<compile_context>
chip_gen: v7x
topology: tpu7x:2x2x1
jax: 0.10.0
libtpu: 0.0.40
codegen_flags: <defaults>
</compile_context>

<pallas_src>
import functools

import numpy as np
import jax
import jax.numpy as jnp
from jax import lax
from jax.experimental import pallas as pl
from jax.experimental.pallas import tpu as pltpu


def window_attention_kernel(x_ref, wqkv_ref, bqkv_ref, bias_ref, wproj_ref,
                            bproj_ref, o_ref, *, num_heads, block_windows,
                            tokens, channels):
    # x_ref:    (G, N, C)   block of G windows
    # wqkv_ref: (3C, C)     torch-layout qkv weight, scale folded into q rows
    # bqkv_ref: (3C, 1)     qkv bias as a column (scale folded into q part)
    # bias_ref: (H, G*N, G*N) block-diag rel-pos bias, -1e9 on cross-window
    # wproj_ref:(C, C)      proj weight transposed (c_in, c_out), hoisted once
    # bproj_ref:(1, C)
    # o_ref:    (G, N, C)
    G, N, C, H = block_windows, tokens, channels, num_heads
    hd = C // H
    M = G * N  # all tokens of all fused windows

    # (G, N, C) -> (M, C): leading-dim merge, free (no relayout).
    x = x_ref[...].reshape(M, C)

    # Fused qkv projection for the whole slab, produced transposed so the
    # (qkv, head) split lands on sublanes instead of the 128-lane axis:
    #   qkvT[o, i] = sum_c Wqkv[o, c] * x[i, c]          -> (3C, M)
    qkvT = lax.dot_general(wqkv_ref[...], x, (((1,), (1,)), ((), ())),
                           preferred_element_type=jnp.float32)
    qkvT = qkvT + bqkv_ref[...]                          # (3C, 1) bcast over M

    # Head split: sublane-tile-aligned slices + free reshapes (no lane shuffles).
    qT = qkvT[0:C].reshape(H, hd, M)                     # (H, hd, M), pre-scaled
    kT = qkvT[C:2 * C].reshape(H, hd, M)
    vT = qkvT[2 * C:3 * C].reshape(H, hd, M)

    # Scores for all heads & all fused windows in one batched contraction
    # (heads = batch dim, contraction over head_dim).
    q_b = jnp.swapaxes(qT, 1, 2)                         # (H, M, hd)
    k_b = jnp.swapaxes(kT, 1, 2)                         # (H, M, hd)
    s = lax.dot_general(q_b, k_b, (((2,), (2,)), ((0,), (0,))),
                        preferred_element_type=jnp.float32)   # (H, M, M)

    # Relative-position bias on same-window (diagonal) blocks, -1e9 elsewhere.
    s = s + bias_ref[...]

    # Softmax over keys, f32, full 128-lane rows; approx reciprocal -> EUP.
    s = s - jnp.max(s, axis=-1, keepdims=True)
    p = jnp.exp(s)                                        # masked entries -> 0.0
    p = p * pl.reciprocal(jnp.sum(p, axis=-1, keepdims=True), approx=True)

    # attention @ V, batched over heads, result kept channel-major:
    #   oT[h, d, i] = sum_j vT[h, d, j] * p[h, i, j]      -> (H, hd, M)
    oT = lax.dot_general(vT, p, (((2,), (2,)), ((0,), (0,))),
                         preferred_element_type=jnp.float32)

    # (H, hd, M) -> (C, M): free merge == torch's transpose(1,2).reshape head
    # concatenation (heads never touch the lane axis).
    oc = oT.reshape(C, M)

    # Output projection back to token-major rows:
    #   y[i, c_out] = sum_c oc[c, i] * Wproj_t[c, c_out] + bproj[c_out]
    y = lax.dot_general(oc, wproj_ref[...], (((0,), (0,)), ((), ())),
                        preferred_element_type=jnp.float32)   # (M, C)
    y = y + bproj_ref[...]

    o_ref[...] = y.reshape(G, N, C).astype(o_ref.dtype)


def pick_block_windows(num_windows, tokens, num_heads,
                       max_score_bytes=4 * 1024 * 1024):
    """Choose G = windows fused per grid step.

    Rules: G divides B_; G is a multiple of 8 (keeps G*N sublane-aligned and
    fills the MXU M dim) unless B_ itself is smaller; the (H, G*N, G*N) masked
    score slab is capped (v7x: 64 MiB physical / 32 MiB default scoped VMEM);
    prefer >= 2 grid steps so v7x's 2 TensorCores both get work.
    """
    candidates = []
    for g in range(1, num_windows + 1):
        if num_windows % g:
            continue
        if g % 8 != 0 and g != num_windows:
            continue
        if num_heads * (g * tokens) ** 2 * 4 > max_score_bytes:
            continue
        candidates.append(g)
    if not candidates:
        return num_windows
    multi = [g for g in candidates if num_windows // g >= 2]
    return max(multi) if multi else max(candidates)


def prepare_params(wqkv, bqkv, wproj, bproj, rel_bias, *, scale, block_windows):
    """One-time weight prep (scale folding, hoisted transpose, masked bias)."""
    C = wproj.shape[0]
    H, N, _ = rel_bias.shape
    G = block_windows
    M = G * N
    # Fold q * scale into the qkv weight / bias once.
    fold = jnp.concatenate([jnp.full((C,), scale, wqkv.dtype),
                            jnp.ones((2 * C,), wqkv.dtype)])
    wqkv_p = wqkv * fold[:, None]                         # (3C, C), torch layout
    bqkv_p = (bqkv * fold).reshape(3 * C, 1)              # column for qkvT
    wproj_t = wproj.T                                     # (C_in, C_out), once
    bproj_p = bproj.reshape(1, C)
    # Block-diagonal relative-position bias + cross-window mask for the fused
    # (G*N, G*N) score slab.
    tiled = jnp.tile(rel_bias, (1, G, G))                 # (H, M, M)
    same_win = (jnp.arange(M)[:, None] // N) == (jnp.arange(M)[None, :] // N)
    bias_big = jnp.where(same_win[None], tiled, jnp.float32(-1e9))
    return wqkv_p, bqkv_p, wproj_t, bproj_p, bias_big.astype(jnp.float32)


def window_attention(x, wqkv_p, bqkv_p, wproj_t, bproj_p, bias_big, *,
                     num_heads, block_windows):
    B_, N, C = x.shape
    G = block_windows
    assert B_ % G == 0, "pick_block_windows guarantees divisibility"
    H = num_heads
    M = G * N

    kernel = functools.partial(window_attention_kernel, num_heads=H,
                               block_windows=G, tokens=N, channels=C)

    return pl.pallas_call(
        kernel,
        out_shape=jax.ShapeDtypeStruct((B_, N, C), x.dtype),
        grid_spec=pltpu.PrefetchScalarGridSpec(
            num_scalar_prefetch=0,
            grid=(B_ // G,),
            in_specs=[
                pl.BlockSpec((G, N, C), lambda b: (b, 0, 0)),       # x
                pl.BlockSpec((3 * C, C), lambda b: (0, 0)),          # wqkv
                pl.BlockSpec((3 * C, 1), lambda b: (0, 0)),          # bqkv col
                pl.BlockSpec((H, M, M), lambda b: (0, 0, 0)),        # masked bias
                pl.BlockSpec((C, C), lambda b: (0, 0)),              # wproj^T
                pl.BlockSpec((1, C), lambda b: (0, 0)),              # bproj
            ],
            out_specs=pl.BlockSpec((G, N, C), lambda b: (b, 0, 0)),
        ),
        compiler_params=pltpu.CompilerParams(
            dimension_semantics=("parallel",)),
    )(x, wqkv_p, bqkv_p, bias_big, wproj_t, bproj_p)


def make_relative_position_index(window_size):
    # Exact replication of the PyTorch buffer construction (including its
    # idiosyncratic use of window_size[1] in the stride multipliers).
    ws = window_size
    coords = np.stack(np.meshgrid(np.arange(ws[0]), np.arange(ws[1]),
                                  np.arange(ws[2]), indexing='ij'))   # (3,S,H,W)
    coords_flat = coords.reshape(3, -1)                               # (3, N)
    rel = coords_flat[:, :, None] - coords_flat[:, None, :]           # (3, N, N)
    rel = rel.transpose(1, 2, 0).copy()                               # (N, N, 3)
    rel[..., 0] += ws[0] - 1
    rel[..., 1] += ws[1] - 1
    rel[..., 2] += ws[2] - 1
    rel[..., 0] *= 3 * ws[1] - 1
    rel[..., 1] *= 2 * ws[1] - 1
    return rel.sum(-1)                                                # (N, N)


def reference(x, wqkv, bqkv, wproj, bproj, rel_bias, *, num_heads, scale):
    B_, N, C = x.shape
    hd = C // num_heads
    qkv = x @ wqkv.T + bqkv
    qkv = qkv.reshape(B_, N, 3, num_heads, hd).transpose(2, 0, 3, 1, 4)
    q, k, v = qkv[0] * scale, qkv[1], qkv[2]
    attn = jnp.einsum('bhnd,bhmd->bhnm', q, k) + rel_bias[None]
    attn = jax.nn.softmax(attn, axis=-1)
    out = jnp.einsum('bhnm,bhmd->bhnd', attn, v)
    out = out.transpose(0, 2, 1, 3).reshape(B_, N, C)
    return out @ wproj.T + bproj


if __name__ == "__main__":
    # Small shapes consistent with the module.
    dim = 32
    num_heads = 4
    window_size = (2, 4, 4)
    N = window_size[0] * window_size[1] * window_size[2]   # 32 tokens / window
    B_ = 16                                                # number of windows
    head_dim = dim // num_heads
    scale = head_dim ** (-0.5)

    key = jax.random.PRNGKey(0)
    k_x, k_tbl, k_wq, k_bq, k_wp, k_bp = jax.random.split(key, 6)

    x = jax.random.normal(k_x, (B_, N, dim), dtype=jnp.float32)

    table_len = ((2 * window_size[0] - 1) * (2 * window_size[1] - 1)
                 * (2 * window_size[2] - 1))
    # trunc_normal_(std=0.02) approximated by a plain normal (synthetic init).
    rel_pos_table = 0.02 * jax.random.normal(
        k_tbl, (table_len, num_heads), dtype=jnp.float32)

    wqkv = 0.1 * jax.random.normal(k_wq, (3 * dim, dim), dtype=jnp.float32)
    bqkv = 0.1 * jax.random.normal(k_bq, (3 * dim,), dtype=jnp.float32)
    wproj = 0.1 * jax.random.normal(k_wp, (dim, dim), dtype=jnp.float32)
    bproj = 0.1 * jax.random.normal(k_bp, (dim,), dtype=jnp.float32)

    # Gather relative position bias -> (H, N, N) (glue, plain JAX).
    rel_idx = jnp.asarray(make_relative_position_index(window_size))   # (N, N)
    rel_bias = rel_pos_table[rel_idx.reshape(-1)].reshape(N, N, num_heads)
    rel_bias = jnp.transpose(rel_bias, (2, 0, 1))                       # (H, N, N)

    G = pick_block_windows(B_, N, num_heads)        # -> 8 (grid of 2 steps)
    params = prepare_params(wqkv, bqkv, wproj, bproj, rel_bias,
                            scale=scale, block_windows=G)

    out = window_attention(x, *params, num_heads=num_heads, block_windows=G)
    out = jax.block_until_ready(out)

    ref = reference(x, wqkv, bqkv, wproj, bproj, rel_bias,
                    num_heads=num_heads, scale=scale)
    # Tolerance loosened slightly for pl.reciprocal(approx=True) in the softmax.
    np.testing.assert_allclose(np.asarray(out), np.asarray(ref),
                               rtol=5e-3, atol=5e-3)
    print("KERNEL_OK")
</pallas_src>

<mosaic_0001>
module attributes {stable_mosaic.version = 11 : i64} {
  func.func @window_attention_kernel(%arg0: i32, %arg1: memref<8x32x32xf32, #tpu.memory_space<vmem>>, %arg2: memref<96x32xf32, #tpu.memory_space<vmem>>, %arg3: memref<96x1xf32, #tpu.memory_space<vmem>>, %arg4: memref<4x256x256xf32, #tpu.memory_space<vmem>>, %arg5: memref<32x32xf32, #tpu.memory_space<vmem>>, %arg6: memref<1x32xf32, #tpu.memory_space<vmem>>, %arg7: memref<8x32x32xf32, #tpu.memory_space<vmem>>) attributes {dimension_semantics = [#tpu.dimension_semantics<parallel>], iteration_bounds = array<i64: 2>, scalar_prefetch = 0 : i64, scratch_operands = 0 : i64, tpu.core_type = #tpu.core_type<tc>, window_params = [{transform_indices = @transform_0, window_bounds = array<i64: 8, 32, 32>}, {pipeline_mode = #tpu.pipeline_mode<synchronous>, transform_indices = @transform_1, window_bounds = array<i64: 96, 32>}, {pipeline_mode = #tpu.pipeline_mode<synchronous>, transform_indices = @transform_2, window_bounds = array<i64: 96, 1>}, {pipeline_mode = #tpu.pipeline_mode<synchronous>, transform_indices = @transform_3, window_bounds = array<i64: 4, 256, 256>}, {pipeline_mode = #tpu.pipeline_mode<synchronous>, transform_indices = @transform_4, window_bounds = array<i64: 32, 32>}, {pipeline_mode = #tpu.pipeline_mode<synchronous>, transform_indices = @transform_5, window_bounds = array<i64: 1, 32>}, {transform_indices = @transform_6, window_bounds = array<i64: 8, 32, 32>}]} {
    %c0 = arith.constant 0 : index
    %c0_0 = arith.constant 0 : index
    %c0_1 = arith.constant 0 : index
    %0 = vector.load %arg1[%c0, %c0_0, %c0_1] : memref<8x32x32xf32, #tpu.memory_space<vmem>>, vector<8x32x32xf32>
    %1 = vector.shape_cast %0 : vector<8x32x32xf32> to vector<256x32xf32>
    %c0_2 = arith.constant 0 : index
    %c0_3 = arith.constant 0 : index
    %2 = vector.load %arg2[%c0_2, %c0_3] : memref<96x32xf32, #tpu.memory_space<vmem>>, vector<96x32xf32>
    %cst = arith.constant dense<0.000000e+00> : vector<96x256xf32>
    %3 = tpu.matmul %2, %1, %cst {dimension_numbers = #tpu.dot_dimension_numbers<[1], [1], [0], [0], [0, 0, 1, 0], [], []>} : vector<96x32xf32>, vector<256x32xf32>, vector<96x256xf32> -> vector<96x256xf32>
    %c0_4 = arith.constant 0 : index
    %c0_5 = arith.constant 0 : index
    %4 = vector.load %arg3[%c0_4, %c0_5] : memref<96x1xf32, #tpu.memory_space<vmem>>, vector<96x1xf32>
    %5 = vector.broadcast %4 : vector<96x1xf32> to vector<96x256xf32>
    %6 = arith.addf %3, %5 : vector<96x256xf32>
    %7 = vector.extract_strided_slice %6 {offsets = [0, 0], sizes = [32, 256], strides = [1, 1]} : vector<96x256xf32> to vector<32x256xf32>
    %8 = vector.shape_cast %7 : vector<32x256xf32> to vector<4x8x256xf32>
    %9 = vector.extract_strided_slice %6 {offsets = [32, 0], sizes = [32, 256], strides = [1, 1]} : vector<96x256xf32> to vector<32x256xf32>
    %10 = vector.shape_cast %9 : vector<32x256xf32> to vector<4x8x256xf32>
    %11 = vector.extract_strided_slice %6 {offsets = [64, 0], sizes = [32, 256], strides = [1, 1]} : vector<96x256xf32> to vector<32x256xf32>
    %12 = vector.shape_cast %11 : vector<32x256xf32> to vector<4x8x256xf32>
    %13 = tpu.transpose %8, [0, 2, 1] : vector<4x8x256xf32> -> vector<4x256x8xf32>
    %14 = tpu.transpose %10, [0, 2, 1] : vector<4x8x256xf32> -> vector<4x256x8xf32>
    %cst_6 = arith.constant dense<0.000000e+00> : vector<4x256x256xf32>
    %15 = tpu.matmul %13, %14, %cst_6 {dimension_numbers = #tpu.dot_dimension_numbers<[2], [2], [1], [1], [0, 0, 0, 1, 1, 1], [0], [0]>} : vector<4x256x8xf32>, vector<4x256x8xf32>, vector<4x256x256xf32> -> vector<4x256x256xf32>
    %c0_7 = arith.constant 0 : index
    %c0_8 = arith.constant 0 : index
    %c0_9 = arith.constant 0 : index
    %16 = vector.load %arg4[%c0_7, %c0_8, %c0_9] : memref<4x256x256xf32, #tpu.memory_space<vmem>>, vector<4x256x256xf32>
    %17 = arith.addf %15, %16 : vector<4x256x256xf32>
    %cst_10 = arith.constant dense<0xFF800000> : vector<4x256xf32>
    %18 = vector.multi_reduction <maximumf>, %17, %cst_10 [2] : vector<4x256x256xf32> to vector<4x256xf32>
    %19 = vector.shape_cast %18 : vector<4x256xf32> to vector<4x256x1xf32>
    %20 = vector.broadcast %19 : vector<4x256x1xf32> to vector<4x256x256xf32>
    %21 = arith.subf %17, %20 : vector<4x256x256xf32>
    %22 = math.exp %21 : vector<4x256x256xf32>
    %cst_11 = arith.constant dense<0.000000e+00> : vector<4x256xf32>
    %23 = vector.multi_reduction <add>, %22, %cst_11 [2] : vector<4x256x256xf32> to vector<4x256xf32>
    %24 = vector.shape_cast %23 : vector<4x256xf32> to vector<4x256x1xf32>
    %25 = tpu.reciprocal %24 {approx = true} : vector<4x256x1xf32> -> vector<4x256x1xf32>
    %26 = vector.broadcast %25 : vector<4x256x1xf32> to vector<4x256x256xf32>
    %27 = arith.mulf %22, %26 : vector<4x256x256xf32>
    %cst_12 = arith.constant dense<0.000000e+00> : vector<4x8x256xf32>
    %28 = tpu.matmul %12, %27, %cst_12 {dimension_numbers = #tpu.dot_dimension_numbers<[2], [2], [1], [1], [0, 0, 0, 1, 1, 1], [0], [0]>} : vector<4x8x256xf32>, vector<4x256x256xf32>, vector<4x8x256xf32> -> vector<4x8x256xf32>
    %29 = vector.shape_cast %28 : vector<4x8x256xf32> to vector<32x256xf32>
    %c0_13 = arith.constant 0 : index
    %c0_14 = arith.constant 0 : index
    %30 = vector.load %arg5[%c0_13, %c0_14] : memref<32x32xf32, #tpu.memory_space<vmem>>, vector<32x32xf32>
    %cst_15 = arith.constant dense<0.000000e+00> : vector<256x32xf32>
    %31 = tpu.matmul %29, %30, %cst_15 {dimension_numbers = #tpu.dot_dimension_numbers<[0], [0], [1], [1], [0, 1, 1, 1], [], []>} : vector<32x256xf32>, vector<32x32xf32>, vector<256x32xf32> -> vector<256x32xf32>
    %c0_16 = arith.constant 0 : index
    %c0_17 = arith.constant 0 : index
    %32 = vector.load %arg6[%c0_16, %c0_17] : memref<1x32xf32, #tpu.memory_space<vmem>>, vector<1x32xf32>
    %33 = vector.broadcast %32 : vector<1x32xf32> to vector<256x32xf32>
    %34 = arith.addf %31, %33 : vector<256x32xf32>
    %35 = vector.shape_cast %34 : vector<256x32xf32> to vector<8x32x32xf32>
    %c0_18 = arith.constant 0 : index
    %c0_19 = arith.constant 0 : index
    %c0_20 = arith.constant 0 : index
    %36 = vector.load %arg7[%c0_18, %c0_19, %c0_20] : memref<8x32x32xf32, #tpu.memory_space<vmem>>, vector<8x32x32xf32>
    tpu.vector_store %arg7[%c0_18, %c0_19, %c0_20], %35 {strides = array<i32>} : memref<8x32x32xf32, #tpu.memory_space<vmem>>, vector<8x32x32xf32>,
    return
  }
  func.func @transform_0(%arg0: i32) -> (i32, i32, i32) {
    %c0_i32 = arith.constant 0 : i32
    %c0_i32_0 = arith.constant 0 : i32
    %c0_i32_1 = arith.constant 0 : i32
    return %arg0, %c0_i32, %c0_i32_0 : i32, i32, i32
  }
  func.func @transform_1(%arg0: i32) -> (i32, i32) {
    %c0_i32 = arith.constant 0 : i32
    %c0_i32_0 = arith.constant 0 : i32
    %c0_i32_1 = arith.constant 0 : i32
    return %c0_i32, %c0_i32_0 : i32, i32
  }
  func.func @transform_2(%arg0: i32) -> (i32, i32) {
    %c0_i32 = arith.constant 0 : i32
    %c0_i32_0 = arith.constant 0 : i32
    %c0_i32_1 = arith.constant 0 : i32
    return %c0_i32, %c0_i32_0 : i32, i32
  }
  func.func @transform_3(%arg0: i32) -> (i32, i32, i32) {
    %c0_i32 = arith.constant 0 : i32
    %c0_i32_0 = arith.constant 0 : i32
    %c0_i32_1 = arith.constant 0 : i32
    %c0_i32_2 = arith.constant 0 : i32
    return %c0_i32, %c0_i32_0, %c0_i32_1 : i32, i32, i32
  }
  func.func @transform_4(%arg0: i32) -> (i32, i32) {
    %c0_i32 = arith.constant 0 : i32
    %c0_i32_0 = arith.constant 0 : i32
    %c0_i32_1 = arith.constant 0 : i32
    return %c0_i32, %c0_i32_0 : i32, i32
  }
  func.func @transform_5(%arg0: i32) -> (i32, i32) {
    %c0_i32 = arith.constant 0 : i32
    %c0_i32_0 = arith.constant 0 : i32
    %c0_i32_1 = arith.constant 0 : i32
    return %c0_i32, %c0_i32_0 : i32, i32
  }
  func.func @transform_6(%arg0: i32) -> (i32, i32, i32) {
    %c0_i32 = arith.constant 0 : i32
    %c0_i32_0 = arith.constant 0 : i32
    %c0_i32_1 = arith.constant 0 : i32
    return %arg0, %c0_i32, %c0_i32_0 : i32, i32, i32
  }
}

</mosaic_0001>

<bundles_post_ra>
// kernel: tpu_custom_call.1
= control target key start
LH: loop header
LB: loop body
LE: loop exit
PB: predicated region body
PF: predicated region fallthrough
CT: control target
= control target key end

     0   :  { %11 = vsyncpa [#allocation3], 0  ;;  %s11104_s0 = inlined_call_operand.hbm [shape: f32[16,32,32], index: 0, kind: input, shape index: {}]   ;;  %s11105_s1 = inlined_call_operand.vmem [shape: f32[96,32], index: 1, kind: input, shape index: {}]   ;;  %s11106_s2 = inlined_call_operand.vmem [shape: f32[96,1], index: 2, kind: input, shape index: {}]   ;;  %s11107_s3 = inlined_call_operand.hbm [shape: f32[4,256,256], index: 3, kind: input, shape index: {}]   ;;  %s11108_s4 = inlined_call_operand.vmem [shape: f32[32,32], index: 4, kind: input, shape index: {}]   ;;  %s11109_s5 = inlined_call_operand.vmem [shape: f32[1,32], index: 5, kind: input, shape index: {}]   ;;  %s11110_s6 = inlined_call_operand.hbm [shape: f32[16,32,32], index: 6, kind: output, shape index: {}]  }
   0x1   :  { %13 = vsyncpa [#allocation3 + $0x1], 0 }
   0x2   :  { %14 = vsyncpa [#allocation6], 0 }
   0x3   :  { %15 = vsyncpa [#allocation4], 0 }
   0x4   :  { %17 = vsyncpa [#allocation4 + $0x1], 0  ;;  %s7029_s21 = smov 0   ;;  %s7031_s22 = smov 0  }
   0x5   :  { %s7033_s23 = smov 0   ;;  %s7035_s24 = smov 0  }
   0x6 LB: > { %s7050_s25 = sadd.s32 4294967295, %s6981_s24   ;;  %s5329_s26 = sadd.s32 4294967294, %s6981_s24   ;;  %s6981_s24 = sphi %s7035_s24, %s12752_s24   ;;  %s6977_s23 = sphi %s7033_s23, %s12751_s23   ;;  %s6973_s22 = sphi %s7031_s22, %s12750_s22   ;;  %s6969_s21 = sphi %s7029_s21, %s12749_s21  }
   0x7   : > { %p43_p0 = scmp.ne.s32.totalorder %s6973_s22, %s6969_s21  ;;  %p11111_p1 = scmp.eq.s32.totalorder %s7050_s25, 0 }
   0x8   : > { %p178_p3 = scmp.eq.s32.totalorder %s5329_s26, 1  ;;  %p5330_p5 = scmp.ge.s32.totalorder %s6981_s24, 1 }
   0x9   : > { %p7059_p4 = por %p11111_p1, %p43_p0  ;;  %p185_p7 = scmp.lt.s32.totalorder %s6981_s24, 3 }
   0xa   : > { %p7064_p6 = por %p178_p3, %p43_p0  ;;  %s6983_s30 = smov [#allocation5]  }
   0xb   : > { %s11589_s27 = scalar_select %p7059_p4, 1, 0 }
   0xc   : > { %s11590_s28 = scalar_select %p7064_p6, 1, 0 }
   0xd   : > { %p7069_p8 = pnand %p5330_p5, %p185_p7  ;;  %s203_s7 = sshll.u32 %s6983_s30, 4  ;;  %s7073_s7 = int_to_ptr.vmem [resolvable:$true] %s203_s7 }
   0xe   : > { %s7085_s9 = sadd.s32 1, %s6981_s24   ;;  %s30_s10 = sadd.s32 1, %s6977_s23 }
   0xf   : > { %s11591_s29 = scalar_select %p7069_p8, 1, 0 }
  0x10   : > { %p6026_p9 = pneg %p7069_p8  ;;  %s27_s11 = ssub.s32 %s6981_s24, %s7085_s9 }
  0x11   : > { %s6853_s14 = scalar_lea.hbm %s11107_s3, 32768 }
  0x12   : > { %p7080_p11 = pnand %p6026_p9, %p11111_p1  ;;  %p6854_p12 = scmp.ne.s32.totalorder %s11107_s3, %s6853_s14 }
  0x13   : > { %p6860_p5 = scmp.lt.u32.totalorder %s6853_s14, %s11107_s3 }
  0x14   : > { %p6855_p13 = pneg %p7080_p11 }
  0x16   : > { %p6856_p0 = pnand %p6855_p13, %p6854_p12 }
  0x18   : > { %p6857_p3 = pneg %p6856_p0 }
  0x1a   : > { %p6862_p7 = pnand %p6860_p5, %p6857_p3 }
  0x1c   : > { %6865 = shalt.err (!%p6862_p7)
}
  0x1d   : > { %s6866_s19 = scalar_lea.vmem %s7073_s7, 32768  ;;  %p6874_p2 = scmp.lt.s32.totalorder %s7073_s7, %s7073_s7 }
  0x1e   : > { %p6867_p9 = scmp.ne.s32.totalorder %s7073_s7, %s6866_s19  ;;  %p6875_p6 = scmp.lt.s32.totalorder %s6866_s19, %s6866_s19 }
  0x20   : > { %p6869_p10 = pnand %p6867_p9, %p6855_p13  ;;  %p6876_p4 = por %p6875_p6, %p6874_p2 }
  0x22   : > { %p6870_p1 = pneg %p6869_p10 }
  0x24   : > { %p6877_p8 = pnand %p6876_p4, %p6870_p1 }
  0x26   : > { %6880 = shalt.err (!%p6877_p8)
}
  0x27   : > { %s6984_s20 = smov 256   ;;  %s6985_s26 = smov 16  }
  0x28   : > { %6029 = dma.hbm_to_vmem [thread:$0]  (!%p7080_p11), %s11107_s3, 32768, %s7073_s7, [#allocation6], %s6984_s20, %s6984_s20, %s6985_s26  }
  0x29   : > { %p28_p2 = scmp.eq.s32.totalorder %s27_s11, 0  ;;  %p37_p1 = scmp.ne.s32.totalorder %s6977_s23, %s6973_s22 }
  0x2a   : > { %p38_p4 = scmp.eq.s32.totalorder %s6981_s24, 0  ;;  %p6039_p6 = scmp.lt.s32.totalorder %s6981_s24, 2 }
  0x2b   : > { %s7116_s13 = scalar_select %p28_p2, %s6977_s23, %s30_s10  }
  0x2c   : > { %p39_p8 = por %p38_p4, %p37_p1  ;;  %p11593_p10 = scmp.eq.s32.totalorder %s7050_s25, 1 }
  0x2d   : > { %s223_s15 = sand.u32 1, %s6977_s23   ;;  %s5553_s16 = sshll.u32 %s6981_s24, 12 }
  0x2e   : > { %p7120_p12 = por %p11593_p10, %p37_p1  ;;  %s5333_s17 = sshll.u32 %s223_s15, 8 }
  0x2f   : > { %s7129_s19 = scalar_lea.hbm %s11104_s0, %s5553_s16  ;;  %s227_s7 = scalar_lea.vmem [#allocation2], %s5333_s17 }
  0x30   : > { %s235_s10 = sshll.u32 %s227_s7, 4  ;;  %p7131_p11 = pnand %p6039_p6, %p39_p8  ;;  %s7135_s10 = int_to_ptr.vmem [resolvable:$true] %s235_s10 }
  0x31   : > { %s7137_s20 = scalar_lea.sflag [#allocation3], %s223_s15  ;;  %s6881_s26 = scalar_lea.hbm %s7129_s19, 4096 }
  0x32   : > { %p6882_p13 = scmp.ne.s32.totalorder %s7129_s19, %s6881_s26  ;;  %p6883_p0 = pneg %p7131_p11 }
  0x33   : > { %s6886_s16 = scalar_lea.hbm %s11104_s0, 8192  ;;  %p6887_p7 = scmp.lt.u32.totalorder %s7129_s19, %s11104_s0 }
  0x34   : > { %p6884_p3 = pnand %p6883_p0, %p6882_p13  ;;  %p6888_p9 = scmp.lt.u32.totalorder %s6886_s16, %s6881_s26 }
  0x35   : > { %p6890_p1 = scmp.lt.u32.totalorder %s6881_s26, %s7129_s19 }
  0x36   : > { %p6885_p5 = pneg %p6884_p3  ;;  %p6889_p2 = por %p6888_p9, %p6887_p7 }
  0x38   : > { %p6891_p4 = por %p6890_p1, %p6889_p2 }
  0x3a   : > { %p6892_p6 = pnand %p6891_p4, %p6885_p5 }
  0x3c   : > { %6895 = shalt.err (!%p6892_p6)
}
  0x3d   : > { %s6896_s15 = scalar_lea.vmem %s7135_s10, 4096  ;;  %s6986_s18 = smov [#allocation2]  }
  0x3e   : > { %p6897_p8 = scmp.ne.s32.totalorder %s7135_s10, %s6896_s15  ;;  %s6901_s7 = sshll.u32 %s6986_s18, 4  ;;  %s6902_s7 = int_to_ptr.vmem [resolvable:$false] %s6901_s7 }
  0x3f   : > { %s6903_s30 = scalar_lea.vmem %s6902_s7, 8192  ;;  %p6904_p3 = scmp.lt.s32.totalorder %s7135_s10, %s6902_s7 }
  0x40   : > { %p6899_p10 = pnand %p6897_p8, %p6883_p0  ;;  %p6905_p7 = scmp.lt.s32.totalorder %s6903_s30, %s6896_s15 }
  0x42   : > { %p6900_p13 = pneg %p6899_p10  ;;  %p6906_p9 = por %p6905_p7, %p6904_p3 }
  0x44   : > { %p6907_p2 = pnand %p6906_p9, %p6900_p13 }
  0x46   : > { %6910 = shalt.err (!%p6907_p2)
}
  0x47   : > { %s6987_s26 = smov 128   ;;  %s6988_s12 = smov 8  }
  0x48   : > { %6033 = dma.hbm_to_vmem [thread:$0]  (!%p7131_p11), %s7129_s19, 4096, %s7135_s10, %s7137_s20, %s6987_s26, %s6987_s26, %s6988_s12  }
  0x49   : > { %p11596_p0 = scmp.ne.s32.totalorder %s11591_s29, 0 }
  0x4b   : > { %247 = sbr.rel (%p11596_p0) target bundleno = 2353 (0x931), region = 44 }
  0x52   : > { %s7168_s16 = sand.u32 1, %s6973_s22   ;;  %p11597_p5 = scmp.ne.s32.totalorder %s11589_s27, 0 }
  0x53   : > { %s5338_s17 = sshll.u32 %s7168_s16, 8  ;;  %s250_s8 = scalar_lea.sflag [#allocation3], %s7168_s16 }
  0x54   : > { %s7174_s15 = scalar_lea.vmem [#allocation2], %s5338_s17 }
  0x55   : > { %6956 = dma.done.wait (%p11597_p5), %s250_s8, 4096  }
  0x56   : > { %6958 = vsyncadd (%p11597_p5), %s250_s8, 4294963200  ;;  %p11598_p11 = scmp.eq.s32.totalorder %s7050_s25, 0 }
  0x58   : > { %6960 = dma.done.wait (%p11598_p11), [#allocation6], 32768   ;;  %p11599_p1 = pmov %p11598_p11 }
  0x59   : > { %v6989_v0 = vmov 0   ;;  %vm404_vm0 = vcmask 261120   ;;  %v304_v2 = vld [vmem:[%s7174_s15 + $0x80] sm:$0xff]  ;;  %v305_v3 = vld [vmem:[%s7174_s15 + $0x88] sm:$0xff]  ;;  %v306_v7 = vld [vmem:[%s7174_s15 + $0x90] sm:$0xff]  ;;  %vm1186_vm2 = vcmask 64512  }
  0x5a   : > { %6962 = vsyncadd (%p11599_p1), [#allocation6], 4294934528  ;;  %6083 = vset.pattern.permute.xlu0 %v6989_v0  ;;  %6084 = vset.pattern.permute.xlu1 %v6989_v0  ;;  %v288_v4 = vld [vmem:[%s7174_s15] sm:$0xff]  ;;  %v5704_v5 = vpack.c.bf16 %v305_v3, %v304_v2  ;;  %v289_v6 = vld [vmem:[%s7174_s15 + $0x8] sm:$0xff]  ;;  %s10957_s18 = scalar_lea.vmem [#allocation7], %s5338_s17  ;;  %s5555_s17 = sshll.u32 %s7050_s25, 12 }
  0x5b   : > { %vm7186_vm1 = vmpackc.low %vm404_vm0, %vm404_vm0  ;;  %v307_v8 = vld [vmem:[%s7174_s15 + $0x98] sm:$0xff]  ;;  %v5707_v9 = vpack.c.bf16 %v289_v6, %v288_v4  ;;  %v290_v11 = vld [vmem:[%s7174_s15 + $0x10] sm:$0xff]  ;;  %s5246_s7 = sshll.u32 %s10957_s18, 4  ;;  %s11053_s12 = scalar_lea.hbm %s11110_s6, %s5555_s17  ;;  %s11055_s7 = int_to_ptr.vmem [resolvable:$true] %s5246_s7 }
  0x5c   : > { %v5710_v10 = vpack.c.bf16 %v307_v8, %v306_v7  ;;  %5706 = vmatprep.subr.msk.bf16.mxu0 %vm7186_vm1, %v5704_v5  ;;  %v291_v12 = vld [vmem:[%s7174_s15 + $0x18] sm:$0xff]  ;;  %v308_v13 = vld [vmem:[%s7174_s15 + $0xa0] sm:$0xff]  ;;  %v309_v14 = vld [vmem:[%s7174_s15 + $0xa8] sm:$0xff]  ;;  %v11114_v8 = vmov 0.0   ;;  %s5232_s25 = scalar_lea.sflag [#allocation4], %s7168_s16  ;;  %s6911_s8 = scalar_lea.vmem %s11055_s7, 4096 }
  0x5d   : > { %5709 = vmatpush3.bf16.xpose.msk.msra.mxu0 %vm7186_vm1, %v5707_v9  ;;  %v5713_v15 = vpack.c.bf16 %v291_v12, %v290_v11  ;;  %v5716_v16 = vpack.c.bf16 %v309_v14, %v308_v13  ;;  %v320_v17 = vld [vmem:[%s11105_s1] sm:$0xff]  ;;  %v293_v20 = vld [vmem:[%s7174_s15 + $0x28] sm:$0xff]  ;;  %v310_v22 = vld [vmem:[%s7174_s15 + $0xb0] sm:$0xff]  ;;  %1347 = vmatprep.mubr.f32.mxu1 %v11114_v8  ;;  %p6912_p4 = scmp.ne.s32.totalorder %s11055_s7, %s6911_s8  ;;  %s6991_s27 = smov [#allocation7]  }
  0x5e   : > { %5712 = vmatprep.subr.msk.bf16.mxu0 %vm7186_vm1, %v5710_v10  ;;  %5588 = vmatprep.mubr.msk.f32.mxu0 %vm404_vm0, %v320_v17  ;;  %v332_v18 = vld [vmem:[%s11106_s2] sm:$0xff]  ;;  %v311_v23 = vld [vmem:[%s7174_s15 + $0xb8] sm:$0xff]  ;;  %v333_v24 = vld [vmem:[%s11106_s2 + $0x8] sm:$0xff]  ;;  %s6915_s29 = sshll.u32 %s6991_s27, 4  ;;  %s6916_s29 = int_to_ptr.vmem [resolvable:$false] %s6915_s29 }
  0x5f   : > { %v292_v19 = vld [vmem:[%s7174_s15 + $0x20] sm:$0xff]  ;;  %346 = vperm.xlu0 %6083, %v332_v18   ;;  %v337_v25 = vld [vmem:[%s11106_s2 + $0x28] sm:$0xff]  ;;  %v5722_v27 = vpack.c.bf16 %v311_v23, %v310_v22  ;;  %v335_v28 = vld [vmem:[%s11106_s2 + $0x18] sm:$0xff]  ;;  %p6913_p6 = pnand %p6912_p4, %p7120_p12  ;;  %s6917_s19 = scalar_lea.vmem %s6916_s29, 8192 }
  0x60   : > { %v336_v21 = vld [vmem:[%s11106_s2 + $0x20] sm:$0xff]  ;;  %v5719_v26 = vpack.c.bf16 %v293_v20, %v292_v19  ;;  %v334_v29 = vld [vmem:[%s11106_s2 + $0x10] sm:$0xff]  ;;  %v295_v31 = vld [vmem:[%s7174_s15 + $0x38] sm:$0xff]  ;;  %p6918_p10 = scmp.lt.s32.totalorder %s11055_s7, %s6916_s29  ;;  %p6919_p13 = scmp.lt.s32.totalorder %s6917_s19, %s6911_s8 }
  0x61   : > { %366 = vperm.xlu1 %6084, %v336_v21   ;;  %v294_v30 = vld [vmem:[%s7174_s15 + $0x30] sm:$0xff]  ;;  %v312_v32 = vld [vmem:[%s7174_s15 + $0xc0] sm:$0xff]  ;;  %v313_v33 = vld [vmem:[%s7174_s15 + $0xc8] sm:$0xff]  ;;  %p6914_p8 = pneg %p6913_p6 }
  0x62   : > { %v5725_v34 = vpack.c.bf16 %v295_v31, %v294_v30  ;;  %v5728_v35 = vpack.c.bf16 %v313_v33, %v312_v32  ;;  %v296_v36 = vld [vmem:[%s7174_s15 + $0x40] sm:$0xff]  ;;  %v297_v37 = vld [vmem:[%s7174_s15 + $0x48] sm:$0xff]  ;;  %v314_v38 = vld [vmem:[%s7174_s15 + $0xd0] sm:$0xff]  ;;  %p6920_p3 = por %p6919_p13, %p6918_p10 }
  0x63   : > { %351 = vperm.xlu0 %6083, %v333_v24   ;;  %v315_v39 = vld [vmem:[%s7174_s15 + $0xd8] sm:$0xff]  ;;  %v5731_v40 = vpack.c.bf16 %v297_v37, %v296_v36  ;;  %v298_v42 = vld [vmem:[%s7174_s15 + $0x50] sm:$0xff]  ;;  %v316_v44 = vld [vmem:[%s7174_s15 + $0xe0] sm:$0xff] }
  0x64   : > { %v5734_v41 = vpack.c.bf16 %v315_v39, %v314_v38  ;;  %v299_v43 = vld [vmem:[%s7174_s15 + $0x58] sm:$0xff]  ;;  %v317_v45 = vld [vmem:[%s7174_s15 + $0xe8] sm:$0xff]  ;;  %v300_v48 = vld [vmem:[%s7174_s15 + $0x60] sm:$0xff]  ;;  %p6921_p7 = pnand %p6920_p3, %p6914_p8 }
  0x65   : > { %5715 = vmatpush3.bf16.xpose.msk.msra.mxu0 %vm7186_vm1, %v5713_v15  ;;  %371 = vperm.xlu1 %6084, %v337_v25   ;;  %v5737_v46 = vpack.c.bf16 %v299_v43, %v298_v42  ;;  %v5740_v47 = vpack.c.bf16 %v317_v45, %v316_v44  ;;  %v301_v49 = vld [vmem:[%s7174_s15 + $0x68] sm:$0xff]  ;;  %v318_v50 = vld [vmem:[%s7174_s15 + $0xf0] sm:$0xff]  ;;  %v319_v51 = vld [vmem:[%s7174_s15 + $0xf8] sm:$0xff] }
  0x66   : > { %5718 = vmatprep.subr.msk.bf16.mxu0 %vm7186_vm1, %v5716_v16  ;;  %v5743_v52 = vpack.c.bf16 %v301_v49, %v300_v48  ;;  %v5746_v53 = vpack.c.bf16 %v319_v51, %v318_v50  ;;  %v302_v54 = vld [vmem:[%s7174_s15 + $0x70] sm:$0xff]  ;;  %v303_v55 = vld [vmem:[%s7174_s15 + $0x78] sm:$0xff]  ;;  %v321_v57 = vld [vmem:[%s11105_s1 + $0x8] sm:$0xff] }
  0x67   : > { %361 = vperm.xlu0 %6083, %v335_v28   ;;  %v5749_v56 = vpack.c.bf16 %v303_v55, %v302_v54  ;;  %v322_v58 = vld [vmem:[%s11105_s1 + $0x10] sm:$0xff]  ;;  %v323_v59 = vld [vmem:[%s11105_s1 + $0x18] sm:$0xff]  ;;  %v324_v60 = vld [vmem:[%s11105_s1 + $0x20] sm:$0xff] }
  0x68   : > { %v325_v61 = vld [vmem:[%s11105_s1 + $0x28] sm:$0xff]  ;;  %v326_v62 = vld [vmem:[%s11105_s1 + $0x30] sm:$0xff]  ;;  %v327_v63 = vld [vmem:[%s11105_s1 + $0x38] sm:$0xff] }
  0x69   : > { %356 = vperm.xlu1 %6084, %v334_v29   ;;  %v328_v0 = vld [vmem:[%s11105_s1 + $0x40] sm:$0xff]  ;;  %v329_v1 = vld [vmem:[%s11105_s1 + $0x48] sm:$0xff]  ;;  %v330_v2 = vld [vmem:[%s11105_s1 + $0x50] sm:$0xff] }
  0x6a   : > { %v331_v7 = vld [vmem:[%s11105_s1 + $0x58] sm:$0xff] }
  0x6d   : > { %5721 = vmatpush3.bf16.xpose.msk.msra.mxu0 %vm7186_vm1, %v5719_v26 }
  0x6e   : > { %5724 = vmatprep.subr.msk.bf16.mxu0 %vm7186_vm1, %v5722_v27 }
  0x75   : > { %5727 = vmatpush3.bf16.xpose.msk.msra.mxu0 %vm7186_vm1, %v5725_v34 }
  0x76   : > { %5730 = vmatprep.subr.msk.bf16.mxu0 %vm7186_vm1, %v5728_v35 }
  0x7d   : > { %5733 = vmatpush3.bf16.xpose.msk.msra.mxu0 %vm7186_vm1, %v5731_v40 }
  0x7e   : > { %5736 = vmatprep.subr.msk.bf16.mxu0 %vm7186_vm1, %v5734_v41 }
  0x85   : > { %5739 = vmatpush3.bf16.xpose.msk.msra.mxu0 %vm7186_vm1, %v5737_v46 }
  0x86   : > { %5742 = vmatprep.subr.msk.bf16.mxu0 %vm7186_vm1, %v5740_v47 }
  0x8d   : > { %5745 = vmatpush3.bf16.xpose.msk.msra.mxu0 %vm7186_vm1, %v5743_v52 }
  0x8e   : > { %5748 = vmatprep.subr.msk.bf16.mxu0 %vm7186_vm1, %v5746_v53 }
  0x95   : > { %5751 = vmatpush3.bf16.xpose.msk.msra.mxu0 %vm7186_vm1, %v5749_v56 }
  0x9c   : > { %5589 = vmatmul.mubr.msk.f32.vlgmr.msra.gmra.mrb[0].mxu0 %vm404_vm0, %v320_v17 }
  0x9d   : > { %5590 = vmatprep.mubr.msk.f32.mxu0 %vm404_vm0, %v321_v57 }
  0xa0   : > { %5591 = vmatmul.mubr.msk.f32.gmra.mrb[2].mxu0 %vm404_vm0, %v321_v57 }
  0xa1   : > { %5592 = vmatprep.mubr.msk.f32.mxu0 %vm404_vm0, %v322_v58 }
  0xa4   : > { %5593 = vmatmul.mubr.msk.f32.gmra.mrb[4].mxu0 %vm404_vm0, %v322_v58 }
  0xa5   : > { %5594 = vmatprep.mubr.msk.f32.mxu0 %vm404_vm0, %v323_v59 }
  0xa8   : > { %5595 = vmatmul.mubr.msk.f32.gmra.mrb[6].mxu0 %vm404_vm0, %v323_v59 }
  0xa9   : > { %5596 = vmatprep.mubr.msk.f32.mxu0 %vm404_vm0, %v324_v60 }
  0xac   : > { %5597 = vmatmul.mubr.msk.f32.gmra.mrb[8].mxu0 %vm404_vm0, %v324_v60 }
  0xad   : > { %5598 = vmatprep.mubr.msk.f32.mxu0 %vm404_vm0, %v325_v61 }
  0xb0   : > { %5599 = vmatmul.mubr.msk.f32.gmra.mrb[10].mxu0 %vm404_vm0, %v325_v61 }
  0xb1   : > { %5600 = vmatprep.mubr.msk.f32.mxu0 %vm404_vm0, %v326_v62 }
  0xb4   : > { %5601 = vmatmul.mubr.msk.f32.gmra.mrb[12].mxu0 %vm404_vm0, %v326_v62 }
  0xb5   : > { %5602 = vmatprep.mubr.msk.f32.mxu0 %vm404_vm0, %v327_v63 }
  0xb8   : > { %5603 = vmatmul.mubr.msk.f32.gmra.mrb[14].mxu0 %vm404_vm0, %v327_v63 }
  0xb9   : > { %5604 = vmatprep.mubr.msk.f32.mxu0 %vm404_vm0, %v328_v0 }
  0xbc   : > { %5605 = vmatmul.mubr.msk.f32.gmra.mrb[16].mxu0 %vm404_vm0, %v328_v0 }
  0xbd   : > { %5606 = vmatprep.mubr.msk.f32.mxu0 %vm404_vm0, %v329_v1 }
  0xc0   : > { %5607 = vmatmul.mubr.msk.f32.gmra.mrb[18].mxu0 %vm404_vm0, %v329_v1 }
  0xc1   : > { %5608 = vmatprep.mubr.msk.f32.mxu0 %vm404_vm0, %v330_v2 }
  0xc4   : > { %5609 = vmatmul.mubr.msk.f32.gmra.mrb[20].mxu0 %vm404_vm0, %v330_v2 }
  0xc5   : > { %5610 = vmatprep.mubr.msk.f32.mxu0 %vm404_vm0, %v331_v7 }
  0xc8   : > { %5611 = vmatmul.mubr.msk.f32.gmra.mrb[22].mxu0 %vm404_vm0, %v331_v7 }
  0xc9   : > { %1700 = vmatprep.mubr.f32.mxu0 %v11114_v8 }
  0xde   : > { %v347_v3 = vpop.permute.xlu0 %346 }
  0xe0   : > { %v367_v17 = vpop.permute.xlu1 %366 }
  0xe2   : > { %v352_v9 = vpop.permute.xlu0 %351 }
  0xe4   : > { %v372_v22 = vpop.permute.xlu1 %371 }
  0xe6   : > { %v7338_v31 = vpop.permute.xlu0 %361 }
  0xe8   : > { %v357_v29 = vpop.permute.xlu1 %356 }
 0x16f   : > { %v603_v4 = vpop.f32.mrb[0].mxu0 }
 0x170   : > { %v604_v5 = vadd.f32 %v603_v4, %v347_v3  ;;  %v605_v6 = vpop.f32.mrb[1].mxu0 }
 0x171   : > { %v606_v27 = vadd.f32 %v605_v6, %v347_v3 }
 0x172   : > { %674 = vxpose.xlu0.b32.start.end [1/1] (short) %v604_v5, 128 }
 0x173   : > { %v609_v10 = vpop.f32.mrb[2].mxu0 }
 0x174   : > { %v610_v11 = vadd.f32 %v609_v10, %v352_v9  ;;  %v611_v12 = vpop.f32.mrb[3].mxu0 }
 0x175   : > { %v612_v28 = vadd.f32 %v611_v12, %v352_v9 }
 0x176   : > { %738 = vxpose.xlu1.b32.start.end [1/1] (short) %v610_v11, 128 }
 0x177   : > { %v615_v13 = vpop.f32.mrb[4].mxu0 }
 0x178   : > { %v617_v14 = vpop.f32.mrb[5].mxu0  ;;  %v616_v30 = vadd.f32 %v615_v13, %v357_v29 }
 0x179   : > { %v618_v32 = vadd.f32 %v617_v14, %v357_v29  ;;  %v340_v29 = vld [vmem:[%s11106_s2 + $0x40] sm:$0xff] }
 0x17b   : > { %v7334_v15 = vpop.f32.mrb[6].mxu0 }
 0x17c   : > { %v7336_v16 = vpop.f32.mrb[7].mxu0  ;;  %v622_v60 = vadd.f32 %v7334_v15, %v7338_v31 }
 0x17f   : > { %v627_v18 = vpop.f32.mrb[8].mxu0 }
 0x180   : > { %v628_v19 = vadd.f32 %v627_v18, %v367_v17  ;;  %v629_v20 = vpop.f32.mrb[9].mxu0 }
 0x181   : > { %v630_v21 = vadd.f32 %v629_v20, %v367_v17 }
 0x183   : > { %v633_v23 = vpop.f32.mrb[10].mxu0  ;;  %1283 = vmatprep.subr.mxu1 %v630_v21 }
 0x184   : > { %v634_v24 = vadd.f32 %v633_v23, %v372_v22  ;;  %v635_v25 = vpop.f32.mrb[11].mxu0  ;;  %1284 = vmatpush1.msra.mxu1 %v628_v19 }
 0x185   : > { %v636_v26 = vadd.f32 %v635_v25, %v372_v22 }
 0x187   : > { %1636 = vmatprep.subr.mxu0 %v636_v26  ;;  %6016 = vmatprep.subr.mxu1 %v636_v26  ;;  %v7398_v63 = vpop.f32.mrb[12].mxu0 }
 0x188   : > { %1637 = vmatpush1.msra.mxu0 %v634_v24  ;;  %v7402_v0 = vpop.f32.mrb[13].mxu0 }
 0x18b   : > { %v7404_v1 = vpop.f32.mrb[14].mxu0 }
 0x18c   : > { %v7408_v4 = vpop.f32.mrb[15].mxu0 }
 0x18f   : > { %v7412_v5 = vpop.f32.mrb[16].mxu0 }
 0x190   : > { %11602 = vst [vmem:[#allocation11_spill] sm:$0xff] %v7412_v5  ;;  %v7414_v6 = vpop.f32.mrb[17].mxu0 }
 0x193   : > { %v7418_v10 = vpop.f32.mrb[18].mxu0 }
 0x194   : > { %11603 = vst [vmem:[#allocation12_spill] sm:$0xff] %v7418_v10  ;;  %v7422_v11 = vpop.f32.mrb[19].mxu0 }
 0x195   : > { %11604 = vst [vmem:[#allocation13_spill] sm:$0xff] %v7422_v11 }
 0x197   : > { %v7436_v19 = vpop.f32.mrb[20].mxu0 }
 0x198   : > { %11605 = vst [vmem:[#allocation14_spill] sm:$0xff] %v7436_v19  ;;  %v7447_v25 = vpop.f32.mrb[21].mxu0 }
 0x199   : > { %11606 = vst [vmem:[#allocation15_spill] sm:$0xff] %v7447_v25  ;;  %v11620_v25 = vmov 0.0  }
 0x19b   : > { %v7451_v26 = vpop.f32.mrb[22].mxu0 }
 0x19c   : > { %11607 = vst [vmem:[#allocation16_spill] sm:$0xff] %v7451_v26  ;;  %v339_v26 = vld [vmem:[%s11106_s2 + $0x38] sm:$0xff] }
 0x1af   : > { %706 = vxpose.xlu0.b32.start.end [1/1] (short) %v606_v27, 128 }
 0x1b3   : > { %770 = vxpose.xlu1.b32.start.end [1/1] (short) %v612_v28, 128 }
 0x1ec   : > { %802 = vxpose.xlu0.b32.start.end [1/1] (short) %v616_v30, 128  ;;  %v7458_v30 = vpop.f32.mrb[23].mxu0 }
 0x1ed   : > { %11608 = vst [vmem:[#allocation17_spill] sm:$0xff] %v7458_v30 }
 0x1f0   : > { %834 = vxpose.xlu1.b32.start.end [1/1] (short) %v618_v32, 128 }
 0x1f2   : > { %v690_v33 = vpop.trf.xlu0 }
 0x1f3   : > { %5385 = vmatmul.mubr.msk.f32.vlgmr.msra.gmra.mrb[0].mxu1 %vm1186_vm2, %v690_v33 }
 0x1f4   : > { %6017 = vmatpush1.msra.mxu1 %v634_v24  ;;  %1353 = vmatprep.mubr.f32.mxu1 %v11114_v8  ;;  %v338_v24 = vld [vmem:[%s11106_s2 + $0x30] sm:$0xff] }
 0x1f6   : > { %v754_v34 = vpop.trf.xlu1  ;;  %v691_v35 = vpop.trf.xlu0 }
 0x1f7   : > { %5386 = vmatmul.mubr.msk.f32.gmra.mrb[2].mxu1 %vm1186_vm2, %v691_v35  ;;  %5417 = vmatmul.mubr.msk.f32.vlgmr.msra.gmra.mrb[24].mxu0 %vm1186_vm2, %v754_v34 }
 0x1f8   : > { %1706 = vmatprep.mubr.f32.mxu0 %v11114_v8  ;;  %1359 = vmatprep.mubr.f32.mxu1 %v11114_v8 }
 0x1fa   : > { %v755_v36 = vpop.trf.xlu1  ;;  %v692_v37 = vpop.trf.xlu0 }
 0x1fb   : > { %5387 = vmatmul.mubr.msk.f32.gmra.mrb[4].mxu1 %vm1186_vm2, %v692_v37  ;;  %5418 = vmatmul.mubr.msk.f32.gmra.mrb[26].mxu0 %vm1186_vm2, %v755_v36 }
 0x1fc   : > { %1365 = vmatprep.mubr.f32.mxu1 %v11114_v8  ;;  %1712 = vmatprep.mubr.f32.mxu0 %v11114_v8 }
 0x1fe   : > { %v693_v38 = vpop.trf.xlu0  ;;  %v756_v39 = vpop.trf.xlu1 }
 0x1ff   : > { %5388 = vmatmul.mubr.msk.f32.gmra.mrb[6].mxu1 %vm1186_vm2, %v693_v38  ;;  %5419 = vmatmul.mubr.msk.f32.gmra.mrb[28].mxu0 %vm1186_vm2, %v756_v39 }
 0x200   : > { %1371 = vmatprep.mubr.f32.mxu1 %v11114_v8  ;;  %1718 = vmatprep.mubr.f32.mxu0 %v11114_v8 }
 0x202   : > { %v694_v40 = vpop.trf.xlu0  ;;  %v757_v41 = vpop.trf.xlu1 }
 0x203   : > { %5389 = vmatmul.mubr.msk.f32.gmra.mrb[8].mxu1 %vm1186_vm2, %v694_v40  ;;  %5420 = vmatmul.mubr.msk.f32.gmra.mrb[30].mxu0 %vm1186_vm2, %v757_v41 }
 0x204   : > { %1377 = vmatprep.mubr.f32.mxu1 %v11114_v8  ;;  %1724 = vmatprep.mubr.f32.mxu0 %v11114_v8 }
 0x206   : > { %v695_v42 = vpop.trf.xlu0  ;;  %v758_v43 = vpop.trf.xlu1 }
 0x207   : > { %5390 = vmatmul.mubr.msk.f32.gmra.mrb[10].mxu1 %vm1186_vm2, %v695_v42  ;;  %5421 = vmatmul.mubr.msk.f32.gmra.mrb[32].mxu0 %vm1186_vm2, %v758_v43 }
 0x208   : > { %1383 = vmatprep.mubr.f32.mxu1 %v11114_v8  ;;  %1730 = vmatprep.mubr.f32.mxu0 %v11114_v8 }
 0x20a   : > { %v696_v44 = vpop.trf.xlu0  ;;  %v759_v45 = vpop.trf.xlu1 }
 0x20b   : > { %5391 = vmatmul.mubr.msk.f32.gmra.mrb[12].mxu1 %vm1186_vm2, %v696_v44  ;;  %5422 = vmatmul.mubr.msk.f32.gmra.mrb[34].mxu0 %vm1186_vm2, %v759_v45 }
 0x20c   : > { %1389 = vmatprep.mubr.f32.mxu1 %v11114_v8  ;;  %1736 = vmatprep.mubr.f32.mxu0 %v11114_v8 }
 0x20e   : > { %v697_v46 = vpop.trf.xlu0  ;;  %v760_v47 = vpop.trf.xlu1 }
 0x20f   : > { %5392 = vmatmul.mubr.msk.f32.gmra.mrb[14].mxu1 %vm1186_vm2, %v697_v46  ;;  %5423 = vmatmul.mubr.msk.f32.gmra.mrb[36].mxu0 %vm1186_vm2, %v760_v47  ;;  %v624_v46 = vadd.f32 %v7336_v16, %v7338_v31 }
 0x210   : > { %1395 = vmatprep.mubr.f32.mxu1 %v11114_v8  ;;  %1742 = vmatprep.mubr.f32.mxu0 %v11114_v8 }
 0x212   : > { %v698_v48 = vpop.trf.xlu0  ;;  %v761_v49 = vpop.trf.xlu1 }
 0x213   : > { %5393 = vmatmul.mubr.msk.f32.gmra.mrb[16].mxu1 %vm1186_vm2, %v698_v48  ;;  %5424 = vmatmul.mubr.msk.f32.gmra.mrb[38].mxu0 %vm1186_vm2, %v761_v49 }
 0x214   : > { %1401 = vmatprep.mubr.f32.mxu1 %v11114_v8  ;;  %1748 = vmatprep.mubr.f32.mxu0 %v11114_v8 }
 0x216   : > { %v699_v50 = vpop.trf.xlu0  ;;  %v762_v51 = vpop.trf.xlu1 }
 0x217   : > { %5394 = vmatmul.mubr.msk.f32.gmra.mrb[18].mxu1 %vm1186_vm2, %v699_v50  ;;  %5425 = vmatmul.mubr.msk.f32.gmra.mrb[40].mxu0 %vm1186_vm2, %v762_v51 }
 0x218   : > { %1407 = vmatprep.mubr.f32.mxu1 %v11114_v8  ;;  %1754 = vmatprep.mubr.f32.mxu0 %v11114_v8 }
 0x21a   : > { %v700_v52 = vpop.trf.xlu0  ;;  %v763_v53 = vpop.trf.xlu1 }
 0x21b   : > { %5395 = vmatmul.mubr.msk.f32.gmra.mrb[20].mxu1 %vm1186_vm2, %v700_v52  ;;  %5426 = vmatmul.mubr.msk.f32.gmra.mrb[42].mxu0 %vm1186_vm2, %v763_v53 }
 0x21c   : > { %1413 = vmatprep.mubr.f32.mxu1 %v11114_v8  ;;  %1760 = vmatprep.mubr.f32.mxu0 %v11114_v8 }
 0x21e   : > { %v701_v54 = vpop.trf.xlu0  ;;  %v764_v55 = vpop.trf.xlu1 }
 0x21f   : > { %5396 = vmatmul.mubr.msk.f32.gmra.mrb[22].mxu1 %vm1186_vm2, %v701_v54  ;;  %5427 = vmatmul.mubr.msk.f32.gmra.mrb[44].mxu0 %vm1186_vm2, %v764_v55 }
 0x220   : > { %1419 = vmatprep.mubr.f32.mxu1 %v11114_v8  ;;  %1766 = vmatprep.mubr.f32.mxu0 %v11114_v8 }
 0x222   : > { %v702_v56 = vpop.trf.xlu0  ;;  %v765_v57 = vpop.trf.xlu1 }
 0x223   : > { %5397 = vmatmul.mubr.msk.f32.gmra.mrb[24].mxu1 %vm1186_vm2, %v702_v56  ;;  %5428 = vmatmul.mubr.msk.f32.gmra.mrb[46].mxu0 %vm1186_vm2, %v765_v57 }
 0x224   : > { %1425 = vmatprep.mubr.f32.mxu1 %v11114_v8  ;;  %1772 = vmatprep.mubr.f32.mxu0 %v11114_v8 }
 0x226   : > { %v703_v58 = vpop.trf.xlu0  ;;  %v766_v59 = vpop.trf.xlu1 }
 0x227   : > { %5398 = vmatmul.mubr.msk.f32.gmra.mrb[26].mxu1 %vm1186_vm2, %v703_v58  ;;  %5429 = vmatmul.mubr.msk.f32.gmra.mrb[48].mxu0 %vm1186_vm2, %v766_v59 }
 0x228   : > { %1431 = vmatprep.mubr.f32.mxu1 %v11114_v8  ;;  %1778 = vmatprep.mubr.f32.mxu0 %v11114_v8 }
 0x22a   : > { %v704_v61 = vpop.trf.xlu0  ;;  %866 = vxpose.xlu0.b32.start.end [1/1] (short) %v622_v60, 128  ;;  %v767_v62 = vpop.trf.xlu1 }
 0x22b   : > { %5399 = vmatmul.mubr.msk.f32.gmra.mrb[28].mxu1 %vm1186_vm2, %v704_v61  ;;  %5430 = vmatmul.mubr.msk.f32.gmra.mrb[50].mxu0 %vm1186_vm2, %v767_v62 }
 0x22c   : > { %1437 = vmatprep.mubr.f32.mxu1 %v11114_v8  ;;  %1784 = vmatprep.mubr.f32.mxu0 %v11114_v8 }
 0x22e   : > { %v705_v2 = vpop.trf.xlu0  ;;  %v768_v3 = vpop.trf.xlu1 }
 0x22f   : > { %5400 = vmatmul.mubr.msk.f32.gmra.mrb[30].mxu1 %vm1186_vm2, %v705_v2  ;;  %5431 = vmatmul.mubr.msk.f32.gmra.mrb[52].mxu0 %vm1186_vm2, %v768_v3 }
 0x230   : > { %1443 = vmatprep.mubr.f32.mxu1 %v11114_v8  ;;  %1790 = vmatprep.mubr.f32.mxu0 %v11114_v8 }
 0x232   : > { %v722_v7 = vpop.trf.xlu0  ;;  %v769_v9 = vpop.trf.xlu1 }
 0x233   : > { %5401 = vmatmul.mubr.msk.f32.gmra.mrb[32].mxu1 %vm1186_vm2, %v722_v7  ;;  %5432 = vmatmul.mubr.msk.f32.gmra.mrb[54].mxu0 %vm1186_vm2, %v769_v9 }
 0x234   : > { %1449 = vmatprep.mubr.f32.mxu1 %v11114_v8  ;;  %1796 = vmatprep.mubr.f32.mxu0 %v11114_v8 }
 0x236   : > { %v723_v12 = vpop.trf.xlu0  ;;  %v786_v13 = vpop.trf.xlu1 }
 0x237   : > { %5402 = vmatmul.mubr.msk.f32.gmra.mrb[34].mxu1 %vm1186_vm2, %v723_v12  ;;  %5433 = vmatmul.mubr.msk.f32.gmra.mrb[56].mxu0 %vm1186_vm2, %v786_v13 }
 0x238   : > { %1455 = vmatprep.mubr.f32.mxu1 %v11114_v8  ;;  %1802 = vmatprep.mubr.f32.mxu0 %v11114_v8 }
 0x23a   : > { %v724_v14 = vpop.trf.xlu0  ;;  %v787_v15 = vpop.trf.xlu1 }
 0x23b   : > { %5403 = vmatmul.mubr.msk.f32.gmra.mrb[36].mxu1 %vm1186_vm2, %v724_v14  ;;  %5434 = vmatmul.mubr.msk.f32.gmra.mrb[58].mxu0 %vm1186_vm2, %v787_v15 }
 0x23c   : > { %1461 = vmatprep.mubr.f32.mxu1 %v11114_v8  ;;  %1808 = vmatprep.mubr.f32.mxu0 %v11114_v8 }
 0x23e   : > { %v725_v17 = vpop.trf.xlu0  ;;  %v788_v18 = vpop.trf.xlu1 }
 0x23f   : > { %5404 = vmatmul.mubr.msk.f32.gmra.mrb[38].mxu1 %vm1186_vm2, %v725_v17  ;;  %5435 = vmatmul.mubr.msk.f32.gmra.mrb[60].mxu0 %vm1186_vm2, %v788_v18 }
 0x240   : > { %1467 = vmatprep.mubr.f32.mxu1 %v11114_v8  ;;  %1814 = vmatprep.mubr.f32.mxu0 %v11114_v8 }
 0x242   : > { %v726_v20 = vpop.trf.xlu0  ;;  %v789_v21 = vpop.trf.xlu1 }
 0x243   : > { %5405 = vmatmul.mubr.msk.f32.gmra.mrb[40].mxu1 %vm1186_vm2, %v726_v20  ;;  %5436 = vmatmul.mubr.msk.f32.gmra.mrb[62].mxu0 %vm1186_vm2, %v789_v21 }
 0x244   : > { %1473 = vmatprep.mubr.f32.mxu1 %v11114_v8  ;;  %1820 = vmatprep.mubr.f32.mxu0 %v11114_v8 }
 0x246   : > { %v727_v22 = vpop.trf.xlu0  ;;  %v790_v23 = vpop.trf.xlu1 }
 0x247   : > { %5406 = vmatmul.mubr.msk.f32.gmra.mrb[42].mxu1 %vm1186_vm2, %v727_v22  ;;  %5437 = vmatmul.mubr.msk.f32.gmra.mrb[64].mxu0 %vm1186_vm2, %v790_v23 }
 0x248   : > { %1479 = vmatprep.mubr.f32.mxu1 %v11114_v8  ;;  %1826 = vmatprep.mubr.f32.mxu0 %v11114_v8 }
 0x24a   : > { %376 = vperm.xlu1 %6084, %v338_v24   ;;  %v728_v27 = vpop.trf.xlu0  ;;  %v791_v28 = vpop.trf.xlu1 }
 0x24b   : > { %5407 = vmatmul.mubr.msk.f32.gmra.mrb[44].mxu1 %vm1186_vm2, %v728_v27  ;;  %5438 = vmatmul.mubr.msk.f32.gmra.mrb[66].mxu0 %vm1186_vm2, %v791_v28 }
 0x24c   : > { %1485 = vmatprep.mubr.f32.mxu1 %v11114_v8  ;;  %1832 = vmatprep.mubr.f32.mxu0 %v11114_v8 }
 0x24e   : > { %386 = vperm.xlu1 %6084, %v340_v29   ;;  %v729_v32 = vpop.trf.xlu0  ;;  %v792_v33 = vpop.trf.xlu1 }
 0x24f   : > { %5408 = vmatmul.mubr.msk.f32.gmra.mrb[46].mxu1 %vm1186_vm2, %v729_v32  ;;  %5439 = vmatmul.mubr.msk.f32.gmra.mrb[68].mxu0 %vm1186_vm2, %v792_v33 }
 0x250   : > { %1491 = vmatprep.mubr.f32.mxu1 %v11114_v8  ;;  %1838 = vmatprep.mubr.f32.mxu0 %v11114_v8 }
 0x252   : > { %v730_v34 = vpop.trf.xlu0  ;;  %v793_v35 = vpop.trf.xlu1 }
 0x253   : > { %5409 = vmatmul.mubr.msk.f32.gmra.mrb[48].mxu1 %vm1186_vm2, %v730_v34  ;;  %5440 = vmatmul.mubr.msk.f32.gmra.mrb[70].mxu0 %vm1186_vm2, %v793_v35 }
 0x254   : > { %1497 = vmatprep.mubr.f32.mxu1 %v11114_v8  ;;  %1844 = vmatprep.mubr.f32.mxu0 %v11114_v8 }
 0x256   : > { %v731_v36 = vpop.trf.xlu0  ;;  %v794_v37 = vpop.trf.xlu1 }
 0x257   : > { %5410 = vmatmul.mubr.msk.f32.gmra.mrb[50].mxu1 %vm1186_vm2, %v731_v36  ;;  %5441 = vmatmul.mubr.msk.f32.gmra.mrb[72].mxu0 %vm1186_vm2, %v794_v37 }
 0x258   : > { %1503 = vmatprep.mubr.f32.mxu1 %v11114_v8  ;;  %1850 = vmatprep.mubr.f32.mxu0 %v11114_v8 }
 0x25a   : > { %v732_v38 = vpop.trf.xlu0  ;;  %v795_v39 = vpop.trf.xlu1 }
 0x25b   : > { %5411 = vmatmul.mubr.msk.f32.gmra.mrb[52].mxu1 %vm1186_vm2, %v732_v38  ;;  %5442 = vmatmul.mubr.msk.f32.gmra.mrb[74].mxu0 %vm1186_vm2, %v795_v39  ;;  %v930_v38 = vld [vmem:[#allocation5] sm:$0xff]  ;;  %v931_v39 = vld [vmem:[#allocation5 + $0x8] sm:$0xff] }
 0x25c   : > { %1509 = vmatprep.mubr.f32.mxu1 %v11114_v8  ;;  %1856 = vmatprep.mubr.f32.mxu0 %v11114_v8 }
 0x25e   : > { %v733_v40 = vpop.trf.xlu0  ;;  %v796_v41 = vpop.trf.xlu1 }
 0x25f   : > { %5412 = vmatmul.mubr.msk.f32.gmra.mrb[54].mxu1 %vm1186_vm2, %v733_v40  ;;  %5443 = vmatmul.mubr.msk.f32.gmra.mrb[76].mxu0 %vm1186_vm2, %v796_v41 }
 0x260   : > { %1515 = vmatprep.mubr.f32.mxu1 %v11114_v8  ;;  %2406 = vmatprep.mubr.f32.mxu0 %v11114_v8 }
 0x262   : > { %v734_v42 = vpop.trf.xlu0  ;;  %v797_v43 = vpop.trf.xlu1 }
 0x263   : > { %5413 = vmatmul.mubr.msk.f32.gmra.mrb[56].mxu1 %vm1186_vm2, %v734_v42 }
 0x264   : > { %1521 = vmatprep.mubr.f32.mxu1 %v11114_v8 }
 0x266   : > { %v735_v44 = vpop.trf.xlu0  ;;  %v798_v45 = vpop.trf.xlu1 }
 0x267   : > { %5414 = vmatmul.mubr.msk.f32.gmra.mrb[58].mxu1 %vm1186_vm2, %v735_v44 }
 0x268   : > { %1527 = vmatprep.mubr.f32.mxu1 %v11114_v8 }
 0x26a   : > { %v736_v47 = vpop.trf.xlu0  ;;  %898 = vxpose.xlu0.b32.start.end [1/1] (short) %v624_v46, 128  ;;  %v799_v48 = vpop.trf.xlu1 }
 0x26b   : > { %5415 = vmatmul.mubr.msk.f32.gmra.mrb[60].mxu1 %vm1186_vm2, %v736_v47  ;;  %v995_v47 = vld [vmem:[#allocation5 + $0x208] sm:$0xff] }
 0x26c   : > { %1533 = vmatprep.mubr.f32.mxu1 %v11114_v8 }
 0x26e   : > { %v800_v49 = vpop.trf.xlu1  ;;  %v737_v50 = vpop.trf.xlu0 }
 0x26f   : > { %5416 = vmatmul.mubr.msk.f32.gmra.mrb[62].mxu1 %vm1186_vm2, %v737_v50 }
 0x270   : > { %1862 = vmatprep.mubr.f32.mxu1 %v11114_v8 }
 0x272   : > { %v801_v51 = vpop.trf.xlu1  ;;  %v7492_v52 = vpop.trf.xlu0 }
 0x273   : > { %5444 = vmatmul.mubr.msk.f32.vlgmr.msra.gmra.mrb[64].mxu1 %vm1186_vm2, %v797_v43 }
 0x274   : > { %1868 = vmatprep.mubr.f32.mxu1 %v11114_v8 }
 0x276   : > { %v7496_v16 = vpop.trf.xlu1  ;;  %v7498_v31 = vpop.trf.xlu0 }
 0x277   : > { %5445 = vmatmul.mubr.msk.f32.gmra.mrb[66].mxu1 %vm1186_vm2, %v798_v45  ;;  %v994_v45 = vld [vmem:[#allocation5 + $0x200] sm:$0xff] }
 0x278   : > { %1874 = vmatprep.mubr.f32.mxu1 %v11114_v8 }
 0x27a   : > { %v7502_v53 = vpop.trf.xlu1  ;;  %v7504_v54 = vpop.trf.xlu0 }
 0x27b   : > { %5446 = vmatmul.mubr.msk.f32.gmra.mrb[68].mxu1 %vm1186_vm2, %v799_v48 }
 0x27c   : > { %1880 = vmatprep.mubr.f32.mxu1 %v11114_v8 }
 0x27e   : > { %v7508_v55 = vpop.trf.xlu1  ;;  %v7510_v56 = vpop.trf.xlu0 }
 0x27f   : > { %5447 = vmatmul.mubr.msk.f32.gmra.mrb[70].mxu1 %vm1186_vm2, %v800_v49 }
 0x280   : > { %1886 = vmatprep.mubr.f32.mxu1 %v11114_v8 }
 0x282   : > { %v7514_v57 = vpop.trf.xlu1  ;;  %v7516_v58 = vpop.trf.xlu0 }
 0x283   : > { %5448 = vmatmul.mubr.msk.f32.gmra.mrb[72].mxu1 %vm1186_vm2, %v801_v51 }
 0x284   : > { %2053 = vmatprep.mubr.f32.mxu1 %v11114_v8 }
 0x286   : > { %v7520_v59 = vpop.trf.xlu1  ;;  %v7522_v60 = vpop.trf.xlu0 }
 0x28a   : > { %v7524_v61 = vpop.trf.xlu1  ;;  %v7526_v62 = vpop.trf.xlu0 }
 0x28e   : > { %v7528_v2 = vpop.trf.xlu1  ;;  %v7530_v3 = vpop.trf.xlu0 }
 0x292   : > { %v7532_v7 = vpop.trf.xlu0  ;;  %v7534_v9 = vpop.trf.xlu1 }
 0x296   : > { %v7536_v12 = vpop.trf.xlu0  ;;  %v7538_v13 = vpop.trf.xlu1 }
 0x29a   : > { %v7540_v14 = vpop.trf.xlu0  ;;  %v7544_v17 = vpop.trf.xlu1 }
 0x29e   : > { %v7542_v15 = vpop.trf.xlu0  ;;  %v7548_v20 = vpop.trf.xlu1 }
 0x2a2   : > { %v7546_v18 = vpop.trf.xlu0  ;;  %v7554_v23 = vpop.trf.xlu1 }
 0x2a6   : > { %v7550_v21 = vpop.trf.xlu0  ;;  %v7558_v27 = vpop.trf.xlu1 }
 0x2aa   : > { %v7552_v22 = vpop.trf.xlu0  ;;  %v7564_v32 = vpop.trf.xlu1 }
 0x2ae   : > { %v7556_v24 = vpop.trf.xlu0  ;;  %v7568_v34 = vpop.trf.xlu1 }
 0x2b2   : > { %v7560_v28 = vpop.trf.xlu0  ;;  %v7574_v37 = vpop.trf.xlu1 }
 0x2b6   : > { %v7562_v29 = vpop.trf.xlu0 }
 0x2b7   : > { %11609 = vst [vmem:[#allocation18_spill] sm:$0xff] %v7562_v29 }
 0x2ba   : > { %v7566_v33 = vpop.trf.xlu0 }
 0x2bb   : > { %11610 = vst [vmem:[#allocation19_spill] sm:$0xff] %v7566_v33 }
 0x2be   : > { %v7570_v35 = vpop.trf.xlu0 }
 0x2bf   : > { %11611 = vst [vmem:[#allocation20_spill] sm:$0xff] %v7570_v35  ;;  %v943_v35 = vld [vmem:[#allocation5 + $0x68] sm:$0xff] }
 0x2c2   : > { %v7572_v36 = vpop.trf.xlu0 }
 0x2c3   : > { %11612 = vst [vmem:[#allocation21_spill] sm:$0xff] %v7572_v36 }
 0x2c6   : > { %v1349_v40 = vpop.f32.mrb[0].mxu1  ;;  %v7576_v41 = vpop.trf.xlu0 }
 0x2c7   : > { %11613 = vst [vmem:[#allocation22_spill] sm:$0xff] %v7576_v41  ;;  %v7578_v42 = vadd.f32 %v1349_v40, %v930_v38  ;;  %v1351_v43 = vpop.f32.mrb[1].mxu1 }
 0x2c8   : > { %v7580_v44 = vadd.f32 %v1351_v43, %v931_v39  ;;  %v996_v43 = vld [vmem:[#allocation5 + $0x210] sm:$0xff] }
 0x2c9   : > { %11614 = vst [vmem:[#allocation23_spill] sm:$0xff] %v7578_v42  ;;  %v377_v46 = vpop.permute.xlu1 %376 }
 0x2ca   : > { %11615 = vst [vmem:[#allocation24_spill] sm:$0xff] %v7580_v44  ;;  %v2599_v48 = vmax.f32 %v7578_v42, %v7580_v44  ;;  %v640_v49 = vadd.f32 %v7398_v63, %v377_v46  ;;  %v642_v50 = vadd.f32 %v7402_v0, %v377_v46  ;;  %v7586_v51 = vpop.f32.mrb[2].mxu1  ;;  %v1702_v8 = vpop.f32.mrb[24].mxu0  ;;  %v997_v0 = vld [vmem:[#allocation5 + $0x218] sm:$0xff] }
 0x2cb   : > { %v7588_v19 = vadd.f32 %v1702_v8, %v994_v45  ;;  %v7590_v38 = vpop.f32.mrb[3].mxu1  ;;  %v1704_v40 = vpop.f32.mrb[25].mxu0 }
 0x2cc   : > { %v7592_v39 = vadd.f32 %v1704_v40, %v995_v47  ;;  %1989 = vmatprep.subr.mxu1 %v642_v50  ;;  %2600 = vmax.xlane.f32.xlu1 %v2599_v48  ;;  %v7597_v63 = vpop.trf.xlu0  ;;  %v934_v47 = vld [vmem:[#allocation5 + $0x20] sm:$0xff]  ;;  %v935_v48 = vld [vmem:[#allocation5 + $0x28] sm:$0xff] }
 0x2cd   : > { %11616 = vst [vmem:[#allocation25_spill] sm:$0xff] %v7588_v19  ;;  %11618 = vst [vmem:[#allocation27_spill] sm:$0xff] %v7597_v63  ;;  %1990 = vmatpush1.msra.mxu1 %v640_v49  ;;  %v341_v49 = vld [vmem:[%s11106_s2 + $0x48] sm:$0xff] }
 0x2ce   : > { %11617 = vst [vmem:[#allocation26_spill] sm:$0xff] %v7592_v39  ;;  %v2695_v8 = vmax.f32 %v7588_v19, %v7592_v39  ;;  %v1361_v45 = vpop.f32.mrb[4].mxu1  ;;  %v1708_v46 = vpop.f32.mrb[26].mxu0  ;;  %5449 = vmatmul.mubr.msk.f32.vlgmr.msra.gmra.mrb[74].mxu1 %vm1186_vm2, %v7492_v52 }
 0x2cf   : > { %v7603_v50 = vadd.f32 %v1708_v46, %v996_v43  ;;  %v1363_v40 = vpop.f32.mrb[5].mxu1  ;;  %v1710_v30 = vpop.f32.mrb[27].mxu0  ;;  %381 = vperm.xlu0 %6083, %v339_v26   ;;  %2059 = vmatprep.mubr.f32.mxu1 %v11620_v25  ;;  %v7613_v39 = vadd.f32 %v1361_v45, %v934_v47  ;;  %v998_v47 = vld [vmem:[#allocation5 + $0x220] sm:$0xff] }
 0x2d0   : > { %v7606_v10 = vadd.f32 %v1710_v30, %v997_v0  ;;  %2696 = vmax.xlane.f32.xlu1 %v2695_v8  ;;  %v7611_v5 = vpop.trf.xlu0  ;;  %v7615_v52 = vadd.f32 %v1363_v40, %v935_v48  ;;  %v936_v30 = vld [vmem:[#allocation5 + $0x30] sm:$0xff]  ;;  %v937_v0 = vld [vmem:[#allocation5 + $0x38] sm:$0xff]  ;;  %v999_v48 = vld [vmem:[#allocation5 + $0x228] sm:$0xff] }
 0x2d1   : > { %11619 = vst [vmem:[#allocation28_spill] sm:$0xff] %v7603_v50  ;;  %11622 = vst [vmem:[#allocation30_spill] sm:$0xff] %v7611_v5 }
 0x2d2   : > { %11621 = vst [vmem:[#allocation29_spill] sm:$0xff] %v7606_v10  ;;  %11623 = vst [vmem:[#allocation31_spill] sm:$0xff] %v7613_v39  ;;  %v2698_v43 = vmax.f32 %v7603_v50, %v7606_v10  ;;  %v1367_v46 = vpop.f32.mrb[6].mxu1  ;;  %5450 = vmatmul.mubr.msk.f32.gmra.mrb[76].mxu1 %vm1186_vm2, %v7498_v31  ;;  %v1714_v26 = vpop.f32.mrb[28].mxu0  ;;  %v2605_v40 = vmax.f32 %v7613_v39, %v7615_v52  ;;  %v939_v39 = vld [vmem:[#allocation5 + $0x48] sm:$0xff] }
 0x2d3   : > { %11624 = vst [vmem:[#allocation32_spill] sm:$0xff] %v7615_v52  ;;  %v1369_v8 = vpop.f32.mrb[7].mxu1  ;;  %391 = vperm.xlu0 %6083, %v341_v49   ;;  %2065 = vmatprep.mubr.f32.mxu1 %v11620_v25  ;;  %v1716_v19 = vpop.f32.mrb[29].mxu0  ;;  %v7626_v10 = vadd.f32 %v1367_v46, %v936_v30  ;;  %v7633_v42 = vadd.f32 %v1714_v26, %v998_v47  ;;  %v1000_v46 = vld [vmem:[#allocation5 + $0x230] sm:$0xff]  ;;  %v1001_v30 = vld [vmem:[#allocation5 + $0x238] sm:$0xff] }
 0x2d4   : > { %2699 = vmax.xlane.f32.xlu1 %v2698_v43  ;;  %v7622_v45 = vpop.trf.xlu0  ;;  %v7628_v50 = vadd.f32 %v1369_v8, %v937_v0  ;;  %v7635_v11 = vadd.f32 %v1716_v19, %v999_v48 }
 0x2d5   : > { %11625 = vst [vmem:[#allocation33_spill] sm:$0xff] %v7622_v45  ;;  %11626 = vst [vmem:[#allocation34_spill] sm:$0xff] %v7626_v10 }
 0x2d6   : > { %11627 = vst [vmem:[#allocation35_spill] sm:$0xff] %v7628_v50  ;;  %v1373_v31 = vpop.f32.mrb[8].mxu1  ;;  %5451 = vmatmul.mubr.msk.f32.gmra.mrb[78].mxu1 %vm1186_vm2, %v7504_v54  ;;  %v1720_v49 = vpop.f32.mrb[30].mxu0  ;;  %11628 = vst [vmem:[#allocation36_spill] sm:$0xff] %v7633_v42  ;;  %v2608_v0 = vmax.f32 %v7626_v10, %v7628_v50  ;;  %v2701_v19 = vmax.f32 %v7633_v42, %v7635_v11  ;;  %v938_v10 = vld [vmem:[#allocation5 + $0x40] sm:$0xff]  ;;  %v940_v42 = vld [vmem:[#allocation5 + $0x50] sm:$0xff] }
 0x2d7   : > { %v1375_v44 = vpop.f32.mrb[9].mxu1  ;;  %2071 = vmatprep.mubr.f32.mxu1 %v11620_v25  ;;  %v1722_v43 = vpop.f32.mrb[31].mxu0  ;;  %11629 = vst [vmem:[#allocation37_spill] sm:$0xff] %v7635_v11  ;;  %v7646_v26 = vadd.f32 %v1720_v49, %v1000_v46  ;;  %v7663_v46 = vadd.f32 %v1373_v31, %v938_v10 }
 0x2d8   : > { %2606 = vmax.xlane.f32.xlu1 %v2605_v40  ;;  %v7637_v45 = vpop.trf.xlu0  ;;  %v7648_v47 = vadd.f32 %v1722_v43, %v1001_v30  ;;  %v7665_v30 = vadd.f32 %v1375_v44, %v939_v39  ;;  %v1002_v44 = vld [vmem:[#allocation5 + $0x240] sm:$0xff]  ;;  %v1003_v39 = vld [vmem:[#allocation5 + $0x248] sm:$0xff] }
 0x2d9   : > { %11630 = vst [vmem:[#allocation38_spill] sm:$0xff] %v7637_v45  ;;  %11631 = vst [vmem:[#allocation39_spill] sm:$0xff] %v7646_v26 }
 0x2da   : > { %v1379_v8 = vpop.f32.mrb[10].mxu1  ;;  %5452 = vmatmul.mubr.msk.f32.gmra.mrb[80].mxu1 %vm1186_vm2, %v7510_v56  ;;  %v1726_v54 = vpop.f32.mrb[32].mxu0  ;;  %11632 = vst [vmem:[#allocation40_spill] sm:$0xff] %v7648_v47  ;;  %v2704_v49 = vmax.f32 %v7646_v26, %v7648_v47  ;;  %11635 = vst [vmem:[#allocation43_spill] sm:$0xff] %v7663_v46  ;;  %v2611_v31 = vmax.f32 %v7663_v46, %v7665_v30 }
 0x2db   : > { %v1381_v52 = vpop.f32.mrb[11].mxu1  ;;  %2077 = vmatprep.mubr.f32.mxu1 %v11620_v25  ;;  %v1728_v40 = vpop.f32.mrb[33].mxu0  ;;  %11636 = vst [vmem:[#allocation44_spill] sm:$0xff] %v7665_v30  ;;  %v7682_v47 = vadd.f32 %v1379_v8, %v940_v42  ;;  %v7693_v41 = vadd.f32 %v1726_v54, %v1002_v44  ;;  %v1004_v8 = vld [vmem:[#allocation5 + $0x250] sm:$0xff]  ;;  %v1009_v44 = vld [vmem:[#allocation5 + $0x278] sm:$0xff] }
 0x2dc   : > { %2609 = vmax.xlane.f32.xlu1 %v2608_v0  ;;  %v7650_v48 = vpop.trf.xlu0  ;;  %v7695_v30 = vadd.f32 %v1728_v40, %v1003_v39  ;;  %v1008_v40 = vld [vmem:[#allocation5 + $0x270] sm:$0xff] }
 0x2dd   : > { %11633 = vst [vmem:[#allocation41_spill] sm:$0xff] %v7650_v48  ;;  %v941_v48 = vld [vmem:[#allocation5 + $0x58] sm:$0xff]  ;;  %11638 = vst [vmem:[#allocation46_spill] sm:$0xff] %v7682_v47 }
 0x2de   : > { %v7652_v50 = vpop.f32.mrb[12].mxu1  ;;  %5453 = vmatmul.mubr.msk.f32.gmra.mrb[82].mxu1 %vm1186_vm2, %v7516_v58  ;;  %v1732_v56 = vpop.f32.mrb[34].mxu0  ;;  %11640 = vst [vmem:[#allocation48_spill] sm:$0xff] %v7693_v41  ;;  %11641 = vst [vmem:[#allocation49_spill] sm:$0xff] %v7695_v30 }
 0x2df   : > { %v7656_v45 = vpop.f32.mrb[13].mxu1  ;;  %2083 = vmatprep.mubr.f32.mxu1 %v11620_v25  ;;  %v1734_v11 = vpop.f32.mrb[35].mxu0 }
 0x2e0   : > { %2702 = vmax.xlane.f32.xlu1 %v2701_v19  ;;  %v7661_v43 = vpop.trf.xlu0 }
 0x2e1   : > { %11634 = vst [vmem:[#allocation42_spill] sm:$0xff] %v7661_v43 }
 0x2e2   : > { %v7667_v0 = vpop.f32.mrb[14].mxu1  ;;  %5454 = vmatmul.mubr.msk.f32.gmra.mrb[84].mxu1 %vm1186_vm2, %v7522_v60  ;;  %v7671_v58 = vpop.f32.mrb[36].mxu0  ;;  %v7684_v60 = vadd.f32 %v1381_v52, %v941_v48  ;;  %v933_v52 = vld [vmem:[#allocation5 + $0x18] sm:$0xff] }
 0x2e3   : > { %v7673_v5 = vpop.f32.mrb[15].mxu1  ;;  %2089 = vmatprep.mubr.f32.mxu1 %v11620_v25  ;;  %v7676_v19 = vpop.f32.mrb[37].mxu0  ;;  %v1005_v48 = vld [vmem:[#allocation5 + $0x258] sm:$0xff] }
 0x2e4   : > { %2705 = vmax.xlane.f32.xlu1 %v2704_v49  ;;  %v7678_v10 = vpop.trf.xlu0  ;;  %11639 = vst [vmem:[#allocation47_spill] sm:$0xff] %v7684_v60 }
 0x2e5   : > { %11637 = vst [vmem:[#allocation45_spill] sm:$0xff] %v7678_v10  ;;  %v932_v10 = vld [vmem:[#allocation5 + $0x10] sm:$0xff] }
 0x2e6   : > { %v7686_v26 = vpop.f32.mrb[16].mxu1  ;;  %5455 = vmatmul.mubr.msk.f32.gmra.mrb[86].mxu1 %vm1186_vm2, %v7526_v62  ;;  %v1744_v43 = vpop.f32.mrb[38].mxu0  ;;  %v2614_v62 = vmax.f32 %v7682_v47, %v7684_v60  ;;  %v2707_v60 = vmax.f32 %v7693_v41, %v7695_v30  ;;  %v7716_v47 = vadd.f32 %v1732_v56, %v1004_v8 }
 0x2e7   : > { %v7690_v63 = vpop.f32.mrb[17].mxu1  ;;  %2095 = vmatprep.mubr.f32.mxu1 %v11620_v25  ;;  %v1746_v49 = vpop.f32.mrb[39].mxu0  ;;  %v7726_v29 = vadd.f32 %v1744_v43, %v1008_v40  ;;  %v7743_v43 = vadd.f32 %v7656_v45, %v943_v35  ;;  %v944_v40 = vld [vmem:[#allocation5 + $0x70] sm:$0xff]  ;;  %v1013_v35 = vld [vmem:[#allocation5 + $0x298] sm:$0xff] }
 0x2e8   : > { %2612 = vmax.xlane.f32.xlu1 %v2611_v31  ;;  %v7697_v42 = vpop.trf.xlu0  ;;  %v7706_v31 = vadd.f32 %v7586_v51, %v932_v10  ;;  %11645 = vst [vmem:[#allocation53_spill] sm:$0xff] %v7716_v47  ;;  %v942_v10 = vld [vmem:[#allocation5 + $0x60] sm:$0xff] }
 0x2e9   : > { %11642 = vst [vmem:[#allocation50_spill] sm:$0xff] %v7697_v42  ;;  %v7712_v42 = vadd.f32 %v7590_v38, %v933_v52  ;;  %11648 = vst [vmem:[#allocation56_spill] sm:$0xff] %v7726_v29  ;;  %v7728_v38 = vadd.f32 %v1746_v49, %v1009_v44  ;;  %v948_v49 = vld [vmem:[#allocation5 + $0x90] sm:$0xff] }
 0x2ea   : > { %v1403_v46 = vpop.f32.mrb[18].mxu1  ;;  %5456 = vmatmul.mubr.msk.f32.gmra.mrb[88].mxu1 %vm1186_vm2, %v7530_v3  ;;  %v7703_v36 = vpop.f32.mrb[40].mxu0  ;;  %11643 = vst [vmem:[#allocation51_spill] sm:$0xff] %v7706_v31  ;;  %v7718_v3 = vadd.f32 %v1734_v11, %v1005_v48  ;;  %11652 = vst [vmem:[#allocation60_spill] sm:$0xff] %v7743_v43 }
 0x2eb   : > { %v1405_v54 = vpop.f32.mrb[19].mxu1  ;;  %2101 = vmatprep.mubr.f32.mxu1 %v11620_v25  ;;  %v7709_v39 = vpop.f32.mrb[41].mxu0  ;;  %11644 = vst [vmem:[#allocation52_spill] sm:$0xff] %v7712_v42  ;;  %11649 = vst [vmem:[#allocation57_spill] sm:$0xff] %v7728_v38  ;;  %v2602_v56 = vmax.f32 %v7706_v31, %v7712_v42  ;;  %v2716_v44 = vmax.f32 %v7726_v29, %v7728_v38  ;;  %v1006_v29 = vld [vmem:[#allocation5 + $0x260] sm:$0xff]  ;;  %v1007_v31 = vld [vmem:[#allocation5 + $0x268] sm:$0xff] }
 0x2ec   : > { %2615 = vmax.xlane.f32.xlu1 %v2614_v62  ;;  %11646 = vst [vmem:[#allocation54_spill] sm:$0xff] %v7718_v3  ;;  %v7720_v51 = vpop.trf.xlu0  ;;  %v2710_v8 = vmax.f32 %v7716_v47, %v7718_v3  ;;  %v949_v62 = vld [vmem:[#allocation5 + $0x98] sm:$0xff] }
 0x2ed   : > { %11647 = vst [vmem:[#allocation55_spill] sm:$0xff] %v7720_v51  ;;  %v945_v3 = vld [vmem:[#allocation5 + $0x78] sm:$0xff]  ;;  %v7756_v42 = vadd.f32 %v1405_v54, %v949_v62  ;;  %v7785_v62 = vadd.f32 %v7676_v19, %v1007_v31  ;;  %v1016_v31 = vld [vmem:[#allocation5 + $0x2b0] sm:$0xff] }
 0x2ee   : > { %v7722_v33 = vpop.f32.mrb[20].mxu1  ;;  %5457 = vmatmul.mubr.msk.f32.gmra.mrb[90].mxu1 %vm1186_vm2, %v7532_v7  ;;  %v1756_v52 = vpop.f32.mrb[42].mxu0  ;;  %v7740_v7 = vadd.f32 %v7652_v50, %v942_v10  ;;  %v1012_v50 = vld [vmem:[#allocation5 + $0x290] sm:$0xff]  ;;  %v7754_v10 = vadd.f32 %v1403_v46, %v948_v49 }
 0x2ef   : > { %v7730_v30 = vpop.f32.mrb[21].mxu1  ;;  %2107 = vmatprep.mubr.f32.mxu1 %v11620_v25  ;;  %v1758_v11 = vpop.f32.mrb[43].mxu0  ;;  %11654 = vst [vmem:[#allocation62_spill] sm:$0xff] %v7756_v42  ;;  %v7772_v46 = vadd.f32 %v1756_v52, %v1012_v50  ;;  %11660 = vst [vmem:[#allocation68_spill] sm:$0xff] %v7785_v62  ;;  %v952_v52 = vld [vmem:[#allocation5 + $0xb0] sm:$0xff] }
 0x2f0   : > { %2708 = vmax.xlane.f32.xlu1 %v2707_v60  ;;  %v7737_v48 = vpop.trf.xlu0  ;;  %11651 = vst [vmem:[#allocation59_spill] sm:$0xff] %v7740_v7  ;;  %11653 = vst [vmem:[#allocation61_spill] sm:$0xff] %v7754_v10  ;;  %v7774_v54 = vadd.f32 %v1758_v11, %v1013_v35  ;;  %v953_v11 = vld [vmem:[#allocation5 + $0xb8] sm:$0xff] }
 0x2f1   : > { %11650 = vst [vmem:[#allocation58_spill] sm:$0xff] %v7737_v48  ;;  %v7766_v48 = vadd.f32 %v7673_v5, %v945_v3  ;;  %11657 = vst [vmem:[#allocation65_spill] sm:$0xff] %v7772_v46  ;;  %v2626_v5 = vmax.f32 %v7754_v10, %v7756_v42  ;;  %v7782_v3 = vadd.f32 %v7671_v58, %v1006_v29  ;;  %v947_v58 = vld [vmem:[#allocation5 + $0x88] sm:$0xff] }
 0x2f2   : > { %v1415_v41 = vpop.f32.mrb[22].mxu1  ;;  %2603 = vmax.xlane.f32.xlu0 %v2602_v56  ;;  %5458 = vmatmul.mubr.msk.f32.gmra.mrb[92].mxu1 %vm1186_vm2, %v7536_v12  ;;  %v7749_v60 = vpop.f32.mrb[44].mxu0  ;;  %v2617_v12 = vmax.f32 %v7740_v7, %v7743_v43  ;;  %v7763_v56 = vadd.f32 %v7667_v0, %v944_v40  ;;  %11658 = vst [vmem:[#allocation66_spill] sm:$0xff] %v7774_v54  ;;  %v1011_v10 = vld [vmem:[#allocation5 + $0x288] sm:$0xff] }
 0x2f3   : > { %v1417_v47 = vpop.f32.mrb[23].mxu1  ;;  %2113 = vmatprep.mubr.f32.mxu1 %v11620_v25  ;;  %v7752_v45 = vpop.f32.mrb[45].mxu0  ;;  %11656 = vst [vmem:[#allocation64_spill] sm:$0xff] %v7766_v48  ;;  %11659 = vst [vmem:[#allocation67_spill] sm:$0xff] %v7782_v3  ;;  %v2722_v50 = vmax.f32 %v7772_v46, %v7774_v54  ;;  %v1010_v46 = vld [vmem:[#allocation5 + $0x280] sm:$0xff]  ;;  %v7812_v43 = vadd.f32 %v7690_v63, %v947_v58 }
 0x2f4   : > { %2711 = vmax.xlane.f32.xlu1 %v2710_v8  ;;  %v7758_v38 = vpop.trf.xlu0  ;;  %11655 = vst [vmem:[#allocation63_spill] sm:$0xff] %v7763_v56  ;;  %v2620_v40 = vmax.f32 %v7763_v56, %v7766_v48  ;;  %v2713_v48 = vmax.f32 %v7782_v3, %v7785_v62  ;;  %v7802_v56 = vadd.f32 %v1415_v41, %v952_v52  ;;  %v950_v58 = vld [vmem:[#allocation5 + $0xa0] sm:$0xff] }
 0x2f5   : > { %v7804_v54 = vadd.f32 %v1417_v47, %v953_v11  ;;  %11664 = vst [vmem:[#allocation72_spill] sm:$0xff] %v7812_v43 }
 0x2f6   : > { %v7768_v51 = vpop.f32.mrb[24].mxu1  ;;  %2717 = vmax.xlane.f32.xlu0 %v2716_v44  ;;  %5459 = vmatmul.mubr.msk.f32.gmra.mrb[94].mxu1 %vm1186_vm2, %v7540_v14  ;;  %v1768_v8 = vpop.f32.mrb[46].mxu0  ;;  %v946_v44 = vld [vmem:[#allocation5 + $0x80] sm:$0xff]  ;;  %11661 = vst [vmem:[#allocation69_spill] sm:$0xff] %v7802_v56 }
 0x2f7   : > { %v7776_v49 = vpop.f32.mrb[25].mxu1  ;;  %2119 = vmatprep.mubr.f32.mxu1 %v11620_v25  ;;  %v1770_v0 = vpop.f32.mrb[47].mxu0  ;;  %11662 = vst [vmem:[#allocation70_spill] sm:$0xff] %v7804_v54  ;;  %v7818_v41 = vadd.f32 %v1768_v8, %v1016_v31  ;;  %v2632_v63 = vmax.f32 %v7802_v56, %v7804_v54  ;;  %v956_v8 = vld [vmem:[#allocation5 + $0xd0] sm:$0xff]  ;;  %v1015_v56 = vld [vmem:[#allocation5 + $0x2a8] sm:$0xff] }
 0x2f8   : > { %2618 = vmax.xlane.f32.xlu1 %v2617_v12  ;;  %v7787_v14 = vpop.trf.xlu0  ;;  %v1017_v12 = vld [vmem:[#allocation5 + $0x2b8] sm:$0xff] }
 0x2f9   : > { %11665 = vst [vmem:[#allocation73_spill] sm:$0xff] %v7818_v41  ;;  %v7820_v47 = vadd.f32 %v1770_v0, %v1017_v12  ;;  %v957_v0 = vld [vmem:[#allocation5 + $0xd8] sm:$0xff] }
 0x2fa   : > { %v1427_v35 = vpop.f32.mrb[26].mxu1  ;;  %2627 = vmax.xlane.f32.xlu0 %v2626_v5  ;;  %5460 = vmatmul.mubr.msk.f32.gmra.mrb[96].mxu1 %vm1186_vm2, %v7542_v15  ;;  %v7795_v29 = vpop.f32.mrb[48].mxu0  ;;  %v7809_v15 = vadd.f32 %v7686_v26, %v946_v44  ;;  %v7831_v44 = vadd.f32 %v7709_v39, %v1011_v10  ;;  %v951_v39 = vld [vmem:[#allocation5 + $0xa8] sm:$0xff]  ;;  %v1020_v10 = vld [vmem:[#allocation5 + $0x2d0] sm:$0xff] }
 0x2fb   : > { %v1429_v19 = vpop.f32.mrb[27].mxu1  ;;  %2125 = vmatprep.mubr.f32.mxu1 %v11620_v25  ;;  %v7798_v42 = vpop.f32.mrb[49].mxu0  ;;  %11666 = vst [vmem:[#allocation74_spill] sm:$0xff] %v7820_v47  ;;  %v2728_v31 = vmax.f32 %v7818_v41, %v7820_v47  ;;  %v1014_v41 = vld [vmem:[#allocation5 + $0x2a0] sm:$0xff]  ;;  %v7858_v62 = vadd.f32 %v7730_v30, %v951_v39 }
 0x2fc   : > { %2621 = vmax.xlane.f32.xlu1 %v2620_v40  ;;  %v7806_v5 = vpop.trf.xlu0  ;;  %11663 = vst [vmem:[#allocation71_spill] sm:$0xff] %v7809_v15  ;;  %v7828_v40 = vadd.f32 %v7703_v36, %v1010_v46  ;;  %11668 = vst [vmem:[#allocation76_spill] sm:$0xff] %v7831_v44  ;;  %v1021_v46 = vld [vmem:[#allocation5 + $0x2d8] sm:$0xff]  ;;  %v7850_v47 = vadd.f32 %v1429_v19, %v957_v0  ;;  %v954_v39 = vld [vmem:[#allocation5 + $0xc0] sm:$0xff] }
 0x2fd   : > { %11672 = vst [vmem:[#allocation80_spill] sm:$0xff] %v7858_v62 }
 0x2fe   : > { %v7814_v7 = vpop.f32.mrb[28].mxu1  ;;  %2723 = vmax.xlane.f32.xlu0 %v2722_v50  ;;  %5461 = vmatmul.mubr.msk.f32.gmra.mrb[98].mxu1 %vm1186_vm2, %v7546_v18  ;;  %v1780_v52 = vpop.f32.mrb[50].mxu0  ;;  %11667 = vst [vmem:[#allocation75_spill] sm:$0xff] %v7828_v40  ;;  %v2623_v50 = vmax.f32 %v7809_v15, %v7812_v43  ;;  %v2719_v43 = vmax.f32 %v7828_v40, %v7831_v44  ;;  %11670 = vst [vmem:[#allocation78_spill] sm:$0xff] %v7850_v47 }
 0x2ff   : > { %v7822_v11 = vpop.f32.mrb[29].mxu1  ;;  %2131 = vmatprep.mubr.f32.mxu1 %v11620_v25  ;;  %v1782_v26 = vpop.f32.mrb[51].mxu0  ;;  %v7848_v15 = vadd.f32 %v1427_v35, %v956_v8  ;;  %v7864_v35 = vadd.f32 %v1780_v52, %v1020_v10  ;;  %v960_v52 = vld [vmem:[#allocation5 + $0xf0] sm:$0xff] }
 0x300   : > { %2714 = vmax.xlane.f32.xlu1 %v2713_v48  ;;  %v7833_v18 = vpop.trf.xlu0  ;;  %v7866_v19 = vadd.f32 %v1782_v26, %v1021_v46  ;;  %v961_v26 = vld [vmem:[#allocation5 + $0xf8] sm:$0xff] }
 0x301   : > { %11669 = vst [vmem:[#allocation77_spill] sm:$0xff] %v7848_v15  ;;  %11673 = vst [vmem:[#allocation81_spill] sm:$0xff] %v7864_v35  ;;  %v2638_v30 = vmax.f32 %v7848_v15, %v7850_v47  ;;  %v1019_v15 = vld [vmem:[#allocation5 + $0x2c8] sm:$0xff] }
 0x302   : > { %v1439_v12 = vpop.f32.mrb[30].mxu1  ;;  %2633 = vmax.xlane.f32.xlu0 %v2632_v63  ;;  %5462 = vmatmul.mubr.msk.f32.gmra.mrb[100].mxu1 %vm1186_vm2, %v7550_v21  ;;  %v7841_v36 = vpop.f32.mrb[52].mxu0  ;;  %v7855_v21 = vadd.f32 %v7722_v33, %v950_v58  ;;  %11674 = vst [vmem:[#allocation82_spill] sm:$0xff] %v7866_v19  ;;  %v7877_v58 = vadd.f32 %v7752_v45, %v1015_v56  ;;  %v955_v45 = vld [vmem:[#allocation5 + $0xc8] sm:$0xff]  ;;  %v1024_v56 = vld [vmem:[#allocation5 + $0x2f0] sm:$0xff] }
 0x303   : > { %v1441_v48 = vpop.f32.mrb[31].mxu1  ;;  %2137 = vmatprep.mubr.f32.mxu1 %v11620_v25  ;;  %v7844_v54 = vpop.f32.mrb[53].mxu0  ;;  %v2734_v10 = vmax.f32 %v7864_v35, %v7866_v19  ;;  %v1018_v35 = vld [vmem:[#allocation5 + $0x2c0] sm:$0xff]  ;;  %v7904_v44 = vadd.f32 %v7776_v49, %v955_v45 }
 0x304   : > { %2624 = vmax.xlane.f32.xlu1 %v2623_v50  ;;  %v7852_v63 = vpop.trf.xlu0  ;;  %11671 = vst [vmem:[#allocation79_spill] sm:$0xff] %v7855_v21  ;;  %v7874_v50 = vadd.f32 %v7749_v60, %v1014_v41  ;;  %11675 = vst [vmem:[#allocation83_spill] sm:$0xff] %v7877_v58  ;;  %v1025_v41 = vld [vmem:[#allocation5 + $0x2f8] sm:$0xff]  ;;  %v7896_v19 = vadd.f32 %v1441_v48, %v961_v26  ;;  %v958_v45 = vld [vmem:[#allocation5 + $0xe0] sm:$0xff] }
 0x305   : > { %11679 = vst [vmem:[#allocation87_spill] sm:$0xff] %v7904_v44 }
 0x306   : > { %v7860_v3 = vpop.f32.mrb[32].mxu1  ;;  %2729 = vmax.xlane.f32.xlu0 %v2728_v31  ;;  %5463 = vmatmul.mubr.msk.f32.gmra.mrb[102].mxu1 %vm1186_vm2, %v7552_v22  ;;  %v1792_v8 = vpop.f32.mrb[54].mxu0  ;;  %v2629_v31 = vmax.f32 %v7855_v21, %v7858_v62  ;;  %v2725_v62 = vmax.f32 %v7874_v50, %v7877_v58  ;;  %v7894_v21 = vadd.f32 %v1439_v12, %v960_v52 }
 0x307   : > { %v7868_v0 = vpop.f32.mrb[33].mxu1  ;;  %2143 = vmatprep.mubr.f32.mxu1 %v11620_v25  ;;  %v1794_v33 = vpop.f32.mrb[55].mxu0  ;;  %11677 = vst [vmem:[#allocation85_spill] sm:$0xff] %v7896_v19  ;;  %v7910_v12 = vadd.f32 %v1792_v8, %v1024_v56  ;;  %v965_v8 = vld [vmem:[#allocation5 + $0x118] sm:$0xff] }
 0x308   : > { %2720 = vmax.xlane.f32.xlu1 %v2719_v43  ;;  %v7879_v22 = vpop.trf.xlu0  ;;  %11676 = vst [vmem:[#allocation84_spill] sm:$0xff] %v7894_v21  ;;  %v7912_v48 = vadd.f32 %v1794_v33, %v1025_v41  ;;  %v2644_v49 = vmax.f32 %v7894_v21, %v7896_v19 }
 0x309   : > { %11680 = vst [vmem:[#allocation88_spill] sm:$0xff] %v7910_v12 }
 0x30a   : > { %v1451_v46 = vpop.f32.mrb[34].mxu1  ;;  %2639 = vmax.xlane.f32.xlu0 %v2638_v30  ;;  %5464 = vmatmul.mubr.msk.f32.gmra.mrb[104].mxu1 %vm1186_vm2, %v7556_v24  ;;  %v7887_v60 = vpop.f32.mrb[56].mxu0  ;;  %v7901_v24 = vadd.f32 %v7768_v51, %v954_v39  ;;  %11681 = vst [vmem:[#allocation89_spill] sm:$0xff] %v7912_v48  ;;  %v7923_v39 = vadd.f32 %v7798_v42, %v1019_v15  ;;  %v959_v42 = vld [vmem:[#allocation5 + $0xe8] sm:$0xff]  ;;  %v1028_v15 = vld [vmem:[#allocation5 + $0x310] sm:$0xff] }
 0x30b   : > { %v1453_v43 = vpop.f32.mrb[35].mxu1  ;;  %2149 = vmatprep.mubr.f32.mxu1 %v11620_v25  ;;  %v7890_v47 = vpop.f32.mrb[57].mxu0  ;;  %v2740_v56 = vmax.f32 %v7910_v12, %v7912_v48  ;;  %v1023_v12 = vld [vmem:[#allocation5 + $0x2e8] sm:$0xff]  ;;  %v7948_v21 = vadd.f32 %v7822_v11, %v959_v42 }
 0x30c   : > { %2630 = vmax.xlane.f32.xlu1 %v2629_v31  ;;  %v7898_v30 = vpop.trf.xlu0  ;;  %11678 = vst [vmem:[#allocation86_spill] sm:$0xff] %v7901_v24  ;;  %v7920_v31 = vadd.f32 %v7795_v29, %v1018_v35  ;;  %11682 = vst [vmem:[#allocation90_spill] sm:$0xff] %v7923_v39  ;;  %v1029_v35 = vld [vmem:[#allocation5 + $0x318] sm:$0xff]  ;;  %v7942_v48 = vadd.f32 %v1453_v43, %v965_v8 }
 0x30d   : > { %11686 = vst [vmem:[#allocation94_spill] sm:$0xff] %v7948_v21 }
 0x30e   : > { %v7906_v40 = vpop.f32.mrb[36].mxu1  ;;  %2735 = vmax.xlane.f32.xlu0 %v2734_v10  ;;  %5465 = vmatmul.mubr.msk.f32.gmra.mrb[106].mxu1 %vm1186_vm2, %v7496_v16  ;;  %v1804_v52 = vpop.f32.mrb[58].mxu0  ;;  %v964_v16 = vld [vmem:[#allocation5 + $0x110] sm:$0xff]  ;;  %v2635_v10 = vmax.f32 %v7901_v24, %v7904_v44  ;;  %v2731_v44 = vmax.f32 %v7920_v31, %v7923_v39  ;;  %11684 = vst [vmem:[#allocation92_spill] sm:$0xff] %v7942_v48 }
 0x30f   : > { %v7914_v26 = vpop.f32.mrb[37].mxu1  ;;  %2155 = vmatprep.mubr.f32.mxu1 %v11620_v25  ;;  %v1806_v51 = vpop.f32.mrb[59].mxu0  ;;  %v7940_v24 = vadd.f32 %v1451_v46, %v964_v16  ;;  %v7954_v39 = vadd.f32 %v1804_v52, %v1028_v15  ;;  %v969_v52 = vld [vmem:[#allocation5 + $0x138] sm:$0xff] }
 0x310   : > { %2726 = vmax.xlane.f32.xlu1 %v2725_v62  ;;  %v7925_v33 = vpop.trf.xlu0  ;;  %v7956_v46 = vadd.f32 %v1806_v51, %v1029_v35  ;;  %v1033_v35 = vld [vmem:[#allocation5 + $0x338] sm:$0xff] }
 0x311   : > { %11683 = vst [vmem:[#allocation91_spill] sm:$0xff] %v7940_v24  ;;  %11687 = vst [vmem:[#allocation95_spill] sm:$0xff] %v7954_v39  ;;  %v2650_v11 = vmax.f32 %v7940_v24, %v7942_v48 }
 0x312   : > { %v1463_v41 = vpop.f32.mrb[38].mxu1  ;;  %2645 = vmax.xlane.f32.xlu0 %v2644_v49  ;;  %5466 = vmatmul.mubr.msk.f32.gmra.mrb[108].mxu1 %vm1186_vm2, %v7502_v53  ;;  %v7933_v29 = vpop.f32.mrb[60].mxu0  ;;  %v7945_v53 = vadd.f32 %v7814_v7, %v958_v45  ;;  %v1022_v49 = vld [vmem:[#allocation5 + $0x2e0] sm:$0xff]  ;;  %11688 = vst [vmem:[#allocation96_spill] sm:$0xff] %v7956_v46  ;;  %v2746_v42 = vmax.f32 %v7954_v39, %v7956_v46  ;;  %v1027_v39 = vld [vmem:[#allocation5 + $0x308] sm:$0xff] }
 0x313   : > { %v1465_v62 = vpop.f32.mrb[39].mxu1  ;;  %2161 = vmatprep.mubr.f32.mxu1 %v11620_v25  ;;  %v7936_v19 = vpop.f32.mrb[61].mxu0  ;;  %v7964_v8 = vadd.f32 %v7841_v36, %v1022_v49 }
 0x314   : > { %2636 = vmax.xlane.f32.xlu1 %v2635_v10  ;;  %11685 = vst [vmem:[#allocation93_spill] sm:$0xff] %v7945_v53  ;;  %v7967_v10 = vadd.f32 %v7844_v54, %v1023_v12  ;;  %v7969_v51 = vpop.trf.xlu0  ;;  %v2641_v45 = vmax.f32 %v7945_v53, %v7948_v21  ;;  %v963_v54 = vld [vmem:[#allocation5 + $0x108] sm:$0xff]  ;;  %v1032_v12 = vld [vmem:[#allocation5 + $0x330] sm:$0xff]  ;;  %v7986_v46 = vadd.f32 %v1465_v62, %v969_v52 }
 0x315   : > { %11689 = vst [vmem:[#allocation97_spill] sm:$0xff] %v7964_v8  ;;  %v7992_v48 = vadd.f32 %v7868_v0, %v963_v54 }
 0x316   : > { %v7950_v58 = vpop.f32.mrb[40].mxu1  ;;  %2741 = vmax.xlane.f32.xlu0 %v2740_v56  ;;  %5467 = vmatmul.mubr.msk.f32.gmra.mrb[110].mxu1 %vm1186_vm2, %v7508_v55  ;;  %v1816_v43 = vpop.f32.mrb[62].mxu0  ;;  %11690 = vst [vmem:[#allocation98_spill] sm:$0xff] %v7967_v10  ;;  %v968_v55 = vld [vmem:[#allocation5 + $0x130] sm:$0xff]  ;;  %v962_v56 = vld [vmem:[#allocation5 + $0x100] sm:$0xff]  ;;  %v2737_v21 = vmax.f32 %v7964_v8, %v7967_v10  ;;  %11692 = vst [vmem:[#allocation100_spill] sm:$0xff] %v7986_v46 }
 0x317   : > { %v7958_v16 = vpop.f32.mrb[41].mxu1  ;;  %2167 = vmatprep.mubr.f32.mxu1 %v11620_v25  ;;  %v1818_v7 = vpop.f32.mrb[63].mxu0  ;;  %v7984_v53 = vadd.f32 %v1463_v41, %v968_v55  ;;  %11694 = vst [vmem:[#allocation102_spill] sm:$0xff] %v7992_v48  ;;  %v7998_v10 = vadd.f32 %v1816_v43, %v1032_v12  ;;  %v973_v43 = vld [vmem:[#allocation5 + $0x158] sm:$0xff]  ;;  %v992_v8 = vld [vmem:[#allocation5 + $0x1f0] sm:$0xff] }
 0x318   : > { %2732 = vmax.xlane.f32.xlu1 %v2731_v44  ;;  %v8000_v41 = vadd.f32 %v1818_v7, %v1033_v35  ;;  %v8013_v7 = vpop.trf.xlu0  ;;  %v1037_v35 = vld [vmem:[#allocation5 + $0x358] sm:$0xff] }
 0x319   : > { %11691 = vst [vmem:[#allocation99_spill] sm:$0xff] %v7984_v53  ;;  %11695 = vst [vmem:[#allocation103_spill] sm:$0xff] %v7998_v10  ;;  %v2656_v0 = vmax.f32 %v7984_v53, %v7986_v46 }
 0x31a   : > { %v1475_v15 = vpop.f32.mrb[42].mxu1  ;;  %2651 = vmax.xlane.f32.xlu0 %v2650_v11  ;;  %5468 = vmatmul.mubr.msk.f32.gmra.mrb[112].mxu1 %vm1186_vm2, %v7514_v57  ;;  %v7977_v36 = vpop.f32.mrb[64].mxu0  ;;  %v7989_v57 = vadd.f32 %v7860_v3, %v962_v56  ;;  %v1026_v11 = vld [vmem:[#allocation5 + $0x300] sm:$0xff]  ;;  %11696 = vst [vmem:[#allocation104_spill] sm:$0xff] %v8000_v41  ;;  %v2752_v54 = vmax.f32 %v7998_v10, %v8000_v41  ;;  %v1031_v10 = vld [vmem:[#allocation5 + $0x328] sm:$0xff] }
 0x31b   : > { %v1477_v44 = vpop.f32.mrb[43].mxu1  ;;  %2173 = vmatprep.mubr.f32.mxu1 %v11620_v25  ;;  %v7980_v49 = vpop.f32.mrb[65].mxu0  ;;  %v8008_v52 = vadd.f32 %v7887_v60, %v1026_v11 }
 0x31c   : > { %2642 = vmax.xlane.f32.xlu1 %v2641_v45  ;;  %11693 = vst [vmem:[#allocation101_spill] sm:$0xff] %v7989_v57  ;;  %v8011_v45 = vadd.f32 %v7890_v47, %v1027_v39  ;;  %v2647_v56 = vmax.f32 %v7989_v57, %v7992_v48  ;;  %v967_v47 = vld [vmem:[#allocation5 + $0x128] sm:$0xff]  ;;  %v1036_v39 = vld [vmem:[#allocation5 + $0x350] sm:$0xff]  ;;  %v8030_v41 = vadd.f32 %v1477_v44, %v973_v43 }
 0x31d   : > { %11697 = vst [vmem:[#allocation105_spill] sm:$0xff] %v8008_v52  ;;  %v8036_v46 = vadd.f32 %v7914_v26, %v967_v47 }
 0x31e   : > { %v7994_v24 = vpop.f32.mrb[44].mxu1  ;;  %2747 = vmax.xlane.f32.xlu0 %v2746_v42  ;;  %5469 = vmatmul.mubr.msk.f32.gmra.mrb[114].mxu1 %vm1186_vm2, %v7520_v59  ;;  %v1828_v62 = vpop.f32.mrb[66].mxu0  ;;  %11698 = vst [vmem:[#allocation106_spill] sm:$0xff] %v8011_v45  ;;  %v972_v59 = vld [vmem:[#allocation5 + $0x150] sm:$0xff]  ;;  %v966_v42 = vld [vmem:[#allocation5 + $0x120] sm:$0xff]  ;;  %v2743_v48 = vmax.f32 %v8008_v52, %v8011_v45  ;;  %11700 = vst [vmem:[#allocation108_spill] sm:$0xff] %v8030_v41 }
 0x31f   : > { %v8002_v55 = vpop.f32.mrb[45].mxu1  ;;  %2179 = vmatprep.mubr.f32.mxu1 %v11620_v25  ;;  %v1830_v3 = vpop.f32.mrb[67].mxu0  ;;  %v8028_v57 = vadd.f32 %v1475_v15, %v972_v59  ;;  %11702 = vst [vmem:[#allocation110_spill] sm:$0xff] %v8036_v46  ;;  %v8042_v45 = vadd.f32 %v1828_v62, %v1036_v39  ;;  %v977_v62 = vld [vmem:[#allocation5 + $0x178] sm:$0xff] }
 0x320   : > { %2738 = vmax.xlane.f32.xlu1 %v2737_v21  ;;  %v8044_v15 = vadd.f32 %v1830_v3, %v1037_v35  ;;  %v8057_v3 = vpop.trf.xlu0  ;;  %v1041_v35 = vld [vmem:[#allocation5 + $0x378] sm:$0xff] }
 0x321   : > { %11699 = vst [vmem:[#allocation107_spill] sm:$0xff] %v8028_v57  ;;  %11703 = vst [vmem:[#allocation111_spill] sm:$0xff] %v8042_v45  ;;  %v2662_v26 = vmax.f32 %v8028_v57, %v8030_v41 }
 0x322   : > { %v1487_v12 = vpop.f32.mrb[46].mxu1  ;;  %2657 = vmax.xlane.f32.xlu0 %v2656_v0  ;;  %5470 = vmatmul.mubr.msk.f32.gmra.mrb[116].mxu1 %vm1186_vm2, %v7524_v61  ;;  %v8021_v60 = vpop.f32.mrb[68].mxu0  ;;  %v8033_v61 = vadd.f32 %v7906_v40, %v966_v42  ;;  %v1030_v0 = vld [vmem:[#allocation5 + $0x320] sm:$0xff]  ;;  %11704 = vst [vmem:[#allocation112_spill] sm:$0xff] %v8044_v15  ;;  %v2758_v47 = vmax.f32 %v8042_v45, %v8044_v15  ;;  %v1035_v45 = vld [vmem:[#allocation5 + $0x348] sm:$0xff] }
 0x323   : > { %v1489_v21 = vpop.f32.mrb[47].mxu1  ;;  %2185 = vmatprep.mubr.f32.mxu1 %v11620_v25  ;;  %v8024_v11 = vpop.f32.mrb[69].mxu0  ;;  %v8052_v43 = vadd.f32 %v7933_v29, %v1030_v0 }
 0x324   : > { %2648 = vmax.xlane.f32.xlu1 %v2647_v56  ;;  %11701 = vst [vmem:[#allocation109_spill] sm:$0xff] %v8033_v61  ;;  %v8055_v56 = vadd.f32 %v7936_v19, %v1031_v10  ;;  %v2653_v42 = vmax.f32 %v8033_v61, %v8036_v46  ;;  %v971_v19 = vld [vmem:[#allocation5 + $0x148] sm:$0xff]  ;;  %v1040_v10 = vld [vmem:[#allocation5 + $0x370] sm:$0xff]  ;;  %v8074_v15 = vadd.f32 %v1489_v21, %v977_v62 }
 0x325   : > { %11705 = vst [vmem:[#allocation113_spill] sm:$0xff] %v8052_v43  ;;  %v8080_v41 = vadd.f32 %v7958_v16, %v971_v19 }
 0x326   : > { %v8038_v53 = vpop.f32.mrb[48].mxu1  ;;  %2753 = vmax.xlane.f32.xlu0 %v2752_v54  ;;  %5471 = vmatmul.mubr.msk.f32.gmra.mrb[118].mxu1 %vm1186_vm2, %v7528_v2  ;;  %v1840_v44 = vpop.f32.mrb[70].mxu0  ;;  %11706 = vst [vmem:[#allocation114_spill] sm:$0xff] %v8055_v56  ;;  %v976_v2 = vld [vmem:[#allocation5 + $0x170] sm:$0xff]  ;;  %v970_v54 = vld [vmem:[#allocation5 + $0x140] sm:$0xff]  ;;  %v2749_v46 = vmax.f32 %v8052_v43, %v8055_v56  ;;  %11708 = vst [vmem:[#allocation116_spill] sm:$0xff] %v8074_v15 }
 0x327   : > { %v8046_v59 = vpop.f32.mrb[49].mxu1  ;;  %2191 = vmatprep.mubr.f32.mxu1 %v11620_v25  ;;  %v1842_v40 = vpop.f32.mrb[71].mxu0  ;;  %v8072_v61 = vadd.f32 %v1487_v12, %v976_v2  ;;  %11710 = vst [vmem:[#allocation118_spill] sm:$0xff] %v8080_v41  ;;  %v8086_v56 = vadd.f32 %v1840_v44, %v1040_v10  ;;  %v980_v44 = vld [vmem:[#allocation5 + $0x190] sm:$0xff] }
 0x328   : > { %2744 = vmax.xlane.f32.xlu1 %v2743_v48  ;;  %v8088_v12 = vadd.f32 %v1842_v40, %v1041_v35  ;;  %v981_v40 = vld [vmem:[#allocation5 + $0x198] sm:$0xff] }
 0x329   : > { %11707 = vst [vmem:[#allocation115_spill] sm:$0xff] %v8072_v61  ;;  %11711 = vst [vmem:[#allocation119_spill] sm:$0xff] %v8086_v56  ;;  %v2668_v16 = vmax.f32 %v8072_v61, %v8074_v15  ;;  %v1045_v35 = vld [vmem:[#allocation5 + $0x398] sm:$0xff] }
 0x32a   : > { %v1499_v39 = vpop.f32.mrb[50].mxu1  ;;  %5472 = vmatmul.mubr.msk.f32.gmra.mrb[120].mxu1 %vm1186_vm2, %v7534_v9  ;;  %2663 = vmax.xlane.f32.xlu0 %v2662_v26  ;;  %v8065_v29 = vpop.f32.mrb[72].mxu0  ;;  %v8077_v9 = vadd.f32 %v7950_v58, %v970_v54  ;;  %v1034_v26 = vld [vmem:[#allocation5 + $0x340] sm:$0xff]  ;;  %11712 = vst [vmem:[#allocation120_spill] sm:$0xff] %v8088_v12  ;;  %v2764_v19 = vmax.f32 %v8086_v56, %v8088_v12  ;;  %v1039_v56 = vld [vmem:[#allocation5 + $0x368] sm:$0xff] }
 0x32b   : > { %v1501_v48 = vpop.f32.mrb[51].mxu1  ;;  %2197 = vmatprep.mubr.f32.mxu1 %v11620_v25  ;;  %v8068_v0 = vpop.f32.mrb[73].mxu0  ;;  %v8096_v62 = vadd.f32 %v7977_v36, %v1034_v26 }
 0x32c   : > { %2654 = vmax.xlane.f32.xlu1 %v2653_v42  ;;  %11709 = vst [vmem:[#allocation117_spill] sm:$0xff] %v8077_v9  ;;  %v8099_v42 = vadd.f32 %v7980_v49, %v1035_v45  ;;  %v2659_v54 = vmax.f32 %v8077_v9, %v8080_v41  ;;  %v975_v49 = vld [vmem:[#allocation5 + $0x168] sm:$0xff]  ;;  %v1044_v45 = vld [vmem:[#allocation5 + $0x390] sm:$0xff]  ;;  %v8116_v9 = vadd.f32 %v1499_v39, %v980_v44 }
 0x32d   : > { %11713 = vst [vmem:[#allocation121_spill] sm:$0xff] %v8096_v62  ;;  %v8118_v12 = vadd.f32 %v1501_v48, %v981_v40  ;;  %v8124_v15 = vadd.f32 %v8002_v55, %v975_v49  ;;  %v8145_v40 = vadd.f32 %v8024_v11, %v1039_v56 }
 0x32e   : > { %v8082_v57 = vpop.f32.mrb[52].mxu1  ;;  %5473 = vmatmul.mubr.msk.f32.gmra.mrb[122].mxu1 %vm1186_vm2, %v7538_v13  ;;  %2759 = vmax.xlane.f32.xlu0 %v2758_v47  ;;  %v1852_v21 = vpop.f32.mrb[74].mxu0  ;;  %11714 = vst [vmem:[#allocation122_spill] sm:$0xff] %v8099_v42  ;;  %v974_v47 = vld [vmem:[#allocation5 + $0x160] sm:$0xff]  ;;  %v2755_v41 = vmax.f32 %v8096_v62, %v8099_v42  ;;  %11715 = vst [vmem:[#allocation123_spill] sm:$0xff] %v8116_v9 }
 0x32f   : > { %v8090_v2 = vpop.f32.mrb[53].mxu1  ;;  %2203 = vmatprep.mubr.f32.mxu1 %v11620_v25  ;;  %v1854_v58 = vpop.f32.mrb[75].mxu0  ;;  %11716 = vst [vmem:[#allocation124_spill] sm:$0xff] %v8118_v12  ;;  %11718 = vst [vmem:[#allocation126_spill] sm:$0xff] %v8124_v15  ;;  %v8130_v42 = vadd.f32 %v1852_v21, %v1044_v45  ;;  %v985_v21 = vld [vmem:[#allocation5 + $0x1b8] sm:$0xff]  ;;  %v1042_v45 = vld [vmem:[#allocation5 + $0x380] sm:$0xff] }
 0x330   : > { %2750 = vmax.xlane.f32.xlu1 %v2749_v46  ;;  %v8101_v13 = vpop.trf.xlu0  ;;  %v8132_v39 = vadd.f32 %v1854_v58, %v1045_v35  ;;  %11722 = vst [vmem:[#allocation130_spill] sm:$0xff] %v8145_v40 }
 0x331   : > { %11719 = vst [vmem:[#allocation127_spill] sm:$0xff] %v8130_v42 }
 0x332   : > { %v1511_v10 = vpop.f32.mrb[54].mxu1  ;;  %5474 = vmatmul.mubr.msk.f32.gmra.mrb[124].mxu1 %vm1186_vm2, %v7544_v17  ;;  %2669 = vmax.xlane.f32.xlu0 %v2668_v16  ;;  %v8109_v36 = vpop.f32.mrb[76].mxu0  ;;  %v8121_v17 = vadd.f32 %v7994_v24, %v974_v47  ;;  %v1038_v16 = vld [vmem:[#allocation5 + $0x360] sm:$0xff]  ;;  %11720 = vst [vmem:[#allocation128_spill] sm:$0xff] %v8132_v39  ;;  %v2674_v24 = vmax.f32 %v8116_v9, %v8118_v12 }
 0x333   : > { %v1513_v46 = vpop.f32.mrb[55].mxu1  ;;  %2209 = vmatprep.mubr.f32.mxu1 %v11620_v25  ;;  %v8112_v26 = vpop.f32.mrb[77].mxu0  ;;  %v8142_v55 = vadd.f32 %v8021_v60, %v1038_v16  ;;  %v979_v60 = vld [vmem:[#allocation5 + $0x188] sm:$0xff] }
 0x334   : > { %2660 = vmax.xlane.f32.xlu1 %v2659_v54  ;;  %11717 = vst [vmem:[#allocation125_spill] sm:$0xff] %v8121_v17  ;;  %v8134_v48 = vpop.trf.xlu0  ;;  %v2665_v58 = vmax.f32 %v8121_v17, %v8124_v15  ;;  %v2770_v54 = vmax.f32 %v8130_v42, %v8132_v39  ;;  %v8158_v56 = vadd.f32 %v1513_v46, %v985_v21  ;;  %v1043_v16 = vld [vmem:[#allocation5 + $0x388] sm:$0xff]  ;;  %v988_v39 = vld [vmem:[#allocation5 + $0x1d0] sm:$0xff] }
 0x335   : > { %11721 = vst [vmem:[#allocation129_spill] sm:$0xff] %v8142_v55  ;;  %v8166_v42 = vadd.f32 %v8046_v59, %v979_v60  ;;  %v1046_v60 = vld [vmem:[#allocation5 + $0x3a0] sm:$0xff] }
 0x336   : > { %v8126_v61 = vpop.f32.mrb[56].mxu1  ;;  %5475 = vmatmul.mubr.msk.f32.gmra.mrb[126].mxu1 %vm1186_vm2, %v7548_v20  ;;  %2765 = vmax.xlane.f32.xlu0 %v2764_v19  ;;  %v984_v20 = vld [vmem:[#allocation5 + $0x1b0] sm:$0xff]  ;;  %v978_v19 = vld [vmem:[#allocation5 + $0x180] sm:$0xff]  ;;  %11724 = vst [vmem:[#allocation132_spill] sm:$0xff] %v8158_v56 }
 0x337   : > { %v8136_v44 = vpop.f32.mrb[57].mxu1  ;;  %2215 = vmatprep.mubr.f32.mxu1 %v11620_v25  ;;  %v8156_v11 = vadd.f32 %v1511_v10, %v984_v20  ;;  %11726 = vst [vmem:[#allocation134_spill] sm:$0xff] %v8166_v42  ;;  %v8173_v10 = vadd.f32 %v8065_v29, %v1042_v45  ;;  %v8181_v20 = vadd.f32 %v8068_v0, %v1043_v16 }
 0x338   : > { %2756 = vmax.xlane.f32.xlu1 %v2755_v41  ;;  %v2761_v41 = vmax.f32 %v8142_v55, %v8145_v40  ;;  %v8160_v35 = vpop.trf.xlu0 }
 0x339   : > { %11723 = vst [vmem:[#allocation131_spill] sm:$0xff] %v8156_v11  ;;  %11727 = vst [vmem:[#allocation135_spill] sm:$0xff] %v8173_v10 }
 0x33a   : > { %v1523_v47 = vpop.f32.mrb[58].mxu1  ;;  %5476 = vmatmul.mubr.msk.f32.gmra.mrb[128].mxu1 %vm1186_vm2, %v7554_v23  ;;  %2675 = vmax.xlane.f32.xlu0 %v2674_v24  ;;  %v989_v23 = vld [vmem:[#allocation5 + $0x1d8] sm:$0xff]  ;;  %v8163_v24 = vadd.f32 %v8038_v53, %v978_v19  ;;  %v2680_v53 = vmax.f32 %v8156_v11, %v8158_v56  ;;  %11728 = vst [vmem:[#allocation136_spill] sm:$0xff] %v8181_v20  ;;  %v983_v19 = vld [vmem:[#allocation5 + $0x1a8] sm:$0xff] }
 0x33b   : > { %v1525_v49 = vpop.f32.mrb[59].mxu1  ;;  %2221 = vmatprep.mubr.f32.mxu1 %v11620_v25  ;;  %v8183_v59 = vadd.f32 %v1523_v47, %v988_v39  ;;  %v2767_v39 = vmax.f32 %v8173_v10, %v8181_v20  ;;  %v8208_v45 = vadd.f32 %v8090_v2, %v983_v19  ;;  %v986_v19 = vld [vmem:[#allocation5 + $0x1c0] sm:$0xff] }
 0x33c   : > { %2666 = vmax.xlane.f32.xlu1 %v2665_v58  ;;  %11725 = vst [vmem:[#allocation133_spill] sm:$0xff] %v8163_v24  ;;  %v8185_v21 = vadd.f32 %v1525_v49, %v989_v23  ;;  %v8191_v29 = vpop.trf.xlu0  ;;  %v8202_v49 = vpop.permute.xlu1 %386 }
 0x33d   : > { %11729 = vst [vmem:[#allocation137_spill] sm:$0xff] %v8183_v59  ;;  %11731 = vst [vmem:[#allocation139_spill] sm:$0xff] %v8202_v49  ;;  %v654_v2 = vadd.f32 %v7414_v6, %v8202_v49 }
 0x33e   : > { %v8168_v15 = vpop.f32.mrb[60].mxu1  ;;  %5477 = vmatmul.mubr.msk.f32.gmra.mrb[130].mxu1 %vm1186_vm2, %v7558_v27  ;;  %2771 = vmax.xlane.f32.xlu0 %v2770_v54  ;;  %11730 = vst [vmem:[#allocation138_spill] sm:$0xff] %v8185_v21  ;;  %v2671_v27 = vmax.f32 %v8163_v24, %v8166_v42  ;;  %v982_v54 = vld [vmem:[#allocation5 + $0x1a0] sm:$0xff]  ;;  %v2686_v47 = vmax.f32 %v8183_v59, %v8185_v21  ;;  %11733 = vst [vmem:[#allocation141_spill] sm:$0xff] %v8208_v45 }
 0x33f   : > { %v8175_v46 = vpop.f32.mrb[61].mxu1  ;;  %2227 = vmatprep.mubr.f32.mxu1 %v11620_v25 }
 0x340   : > { %2762 = vmax.xlane.f32.xlu1 %v2761_v41  ;;  %v8205_v41 = vadd.f32 %v8082_v57, %v982_v54 }
 0x342   : > { %5478 = vmatmul.mubr.msk.f32.gmra.mrb[132].mxu1 %vm1186_vm2, %v7564_v32  ;;  %2681 = vmax.xlane.f32.xlu0 %v2680_v53  ;;  %v8193_v58 = vpop.f32.mrb[62].mxu1  ;;  %v1047_v32 = vld [vmem:[#allocation5 + $0x3a8] sm:$0xff]  ;;  %11732 = vst [vmem:[#allocation140_spill] sm:$0xff] %v8205_v41  ;;  %v8218_v53 = vadd.f32 %v8109_v36, %v1046_v60 }
 0x343   : > { %2233 = vmatprep.mubr.f32.mxu1 %v11620_v25  ;;  %v8196_v0 = vpop.f32.mrb[63].mxu1  ;;  %v8223_v57 = vadd.f32 %v8112_v26, %v1047_v32 }
 0x344   : > { %2672 = vmax.xlane.f32.xlu1 %v2671_v27  ;;  %11734 = vst [vmem:[#allocation142_spill] sm:$0xff] %v8218_v53  ;;  %v8220_v27 = vpop.trf.xlu0 }
 0x345   : > { %11735 = vst [vmem:[#allocation143_spill] sm:$0xff] %v8223_v57  ;;  %v2773_v26 = vmax.f32 %v8218_v53, %v8223_v57  ;;  %v11757_v53 = vld [vmem:[#allocation13_spill] sm:$0xff] }
 0x346   : > { %5479 = vmatmul.mubr.msk.f32.gmra.mrb[134].mxu1 %vm1186_vm2, %v7568_v34  ;;  %2687 = vmax.xlane.f32.xlu0 %v2686_v47  ;;  %v8212_v16 = vpop.f32.mrb[64].mxu1  ;;  %v2677_v34 = vmax.f32 %v8205_v41, %v8208_v45  ;;  %v8238_v47 = vadd.f32 %v8126_v61, %v986_v19  ;;  %v11739_v19 = vld [vmem:[#allocation19_spill] sm:$0xff] }
 0x347   : > { %2239 = vmatprep.mubr.f32.mxu1 %v11620_v25  ;;  %v8215_v23 = vpop.f32.mrb[65].mxu1 }
 0x348   : > { %2768 = vmax.xlane.f32.xlu1 %v2767_v39  ;;  %v987_v39 = vld [vmem:[#allocation5 + $0x1c8] sm:$0xff]  ;;  %11736 = vst [vmem:[#allocation144_spill] sm:$0xff] %v8238_v47 }
 0x349   : > { %v8241_v6 = vadd.f32 %v8136_v44, %v987_v39  ;;  %v11741_v39 = vld [vmem:[#allocation21_spill] sm:$0xff] }
 0x34a   : > { %5480 = vmatmul.mubr.msk.f32.gmra.mrb[136].mxu1 %vm1186_vm2, %v7574_v37  ;;  %v8231_v54 = vpop.f32.mrb[66].mxu1 }
 0x34b   : > { %4583 = vmatprep.mubr.f32.mxu1 %v654_v2  ;;  %v8233_v36 = vpop.f32.mrb[67].mxu1  ;;  %11737 = vst [vmem:[#allocation145_spill] sm:$0xff] %v8241_v6 }
 0x34c   : > { %2678 = vmax.xlane.f32.xlu1 %v2677_v34  ;;  %v2683_v34 = vmax.f32 %v8238_v47, %v8241_v6 }
 0x34e   : > { %v382_v60 = vpop.permute.xlu0 %381  ;;  %v8243_v32 = vpop.f32.mrb[68].mxu1 }
 0x34f   : > { %v646_v37 = vadd.f32 %v7404_v1, %v382_v60  ;;  %v648_v49 = vadd.f32 %v7408_v4, %v382_v60  ;;  %v8247_v2 = vpop.f32.mrb[69].mxu1  ;;  %v11738_v4 = vld [vmem:[#allocation18_spill] sm:$0xff]  ;;  %v11743_v60 = vld [vmem:[#allocation27_spill] sm:$0xff] }
 0x350   : > { %2774 = vmax.xlane.f32.xlu1 %v2773_v26  ;;  %v11742_v26 = vld [vmem:[#allocation22_spill] sm:$0xff] }
 0x351   : > { %2342 = vmatprep.subr.mxu0 %v648_v49 }
 0x352   : > { %2343 = vmatpush1.msra.mxu0 %v646_v37  ;;  %v8251_v61 = vpop.f32.mrb[70].mxu1  ;;  %v11744_v37 = vld [vmem:[#allocation30_spill] sm:$0xff]  ;;  %v8393_v57 = vpop.permute.xlu0 %391 }
 0x353   : > { %5481 = vmatmul.mubr.msk.f32.vlgmr.msra.gmra.mrb[78].mxu0 %vm1186_vm2, %v7560_v28  ;;  %v8255_v44 = vpop.f32.mrb[71].mxu1  ;;  %v11740_v28 = vld [vmem:[#allocation20_spill] sm:$0xff]  ;;  %v660_v45 = vadd.f32 %v11757_v53, %v8393_v57 }
 0x354   : > { %2684 = vmax.xlane.f32.xlu1 %v2683_v34  ;;  %2412 = vmatprep.mubr.f32.mxu0 %v11620_v25  ;;  %v11745_v34 = vld [vmem:[#allocation33_spill] sm:$0xff]  ;;  %11755 = vst [vmem:[#allocation20_spill] sm:$0xff] %v8393_v57 }
 0x356   : > { %v8258_v1 = vpop.f32.mrb[72].mxu1 }
 0x357   : > { %5482 = vmatmul.mubr.msk.f32.gmra.mrb[80].mxu0 %vm1186_vm2, %v11738_v4  ;;  %v8262_v49 = vpop.f32.mrb[73].mxu1  ;;  %v11746_v4 = vld [vmem:[#allocation38_spill] sm:$0xff] }
 0x358   : > { %2418 = vmatprep.mubr.f32.mxu0 %v11620_v25 }
 0x359   : > { %v8430_v24 = vpop.xlane.xlu1 %2600 }
 0x35b   : > { %5483 = vmatmul.mubr.msk.f32.gmra.mrb[82].mxu0 %vm1186_vm2, %v11739_v19  ;;  %v11747_v19 = vld [vmem:[#allocation41_spill] sm:$0xff] }
 0x35c   : > { %2424 = vmatprep.mubr.f32.mxu0 %v11620_v25 }
 0x35f   : > { %5484 = vmatmul.mubr.msk.f32.gmra.mrb[84].mxu0 %vm1186_vm2, %v11740_v28  ;;  %v11748_v28 = vld [vmem:[#allocation42_spill] sm:$0xff] }
 0x360   : > { %2430 = vmatprep.mubr.f32.mxu0 %v11620_v25 }
 0x363   : > { %5485 = vmatmul.mubr.msk.f32.gmra.mrb[86].mxu0 %vm1186_vm2, %v11741_v39  ;;  %v11749_v39 = vld [vmem:[#allocation45_spill] sm:$0xff] }
 0x364   : > { %2436 = vmatprep.mubr.f32.mxu0 %v11620_v25 }
 0x367   : > { %5486 = vmatmul.mubr.msk.f32.gmra.mrb[88].mxu0 %vm1186_vm2, %v11742_v26  ;;  %v11750_v26 = vld [vmem:[#allocation50_spill] sm:$0xff] }
 0x368   : > { %2442 = vmatprep.mubr.f32.mxu0 %v11620_v25 }
 0x36b   : > { %5487 = vmatmul.mubr.msk.f32.gmra.mrb[90].mxu0 %vm1186_vm2, %v11743_v60  ;;  %v11751_v60 = vld [vmem:[#allocation55_spill] sm:$0xff] }
 0x36c   : > { %2448 = vmatprep.mubr.f32.mxu0 %v11620_v25 }
 0x36f   : > { %5488 = vmatmul.mubr.msk.f32.gmra.mrb[92].mxu0 %vm1186_vm2, %v11744_v37  ;;  %v11752_v37 = vld [vmem:[#allocation58_spill] sm:$0xff] }
 0x370   : > { %2454 = vmatprep.mubr.f32.mxu0 %v11620_v25 }
 0x373   : > { %5489 = vmatmul.mubr.msk.f32.gmra.mrb[94].mxu0 %vm1186_vm2, %v11745_v34 }
 0x374   : > { %2460 = vmatprep.mubr.f32.mxu0 %v11620_v25 }
 0x377   : > { %5490 = vmatmul.mubr.msk.f32.gmra.mrb[96].mxu0 %vm1186_vm2, %v11746_v4 }
 0x378   : > { %2466 = vmatprep.mubr.f32.mxu0 %v11620_v25 }
 0x37b   : > { %5491 = vmatmul.mubr.msk.f32.gmra.mrb[98].mxu0 %vm1186_vm2, %v11747_v19 }
 0x37c   : > { %2472 = vmatprep.mubr.f32.mxu0 %v11620_v25 }
 0x37f   : > { %5492 = vmatmul.mubr.msk.f32.gmra.mrb[100].mxu0 %vm1186_vm2, %v11748_v28 }
 0x380   : > { %2478 = vmatprep.mubr.f32.mxu0 %v11620_v25 }
 0x383   : > { %5493 = vmatmul.mubr.msk.f32.gmra.mrb[102].mxu0 %vm1186_vm2, %v11749_v39 }
 0x384   : > { %2484 = vmatprep.mubr.f32.mxu0 %v11620_v25 }
 0x387   : > { %5494 = vmatmul.mubr.msk.f32.gmra.mrb[104].mxu0 %vm1186_vm2, %v11750_v26 }
 0x388   : > { %2490 = vmatprep.mubr.f32.mxu0 %v11620_v25 }
 0x38b   : > { %5495 = vmatmul.mubr.msk.f32.gmra.mrb[106].mxu0 %vm1186_vm2, %v11751_v60 }
 0x38c   : > { %2496 = vmatprep.mubr.f32.mxu0 %v11620_v25 }
 0x38f   : > { %5496 = vmatmul.mubr.msk.f32.gmra.mrb[108].mxu0 %vm1186_vm2, %v11752_v37 }
 0x390   : > { %2502 = vmatprep.mubr.f32.mxu0 %v11620_v25 }
 0x393   : > { %5497 = vmatmul.mubr.msk.f32.gmra.mrb[110].mxu0 %vm1186_vm2, %v7758_v38 }
 0x394   : > { %2508 = vmatprep.mubr.f32.mxu0 %v11620_v25 }
 0x397   : > { %5498 = vmatmul.mubr.msk.f32.gmra.mrb[112].mxu0 %vm1186_vm2, %v7787_v14 }
 0x398   : > { %2514 = vmatprep.mubr.f32.mxu0 %v11620_v25 }
 0x39b   : > { %5499 = vmatmul.mubr.msk.f32.gmra.mrb[114].mxu0 %vm1186_vm2, %v7806_v5 }
 0x39c   : > { %2520 = vmatprep.mubr.f32.mxu0 %v11620_v25 }
 0x39f   : > { %5500 = vmatmul.mubr.msk.f32.gmra.mrb[116].mxu0 %vm1186_vm2, %v7833_v18 }
 0x3a0   : > { %2526 = vmatprep.mubr.f32.mxu0 %v11620_v25 }
 0x3a1   : > { %v8319_v34 = vpop.f32.mrb[74].mxu1 }
 0x3a2   : > { %v8321_v38 = vpop.f32.mrb[75].mxu1 }
 0x3a3   : > { %5501 = vmatmul.mubr.msk.f32.gmra.mrb[118].mxu0 %vm1186_vm2, %v7852_v63 }
 0x3a4   : > { %2532 = vmatprep.mubr.f32.mxu0 %v11620_v25 }
 0x3a5   : > { %v8326_v14 = vpop.f32.mrb[76].mxu1 }
 0x3a6   : > { %v8328_v4 = vpop.f32.mrb[77].mxu1 }
 0x3a7   : > { %5502 = vmatmul.mubr.msk.f32.gmra.mrb[120].mxu0 %vm1186_vm2, %v7879_v22 }
 0x3a8   : > { %2538 = vmatprep.mubr.f32.mxu0 %v11620_v25 }
 0x3a9   : > { %v8333_v5 = vpop.f32.mrb[78].mxu1 }
 0x3aa   : > { %v8335_v18 = vpop.f32.mrb[79].mxu1 }
 0x3ab   : > { %5503 = vmatmul.mubr.msk.f32.gmra.mrb[122].mxu0 %vm1186_vm2, %v7898_v30 }
 0x3ac   : > { %2544 = vmatprep.mubr.f32.mxu0 %v11620_v25 }
 0x3ad   : > { %v8340_v63 = vpop.f32.mrb[80].mxu1 }
 0x3ae   : > { %v8342_v19 = vpop.f32.mrb[81].mxu1 }
 0x3af   : > { %5504 = vmatmul.mubr.msk.f32.gmra.mrb[124].mxu0 %vm1186_vm2, %v7925_v33 }
 0x3b0   : > { %2550 = vmatprep.mubr.f32.mxu0 %v11620_v25 }
 0x3b1   : > { %v8347_v22 = vpop.f32.mrb[82].mxu1 }
 0x3b2   : > { %v8349_v28 = vpop.f32.mrb[83].mxu1 }
 0x3b3   : > { %5505 = vmatmul.mubr.msk.f32.gmra.mrb[126].mxu0 %vm1186_vm2, %v7969_v51 }
 0x3b4   : > { %2556 = vmatprep.mubr.f32.mxu0 %v11620_v25 }
 0x3b5   : > { %v8354_v30 = vpop.f32.mrb[84].mxu1 }
 0x3b6   : > { %v8356_v39 = vpop.f32.mrb[85].mxu1 }
 0x3b7   : > { %5506 = vmatmul.mubr.msk.f32.gmra.mrb[128].mxu0 %vm1186_vm2, %v8013_v7 }
 0x3b8   : > { %2562 = vmatprep.mubr.f32.mxu0 %v11620_v25 }
 0x3b9   : > { %v8361_v33 = vpop.f32.mrb[86].mxu1 }
 0x3ba   : > { %v8363_v26 = vpop.f32.mrb[87].mxu1 }
 0x3bb   : > { %5507 = vmatmul.mubr.msk.f32.gmra.mrb[130].mxu0 %vm1186_vm2, %v8057_v3 }
 0x3bc   : > { %2568 = vmatprep.mubr.f32.mxu0 %v11620_v25 }
 0x3bd   : > { %v8368_v51 = vpop.f32.mrb[88].mxu1 }
 0x3be   : > { %v8370_v60 = vpop.f32.mrb[89].mxu1 }
 0x3bf   : > { %5508 = vmatmul.mubr.msk.f32.gmra.mrb[132].mxu0 %vm1186_vm2, %v8101_v13 }
 0x3c0   : > { %2574 = vmatprep.mubr.f32.mxu0 %v11620_v25 }
 0x3c1   : > { %v8375_v7 = vpop.f32.mrb[90].mxu1 }
 0x3c2   : > { %v8377_v37 = vpop.f32.mrb[91].mxu1 }
 0x3c3   : > { %5509 = vmatmul.mubr.msk.f32.gmra.mrb[134].mxu0 %vm1186_vm2, %v8134_v48 }
 0x3c4   : > { %2580 = vmatprep.mubr.f32.mxu0 %v11620_v25 }
 0x3c5   : > { %v8382_v3 = vpop.f32.mrb[92].mxu1 }
 0x3c6   : > { %v8384_v6 = vpop.f32.mrb[93].mxu1 }
 0x3c7   : > { %5510 = vmatmul.mubr.msk.f32.gmra.mrb[136].mxu0 %vm1186_vm2, %v8160_v35 }
 0x3c8   : > { %2586 = vmatprep.mubr.f32.mxu0 %v11620_v25 }
 0x3c9   : > { %v8389_v13 = vpop.f32.mrb[94].mxu1 }
 0x3ca   : > { %11753 = vst [vmem:[#allocation18_spill] sm:$0xff] %v8389_v13  ;;  %v8391_v47 = vpop.f32.mrb[95].mxu1 }
 0x3cb   : > { %11754 = vst [vmem:[#allocation19_spill] sm:$0xff] %v8391_v47  ;;  %5511 = vmatmul.mubr.msk.f32.gmra.mrb[138].mxu0 %vm1186_vm2, %v8191_v29  ;;  %v993_v47 = vld [vmem:[#allocation5 + $0x1f8] sm:$0xff] }
 0x3cc   : > { %2592 = vmatprep.mubr.f32.mxu0 %v11620_v25 }
 0x3cd   : > { %v8398_v48 = vpop.f32.mrb[96].mxu1 }
 0x3ce   : > { %11756 = vst [vmem:[#allocation21_spill] sm:$0xff] %v8398_v48  ;;  %v8402_v41 = vpop.f32.mrb[97].mxu1 }
 0x3cf   : > { %11758 = vst [vmem:[#allocation22_spill] sm:$0xff] %v8402_v41  ;;  %5512 = vmatmul.mubr.msk.f32.gmra.mrb[140].mxu0 %vm1186_vm2, %v8220_v27 }
 0x3d0   : > { %4654 = vmatprep.mubr.f32.mxu0 %v660_v45 }
 0x3d1   : > { %v8406_v35 = vpop.f32.mrb[98].mxu1 }
 0x3d2   : > { %11759 = vst [vmem:[#allocation27_spill] sm:$0xff] %v8406_v35  ;;  %v8408_v20 = vpop.f32.mrb[99].mxu1 }
 0x3d3   : > { %11760 = vst [vmem:[#allocation30_spill] sm:$0xff] %v8408_v20  ;;  %v991_v20 = vld [vmem:[#allocation5 + $0x1e8] sm:$0xff] }
 0x3d5   : > { %v8410_v10 = vpop.f32.mrb[100].mxu1 }
 0x3d6   : > { %11761 = vst [vmem:[#allocation33_spill] sm:$0xff] %v8410_v10  ;;  %v8412_v29 = vpop.f32.mrb[101].mxu1 }
 0x3d7   : > { %11762 = vst [vmem:[#allocation38_spill] sm:$0xff] %v8412_v29  ;;  %v1123_v29 = vld [vmem:[#allocation5 + $0x608] sm:$0xff] }
 0x3d9   : > { %v8414_v25 = vpop.f32.mrb[102].mxu1 }
 0x3da   : > { %11763 = vst [vmem:[#allocation41_spill] sm:$0xff] %v8414_v25  ;;  %v8416_v21 = vpop.f32.mrb[103].mxu1 }
 0x3db   : > { %11764 = vst [vmem:[#allocation42_spill] sm:$0xff] %v8416_v21 }
 0x3dd   : > { %v8418_v59 = vpop.f32.mrb[104].mxu1 }
 0x3de   : > { %11765 = vst [vmem:[#allocation45_spill] sm:$0xff] %v8418_v59  ;;  %v8420_v53 = vpop.f32.mrb[105].mxu1  ;;  %v8440_v59 = vpop.xlane.xlu1 %2696 }
 0x3df   : > { %11766 = vst [vmem:[#allocation50_spill] sm:$0xff] %v8420_v53 }
 0x3e1   : > { %v8422_v57 = vpop.f32.mrb[106].mxu1 }
 0x3e2   : > { %11767 = vst [vmem:[#allocation55_spill] sm:$0xff] %v8422_v57  ;;  %v8424_v27 = vpop.f32.mrb[107].mxu1 }
 0x3e3   : > { %11768 = vst [vmem:[#allocation58_spill] sm:$0xff] %v8424_v27  ;;  %v8446_v27 = vpop.xlane.xlu1 %2699 }
 0x3e5   : > { %v8426_v45 = vpop.f32.mrb[108].mxu1 }
 0x3e6   : > { %11769 = vst [vmem:[#allocation13_spill] sm:$0xff] %v8426_v45  ;;  %v8428_v42 = vpop.f32.mrb[109].mxu1 }
 0x3e7   : > { %11770 = vst [vmem:[#allocation146_spill] sm:$0xff] %v8428_v42 }
 0x3e9   : > { %v8432_v56 = vpop.f32.mrb[110].mxu1 }
 0x3ea   : > { %11771 = vst [vmem:[#allocation147_spill] sm:$0xff] %v8432_v56  ;;  %v8434_v11 = vpop.f32.mrb[111].mxu1 }
 0x3eb   : > { %11772 = vst [vmem:[#allocation148_spill] sm:$0xff] %v8434_v11  ;;  %v8456_v11 = vpop.xlane.xlu1 %2606 }
 0x3ed   : > { %v8436_v40 = vpop.f32.mrb[112].mxu1 }
 0x3ee   : > { %11773 = vst [vmem:[#allocation149_spill] sm:$0xff] %v8436_v40  ;;  %v8438_v55 = vpop.f32.mrb[113].mxu1 }
 0x3ef   : > { %11774 = vst [vmem:[#allocation150_spill] sm:$0xff] %v8438_v55  ;;  %v8462_v12 = vpop.xlane.xlu1 %2609 }
 0x3f1   : > { %v8442_v53 = vpop.f32.mrb[114].mxu1 }
 0x3f2   : > { %11775 = vst [vmem:[#allocation151_spill] sm:$0xff] %v8442_v53  ;;  %v8444_v57 = vpop.f32.mrb[115].mxu1 }
 0x3f3   : > { %11776 = vst [vmem:[#allocation152_spill] sm:$0xff] %v8444_v57 }
 0x3f5   : > { %v8448_v45 = vpop.f32.mrb[116].mxu1 }
 0x3f6   : > { %11777 = vst [vmem:[#allocation153_spill] sm:$0xff] %v8448_v45  ;;  %v8450_v42 = vpop.f32.mrb[117].mxu1 }
 0x3f7   : > { %11778 = vst [vmem:[#allocation154_spill] sm:$0xff] %v8450_v42  ;;  %v8472_v42 = vpop.xlane.xlu1 %2702 }
 0x3f9   : > { %v8452_v17 = vpop.f32.mrb[118].mxu1 }
 0x3fa   : > { %11779 = vst [vmem:[#allocation155_spill] sm:$0xff] %v8452_v17  ;;  %v8454_v56 = vpop.f32.mrb[119].mxu1 }
 0x3fb   : > { %11780 = vst [vmem:[#allocation156_spill] sm:$0xff] %v8454_v56  ;;  %v8478_v21 = vpop.xlane.xlu1 %2705 }
 0x3fd   : > { %v8458_v40 = vpop.f32.mrb[120].mxu1 }
 0x3fe   : > { %11781 = vst [vmem:[#allocation157_spill] sm:$0xff] %v8458_v40  ;;  %v8460_v55 = vpop.f32.mrb[121].mxu1 }
 0x3ff   : > { %11782 = vst [vmem:[#allocation158_spill] sm:$0xff] %v8460_v55 }
 0x401   : > { %v8464_v53 = vpop.f32.mrb[122].mxu1 }
 0x402   : > { %11783 = vst [vmem:[#allocation159_spill] sm:$0xff] %v8464_v53  ;;  %v8466_v57 = vpop.f32.mrb[123].mxu1 }
 0x403   : > { %11784 = vst [vmem:[#allocation160_spill] sm:$0xff] %v8466_v57  ;;  %v8488_v57 = vpop.xlane.xlu1 %2612 }
 0x405   : > { %v8468_v9 = vpop.f32.mrb[124].mxu1 }
 0x406   : > { %11785 = vst [vmem:[#allocation161_spill] sm:$0xff] %v8468_v9  ;;  %v8470_v45 = vpop.f32.mrb[125].mxu1 }
 0x407   : > { %11786 = vst [vmem:[#allocation162_spill] sm:$0xff] %v8470_v45  ;;  %v8494_v62 = vpop.xlane.xlu1 %2615 }
 0x409   : > { %v8474_v17 = vpop.f32.mrb[126].mxu1 }
 0x40a   : > { %11787 = vst [vmem:[#allocation163_spill] sm:$0xff] %v8474_v17  ;;  %v8476_v56 = vpop.f32.mrb[127].mxu1 }
 0x40b   : > { %11788 = vst [vmem:[#allocation164_spill] sm:$0xff] %v8476_v56 }
 0x40d   : > { %v8480_v40 = vpop.f32.mrb[128].mxu1 }
 0x40e   : > { %11789 = vst [vmem:[#allocation165_spill] sm:$0xff] %v8480_v40  ;;  %v8482_v55 = vpop.f32.mrb[129].mxu1 }
 0x40f   : > { %11790 = vst [vmem:[#allocation166_spill] sm:$0xff] %v8482_v55  ;;  %v8504_v55 = vpop.xlane.xlu1 %2708 }
 0x411   : > { %v8484_v25 = vpop.f32.mrb[130].mxu1 }
 0x412   : > { %11791 = vst [vmem:[#allocation167_spill] sm:$0xff] %v8484_v25  ;;  %v8486_v53 = vpop.f32.mrb[131].mxu1  ;;  %v1122_v25 = vld [vmem:[#allocation5 + $0x600] sm:$0xff] }
 0x413   : > { %11792 = vst [vmem:[#allocation168_spill] sm:$0xff] %v8486_v53  ;;  %v8506_v53 = vpop.xlane.xlu1 %2711 }
 0x415   : > { %v8490_v9 = vpop.f32.mrb[132].mxu1 }
 0x416   : > { %11793 = vst [vmem:[#allocation169_spill] sm:$0xff] %v8490_v9  ;;  %v8492_v45 = vpop.f32.mrb[133].mxu1  ;;  %v990_v9 = vld [vmem:[#allocation5 + $0x1e0] sm:$0xff] }
 0x417   : > { %11794 = vst [vmem:[#allocation170_spill] sm:$0xff] %v8492_v45  ;;  %v8520_v13 = vpop.xlane.xlu1 %2618 }
 0x419   : > { %v8496_v17 = vpop.f32.mrb[134].mxu1 }
 0x41a   : > { %11795 = vst [vmem:[#allocation171_spill] sm:$0xff] %v8496_v17  ;;  %v8498_v56 = vpop.f32.mrb[135].mxu1  ;;  %v1124_v17 = vld [vmem:[#allocation5 + $0x610] sm:$0xff] }
 0x41b   : > { %11796 = vst [vmem:[#allocation172_spill] sm:$0xff] %v8498_v56  ;;  %v1125_v56 = vld [vmem:[#allocation5 + $0x618] sm:$0xff] }
 0x41d   : > { %v8500_v43 = vpop.f32.mrb[136].mxu1 }
 0x41e   : > { %11797 = vst [vmem:[#allocation173_spill] sm:$0xff] %v8500_v43  ;;  %v8502_v40 = vpop.f32.mrb[137].mxu1  ;;  %v8513_v43 = vadd.f32 %v8168_v15, %v990_v9  ;;  %v1127_v15 = vld [vmem:[#allocation5 + $0x628] sm:$0xff] }
 0x41f   : > { %11798 = vst [vmem:[#allocation174_spill] sm:$0xff] %v8502_v40  ;;  %v8516_v40 = vadd.f32 %v8175_v46, %v991_v20  ;;  %v8529_v46 = vadd.f32 %v8193_v58, %v992_v8  ;;  %v8532_v20 = vadd.f32 %v8196_v0, %v993_v47  ;;  %v1048_v47 = vld [vmem:[#allocation5 + $0x3b0] sm:$0xff] }
 0x420   : > { %11801 = vst [vmem:[#allocation177_spill] sm:$0xff] %v8513_v43 }
 0x421   : > { %11802 = vst [vmem:[#allocation178_spill] sm:$0xff] %v8516_v40  ;;  %v2689_v9 = vmax.f32 %v8513_v43, %v8516_v40  ;;  %11805 = vst [vmem:[#allocation181_spill] sm:$0xff] %v8529_v46  ;;  %v1129_v40 = vld [vmem:[#allocation5 + $0x638] sm:$0xff]  ;;  %v2692_v8 = vmax.f32 %v8529_v46, %v8532_v20 }
 0x422   : > { %11806 = vst [vmem:[#allocation182_spill] sm:$0xff] %v8532_v20 }
 0x426   : > { %v2408_v10 = vpop.f32.mrb[78].mxu0 }
 0x427   : > { %v8508_v45 = vadd.f32 %v2408_v10, %v1122_v25  ;;  %v2410_v35 = vpop.f32.mrb[79].mxu0  ;;  %v1126_v25 = vld [vmem:[#allocation5 + $0x620] sm:$0xff] }
 0x428   : > { %v8510_v52 = vadd.f32 %v2410_v35, %v1123_v29 }
 0x429   : > { %11799 = vst [vmem:[#allocation175_spill] sm:$0xff] %v8508_v45 }
 0x42a   : > { %11800 = vst [vmem:[#allocation176_spill] sm:$0xff] %v8510_v52  ;;  %v2887_v41 = vmax.f32 %v8508_v45, %v8510_v52  ;;  %v2414_v48 = vpop.f32.mrb[80].mxu0  ;;  %v8540_v45 = vpop.xlane.xlu1 %2621 }
 0x42b   : > { %v8522_v10 = vadd.f32 %v2414_v48, %v1124_v17  ;;  %v2416_v35 = vpop.f32.mrb[81].mxu0 }
 0x42c   : > { %v8524_v29 = vadd.f32 %v2416_v35, %v1125_v56  ;;  %2888 = vmax.xlane.f32.xlu1 %v2887_v41  ;;  %v1128_v41 = vld [vmem:[#allocation5 + $0x630] sm:$0xff] }
 0x42d   : > { %11803 = vst [vmem:[#allocation179_spill] sm:$0xff] %v8522_v10 }
 0x42e   : > { %11804 = vst [vmem:[#allocation180_spill] sm:$0xff] %v8524_v29  ;;  %v2890_v52 = vmax.f32 %v8522_v10, %v8524_v29  ;;  %v2420_v17 = vpop.f32.mrb[82].mxu0  ;;  %v1049_v29 = vld [vmem:[#allocation5 + $0x3b8] sm:$0xff] }
 0x42f   : > { %v8536_v48 = vadd.f32 %v2420_v17, %v1126_v25  ;;  %v2422_v56 = vpop.f32.mrb[83].mxu0  ;;  %v8554_v20 = vadd.f32 %v8215_v23, %v1049_v29 }
 0x430   : > { %v8538_v35 = vadd.f32 %v2422_v56, %v1127_v15  ;;  %2891 = vmax.xlane.f32.xlu0 %v2890_v52  ;;  %2690 = vmax.xlane.f32.xlu1 %v2689_v9  ;;  %v1130_v52 = vld [vmem:[#allocation5 + $0x640] sm:$0xff]  ;;  %v1131_v9 = vld [vmem:[#allocation5 + $0x648] sm:$0xff]  ;;  %v8551_v56 = vadd.f32 %v8212_v16, %v1048_v47  ;;  %v1133_v16 = vld [vmem:[#allocation5 + $0x658] sm:$0xff] }
 0x431   : > { %11807 = vst [vmem:[#allocation183_spill] sm:$0xff] %v8536_v48  ;;  %11812 = vst [vmem:[#allocation188_spill] sm:$0xff] %v8554_v20 }
 0x432   : > { %11808 = vst [vmem:[#allocation184_spill] sm:$0xff] %v8538_v35  ;;  %v2893_v58 = vmax.f32 %v8536_v48, %v8538_v35  ;;  %v2426_v0 = vpop.f32.mrb[84].mxu0  ;;  %11811 = vst [vmem:[#allocation187_spill] sm:$0xff] %v8551_v56  ;;  %v8558_v48 = vpop.xlane.xlu1 %2714  ;;  %v2776_v23 = vmax.f32 %v8551_v56, %v8554_v20 }
 0x433   : > { %v8546_v25 = vadd.f32 %v2426_v0, %v1128_v41  ;;  %v2428_v17 = vpop.f32.mrb[85].mxu0  ;;  %v1050_v41 = vld [vmem:[#allocation5 + $0x3c0] sm:$0xff]  ;;  %v1051_v0 = vld [vmem:[#allocation5 + $0x3c8] sm:$0xff] }
 0x434   : > { %v8548_v15 = vadd.f32 %v2428_v17, %v1129_v40  ;;  %2693 = vmax.xlane.f32.xlu0 %v2692_v8  ;;  %2894 = vmax.xlane.f32.xlu1 %v2893_v58  ;;  %v1132_v17 = vld [vmem:[#allocation5 + $0x650] sm:$0xff]  ;;  %v8567_v29 = vadd.f32 %v8231_v54, %v1050_v41  ;;  %v8570_v47 = vadd.f32 %v8233_v36, %v1051_v0  ;;  %v1134_v54 = vld [vmem:[#allocation5 + $0x660] sm:$0xff]  ;;  %v1135_v36 = vld [vmem:[#allocation5 + $0x668] sm:$0xff] }
 0x435   : > { %11809 = vst [vmem:[#allocation185_spill] sm:$0xff] %v8546_v25 }
 0x436   : > { %11810 = vst [vmem:[#allocation186_spill] sm:$0xff] %v8548_v15  ;;  %v2896_v46 = vmax.f32 %v8546_v25, %v8548_v15  ;;  %v2432_v35 = vpop.f32.mrb[86].mxu0  ;;  %11815 = vst [vmem:[#allocation191_spill] sm:$0xff] %v8567_v29  ;;  %v8580_v41 = vpop.xlane.xlu1 %2624  ;;  %v2779_v0 = vmax.f32 %v8567_v29, %v8570_v47 }
 0x437   : > { %v8560_v40 = vadd.f32 %v2432_v35, %v1130_v52  ;;  %v2434_v8 = vpop.f32.mrb[87].mxu0  ;;  %11816 = vst [vmem:[#allocation192_spill] sm:$0xff] %v8570_v47  ;;  %v8574_v52 = vpop.xlane.xlu0 %2603  ;;  %v1136_v47 = vld [vmem:[#allocation5 + $0x670] sm:$0xff] }
 0x438   : > { %v8562_v58 = vadd.f32 %v2434_v8, %v1131_v9  ;;  %2897 = vmax.xlane.f32.xlu0 %v2896_v46  ;;  %v1052_v9 = vld [vmem:[#allocation5 + $0x3d0] sm:$0xff]  ;;  %v1053_v8 = vld [vmem:[#allocation5 + $0x3d8] sm:$0xff] }
 0x439   : > { %11813 = vst [vmem:[#allocation189_spill] sm:$0xff] %v8560_v40  ;;  %v8585_v20 = vadd.f32 %v8243_v32, %v1052_v9  ;;  %v8588_v56 = vadd.f32 %v8247_v2, %v1053_v8  ;;  %v1137_v32 = vld [vmem:[#allocation5 + $0x678] sm:$0xff] }
 0x43a   : > { %11814 = vst [vmem:[#allocation190_spill] sm:$0xff] %v8562_v58  ;;  %v2899_v15 = vmax.f32 %v8560_v40, %v8562_v58  ;;  %v2438_v35 = vpop.f32.mrb[88].mxu0 }
 0x43b   : > { %v8576_v46 = vadd.f32 %v2438_v35, %v1132_v17  ;;  %v2440_v25 = vpop.f32.mrb[89].mxu0  ;;  %11819 = vst [vmem:[#allocation195_spill] sm:$0xff] %v8585_v20  ;;  %11820 = vst [vmem:[#allocation196_spill] sm:$0xff] %v8588_v56  ;;  %v8596_v29 = vpop.xlane.xlu0 %2717  ;;  %v2782_v2 = vmax.f32 %v8585_v20, %v8588_v56 }
 0x43c   : > { %v8578_v10 = vadd.f32 %v2440_v25, %v1133_v16  ;;  %2777 = vmax.xlane.f32.xlu0 %v2776_v23  ;;  %2900 = vmax.xlane.f32.xlu1 %v2899_v15  ;;  %v1054_v16 = vld [vmem:[#allocation5 + $0x3e0] sm:$0xff]  ;;  %v1055_v23 = vld [vmem:[#allocation5 + $0x3e8] sm:$0xff] }
 0x43d   : > { %11817 = vst [vmem:[#allocation193_spill] sm:$0xff] %v8576_v46  ;;  %v8601_v9 = vadd.f32 %v8251_v61, %v1054_v16  ;;  %v8604_v8 = vadd.f32 %v8255_v44, %v1055_v23  ;;  %v11827_v61 = vld [vmem:[#allocation24_spill] sm:$0xff]  ;;  %v1138_v44 = vld [vmem:[#allocation5 + $0x680] sm:$0xff]  ;;  %v11829_v23 = vld [vmem:[#allocation25_spill] sm:$0xff] }
 0x43e   : > { %11818 = vst [vmem:[#allocation194_spill] sm:$0xff] %v8578_v10  ;;  %v2902_v17 = vmax.f32 %v8576_v46, %v8578_v10  ;;  %v2444_v25 = vpop.f32.mrb[90].mxu0  ;;  %v1057_v10 = vld [vmem:[#allocation5 + $0x3f8] sm:$0xff]  ;;  %v2984_v16 = vsub.f32 %v11827_v61, %v8430_v24  ;;  %v1058_v61 = vld [vmem:[#allocation5 + $0x400] sm:$0xff] }
 0x43f   : > { %v8592_v15 = vadd.f32 %v2444_v25, %v1134_v54  ;;  %v2446_v35 = vpop.f32.mrb[91].mxu0  ;;  %11823 = vst [vmem:[#allocation199_spill] sm:$0xff] %v8601_v9  ;;  %11824 = vst [vmem:[#allocation200_spill] sm:$0xff] %v8604_v8  ;;  %v8610_v25 = vpop.xlane.xlu1 %2720 }
 0x440   : > { %v8594_v58 = vadd.f32 %v2446_v35, %v1135_v36  ;;  %2903 = vmax.xlane.f32.xlu0 %v2902_v17  ;;  %2780 = vmax.xlane.f32.xlu1 %v2779_v0  ;;  %v11825_v17 = vld [vmem:[#allocation23_spill] sm:$0xff]  ;;  %v1056_v35 = vld [vmem:[#allocation5 + $0x3f0] sm:$0xff] }
 0x441   : > { %11821 = vst [vmem:[#allocation197_spill] sm:$0xff] %v8592_v15  ;;  %v2983_v0 = vsub.f32 %v11825_v17, %v8430_v24  ;;  %v2785_v17 = vmax.f32 %v8601_v9, %v8604_v8  ;;  %v8623_v40 = vadd.f32 %v8258_v1, %v1056_v35  ;;  %v3241_v1 = vmul.f32 1.442695, %v2984_v16  ;;  %v11834_v35 = vld [vmem:[#allocation51_spill] sm:$0xff]  ;;  %v1141_v9 = vld [vmem:[#allocation5 + $0x698] sm:$0xff] }
 0x442   : > { %11822 = vst [vmem:[#allocation198_spill] sm:$0xff] %v8594_v58  ;;  %v2905_v54 = vmax.f32 %v8592_v15, %v8594_v58  ;;  %v2450_v36 = vpop.f32.mrb[92].mxu0  ;;  %v3047_v58 = vsub.f32 %v11829_v23, %v8440_v59  ;;  %v1139_v15 = vld [vmem:[#allocation5 + $0x688] sm:$0xff]  ;;  %v8647_v16 = vadd.f32 %v8319_v34, %v1058_v61  ;;  %v11841_v34 = vld [vmem:[#allocation29_spill] sm:$0xff] }
 0x443   : > { %v8612_v46 = vadd.f32 %v2450_v36, %v1136_v47  ;;  %v2452_v56 = vpop.f32.mrb[93].mxu0  ;;  %11830 = vst [vmem:[#allocation25_spill] sm:$0xff] %v8623_v40  ;;  %v8626_v47 = vadd.f32 %v8262_v49, %v1057_v10  ;;  %v8632_v36 = vpop.xlane.xlu0 %2627  ;;  %v1059_v23 = vld [vmem:[#allocation5 + $0x408] sm:$0xff]  ;;  %v2985_v49 = vsub.f32 %v11834_v35, %v8574_v52  ;;  %v3050_v61 = vsub.f32 %v11841_v34, %v8446_v27 }
 0x444   : > { %v8616_v20 = vadd.f32 %v2452_v56, %v1137_v32  ;;  %2783 = vmax.xlane.f32.xlu0 %v2782_v2  ;;  %2906 = vmax.xlane.f32.xlu1 %v2905_v54  ;;  %v3239_v32 = vmul.f32 1.442695, %v2983_v0  ;;  %v11832_v2 = vld [vmem:[#allocation26_spill] sm:$0xff]  ;;  %v3367_v0 = vmul.f32 1.442695, %v3047_v58  ;;  %v1063_v34 = vld [vmem:[#allocation5 + $0x428] sm:$0xff] }
 0x445   : > { %11826 = vst [vmem:[#allocation23_spill] sm:$0xff] %v8612_v46  ;;  %11831 = vst [vmem:[#allocation201_spill] sm:$0xff] %v8626_v47  ;;  %v3048_v54 = vsub.f32 %v11832_v2, %v8440_v59  ;;  %v8642_v2 = vpop.xlane.xlu1 %2630 }
 0x446   : > { %11828 = vst [vmem:[#allocation24_spill] sm:$0xff] %v8616_v20  ;;  %v2908_v24 = vmax.f32 %v8612_v46, %v8616_v20  ;;  %v2456_v56 = vpop.f32.mrb[94].mxu0  ;;  %v1140_v20 = vld [vmem:[#allocation5 + $0x690] sm:$0xff]  ;;  %v11836_v46 = vld [vmem:[#allocation52_spill] sm:$0xff]  ;;  %6085 = vpow2.f32 %v3239_v32  ;;  %v11843_v32 = vld [vmem:[#allocation31_spill] sm:$0xff] }
 0x447   : > { %v8634_v43 = vadd.f32 %v2456_v56, %v1138_v44  ;;  %v2458_v8 = vpop.f32.mrb[95].mxu0  ;;  %v2986_v59 = vsub.f32 %v11836_v46, %v8574_v52  ;;  %v2788_v44 = vmax.f32 %v8623_v40, %v8626_v47  ;;  %11837 = vst [vmem:[#allocation52_spill] sm:$0xff] %v8647_v16  ;;  %v8650_v56 = vadd.f32 %v8321_v38, %v1059_v23  ;;  %v11839_v52 = vld [vmem:[#allocation28_spill] sm:$0xff]  ;;  %v1142_v40 = vld [vmem:[#allocation5 + $0x6a0] sm:$0xff] }
 0x448   : > { %v8638_v10 = vadd.f32 %v2458_v8, %v1139_v15  ;;  %2909 = vmax.xlane.f32.xlu0 %v2908_v24  ;;  %2786 = vmax.xlane.f32.xlu1 %v2785_v17  ;;  %v3369_v58 = vmul.f32 1.442695, %v3048_v54  ;;  %v3049_v46 = vsub.f32 %v11839_v52, %v8446_v27  ;;  %v1060_v17 = vld [vmem:[#allocation5 + $0x410] sm:$0xff]  ;;  %v1061_v24 = vld [vmem:[#allocation5 + $0x418] sm:$0xff]  ;;  %6087 = vpow2.f32 %v3241_v1 }
 0x449   : > { %11833 = vst [vmem:[#allocation26_spill] sm:$0xff] %v8634_v43  ;;  %11838 = vst [vmem:[#allocation202_spill] sm:$0xff] %v8650_v56  ;;  %v3243_v38 = vmul.f32 1.442695, %v2985_v49  ;;  %6089 = vpow2.f32 %v3367_v0  ;;  %v2987_v54 = vsub.f32 %v11843_v32, %v8456_v11  ;;  %v3245_v52 = vmul.f32 1.442695, %v2986_v59 }
 0x44a   : > { %11835 = vst [vmem:[#allocation51_spill] sm:$0xff] %v8638_v10  ;;  %v2911_v15 = vmax.f32 %v8634_v43, %v8638_v10  ;;  %v2462_v8 = vpop.f32.mrb[96].mxu0  ;;  %v8664_v10 = vpop.xlane.xlu0 %2723  ;;  %v2791_v1 = vmax.f32 %v8647_v16, %v8650_v56  ;;  %v8672_v27 = vadd.f32 %v8328_v4, %v1061_v24  ;;  %6091 = vpow2.f32 %v3369_v58  ;;  %v11846_v0 = vld [vmem:[#allocation32_spill] sm:$0xff]  ;;  %v11848_v4 = vld [vmem:[#allocation34_spill] sm:$0xff]  ;;  %v1144_v58 = vld [vmem:[#allocation5 + $0x6b0] sm:$0xff] }
 0x44b   : > { %v8656_v35 = vadd.f32 %v2462_v8, %v1140_v20  ;;  %v2464_v47 = vpop.f32.mrb[97].mxu0  ;;  %v1143_v20 = vld [vmem:[#allocation5 + $0x6a8] sm:$0xff]  ;;  %v8669_v8 = vadd.f32 %v8326_v14, %v1060_v17  ;;  %v3371_v49 = vmul.f32 1.442695, %v3049_v46  ;;  %v2988_v59 = vsub.f32 %v11846_v0, %v8456_v11  ;;  %v11850_v11 = vld [vmem:[#allocation35_spill] sm:$0xff] }
 0x44c   : > { %v8660_v23 = vadd.f32 %v2464_v47, %v1141_v9  ;;  %2789 = vmax.xlane.f32.xlu0 %v2788_v44  ;;  %2912 = vmax.xlane.f32.xlu1 %v2911_v15  ;;  %11845 = vst [vmem:[#allocation203_spill] sm:$0xff] %v8672_v27  ;;  %v8678_v44 = vpop.xlane.xlu1 %2726  ;;  %v1062_v15 = vld [vmem:[#allocation5 + $0x420] sm:$0xff]  ;;  %v3373_v17 = vmul.f32 1.442695, %v3050_v61  ;;  %v2989_v24 = vsub.f32 %v11848_v4, %v8462_v12  ;;  %6093 = vpow2.f32 %v3243_v38 }
 0x44d   : > { %11840 = vst [vmem:[#allocation28_spill] sm:$0xff] %v8656_v35  ;;  %11844 = vst [vmem:[#allocation31_spill] sm:$0xff] %v8669_v8  ;;  %v3247_v46 = vmul.f32 1.442695, %v2987_v54  ;;  %v2990_v0 = vsub.f32 %v11850_v11, %v8462_v12  ;;  %6095 = vpow2.f32 %v3245_v52  ;;  %v2794_v61 = vmax.f32 %v8669_v8, %v8672_v27 }
 0x44e   : > { %11842 = vst [vmem:[#allocation29_spill] sm:$0xff] %v8660_v23  ;;  %v2914_v9 = vmax.f32 %v8656_v35, %v8660_v23  ;;  %v2468_v47 = vpop.f32.mrb[98].mxu0  ;;  %v11851_v23 = vld [vmem:[#allocation36_spill] sm:$0xff]  ;;  %v8696_v38 = vadd.f32 %v8335_v18, %v1063_v34  ;;  %6097 = vpow2.f32 %v3371_v49  ;;  %v3249_v12 = vmul.f32 1.442695, %v2988_v59  ;;  %v8702_v52 = vpop.xlane.xlu0 %2633  ;;  %v11856_v18 = vld [vmem:[#allocation39_spill] sm:$0xff] }
 0x44f   : > { %v8680_v32 = vadd.f32 %v2468_v47, %v1142_v40  ;;  %v2470_v14 = vpop.f32.mrb[99].mxu0  ;;  %v3051_v35 = vsub.f32 %v11851_v23, %v8472_v42  ;;  %v1145_v40 = vld [vmem:[#allocation5 + $0x6b8] sm:$0xff]  ;;  %v8693_v47 = vadd.f32 %v8333_v5, %v1062_v15  ;;  %6099 = vpow2.f32 %v3373_v17 }
 0x450   : > { %v8684_v56 = vadd.f32 %v2470_v14, %v1143_v20  ;;  %2915 = vmax.xlane.f32.xlu0 %v2914_v9  ;;  %2792 = vmax.xlane.f32.xlu1 %v2791_v1  ;;  %11853 = vst [vmem:[#allocation36_spill] sm:$0xff] %v8696_v38  ;;  %v11854_v1 = vld [vmem:[#allocation37_spill] sm:$0xff]  ;;  %v1065_v14 = vld [vmem:[#allocation5 + $0x438] sm:$0xff]  ;;  %v3251_v15 = vmul.f32 1.442695, %v2989_v24  ;;  %v3053_v34 = vsub.f32 %v11856_v18, %v8478_v21  ;;  %v8710_v49 = vpop.eup %6085  ;;  %6101 = vpow2.f32 %v3247_v46  ;;  %v1147_v18 = vld [vmem:[#allocation5 + $0x6c8] sm:$0xff] }
 0x451   : > { %11847 = vst [vmem:[#allocation32_spill] sm:$0xff] %v8680_v32  ;;  %11852 = vst [vmem:[#allocation35_spill] sm:$0xff] %v8693_v47  ;;  %v3052_v23 = vsub.f32 %v11854_v1, %v8472_v42  ;;  %v1064_v9 = vld [vmem:[#allocation5 + $0x430] sm:$0xff]  ;;  %v3253_v42 = vmul.f32 1.442695, %v2990_v0  ;;  %v11859_v1 = vld [vmem:[#allocation40_spill] sm:$0xff]  ;;  %v2797_v17 = vmax.f32 %v8693_v47, %v8696_v38  ;;  %6103 = vpow2.f32 %v3249_v12 }
 0x452   : > { %11849 = vst [vmem:[#allocation34_spill] sm:$0xff] %v8684_v56  ;;  %v2917_v54 = vmax.f32 %v8680_v32, %v8684_v56  ;;  %v2474_v20 = vpop.f32.mrb[100].mxu0  ;;  %11858 = vst [vmem:[#allocation204_spill] sm:$0xff] %v8710_v49  ;;  %v3375_v59 = vmul.f32 1.442695, %v3051_v35  ;;  %v3054_v27 = vsub.f32 %v11859_v1, %v8478_v21  ;;  %v8721_v24 = vadd.f32 %v8340_v63, %v1064_v9  ;;  %v11865_v9 = vld [vmem:[#allocation44_spill] sm:$0xff] }
 0x453   : > { %v8704_v4 = vadd.f32 %v2474_v20, %v1144_v58  ;;  %v2476_v5 = vpop.f32.mrb[101].mxu0  ;;  %v8714_v58 = vpop.xlane.xlu1 %2636  ;;  %v3377_v21 = vmul.f32 1.442695, %v3052_v23  ;;  %6105 = vpow2.f32 %v3251_v15  ;;  %v3379_v63 = vmul.f32 1.442695, %v3053_v34  ;;  %v11867_v12 = vld [vmem:[#allocation46_spill] sm:$0xff] }
 0x454   : > { %v8708_v11 = vadd.f32 %v2476_v5, %v1145_v40  ;;  %2795 = vmax.xlane.f32.xlu0 %v2794_v61  ;;  %2918 = vmax.xlane.f32.xlu1 %v2917_v54  ;;  %v8716_v20 = vpop.eup %6087  ;;  %11861 = vst [vmem:[#allocation205_spill] sm:$0xff] %v8721_v24  ;;  %v8724_v40 = vadd.f32 %v8342_v19, %v1065_v14  ;;  %v11864_v61 = vld [vmem:[#allocation43_spill] sm:$0xff]  ;;  %6107 = vpow2.f32 %v3253_v42  ;;  %v1149_v47 = vld [vmem:[#allocation5 + $0x6d8] sm:$0xff] }
 0x455   : > { %11855 = vst [vmem:[#allocation37_spill] sm:$0xff] %v8704_v4  ;;  %11860 = vst [vmem:[#allocation40_spill] sm:$0xff] %v8716_v20  ;;  %v8728_v0 = vpop.eup %6089  ;;  %v2991_v54 = vsub.f32 %v11864_v61, %v8488_v57  ;;  %v1146_v5 = vld [vmem:[#allocation5 + $0x6c0] sm:$0xff]  ;;  %v2992_v19 = vsub.f32 %v11865_v9, %v8488_v57  ;;  %v2993_v23 = vsub.f32 %v11867_v12, %v8494_v62  ;;  %6109 = vpow2.f32 %v3375_v59 }
 0x456   : > { %11857 = vst [vmem:[#allocation39_spill] sm:$0xff] %v8708_v11  ;;  %11862 = vst [vmem:[#allocation206_spill] sm:$0xff] %v8724_v40  ;;  %v2920_v46 = vmax.f32 %v8704_v4, %v8708_v11  ;;  %v2480_v35 = vpop.f32.mrb[102].mxu0  ;;  %v8734_v14 = vpop.eup %6091  ;;  %v3381_v11 = vmul.f32 1.442695, %v3054_v27  ;;  %v3751_v61 = vadd.f32 %v8716_v20, %v8710_v49  ;;  %v2800_v57 = vmax.f32 %v8721_v24, %v8724_v40  ;;  %v1148_v49 = vld [vmem:[#allocation5 + $0x6d0] sm:$0xff] }
 0x457   : > { %11863 = vst [vmem:[#allocation207_spill] sm:$0xff] %v8728_v0  ;;  %v2482_v1 = vpop.f32.mrb[103].mxu0  ;;  %11866 = vst [vmem:[#allocation43_spill] sm:$0xff] %v8734_v14  ;;  %v8738_v4 = vpop.xlane.xlu0 %2729  ;;  %v8746_v15 = vadd.f32 %v2480_v35, %v1146_v5  ;;  %6111 = vpow2.f32 %v3377_v21  ;;  %v3257_v20 = vmul.f32 1.442695, %v2992_v19  ;;  %v11873_v35 = vld [vmem:[#allocation48_spill] sm:$0xff] }
 0x458   : > { %2921 = vmax.xlane.f32.xlu0 %v2920_v46  ;;  %2798 = vmax.xlane.f32.xlu1 %v2797_v17  ;;  %v8742_v38 = vpop.eup %6093  ;;  %v8748_v34 = vadd.f32 %v2482_v1, %v1147_v18  ;;  %v3255_v17 = vmul.f32 1.442695, %v2991_v54  ;;  %v11872_v46 = vld [vmem:[#allocation47_spill] sm:$0xff]  ;;  %v8754_v12 = vpop.xlane.xlu1 %2732  ;;  %6113 = vpow2.f32 %v3379_v63  ;;  %v3055_v5 = vsub.f32 %v11873_v35, %v8504_v55  ;;  %v11875_v54 = vld [vmem:[#allocation49_spill] sm:$0xff] }
 0x459   : > { %11868 = vst [vmem:[#allocation44_spill] sm:$0xff] %v8742_v38  ;;  %11869 = vst [vmem:[#allocation46_spill] sm:$0xff] %v8746_v15  ;;  %v8750_v27 = vpop.eup %6095  ;;  %v2994_v9 = vsub.f32 %v11872_v46, %v8494_v62  ;;  %6115 = vpow2.f32 %v3381_v11  ;;  %v3259_v21 = vmul.f32 1.442695, %v2993_v23  ;;  %v3056_v1 = vsub.f32 %v11875_v54, %v8504_v55  ;;  %v11880_v55 = vld [vmem:[#allocation53_spill] sm:$0xff]  ;;  %v1066_v54 = vld [vmem:[#allocation5 + $0x440] sm:$0xff] }
 0x45a   : > { %11870 = vst [vmem:[#allocation208_spill] sm:$0xff] %v8748_v34  ;;  %v2486_v42 = vpop.f32.mrb[104].mxu0  ;;  %11871 = vst [vmem:[#allocation209_spill] sm:$0xff] %v8750_v27  ;;  %v8758_v18 = vpop.eup %6097  ;;  %v2923_v46 = vmax.f32 %v8746_v15, %v8748_v34  ;;  %6117 = vpow2.f32 %v3255_v17  ;;  %v3057_v23 = vsub.f32 %v11880_v55, %v8506_v53  ;;  %v1067_v34 = vld [vmem:[#allocation5 + $0x448] sm:$0xff] }
 0x45b   : > { %v2488_v59 = vpop.f32.mrb[105].mxu0  ;;  %11874 = vst [vmem:[#allocation47_spill] sm:$0xff] %v8758_v18  ;;  %v8762_v62 = vpop.eup %6099  ;;  %v8766_v40 = vadd.f32 %v2486_v42, %v1148_v49  ;;  %v3261_v11 = vmul.f32 1.442695, %v2994_v9  ;;  %6119 = vpow2.f32 %v3257_v20  ;;  %v11881_v42 = vld [vmem:[#allocation54_spill] sm:$0xff]  ;;  %v11883_v9 = vld [vmem:[#allocation56_spill] sm:$0xff] }
 0x45c   : > { %2801 = vmax.xlane.f32.xlu0 %v2800_v57  ;;  %3752 = vadd.xlane.f32.xlu1 %v3751_v61  ;;  %11876 = vst [vmem:[#allocation48_spill] sm:$0xff] %v8762_v62  ;;  %v8768_v63 = vadd.f32 %v2488_v59, %v1149_v47  ;;  %v3754_v61 = vadd.f32 %v8750_v27, %v8742_v38  ;;  %v8774_v57 = vpop.eup %6101  ;;  %v8778_v35 = vpop.xlane.xlu0 %2639  ;;  %v3383_v47 = vmul.f32 1.442695, %v3055_v5  ;;  %6121 = vpow2.f32 %v3259_v21  ;;  %v11885_v20 = vld [vmem:[#allocation57_spill] sm:$0xff] }
 0x45d   : > { %11877 = vst [vmem:[#allocation49_spill] sm:$0xff] %v8766_v40  ;;  %11879 = vst [vmem:[#allocation211_spill] sm:$0xff] %v8774_v57  ;;  %v3058_v59 = vsub.f32 %v11881_v42, %v8506_v53  ;;  %v8784_v15 = vpop.eup %6103  ;;  %v3385_v17 = vmul.f32 1.442695, %v3056_v1  ;;  %v3061_v55 = vsub.f32 %v11883_v9, %v8596_v29  ;;  %v8788_v24 = vpop.xlane.xlu1 %2642  ;;  %v3847_v38 = vadd.f32 %v8734_v14, %v8728_v0  ;;  %v11889_v9 = vld [vmem:[#allocation59_spill] sm:$0xff]  ;;  %v1068_v14 = vld [vmem:[#allocation5 + $0x450] sm:$0xff] }
 0x45e   : > { %11878 = vst [vmem:[#allocation210_spill] sm:$0xff] %v8768_v63  ;;  %v8770_v19 = vpop.f32.mrb[106].mxu0  ;;  %11882 = vst [vmem:[#allocation53_spill] sm:$0xff] %v8784_v15  ;;  %v8792_v27 = vpop.eup %6105  ;;  %v3062_v5 = vsub.f32 %v11885_v20, %v8596_v29  ;;  %v8797_v53 = vadd.f32 %v8347_v22, %v1066_v54  ;;  %v2926_v21 = vmax.f32 %v8766_v40, %v8768_v63  ;;  %6123 = vpow2.f32 %v3261_v11  ;;  %v1069_v29 = vld [vmem:[#allocation5 + $0x458] sm:$0xff] }
 0x45f   : > { %v8780_v49 = vpop.f32.mrb[107].mxu0  ;;  %11884 = vst [vmem:[#allocation54_spill] sm:$0xff] %v8792_v27  ;;  %v3387_v42 = vmul.f32 1.442695, %v3057_v23  ;;  %v2995_v0 = vsub.f32 %v11889_v9, %v8520_v13  ;;  %6125 = vpow2.f32 %v3383_v47  ;;  %v3395_v11 = vmul.f32 1.442695, %v3061_v55 }
 0x460   : > { %2924 = vmax.xlane.f32.xlu1 %v2923_v46  ;;  %3755 = vadd.xlane.f32.xlu0 %v3754_v61  ;;  %11886 = vst [vmem:[#allocation56_spill] sm:$0xff] %v8797_v53  ;;  %v8800_v46 = vadd.f32 %v8349_v28, %v1067_v34  ;;  %v8806_v61 = vpop.eup %6107  ;;  %v3389_v28 = vmul.f32 1.442695, %v3058_v59  ;;  %v11891_v34 = vld [vmem:[#allocation60_spill] sm:$0xff]  ;;  %6127 = vpow2.f32 %v3385_v17  ;;  %v11893_v23 = vld [vmem:[#allocation61_spill] sm:$0xff]  ;;  %v8820_v40 = vpop.xlane.xlu0 %2735  ;;  %v3850_v8 = vadd.f32 %v8762_v62, %v8758_v18 }
 0x461   : > { %11888 = vst [vmem:[#allocation212_spill] sm:$0xff] %v8806_v61  ;;  %v8812_v22 = vpop.eup %6109  ;;  %v2996_v54 = vsub.f32 %v11891_v34, %v8520_v13  ;;  %v3001_v9 = vsub.f32 %v11893_v23, %v8632_v36  ;;  %v3397_v47 = vmul.f32 1.442695, %v3062_v5  ;;  %v8832_v59 = vadd.f32 %v8356_v39, %v1069_v29  ;;  %v11898_v34 = vld [vmem:[#allocation62_spill] sm:$0xff]  ;;  %v8840_v18 = vpop.xlane.xlu1 %2738  ;;  %v1150_v5 = vld [vmem:[#allocation5 + $0x6e0] sm:$0xff]  ;;  %v1151_v62 = vld [vmem:[#allocation5 + $0x6e8] sm:$0xff] }
 0x462   : > { %11887 = vst [vmem:[#allocation57_spill] sm:$0xff] %v8800_v46  ;;  %v8804_v1 = vpop.f32.mrb[108].mxu0  ;;  %11890 = vst [vmem:[#allocation59_spill] sm:$0xff] %v8812_v22  ;;  %v8816_v63 = vpop.eup %6111  ;;  %v2803_v13 = vmax.f32 %v8797_v53, %v8800_v46  ;;  %6129 = vpow2.f32 %v3387_v42  ;;  %v3002_v23 = vsub.f32 %v11898_v34, %v8632_v36  ;;  %v11899_v39 = vld [vmem:[#allocation63_spill] sm:$0xff]  ;;  %v11901_v42 = vld [vmem:[#allocation64_spill] sm:$0xff]  ;;  %v3757_v34 = vadd.f32 %v8784_v15, %v8774_v57 }
 0x463   : > { %v8810_v20 = vpop.f32.mrb[109].mxu0  ;;  %11892 = vst [vmem:[#allocation60_spill] sm:$0xff] %v8816_v63  ;;  %v8824_v56 = vpop.eup %6113  ;;  %11896 = vst [vmem:[#allocation214_spill] sm:$0xff] %v8832_v59  ;;  %6131 = vpow2.f32 %v3389_v28  ;;  %v2998_v36 = vsub.f32 %v11901_v42, %v8540_v45  ;;  %v1153_v57 = vld [vmem:[#allocation5 + $0x6f8] sm:$0xff]  ;;  %v3760_v15 = vadd.f32 %v8806_v61, %v8792_v27  ;;  %v1070_v61 = vld [vmem:[#allocation5 + $0x460] sm:$0xff] }
 0x464   : > { %3848 = vadd.xlane.f32.xlu1 %v3847_v38  ;;  %2927 = vmax.xlane.f32.xlu0 %v2926_v21  ;;  %11894 = vst [vmem:[#allocation61_spill] sm:$0xff] %v8824_v56  ;;  %v8829_v38 = vadd.f32 %v8354_v30, %v1068_v14  ;;  %v8836_v55 = vpop.eup %6115  ;;  %v3263_v21 = vmul.f32 1.442695, %v2995_v0  ;;  %v3265_v30 = vmul.f32 1.442695, %v2996_v54  ;;  %v2997_v14 = vsub.f32 %v11899_v39, %v8540_v45  ;;  %v8868_v42 = vpop.xlane.xlu0 %2645 }
 0x465   : > { %11897 = vst [vmem:[#allocation215_spill] sm:$0xff] %v8836_v55  ;;  %v8846_v29 = vpop.eup %6117  ;;  %6133 = vpow2.f32 %v3395_v11  ;;  %v3275_v0 = vmul.f32 1.442695, %v3001_v9  ;;  %v8857_v54 = vadd.f32 %v8770_v19, %v1150_v5  ;;  %v3277_v45 = vmul.f32 1.442695, %v3002_v23  ;;  %v11909_v23 = vld [vmem:[#allocation67_spill] sm:$0xff] }
 0x466   : > { %11895 = vst [vmem:[#allocation213_spill] sm:$0xff] %v8829_v38  ;;  %v8834_v17 = vpop.f32.mrb[110].mxu0  ;;  %11900 = vst [vmem:[#allocation62_spill] sm:$0xff] %v8846_v29  ;;  %v8852_v53 = vpop.eup %6119  ;;  %6135 = vpow2.f32 %v3397_v47  ;;  %v2806_v28 = vmax.f32 %v8829_v38, %v8832_v59  ;;  %v1152_v47 = vld [vmem:[#allocation5 + $0x6f0] sm:$0xff]  ;;  %v3267_v19 = vmul.f32 1.442695, %v2997_v14 }
 0x467   : > { %v8842_v46 = vpop.f32.mrb[111].mxu0  ;;  %11902 = vst [vmem:[#allocation63_spill] sm:$0xff] %v8852_v53  ;;  %11903 = vst [vmem:[#allocation64_spill] sm:$0xff] %v8857_v54  ;;  %v8864_v9 = vpop.eup %6121  ;;  %6137 = vpow2.f32 %v3263_v21  ;;  %v3269_v21 = vmul.f32 1.442695, %v2998_v36 }
 0x468   : > { %2804 = vmax.xlane.f32.xlu1 %v2803_v13  ;;  %3851 = vadd.xlane.f32.xlu0 %v3850_v8  ;;  %v8860_v8 = vadd.f32 %v8780_v49, %v1151_v62  ;;  %11905 = vst [vmem:[#allocation217_spill] sm:$0xff] %v8864_v9  ;;  %v11906_v13 = vld [vmem:[#allocation65_spill] sm:$0xff]  ;;  %6139 = vpow2.f32 %v3265_v30  ;;  %v11907_v62 = vld [vmem:[#allocation66_spill] sm:$0xff]  ;;  %v8874_v5 = vpop.eup %6123  ;;  %v8878_v38 = vpop.xlane.xlu1 %2648  ;;  %v11911_v30 = vld [vmem:[#allocation68_spill] sm:$0xff] }
 0x469   : > { %v3065_v39 = vsub.f32 %v11906_v13, %v8664_v10  ;;  %v3066_v49 = vsub.f32 %v11907_v62, %v8664_v10  ;;  %11908 = vst [vmem:[#allocation65_spill] sm:$0xff] %v8874_v5  ;;  %6141 = vpow2.f32 %v3275_v0  ;;  %v3059_v13 = vsub.f32 %v11909_v23, %v8558_v48  ;;  %v8882_v32 = vpop.eup %6125  ;;  %v11915_v23 = vld [vmem:[#allocation69_spill] sm:$0xff] }
 0x46a   : > { %11904 = vst [vmem:[#allocation216_spill] sm:$0xff] %v8860_v8  ;;  %v8862_v11 = vpop.f32.mrb[112].mxu0  ;;  %11910 = vst [vmem:[#allocation66_spill] sm:$0xff] %v8882_v32  ;;  %v3060_v14 = vsub.f32 %v11911_v30, %v8558_v48  ;;  %v2929_v10 = vmax.f32 %v8857_v54, %v8860_v8  ;;  %v8892_v0 = vadd.f32 %v8810_v20, %v1153_v57  ;;  %6143 = vpow2.f32 %v3277_v45  ;;  %v1071_v48 = vld [vmem:[#allocation5 + $0x468] sm:$0xff]  ;;  %v11918_v45 = vld [vmem:[#allocation71_spill] sm:$0xff]  ;;  %v8908_v54 = vpop.xlane.xlu0 %2741 }
 0x46b   : > { %v8870_v59 = vpop.f32.mrb[113].mxu0  ;;  %v3403_v62 = vmul.f32 1.442695, %v3065_v39  ;;  %v3005_v27 = vsub.f32 %v11915_v23, %v8702_v52  ;;  %6145 = vpow2.f32 %v3267_v19  ;;  %v3405_v8 = vmul.f32 1.442695, %v3066_v49 }
 0x46c   : > { %3758 = vadd.xlane.f32.xlu1 %v3757_v34  ;;  %2807 = vmax.xlane.f32.xlu0 %v2806_v28  ;;  %v8889_v34 = vadd.f32 %v8804_v1, %v1152_v47  ;;  %11913 = vst [vmem:[#allocation68_spill] sm:$0xff] %v8892_v0  ;;  %v8896_v28 = vpop.eup %6127  ;;  %v11916_v1 = vld [vmem:[#allocation70_spill] sm:$0xff]  ;;  %6147 = vpow2.f32 %v3269_v21  ;;  %v3391_v20 = vmul.f32 1.442695, %v3059_v13  ;;  %v2999_v39 = vsub.f32 %v11918_v45, %v8580_v41 }
 0x46d   : > { %11914 = vst [vmem:[#allocation218_spill] sm:$0xff] %v8896_v28  ;;  %v3006_v47 = vsub.f32 %v11916_v1, %v8702_v52  ;;  %v8904_v57 = vpop.eup %6129  ;;  %v3853_v23 = vadd.f32 %v8816_v63, %v8812_v22  ;;  %v3393_v19 = vmul.f32 1.442695, %v3060_v14  ;;  %v8915_v49 = vadd.f32 %v8361_v33, %v1070_v61  ;;  %v11923_v1 = vld [vmem:[#allocation72_spill] sm:$0xff]  ;;  %v8928_v22 = vpop.xlane.xlu1 %2744  ;;  %v1072_v14 = vld [vmem:[#allocation5 + $0x470] sm:$0xff]  ;;  %v1073_v33 = vld [vmem:[#allocation5 + $0x478] sm:$0xff] }
 0x46e   : > { %11912 = vst [vmem:[#allocation67_spill] sm:$0xff] %v8889_v34  ;;  %v8894_v36 = vpop.f32.mrb[114].mxu0  ;;  %11917 = vst [vmem:[#allocation69_spill] sm:$0xff] %v8904_v57  ;;  %v8912_v16 = vpop.eup %6131  ;;  %v8918_v52 = vadd.f32 %v8363_v26, %v1071_v48  ;;  %6149 = vpow2.f32 %v3403_v62  ;;  %v3000_v45 = vsub.f32 %v11923_v1, %v8580_v41  ;;  %v11927_v41 = vld [vmem:[#allocation74_spill] sm:$0xff]  ;;  %v3856_v63 = vadd.f32 %v8836_v55, %v8824_v56  ;;  %v1155_v56 = vld [vmem:[#allocation5 + $0x708] sm:$0xff] }
 0x46f   : > { %v8900_v30 = vpop.f32.mrb[115].mxu0  ;;  %11919 = vst [vmem:[#allocation70_spill] sm:$0xff] %v8912_v16  ;;  %11920 = vst [vmem:[#allocation71_spill] sm:$0xff] %v8915_v49  ;;  %v8924_v13 = vpop.eup %6133  ;;  %6151 = vpow2.f32 %v3405_v8  ;;  %v3285_v48 = vmul.f32 1.442695, %v3006_v47  ;;  %v3070_v1 = vsub.f32 %v11927_v41, %v8738_v4  ;;  %v8950_v47 = vadd.f32 %v8370_v60, %v1073_v33  ;;  %v11933_v60 = vld [vmem:[#allocation76_spill] sm:$0xff] }
 0x470   : > { %2930 = vmax.xlane.f32.xlu1 %v2929_v10  ;;  %3761 = vadd.xlane.f32.xlu0 %v3760_v15  ;;  %11921 = vst [vmem:[#allocation219_spill] sm:$0xff] %v8918_v52  ;;  %v2932_v15 = vmax.f32 %v8889_v34, %v8892_v0  ;;  %11922 = vst [vmem:[#allocation220_spill] sm:$0xff] %v8924_v13  ;;  %v3283_v10 = vmul.f32 1.442695, %v3005_v27  ;;  %v8932_v26 = vpop.eup %6135  ;;  %v11925_v0 = vld [vmem:[#allocation73_spill] sm:$0xff]  ;;  %6153 = vpow2.f32 %v3391_v20  ;;  %v8958_v41 = vpop.xlane.xlu0 %2651 }
 0x471   : > { %11924 = vst [vmem:[#allocation72_spill] sm:$0xff] %v8932_v26  ;;  %v3069_v34 = vsub.f32 %v11925_v0, %v8738_v4  ;;  %v8936_v62 = vpop.eup %6137  ;;  %v3271_v27 = vmul.f32 1.442695, %v2999_v39  ;;  %6155 = vpow2.f32 %v3393_v19  ;;  %v2809_v8 = vmax.f32 %v8915_v49, %v8918_v52  ;;  %11930 = vst [vmem:[#allocation222_spill] sm:$0xff] %v8950_v47  ;;  %v1154_v19 = vld [vmem:[#allocation5 + $0x700] sm:$0xff]  ;;  %v8968_v49 = vpop.xlane.xlu1 %2654 }
 0x472   : > { %v8922_v21 = vpop.f32.mrb[116].mxu0  ;;  %11926 = vst [vmem:[#allocation73_spill] sm:$0xff] %v8936_v62  ;;  %v8942_v43 = vpop.eup %6139  ;;  %v8947_v0 = vadd.f32 %v8368_v51, %v1072_v14  ;;  %6157 = vpow2.f32 %v3283_v10  ;;  %v3273_v4 = vmul.f32 1.442695, %v3000_v45  ;;  %v3064_v14 = vsub.f32 %v11933_v60, %v8610_v25  ;;  %v11935_v45 = vld [vmem:[#allocation77_spill] sm:$0xff]  ;;  %11936 = vst [vmem:[#allocation76_spill] sm:$0xff] %v8968_v49 }
 0x473   : > { %v8930_v61 = vpop.f32.mrb[117].mxu0  ;;  %11928 = vst [vmem:[#allocation74_spill] sm:$0xff] %v8942_v43  ;;  %v8954_v39 = vpop.eup %6141  ;;  %6159 = vpow2.f32 %v3285_v48  ;;  %v3411_v51 = vmul.f32 1.442695, %v3069_v34  ;;  %v3413_v10 = vmul.f32 1.442695, %v3070_v1  ;;  %v3763_v55 = vadd.f32 %v8852_v53, %v8846_v29 }
 0x474   : > { %3854 = vadd.xlane.f32.xlu1 %v3853_v23  ;;  %2933 = vmax.xlane.f32.xlu0 %v2932_v15  ;;  %11929 = vst [vmem:[#allocation221_spill] sm:$0xff] %v8947_v0  ;;  %11931 = vst [vmem:[#allocation223_spill] sm:$0xff] %v8954_v39  ;;  %v11932_v23 = vld [vmem:[#allocation75_spill] sm:$0xff]  ;;  %v8964_v33 = vpop.eup %6143  ;;  %6161 = vpow2.f32 %v3271_v27  ;;  %v11938_v34 = vld [vmem:[#allocation78_spill] sm:$0xff]  ;;  %v8982_v27 = vadd.f32 %v8842_v46, %v1155_v56 }
 0x475   : > { %v3063_v15 = vsub.f32 %v11932_v23, %v8610_v25  ;;  %11934 = vst [vmem:[#allocation75_spill] sm:$0xff] %v8964_v33  ;;  %v3009_v23 = vsub.f32 %v11935_v45, %v8778_v35  ;;  %v8972_v39 = vpop.eup %6145  ;;  %v3010_v48 = vsub.f32 %v11938_v34, %v8778_v35  ;;  %v2812_v25 = vmax.f32 %v8947_v0, %v8950_v47  ;;  %v11942_v45 = vld [vmem:[#allocation79_spill] sm:$0xff]  ;;  %v1156_v53 = vld [vmem:[#allocation5 + $0x710] sm:$0xff]  ;;  %v1157_v35 = vld [vmem:[#allocation5 + $0x718] sm:$0xff]  ;;  %v8998_v0 = vpop.xlane.xlu0 %2747 }
 0x476   : > { %v8952_v20 = vpop.f32.mrb[118].mxu0  ;;  %11937 = vst [vmem:[#allocation77_spill] sm:$0xff] %v8972_v39  ;;  %11940 = vst [vmem:[#allocation224_spill] sm:$0xff] %v8982_v27  ;;  %6163 = vpow2.f32 %v3273_v4  ;;  %v3003_v29 = vsub.f32 %v11942_v45, %v8642_v2  ;;  %v3401_v47 = vmul.f32 1.442695, %v3064_v14  ;;  %v11945_v4 = vld [vmem:[#allocation81_spill] sm:$0xff]  ;;  %v3766_v45 = vadd.f32 %v8874_v5, %v8864_v9  ;;  %v9018_v9 = vpop.xlane.xlu1 %2750 }
 0x477   : > { %v8960_v52 = vpop.f32.mrb[119].mxu0  ;;  %v3399_v60 = vmul.f32 1.442695, %v3063_v15  ;;  %6165 = vpow2.f32 %v3411_v51  ;;  %v3291_v46 = vmul.f32 1.442695, %v3009_v23  ;;  %v3073_v15 = vsub.f32 %v11945_v4, %v8820_v40  ;;  %v1075_v5 = vld [vmem:[#allocation5 + $0x488] sm:$0xff] }
 0x478   : > { %2810 = vmax.xlane.f32.xlu1 %v2809_v8  ;;  %3857 = vadd.xlane.f32.xlu0 %v3856_v63  ;;  %v8979_v63 = vadd.f32 %v8834_v17, %v1154_v19  ;;  %v8986_v8 = vpop.eup %6147  ;;  %v11943_v17 = vld [vmem:[#allocation80_spill] sm:$0xff]  ;;  %6167 = vpow2.f32 %v3413_v10  ;;  %v3293_v51 = vmul.f32 1.442695, %v3010_v48  ;;  %v9010_v14 = vadd.f32 %v8870_v59, %v1157_v35  ;;  %v1074_v48 = vld [vmem:[#allocation5 + $0x480] sm:$0xff] }
 0x479   : > { %11941 = vst [vmem:[#allocation225_spill] sm:$0xff] %v8986_v8  ;;  %v3004_v19 = vsub.f32 %v11943_v17, %v8642_v2  ;;  %v8994_v56 = vpop.eup %6149  ;;  %6169 = vpow2.f32 %v3399_v60  ;;  %v11950_v17 = vld [vmem:[#allocation82_spill] sm:$0xff] }
 0x47a   : > { %11939 = vst [vmem:[#allocation78_spill] sm:$0xff] %v8979_v63  ;;  %v8984_v1 = vpop.f32.mrb[120].mxu0  ;;  %11944 = vst [vmem:[#allocation79_spill] sm:$0xff] %v8994_v56  ;;  %v9002_v49 = vpop.eup %6151  ;;  %v2935_v2 = vmax.f32 %v8979_v63, %v8982_v27  ;;  %v3074_v4 = vsub.f32 %v11950_v17, %v8820_v40  ;;  %6171 = vpow2.f32 %v3401_v47  ;;  %v11953_v40 = vld [vmem:[#allocation83_spill] sm:$0xff]  ;;  %v3859_v17 = vadd.f32 %v8896_v28, %v8882_v32 }
 0x47b   : > { %v8990_v34 = vpop.f32.mrb[121].mxu0  ;;  %11946 = vst [vmem:[#allocation80_spill] sm:$0xff] %v9002_v49  ;;  %11948 = vst [vmem:[#allocation226_spill] sm:$0xff] %v9010_v14  ;;  %v9014_v23 = vpop.eup %6153  ;;  %v3281_v59 = vmul.f32 1.442695, %v3004_v19  ;;  %6173 = vpow2.f32 %v3291_v46  ;;  %v3068_v35 = vsub.f32 %v11953_v40, %v8678_v44  ;;  %v9035_v47 = vadd.f32 %v8375_v7, %v1074_v48  ;;  %v1077_v7 = vld [vmem:[#allocation5 + $0x498] sm:$0xff] }
 0x47c   : > { %3764 = vadd.xlane.f32.xlu1 %v3763_v55  ;;  %2813 = vmax.xlane.f32.xlu0 %v2812_v25  ;;  %v9007_v55 = vadd.f32 %v8862_v11, %v1156_v53  ;;  %11949 = vst [vmem:[#allocation227_spill] sm:$0xff] %v9014_v23  ;;  %v3279_v25 = vmul.f32 1.442695, %v3003_v29  ;;  %v9022_v53 = vpop.eup %6155  ;;  %v3067_v11 = vsub.f32 %v7874_v50, %v8678_v44  ;;  %v3419_v29 = vmul.f32 1.442695, %v3073_v15  ;;  %v9048_v40 = vpop.xlane.xlu0 %2657 }
 0x47d   : > { %11951 = vst [vmem:[#allocation82_spill] sm:$0xff] %v9022_v53  ;;  %v9026_v60 = vpop.eup %6157  ;;  %6175 = vpow2.f32 %v3293_v51  ;;  %11955 = vst [vmem:[#allocation229_spill] sm:$0xff] %v9035_v47  ;;  %v9038_v50 = vadd.f32 %v8377_v37, %v1075_v5  ;;  %v3421_v44 = vmul.f32 1.442695, %v3074_v4  ;;  %v1076_v51 = vld [vmem:[#allocation5 + $0x490] sm:$0xff]  ;;  %v11962_v4 = vld [vmem:[#allocation86_spill] sm:$0xff]  ;;  %v9058_v32 = vpop.xlane.xlu1 %2660  ;;  %v3862_v28 = vadd.f32 %v8912_v16, %v8904_v57 }
 0x47e   : > { %11947 = vst [vmem:[#allocation81_spill] sm:$0xff] %v9007_v55  ;;  %v9012_v10 = vpop.f32.mrb[122].mxu0  ;;  %11952 = vst [vmem:[#allocation228_spill] sm:$0xff] %v9026_v60  ;;  %v9032_v63 = vpop.eup %6159  ;;  %v2938_v19 = vmax.f32 %v9007_v55, %v9010_v14  ;;  %6177 = vpow2.f32 %v3279_v25  ;;  %v3407_v37 = vmul.f32 1.442695, %v3067_v11  ;;  %v11960_v5 = vld [vmem:[#allocation85_spill] sm:$0xff] }
 0x47f   : > { %v9020_v27 = vpop.f32.mrb[123].mxu0  ;;  %11954 = vst [vmem:[#allocation83_spill] sm:$0xff] %v9032_v63  ;;  %11956 = vst [vmem:[#allocation230_spill] sm:$0xff] %v9038_v50  ;;  %v9044_v15 = vpop.eup %6161  ;;  %6179 = vpow2.f32 %v3281_v59  ;;  %v3014_v14 = vsub.f32 %v11960_v5, %v8868_v42  ;;  %v3409_v25 = vmul.f32 1.442695, %v3068_v35  ;;  %v11964_v59 = vld [vmem:[#allocation87_spill] sm:$0xff] }
 0x480   : > { %2936 = vmax.xlane.f32.xlu1 %v2935_v2  ;;  %3767 = vadd.xlane.f32.xlu0 %v3766_v45  ;;  %11957 = vst [vmem:[#allocation231_spill] sm:$0xff] %v9044_v15  ;;  %v11958_v45 = vld [vmem:[#allocation84_spill] sm:$0xff]  ;;  %v9054_v55 = vpop.eup %6163  ;;  %6181 = vpow2.f32 %v3419_v29  ;;  %v3008_v11 = vsub.f32 %v11964_v59, %v8714_v58  ;;  %v9072_v29 = vadd.f32 %v8384_v6, %v1077_v7  ;;  %v1158_v16 = vld [vmem:[#allocation5 + $0x720] sm:$0xff] }
 0x481   : > { %v3013_v2 = vsub.f32 %v11958_v45, %v8868_v42  ;;  %11961 = vst [vmem:[#allocation85_spill] sm:$0xff] %v9054_v55  ;;  %v3007_v45 = vsub.f32 %v11962_v4, %v8714_v58  ;;  %v2815_v42 = vmax.f32 %v9035_v47, %v9038_v50  ;;  %6183 = vpow2.f32 %v3421_v44  ;;  %v11968_v4 = vld [vmem:[#allocation88_spill] sm:$0xff] }
 0x482   : > { %v9042_v46 = vpop.f32.mrb[124].mxu0  ;;  %11966 = vst [vmem:[#allocation232_spill] sm:$0xff] %v9072_v29  ;;  %v3077_v57 = vsub.f32 %v11968_v4, %v8908_v54  ;;  %v1159_v58 = vld [vmem:[#allocation5 + $0x728] sm:$0xff]  ;;  %6185 = vpow2.f32 %v3407_v37  ;;  %v3301_v50 = vmul.f32 1.442695, %v3014_v14  ;;  %v3071_v44 = vsub.f32 %v7920_v31, %v8754_v12 }
 0x483   : > { %v9050_v48 = vpop.f32.mrb[125].mxu0  ;;  %v3299_v5 = vmul.f32 1.442695, %v3013_v2  ;;  %6187 = vpow2.f32 %v3409_v25  ;;  %v3287_v7 = vmul.f32 1.442695, %v3007_v45  ;;  %v9088_v2 = vpop.xlane.xlu0 %2753  ;;  %v3769_v4 = vadd.f32 %v8942_v43, %v8936_v62  ;;  %v1161_v43 = vld [vmem:[#allocation5 + $0x738] sm:$0xff] }
 0x484   : > { %11959 = vst [vmem:[#allocation84_spill] sm:$0xff] %v9050_v48  ;;  %3860 = vadd.xlane.f32.xlu1 %v3859_v17  ;;  %2939 = vmax.xlane.f32.xlu0 %v2938_v19  ;;  %v9062_v48 = vpop.eup %6165  ;;  %v9069_v17 = vadd.f32 %v8382_v3, %v1076_v51  ;;  %v11969_v3 = vld [vmem:[#allocation89_spill] sm:$0xff]  ;;  %v3289_v14 = vmul.f32 1.442695, %v3008_v11  ;;  %v9100_v37 = vadd.f32 %v8900_v30, %v1159_v58  ;;  %v3427_v45 = vmul.f32 1.442695, %v3077_v57  ;;  %v9108_v62 = vpop.xlane.xlu1 %2756 }
 0x485   : > { %11963 = vst [vmem:[#allocation86_spill] sm:$0xff] %v9062_v48  ;;  %v9076_v19 = vpop.eup %6167  ;;  %v3078_v51 = vsub.f32 %v11969_v3, %v8908_v54  ;;  %6189 = vpow2.f32 %v3299_v5  ;;  %v1160_v11 = vld [vmem:[#allocation5 + $0x730] sm:$0xff]  ;;  %v11978_v30 = vld [vmem:[#allocation91_spill] sm:$0xff]  ;;  %v3415_v57 = vmul.f32 1.442695, %v3071_v44 }
 0x486   : > { %11965 = vst [vmem:[#allocation87_spill] sm:$0xff] %v9069_v17  ;;  %v9074_v35 = vpop.f32.mrb[126].mxu0  ;;  %11967 = vst [vmem:[#allocation233_spill] sm:$0xff] %v9076_v19  ;;  %v9084_v6 = vpop.eup %6169  ;;  %v2818_v54 = vmax.f32 %v9069_v17, %v9072_v29  ;;  %6191 = vpow2.f32 %v3301_v50  ;;  %v3017_v58 = vsub.f32 %v11978_v30, %v8958_v41  ;;  %v3772_v17 = vadd.f32 %v8986_v8, %v8972_v39  ;;  %v1079_v39 = vld [vmem:[#allocation5 + $0x4a8] sm:$0xff] }
 0x487   : > { %v9080_v59 = vpop.f32.mrb[127].mxu0  ;;  %11970 = vst [vmem:[#allocation88_spill] sm:$0xff] %v9084_v6  ;;  %v9092_v47 = vpop.eup %6171  ;;  %11973 = vst [vmem:[#allocation235_spill] sm:$0xff] %v9100_v37  ;;  %6193 = vpow2.f32 %v3287_v7  ;;  %v3865_v8 = vadd.f32 %v9022_v53, %v9014_v23  ;;  %v11999_v53 = vld [vmem:[#allocation97_spill] sm:$0xff] }
 0x488   : > { %2816 = vmax.xlane.f32.xlu1 %v2815_v42  ;;  %3863 = vadd.xlane.f32.xlu0 %v3862_v28  ;;  %11971 = vst [vmem:[#allocation89_spill] sm:$0xff] %v9092_v47  ;;  %v9097_v28 = vadd.f32 %v8894_v36, %v1158_v16  ;;  %v9104_v31 = vpop.eup %6173  ;;  %v11975_v42 = vld [vmem:[#allocation90_spill] sm:$0xff]  ;;  %v3429_v36 = vmul.f32 1.442695, %v3078_v51  ;;  %6195 = vpow2.f32 %v3289_v14  ;;  %v9127_v51 = vadd.f32 %v8922_v21, %v1160_v11  ;;  %v1078_v14 = vld [vmem:[#allocation5 + $0x4a0] sm:$0xff] }
 0x489   : > { %11974 = vst [vmem:[#allocation236_spill] sm:$0xff] %v9104_v31  ;;  %v3072_v3 = vsub.f32 %v11975_v42, %v8754_v12  ;;  %v9112_v16 = vpop.eup %6175  ;;  %v11980_v12 = vld [vmem:[#allocation92_spill] sm:$0xff]  ;;  %6197 = vpow2.f32 %v3427_v45  ;;  %v3307_v21 = vmul.f32 1.442695, %v3017_v58 }
 0x48a   : > { %11972 = vst [vmem:[#allocation234_spill] sm:$0xff] %v9097_v28  ;;  %v9102_v25 = vpop.f32.mrb[128].mxu0  ;;  %11977 = vst [vmem:[#allocation237_spill] sm:$0xff] %v9112_v16  ;;  %v9116_v5 = vpop.eup %6177  ;;  %v3018_v42 = vsub.f32 %v11980_v12, %v8958_v41  ;;  %v2941_v50 = vmax.f32 %v9097_v28, %v9100_v37  ;;  %6199 = vpow2.f32 %v3429_v36  ;;  %v11992_v36 = vld [vmem:[#allocation96_spill] sm:$0xff] }
 0x48b   : > { %v9110_v29 = vpop.f32.mrb[129].mxu0  ;;  %11979 = vst [vmem:[#allocation91_spill] sm:$0xff] %v9116_v5  ;;  %11982 = vst [vmem:[#allocation238_spill] sm:$0xff] %v9127_v51  ;;  %v3417_v41 = vmul.f32 1.442695, %v3072_v3  ;;  %v9138_v12 = vpop.xlane.xlu0 %2663  ;;  %6201 = vpow2.f32 %v3415_v57  ;;  %v11990_v3 = vld [vmem:[#allocation95_spill] sm:$0xff]  ;;  %v3082_v58 = vsub.f32 %v11992_v36, %v8998_v0 }
 0x48c   : > { %11976 = vst [vmem:[#allocation90_spill] sm:$0xff] %v9110_v29  ;;  %3770 = vadd.xlane.f32.xlu1 %v3769_v4  ;;  %2819 = vmax.xlane.f32.xlu0 %v2818_v54  ;;  %v9122_v29 = vpop.eup %6179  ;;  %v9130_v4 = vadd.f32 %v8930_v61, %v1161_v43  ;;  %v11986_v54 = vld [vmem:[#allocation93_spill] sm:$0xff]  ;;  %v11988_v43 = vld [vmem:[#allocation94_spill] sm:$0xff]  ;;  %v3309_v45 = vmul.f32 1.442695, %v3018_v42  ;;  %v9148_v28 = vpop.xlane.xlu1 %2666 }
 0x48d   : > { %11981 = vst [vmem:[#allocation92_spill] sm:$0xff] %v9122_v29  ;;  %v9134_v44 = vpop.eup %6181  ;;  %v3011_v30 = vsub.f32 %v11986_v54, %v8788_v24  ;;  %v3012_v61 = vsub.f32 %v11988_v43, %v8788_v24  ;;  %v3081_v54 = vsub.f32 %v11990_v3, %v8998_v0  ;;  %v11993_v24 = vld [vmem:[#allocation18_spill] sm:$0xff]  ;;  %6203 = vpow2.f32 %v3417_v41  ;;  %v12003_v41 = vld [vmem:[#allocation99_spill] sm:$0xff] }
 0x48e   : > { %11983 = vst [vmem:[#allocation239_spill] sm:$0xff] %v9130_v4  ;;  %v9132_v7 = vpop.f32.mrb[130].mxu0  ;;  %11985 = vst [vmem:[#allocation241_spill] sm:$0xff] %v9134_v44  ;;  %v9144_v11 = vpop.eup %6183  ;;  %v2944_v57 = vmax.f32 %v9127_v51, %v9130_v4  ;;  %v1081_v0 = vld [vmem:[#allocation5 + $0x4b8] sm:$0xff]  ;;  %6205 = vpow2.f32 %v3307_v21  ;;  %v3437_v21 = vmul.f32 1.442695, %v3082_v58 }
 0x48f   : > { %11984 = vst [vmem:[#allocation240_spill] sm:$0xff] %v9132_v7  ;;  %v9140_v37 = vpop.f32.mrb[131].mxu0  ;;  %11989 = vst [vmem:[#allocation94_spill] sm:$0xff] %v9144_v11  ;;  %v3295_v23 = vmul.f32 1.442695, %v3011_v30  ;;  %v3075_v7 = vsub.f32 %v11999_v53, %v8840_v18  ;;  %v1080_v11 = vld [vmem:[#allocation5 + $0x4b0] sm:$0xff]  ;;  %6207 = vpow2.f32 %v3309_v45  ;;  %v3021_v30 = vsub.f32 %v12003_v41, %v9048_v40  ;;  %v9178_v51 = vpop.xlane.xlu0 %2759 }
 0x490   : > { %11987 = vst [vmem:[#allocation93_spill] sm:$0xff] %v9140_v37  ;;  %2942 = vmax.xlane.f32.xlu1 %v2941_v50  ;;  %3773 = vadd.xlane.f32.xlu0 %v3772_v17  ;;  %v9152_v37 = vpop.eup %6185  ;;  %v9157_v50 = vadd.f32 %v11993_v24, %v1078_v14  ;;  %v11995_v17 = vld [vmem:[#allocation19_spill] sm:$0xff]  ;;  %v3297_v14 = vmul.f32 1.442695, %v3012_v61  ;;  %v3435_v4 = vmul.f32 1.442695, %v3081_v54  ;;  %v3868_v53 = vadd.f32 %v8932_v26, %v8924_v13 }
 0x491   : > { %11991 = vst [vmem:[#allocation95_spill] sm:$0xff] %v9152_v37  ;;  %v9160_v43 = vadd.f32 %v11995_v17, %v1079_v39  ;;  %v9166_v3 = vpop.eup %6187  ;;  %v12001_v39 = vld [vmem:[#allocation98_spill] sm:$0xff]  ;;  %6209 = vpow2.f32 %v3295_v23  ;;  %v3423_v41 = vmul.f32 1.442695, %v3075_v7  ;;  %v12010_v13 = vld [vmem:[#allocation100_spill] sm:$0xff]  ;;  %v1162_v58 = vld [vmem:[#allocation5 + $0x740] sm:$0xff] }
 0x492   : > { %11994 = vst [vmem:[#allocation96_spill] sm:$0xff] %v9157_v50  ;;  %v9164_v42 = vpop.f32.mrb[132].mxu0  ;;  %11998 = vst [vmem:[#allocation242_spill] sm:$0xff] %v9166_v3  ;;  %v3076_v24 = vsub.f32 %v12001_v39, %v8840_v18  ;;  %v9174_v17 = vpop.eup %6189  ;;  %v3022_v26 = vsub.f32 %v12010_v13, %v9048_v40  ;;  %6211 = vpow2.f32 %v3297_v14  ;;  %v3315_v7 = vmul.f32 1.442695, %v3021_v30  ;;  %v12015_v13 = vld [vmem:[#allocation102_spill] sm:$0xff] }
 0x493   : > { %11996 = vst [vmem:[#allocation18_spill] sm:$0xff] %v9160_v43  ;;  %11997 = vst [vmem:[#allocation19_spill] sm:$0xff] %v9164_v42  ;;  %v9170_v36 = vpop.f32.mrb[133].mxu0  ;;  %v2821_v18 = vmax.f32 %v9157_v50, %v9160_v43  ;;  %v9198_v42 = vpop.xlane.xlu1 %2762  ;;  %6213 = vpow2.f32 %v3435_v4  ;;  %v3016_v40 = vsub.f32 %v12015_v13, %v8878_v38  ;;  %v3775_v50 = vadd.f32 %v9054_v55, %v9044_v15  ;;  %v1165_v15 = vld [vmem:[#allocation5 + $0x758] sm:$0xff]  ;;  %v12026_v55 = vld [vmem:[#allocation223_spill] sm:$0xff] }
 0x494   : > { %12000 = vst [vmem:[#allocation97_spill] sm:$0xff] %v9170_v36  ;;  %3866 = vadd.xlane.f32.xlu1 %v3865_v8  ;;  %2945 = vmax.xlane.f32.xlu0 %v2944_v57  ;;  %12002 = vst [vmem:[#allocation98_spill] sm:$0xff] %v9174_v17  ;;  %v9182_v36 = vpop.eup %6191  ;;  %v12005_v8 = vld [vmem:[#allocation21_spill] sm:$0xff]  ;;  %v12007_v57 = vld [vmem:[#allocation22_spill] sm:$0xff]  ;;  %6215 = vpow2.f32 %v3437_v21  ;;  %v9228_v13 = vpop.xlane.xlu0 %2669 }
 0x495   : > { %12004 = vst [vmem:[#allocation99_spill] sm:$0xff] %v9182_v36  ;;  %v9187_v61 = vadd.f32 %v12005_v8, %v1080_v11  ;;  %v9190_v45 = vadd.f32 %v12007_v57, %v1081_v0  ;;  %v9194_v39 = vpop.eup %6193  ;;  %v1163_v36 = vld [vmem:[#allocation5 + $0x748] sm:$0xff]  ;;  %v3425_v0 = vmul.f32 1.442695, %v3076_v24  ;;  %v12013_v8 = vld [vmem:[#allocation101_spill] sm:$0xff]  ;;  %v9217_v24 = vadd.f32 %v8952_v20, %v1162_v58 }
 0x496   : > { %v9192_v54 = vpop.f32.mrb[134].mxu0  ;;  %12009 = vst [vmem:[#allocation243_spill] sm:$0xff] %v9194_v39  ;;  %v9202_v11 = vpop.eup %6195  ;;  %v3015_v57 = vsub.f32 %v12013_v8, %v8878_v38  ;;  %6217 = vpow2.f32 %v3423_v41  ;;  %v3317_v38 = vmul.f32 1.442695, %v3022_v26  ;;  %v1164_v21 = vld [vmem:[#allocation5 + $0x750] sm:$0xff] }
 0x497   : > { %12006 = vst [vmem:[#allocation21_spill] sm:$0xff] %v9187_v61  ;;  %12008 = vst [vmem:[#allocation22_spill] sm:$0xff] %v9190_v45  ;;  %v9200_v43 = vpop.f32.mrb[135].mxu0  ;;  %v9206_v23 = vpop.eup %6197  ;;  %v2824_v14 = vmax.f32 %v9187_v61, %v9190_v45  ;;  %6219 = vpow2.f32 %v3425_v0  ;;  %v3305_v26 = vmul.f32 1.442695, %v3016_v40  ;;  %v12025_v41 = vld [vmem:[#allocation105_spill] sm:$0xff] }
 0x498   : > { %12011 = vst [vmem:[#allocation100_spill] sm:$0xff] %v9200_v43  ;;  %12012 = vst [vmem:[#allocation244_spill] sm:$0xff] %v9202_v11  ;;  %2822 = vmax.xlane.f32.xlu1 %v2821_v18  ;;  %3869 = vadd.xlane.f32.xlu0 %v3868_v53  ;;  %v9212_v43 = vpop.eup %6199  ;;  %v9220_v53 = vadd.f32 %v8960_v52, %v1163_v36  ;;  %v12021_v18 = vld [vmem:[#allocation103_spill] sm:$0xff]  ;;  %v3303_v20 = vmul.f32 1.442695, %v3015_v57  ;;  %v12023_v52 = vld [vmem:[#allocation104_spill] sm:$0xff]  ;;  %6221 = vpow2.f32 %v3315_v7  ;;  %v9238_v61 = vpop.xlane.xlu1 %2672 }
 0x499   : > { %12014 = vst [vmem:[#allocation101_spill] sm:$0xff] %v9206_v23  ;;  %12016 = vst [vmem:[#allocation102_spill] sm:$0xff] %v9212_v43  ;;  %v9224_v30 = vpop.eup %6201  ;;  %v3085_v8 = vsub.f32 %v12021_v18, %v9088_v2  ;;  %v3086_v36 = vsub.f32 %v12023_v52, %v9088_v2  ;;  %v3079_v18 = vsub.f32 %v12025_v41, %v8928_v22  ;;  %v12028_v0 = vld [vmem:[#allocation106_spill] sm:$0xff]  ;;  %6223 = vpow2.f32 %v3317_v38  ;;  %v12033_v41 = vld [vmem:[#allocation107_spill] sm:$0xff] }
 0x49a   : > { %12017 = vst [vmem:[#allocation245_spill] sm:$0xff] %v9217_v24  ;;  %12018 = vst [vmem:[#allocation246_spill] sm:$0xff] %v9220_v53  ;;  %v9222_v4 = vpop.f32.mrb[136].mxu0  ;;  %v9234_v58 = vpop.eup %6203  ;;  %v3080_v57 = vsub.f32 %v12028_v0, %v8928_v22  ;;  %v2947_v2 = vmax.f32 %v9217_v24, %v9220_v53  ;;  %v9252_v7 = vadd.f32 %v8990_v34, %v1165_v15  ;;  %v1083_v22 = vld [vmem:[#allocation5 + $0x4c8] sm:$0xff]  ;;  %6225 = vpow2.f32 %v3303_v20 }
 0x49b   : > { %12019 = vst [vmem:[#allocation247_spill] sm:$0xff] %v9222_v4  ;;  %12020 = vst [vmem:[#allocation248_spill] sm:$0xff] %v9224_v30  ;;  %v9230_v45 = vpop.f32.mrb[137].mxu0  ;;  %v3778_v4 = vadd.f32 %v8964_v33, %v12026_v55  ;;  %v3443_v52 = vmul.f32 1.442695, %v3085_v8  ;;  %v3025_v55 = vsub.f32 %v12033_v41, %v9138_v12  ;;  %v1082_v33 = vld [vmem:[#allocation5 + $0x4c0] sm:$0xff]  ;;  %6227 = vpow2.f32 %v3305_v26  ;;  %v9268_v24 = vpop.xlane.xlu0 %2765 }
 0x49c   : > { %12022 = vst [vmem:[#allocation103_spill] sm:$0xff] %v9230_v45  ;;  %3776 = vadd.xlane.f32.xlu1 %v3775_v50  ;;  %2825 = vmax.xlane.f32.xlu0 %v2824_v14  ;;  %12024 = vst [vmem:[#allocation104_spill] sm:$0xff] %v9234_v58  ;;  %v9242_v45 = vpop.eup %6205  ;;  %v9249_v50 = vadd.f32 %v8984_v1, %v1164_v21  ;;  %v3445_v53 = vmul.f32 1.442695, %v3086_v36  ;;  %v12035_v1 = vld [vmem:[#allocation108_spill] sm:$0xff]  ;;  %v12038_v8 = vld [vmem:[#allocation109_spill] sm:$0xff]  ;;  %v3871_v41 = vadd.f32 %v9092_v47, %v9084_v6  ;;  %v9288_v47 = vpop.xlane.xlu1 %2768 }
 0x49d   : > { %12027 = vst [vmem:[#allocation105_spill] sm:$0xff] %v9242_v45  ;;  %12030 = vst [vmem:[#allocation249_spill] sm:$0xff] %v9252_v7  ;;  %v9256_v14 = vpop.eup %6207  ;;  %v3026_v21 = vsub.f32 %v12035_v1, %v9138_v12  ;;  %v3431_v15 = vmul.f32 1.442695, %v3079_v18  ;;  %v12037_v38 = vld [vmem:[#allocation76_spill] sm:$0xff]  ;;  %v12040_v36 = vld [vmem:[#allocation27_spill] sm:$0xff]  ;;  %6229 = vpow2.f32 %v3443_v52 }
 0x49e   : > { %12029 = vst [vmem:[#allocation106_spill] sm:$0xff] %v9249_v50  ;;  %v9254_v40 = vpop.f32.mrb[138].mxu0  ;;  %12032 = vst [vmem:[#allocation251_spill] sm:$0xff] %v9256_v14  ;;  %v9264_v34 = vpop.eup %6209  ;;  %v3433_v20 = vmul.f32 1.442695, %v3080_v57  ;;  %v9275_v14 = vadd.f32 %v12040_v36, %v1082_v33  ;;  %v12042_v12 = vld [vmem:[#allocation30_spill] sm:$0xff]  ;;  %v2950_v26 = vmax.f32 %v9249_v50, %v9252_v7  ;;  %6231 = vpow2.f32 %v3445_v53 }
 0x49f   : > { %12031 = vst [vmem:[#allocation250_spill] sm:$0xff] %v9254_v40  ;;  %v9260_v0 = vpop.f32.mrb[139].mxu0  ;;  %12036 = vst [vmem:[#allocation108_spill] sm:$0xff] %v9264_v34  ;;  %v3019_v40 = vsub.f32 %v12038_v8, %v12037_v38  ;;  %v3323_v1 = vmul.f32 1.442695, %v3025_v55  ;;  %v12046_v8 = vld [vmem:[#allocation110_spill] sm:$0xff]  ;;  %6233 = vpow2.f32 %v3431_v15  ;;  %v3874_v50 = vadd.f32 %v9002_v49, %v8994_v56  ;;  %v9316_v56 = vpop.xlane.xlu0 %2675 }
 0x4a0   : > { %12034 = vst [vmem:[#allocation107_spill] sm:$0xff] %v9260_v0  ;;  %2948 = vmax.xlane.f32.xlu1 %v2947_v2  ;;  %3779 = vadd.xlane.f32.xlu0 %v3778_v4  ;;  %v9272_v0 = vpop.eup %6211  ;;  %12041 = vst [vmem:[#allocation109_spill] sm:$0xff] %v9275_v14  ;;  %v9278_v4 = vadd.f32 %v12042_v12, %v1083_v22  ;;  %v3020_v6 = vsub.f32 %v12046_v8, %v12037_v38  ;;  %v1084_v57 = vld [vmem:[#allocation5 + $0x4d0] sm:$0xff]  ;;  %v1085_v33 = vld [vmem:[#allocation5 + $0x4d8] sm:$0xff]  ;;  %v3325_v12 = vmul.f32 1.442695, %v3026_v21 }
 0x4a1   : > { %12039 = vst [vmem:[#allocation76_spill] sm:$0xff] %v9272_v0  ;;  %v9284_v2 = vpop.eup %6213  ;;  %v12049_v7 = vld [vmem:[#allocation111_spill] sm:$0xff]  ;;  %v3311_v55 = vmul.f32 1.442695, %v3019_v40  ;;  %v12051_v38 = vld [vmem:[#allocation112_spill] sm:$0xff]  ;;  %6235 = vpow2.f32 %v3433_v20  ;;  %v12053_v21 = vld [vmem:[#allocation33_spill] sm:$0xff] }
 0x4a2   : > { %12043 = vst [vmem:[#allocation27_spill] sm:$0xff] %v9278_v4  ;;  %v9282_v18 = vpop.f32.mrb[140].mxu0  ;;  %12045 = vst [vmem:[#allocation252_spill] sm:$0xff] %v9284_v2  ;;  %v9292_v22 = vpop.eup %6215  ;;  %v3090_v8 = vsub.f32 %v12051_v38, %v9178_v51  ;;  %v2827_v53 = vmax.f32 %v9275_v14, %v9278_v4  ;;  %6237 = vpow2.f32 %v3323_v1  ;;  %v3313_v40 = vmul.f32 1.442695, %v3020_v6  ;;  %v1166_v49 = vld [vmem:[#allocation5 + $0x760] sm:$0xff] }
 0x4a3   : > { %12044 = vst [vmem:[#allocation30_spill] sm:$0xff] %v9282_v18  ;;  %v9290_v36 = vpop.f32.mrb[141].mxu0  ;;  %12048 = vst [vmem:[#allocation253_spill] sm:$0xff] %v9292_v22  ;;  %v3089_v18 = vsub.f32 %v12049_v7, %v9178_v51  ;;  %v9296_v52 = vpop.eup %6217  ;;  %v9307_v7 = vadd.f32 %v12053_v21, %v1084_v57  ;;  %v12058_v51 = vld [vmem:[#allocation113_spill] sm:$0xff]  ;;  %v1167_v20 = vld [vmem:[#allocation5 + $0x768] sm:$0xff]  ;;  %6239 = vpow2.f32 %v3325_v12 }
 0x4a4   : > { %12047 = vst [vmem:[#allocation110_spill] sm:$0xff] %v9290_v36  ;;  %3872 = vadd.xlane.f32.xlu1 %v3871_v41  ;;  %2951 = vmax.xlane.f32.xlu0 %v2950_v26  ;;  %12050 = vst [vmem:[#allocation111_spill] sm:$0xff] %v9296_v52  ;;  %v9302_v36 = vpop.eup %6219  ;;  %v12055_v41 = vld [vmem:[#allocation38_spill] sm:$0xff]  ;;  %v3083_v38 = vsub.f32 %v12058_v51, %v9018_v9  ;;  %6241 = vpow2.f32 %v3311_v55  ;;  %v3453_v21 = vmul.f32 1.442695, %v3090_v8  ;;  %v12061_v6 = vld [vmem:[#allocation115_spill] sm:$0xff] }
 0x4a5   : > { %12052 = vst [vmem:[#allocation112_spill] sm:$0xff] %v9302_v36  ;;  %12054 = vst [vmem:[#allocation33_spill] sm:$0xff] %v9307_v7  ;;  %v9310_v26 = vadd.f32 %v12055_v41, %v1085_v33  ;;  %v9312_v15 = vpop.eup %6221  ;;  %v3451_v22 = vmul.f32 1.442695, %v3089_v18  ;;  %v12059_v4 = vld [vmem:[#allocation114_spill] sm:$0xff]  ;;  %v3029_v1 = vsub.f32 %v12061_v6, %v9228_v13  ;;  %v9324_v41 = vpop.xlane.xlu1 %2678  ;;  %v3781_v51 = vadd.f32 %v9122_v29, %v9116_v5  ;;  %v12063_v18 = vld [vmem:[#allocation116_spill] sm:$0xff] }
 0x4a6   : > { %12057 = vst [vmem:[#allocation254_spill] sm:$0xff] %v9312_v15  ;;  %v3084_v57 = vsub.f32 %v12059_v4, %v9018_v9  ;;  %v9320_v33 = vpop.eup %6223  ;;  %v3030_v12 = vsub.f32 %v12063_v18, %v9228_v13  ;;  %v9338_v4 = vadd.f32 %v9020_v27, %v1167_v20  ;;  %6243 = vpow2.f32 %v3313_v40  ;;  %v1168_v5 = vld [vmem:[#allocation5 + $0x770] sm:$0xff]  ;;  %v1169_v29 = vld [vmem:[#allocation5 + $0x778] sm:$0xff] }
 0x4a7   : > { %12056 = vst [vmem:[#allocation38_spill] sm:$0xff] %v9310_v26  ;;  %12060 = vst [vmem:[#allocation113_spill] sm:$0xff] %v9320_v33  ;;  %v9328_v14 = vpop.eup %6225  ;;  %v2830_v9 = vmax.f32 %v9307_v7, %v9310_v26  ;;  %v3439_v8 = vmul.f32 1.442695, %v3083_v38  ;;  %6245 = vpow2.f32 %v3451_v22  ;;  %v12068_v18 = vld [vmem:[#allocation118_spill] sm:$0xff]  ;;  %v9350_v38 = vpop.xlane.xlu0 %2771  ;;  %v3784_v20 = vadd.f32 %v9032_v63, %v9026_v60  ;;  %v1086_v60 = vld [vmem:[#allocation5 + $0x4e0] sm:$0xff] }
 0x4a8   : > { %2828 = vmax.xlane.f32.xlu1 %v2827_v53  ;;  %3875 = vadd.xlane.f32.xlu0 %v3874_v50  ;;  %12062 = vst [vmem:[#allocation114_spill] sm:$0xff] %v9328_v14  ;;  %v9335_v50 = vadd.f32 %v9012_v10, %v1166_v49  ;;  %12065 = vst [vmem:[#allocation116_spill] sm:$0xff] %v9338_v4  ;;  %v9340_v55 = vpop.eup %6227  ;;  %v12067_v53 = vld [vmem:[#allocation117_spill] sm:$0xff]  ;;  %v3441_v13 = vmul.f32 1.442695, %v3084_v57  ;;  %v3024_v26 = vsub.f32 %v12068_v18, %v9058_v32  ;;  %v12070_v10 = vld [vmem:[#allocation119_spill] sm:$0xff] }
 0x4a9   : > { %12066 = vst [vmem:[#allocation255_spill] sm:$0xff] %v9340_v55  ;;  %v3023_v6 = vsub.f32 %v12067_v53, %v9058_v32  ;;  %v9346_v49 = vpop.eup %6229  ;;  %6247 = vpow2.f32 %v3453_v21  ;;  %v3331_v27 = vmul.f32 1.442695, %v3029_v1  ;;  %v3093_v40 = vsub.f32 %v12070_v10, %v9268_v24  ;;  %v12076_v18 = vld [vmem:[#allocation120_spill] sm:$0xff]  ;;  %v9368_v7 = vpop.xlane.xlu1 %2774 }
 0x4aa   : > { %12064 = vst [vmem:[#allocation115_spill] sm:$0xff] %v9335_v50  ;;  %12069 = vst [vmem:[#allocation117_spill] sm:$0xff] %v9346_v49  ;;  %v9354_v53 = vpop.eup %6231  ;;  %v3333_v22 = vmul.f32 1.442695, %v3030_v12  ;;  %v2953_v32 = vmax.f32 %v9335_v50, %v9338_v4  ;;  %v9359_v57 = vadd.f32 %v9042_v46, %v1168_v5  ;;  %6249 = vpow2.f32 %v3439_v8  ;;  %v1087_v63 = vld [vmem:[#allocation5 + $0x4e8] sm:$0xff]  ;;  %v12078_v46 = vld [vmem:[#allocation121_spill] sm:$0xff] }
 0x4ab   : > { %12071 = vst [vmem:[#allocation118_spill] sm:$0xff] %v9354_v53  ;;  %v9364_v1 = vpop.eup %6233  ;;  %v3094_v10 = vsub.f32 %v12076_v18, %v9268_v24  ;;  %6251 = vpow2.f32 %v3441_v13  ;;  %v3321_v4 = vmul.f32 1.442695, %v3024_v26  ;;  %v3087_v5 = vsub.f32 %v12078_v46, %v9108_v62  ;;  %v12082_v13 = vld [vmem:[#allocation41_spill] sm:$0xff]  ;;  %v12084_v50 = vld [vmem:[#allocation42_spill] sm:$0xff] }
 0x4ac   : > { %3782 = vadd.xlane.f32.xlu1 %v3781_v51  ;;  %2831 = vmax.xlane.f32.xlu0 %v2830_v9  ;;  %12072 = vst [vmem:[#allocation119_spill] sm:$0xff] %v9359_v57  ;;  %v12073_v51 = vld [vmem:[#allocation84_spill] sm:$0xff]  ;;  %12075 = vst [vmem:[#allocation256_spill] sm:$0xff] %v9364_v1  ;;  %v3319_v9 = vmul.f32 1.442695, %v3023_v6  ;;  %v9370_v12 = vpop.eup %6235  ;;  %6253 = vpow2.f32 %v3331_v27  ;;  %v12080_v6 = vld [vmem:[#allocation122_spill] sm:$0xff]  ;;  %v9383_v26 = vadd.f32 %v12082_v13, %v1086_v60 }
 0x4ad   : > { %v9362_v21 = vadd.f32 %v12073_v51, %v1169_v29  ;;  %12077 = vst [vmem:[#allocation120_spill] sm:$0xff] %v9370_v12  ;;  %v9374_v29 = vpop.eup %6237  ;;  %v3459_v8 = vmul.f32 1.442695, %v3093_v40  ;;  %v3088_v24 = vsub.f32 %v12080_v6, %v9108_v62  ;;  %v3877_v51 = vadd.f32 %v9166_v3, %v9152_v37  ;;  %v12087_v62 = vld [vmem:[#allocation123_spill] sm:$0xff]  ;;  %v9394_v6 = vpop.xlane.xlu0 %2681  ;;  %v1088_v37 = vld [vmem:[#allocation5 + $0x4f0] sm:$0xff]  ;;  %v12088_v13 = vld [vmem:[#allocation124_spill] sm:$0xff] }
 0x4ae   : > { %12079 = vst [vmem:[#allocation121_spill] sm:$0xff] %v9374_v29  ;;  %v9380_v18 = vpop.eup %6239  ;;  %6255 = vpow2.f32 %v3333_v22  ;;  %12083 = vst [vmem:[#allocation41_spill] sm:$0xff] %v9383_v26  ;;  %v9386_v46 = vadd.f32 %v12084_v50, %v1087_v63  ;;  %v3461_v40 = vmul.f32 1.442695, %v3094_v10  ;;  %v1089_v22 = vld [vmem:[#allocation5 + $0x4f8] sm:$0xff]  ;;  %v3034_v63 = vsub.f32 %v12088_v13, %v9316_v56  ;;  %v9402_v3 = vpop.xlane.xlu1 %2684 }
 0x4af   : > { %12074 = vst [vmem:[#allocation84_spill] sm:$0xff] %v9362_v21  ;;  %12081 = vst [vmem:[#allocation122_spill] sm:$0xff] %v9380_v18  ;;  %v9390_v27 = vpop.eup %6241  ;;  %6257 = vpow2.f32 %v3319_v9  ;;  %v3447_v60 = vmul.f32 1.442695, %v3087_v5  ;;  %v12090_v9 = vld [vmem:[#allocation125_spill] sm:$0xff]  ;;  %v1171_v18 = vld [vmem:[#allocation5 + $0x788] sm:$0xff] }
 0x4b0   : > { %2954 = vmax.xlane.f32.xlu1 %v2953_v32  ;;  %3785 = vadd.xlane.f32.xlu0 %v3784_v20  ;;  %12085 = vst [vmem:[#allocation42_spill] sm:$0xff] %v9386_v46  ;;  %v2956_v20 = vmax.f32 %v9359_v57, %v9362_v21  ;;  %12086 = vst [vmem:[#allocation257_spill] sm:$0xff] %v9390_v27  ;;  %v3033_v32 = vsub.f32 %v12087_v62, %v9316_v56  ;;  %6259 = vpow2.f32 %v3321_v4  ;;  %v9398_v50 = vpop.eup %6243  ;;  %v12092_v4 = vld [vmem:[#allocation126_spill] sm:$0xff] }
 0x4b1   : > { %12089 = vst [vmem:[#allocation123_spill] sm:$0xff] %v9398_v50  ;;  %6261 = vpow2.f32 %v3459_v8  ;;  %v3449_v21 = vmul.f32 1.442695, %v3088_v24  ;;  %v3027_v10 = vsub.f32 %v12090_v9, %v9148_v28  ;;  %v3880_v62 = vadd.f32 %v9076_v19, %v9062_v48  ;;  %v9406_v57 = vpop.eup %6245  ;;  %v12095_v8 = vld [vmem:[#allocation50_spill] sm:$0xff]  ;;  %v12098_v48 = vld [vmem:[#allocation127_spill] sm:$0xff] }
 0x4b2   : > { %12091 = vst [vmem:[#allocation124_spill] sm:$0xff] %v9406_v57  ;;  %v3028_v5 = vsub.f32 %v12092_v4, %v9148_v28  ;;  %v2833_v56 = vmax.f32 %v9383_v26, %v9386_v46  ;;  %v9416_v24 = vadd.f32 %v12095_v8, %v1089_v22  ;;  %6263 = vpow2.f32 %v3461_v40  ;;  %v1170_v57 = vld [vmem:[#allocation5 + $0x780] sm:$0xff]  ;;  %v12099_v4 = vld [vmem:[#allocation128_spill] sm:$0xff] }
 0x4b3   : > { %v9418_v13 = vpop.eup %6247  ;;  %v3339_v9 = vmul.f32 1.442695, %v3033_v32  ;;  %v3097_v19 = vsub.f32 %v12098_v48, %v9350_v38  ;;  %6265 = vpow2.f32 %v3447_v60  ;;  %v3341_v28 = vmul.f32 1.442695, %v3034_v63  ;;  %v9428_v32 = vpop.xlane.xlu0 %2687 }
 0x4b4   : > { %3878 = vadd.xlane.f32.xlu1 %v3877_v51  ;;  %2957 = vmax.xlane.f32.xlu0 %v2956_v20  ;;  %v12093_v51 = vld [vmem:[#allocation45_spill] sm:$0xff]  ;;  %12096 = vst [vmem:[#allocation126_spill] sm:$0xff] %v9416_v24  ;;  %v3098_v46 = vsub.f32 %v12099_v4, %v9350_v38  ;;  %6267 = vpow2.f32 %v3449_v21  ;;  %v3327_v22 = vmul.f32 1.442695, %v3027_v10  ;;  %v3787_v48 = vadd.f32 %v9202_v11, %v9194_v39  ;;  %v12106_v4 = vld [vmem:[#allocation130_spill] sm:$0xff] }
 0x4b5   : > { %v9413_v20 = vadd.f32 %v12093_v51, %v1088_v37  ;;  %12097 = vst [vmem:[#allocation45_spill] sm:$0xff] %v9418_v13  ;;  %v9424_v37 = vpop.eup %6249  ;;  %v12101_v51 = vld [vmem:[#allocation129_spill] sm:$0xff]  ;;  %v3329_v63 = vmul.f32 1.442695, %v3028_v5  ;;  %v9442_v21 = vadd.f32 %v9080_v59, %v1171_v18  ;;  %6269 = vpow2.f32 %v3339_v9  ;;  %v1173_v11 = vld [vmem:[#allocation5 + $0x798] sm:$0xff] }
 0x4b6   : > { %12100 = vst [vmem:[#allocation50_spill] sm:$0xff] %v9424_v37  ;;  %v3091_v40 = vsub.f32 %v12101_v51, %v9198_v42  ;;  %v9434_v60 = vpop.eup %6251  ;;  %v3092_v51 = vsub.f32 %v12106_v4, %v9198_v42  ;;  %v1172_v39 = vld [vmem:[#allocation5 + $0x790] sm:$0xff]  ;;  %6271 = vpow2.f32 %v3341_v28  ;;  %v3469_v5 = vmul.f32 1.442695, %v3098_v46  ;;  %v12113_v28 = vld [vmem:[#allocation90_spill] sm:$0xff] }
 0x4b7   : > { %12094 = vst [vmem:[#allocation125_spill] sm:$0xff] %v9413_v20  ;;  %12102 = vst [vmem:[#allocation127_spill] sm:$0xff] %v9434_v60  ;;  %v2836_v38 = vmax.f32 %v9413_v20, %v9416_v24  ;;  %v9444_v10 = vpop.eup %6253  ;;  %v12108_v24 = vld [vmem:[#allocation131_spill] sm:$0xff]  ;;  %6273 = vpow2.f32 %v3327_v22  ;;  %v3790_v42 = vadd.f32 %v9112_v16, %v9104_v31  ;;  %v9468_v22 = vadd.f32 %v12113_v28, %v1173_v11  ;;  %v1091_v31 = vld [vmem:[#allocation5 + $0x508] sm:$0xff] }
 0x4b8   : > { %2834 = vmax.xlane.f32.xlu1 %v2833_v56  ;;  %3881 = vadd.xlane.f32.xlu0 %v3880_v62  ;;  %v9439_v62 = vadd.f32 %v9074_v35, %v1170_v57  ;;  %12104 = vst [vmem:[#allocation129_spill] sm:$0xff] %v9442_v21  ;;  %12105 = vst [vmem:[#allocation258_spill] sm:$0xff] %v9444_v10  ;;  %v3467_v56 = vmul.f32 1.442695, %v3097_v19  ;;  %v9448_v26 = vpop.eup %6255  ;;  %v3037_v35 = vsub.f32 %v12108_v24, %v9394_v6  ;;  %v12110_v19 = vld [vmem:[#allocation132_spill] sm:$0xff]  ;;  %v1092_v20 = vld [vmem:[#allocation5 + $0x510] sm:$0xff] }
 0x4b9   : > { %v9430_v8 = vpop.xlane.xlu1 %2888  ;;  %12107 = vst [vmem:[#allocation130_spill] sm:$0xff] %v9448_v26  ;;  %v9452_v59 = vpop.eup %6257  ;;  %v3455_v57 = vmul.f32 1.442695, %v3091_v40  ;;  %v3038_v18 = vsub.f32 %v12110_v19, %v9394_v6  ;;  %6275 = vpow2.f32 %v3329_v63  ;;  %v9465_v24 = vadd.f32 %v9102_v25, %v1172_v39  ;;  %12114 = vst [vmem:[#allocation90_spill] sm:$0xff] %v9468_v22  ;;  %v1090_v19 = vld [vmem:[#allocation5 + $0x500] sm:$0xff] }
 0x4ba   : > { %12103 = vst [vmem:[#allocation128_spill] sm:$0xff] %v9439_v62  ;;  %12109 = vst [vmem:[#allocation131_spill] sm:$0xff] %v9452_v59  ;;  %v9460_v4 = vpop.eup %6259  ;;  %v2959_v46 = vmax.f32 %v9439_v62, %v9442_v21  ;;  %6277 = vpow2.f32 %v3467_v56  ;;  %v3457_v6 = vmul.f32 1.442695, %v3092_v51  ;;  %v3347_v63 = vmul.f32 1.442695, %v3037_v35 }
 0x4bb   : > { %12111 = vst [vmem:[#allocation132_spill] sm:$0xff] %v9460_v4  ;;  %12112 = vst [vmem:[#allocation259_spill] sm:$0xff] %v9465_v24  ;;  %v9470_v40 = vpop.eup %6261  ;;  %6279 = vpow2.f32 %v3469_v5  ;;  %v12117_v21 = vld [vmem:[#allocation134_spill] sm:$0xff]  ;;  %v3349_v11 = vmul.f32 1.442695, %v3038_v18  ;;  %v12119_v56 = vld [vmem:[#allocation137_spill] sm:$0xff] }
 0x4bc   : > { %3788 = vadd.xlane.f32.xlu1 %v3787_v48  ;;  %2837 = vmax.xlane.f32.xlu0 %v2836_v38  ;;  %12115 = vst [vmem:[#allocation260_spill] sm:$0xff] %v9470_v40  ;;  %v12116_v48 = vld [vmem:[#allocation133_spill] sm:$0xff]  ;;  %v3032_v25 = vsub.f32 %v12117_v21, %v9238_v61  ;;  %v9478_v39 = vpop.eup %6263  ;;  %6281 = vpow2.f32 %v3455_v57  ;;  %v3041_v51 = vsub.f32 %v12119_v56, %v9428_v32  ;;  %v12121_v5 = vld [vmem:[#allocation138_spill] sm:$0xff] }
 0x4bd   : > { %v9456_v9 = vpop.xlane.xlu0 %2891  ;;  %v3031_v38 = vsub.f32 %v12116_v48, %v9238_v61  ;;  %v9474_v16 = vpop.xlane.xlu1 %2690  ;;  %12118 = vst [vmem:[#allocation133_spill] sm:$0xff] %v9478_v39  ;;  %v3883_v48 = vadd.f32 %v9234_v58, %v9224_v30  ;;  %v3042_v35 = vsub.f32 %v12121_v5, %v9428_v32  ;;  %v12122_v61 = vld [vmem:[#allocation55_spill] sm:$0xff]  ;;  %v2962_v57 = vmax.f32 %v9465_v24, %v9468_v22  ;;  %v1093_v39 = vld [vmem:[#allocation5 + $0x518] sm:$0xff] }
 0x4be   : > { %v9486_v62 = vpop.eup %6265  ;;  %v9491_v21 = vadd.f32 %v12122_v61, %v1090_v19  ;;  %6283 = vpow2.f32 %v3457_v6  ;;  %v12127_v30 = vld [vmem:[#allocation135_spill] sm:$0xff]  ;;  %v3337_v32 = vmul.f32 1.442695, %v3032_v25  ;;  %v12128_v19 = vld [vmem:[#allocation136_spill] sm:$0xff]  ;;  %v3355_v61 = vmul.f32 1.442695, %v3041_v51 }
 0x4bf   : > { %12120 = vst [vmem:[#allocation134_spill] sm:$0xff] %v9486_v62  ;;  %v9498_v18 = vpop.eup %6267  ;;  %v3335_v56 = vmul.f32 1.442695, %v3031_v38  ;;  %v3095_v58 = vsub.f32 %v12127_v30, %v9288_v47  ;;  %6285 = vpow2.f32 %v3347_v63  ;;  %v3096_v5 = vsub.f32 %v12128_v19, %v9288_v47  ;;  %v12131_v30 = vld [vmem:[#allocation94_spill] sm:$0xff] }
 0x4c0   : > { %2960 = vmax.xlane.f32.xlu1 %v2959_v46  ;;  %3791 = vadd.xlane.f32.xlu0 %v3790_v42  ;;  %12123 = vst [vmem:[#allocation137_spill] sm:$0xff] %v9491_v21  ;;  %v12124_v42 = vld [vmem:[#allocation58_spill] sm:$0xff]  ;;  %12126 = vst [vmem:[#allocation55_spill] sm:$0xff] %v9498_v18  ;;  %6287 = vpow2.f32 %v3349_v11  ;;  %v3886_v63 = vadd.f32 %v12131_v30, %v9134_v44  ;;  %v3357_v24 = vmul.f32 1.442695, %v3042_v35  ;;  %v1174_v44 = vld [vmem:[#allocation5 + $0x7a0] sm:$0xff] }
 0x4c1   : > { %v9482_v28 = vpop.xlane.xlu0 %2693  ;;  %v9494_v46 = vadd.f32 %v12124_v42, %v1091_v31  ;;  %v9504_v31 = vpop.eup %6269  ;;  %v12130_v42 = vld [vmem:[#allocation140_spill] sm:$0xff]  ;;  %v12135_v11 = vld [vmem:[#allocation146_spill] sm:$0xff]  ;;  %6289 = vpow2.f32 %v3335_v56  ;;  %v3465_v35 = vmul.f32 1.442695, %v3096_v5 }
 0x4c2   : > { %12129 = vst [vmem:[#allocation58_spill] sm:$0xff] %v9504_v31  ;;  %v3035_v6 = vsub.f32 %v12130_v42, %v9324_v41  ;;  %v9508_v38 = vpop.xlane.xlu1 %2894  ;;  %v9514_v25 = vpop.eup %6271  ;;  %v9522_v51 = vadd.f32 %v12135_v11, %v1093_v39  ;;  %v3463_v42 = vmul.f32 1.442695, %v3095_v58  ;;  %v12138_v31 = vld [vmem:[#allocation141_spill] sm:$0xff]  ;;  %v1175_v30 = vld [vmem:[#allocation5 + $0x7a8] sm:$0xff]  ;;  %6291 = vpow2.f32 %v3337_v32  ;;  %v12142_v58 = vld [vmem:[#allocation143_spill] sm:$0xff] }
 0x4c3   : > { %12125 = vst [vmem:[#allocation138_spill] sm:$0xff] %v9494_v46  ;;  %12132 = vst [vmem:[#allocation135_spill] sm:$0xff] %v9514_v25  ;;  %v2839_v47 = vmax.f32 %v9491_v21, %v9494_v46  ;;  %v9524_v19 = vpop.eup %6273  ;;  %v3036_v40 = vsub.f32 %v12138_v31, %v9324_v41  ;;  %v12140_v46 = vld [vmem:[#allocation142_spill] sm:$0xff]  ;;  %6293 = vpow2.f32 %v3355_v61  ;;  %v3100_v56 = vsub.f32 %v12142_v58, %v9368_v7  ;;  %v12144_v31 = vld [vmem:[#allocation240_spill] sm:$0xff] }
 0x4c4   : > { %3884 = vadd.xlane.f32.xlu1 %v3883_v48  ;;  %2963 = vmax.xlane.f32.xlu0 %v2962_v57  ;;  %v12133_v48 = vld [vmem:[#allocation13_spill] sm:$0xff]  ;;  %12136 = vst [vmem:[#allocation140_spill] sm:$0xff] %v9522_v51  ;;  %v9528_v25 = vpop.eup %6275  ;;  %v3793_v32 = vadd.f32 %v9272_v0, %v9264_v34  ;;  %6295 = vpow2.f32 %v3357_v24  ;;  %v12149_v58 = vld [vmem:[#allocation144_spill] sm:$0xff]  ;;  %v1177_v0 = vld [vmem:[#allocation5 + $0x7b8] sm:$0xff] }
 0x4c5   : > { %v9510_v22 = vpop.xlane.xlu0 %2897  ;;  %v9519_v57 = vadd.f32 %v12133_v48, %v1092_v20  ;;  %12137 = vst [vmem:[#allocation13_spill] sm:$0xff] %v9524_v19  ;;  %12139 = vst [vmem:[#allocation146_spill] sm:$0xff] %v9528_v25  ;;  %v3099_v20 = vsub.f32 %v12140_v46, %v9368_v7  ;;  %v9532_v39 = vpop.eup %6277  ;;  %v3343_v48 = vmul.f32 1.442695, %v3035_v6  ;;  %v12146_v61 = vld [vmem:[#allocation93_spill] sm:$0xff]  ;;  %6297 = vpow2.f32 %v3463_v42 }
 0x4c6   : > { %12141 = vst [vmem:[#allocation141_spill] sm:$0xff] %v9532_v39  ;;  %v9542_v5 = vpop.eup %6279  ;;  %v9550_v6 = vadd.f32 %v12146_v61, %v1175_v30  ;;  %v3039_v21 = vsub.f32 %v12149_v58, %v9402_v3  ;;  %v1176_v34 = vld [vmem:[#allocation5 + $0x7b0] sm:$0xff]  ;;  %6299 = vpow2.f32 %v3465_v35  ;;  %v1094_v35 = vld [vmem:[#allocation5 + $0x520] sm:$0xff] }
 0x4c7   : > { %12134 = vst [vmem:[#allocation136_spill] sm:$0xff] %v9519_v57  ;;  %12143 = vst [vmem:[#allocation142_spill] sm:$0xff] %v9542_v5  ;;  %v2842_v46 = vmax.f32 %v9519_v57, %v9522_v51  ;;  %v9552_v7 = vpop.eup %6281  ;;  %v3471_v24 = vmul.f32 1.442695, %v3099_v20  ;;  %6301 = vpow2.f32 %v3343_v48  ;;  %v12151_v30 = vld [vmem:[#allocation145_spill] sm:$0xff] }
 0x4c8   : > { %2840 = vmax.xlane.f32.xlu1 %v2839_v47  ;;  %3887 = vadd.xlane.f32.xlu0 %v3886_v63  ;;  %v9547_v63 = vadd.f32 %v12144_v31, %v1174_v44  ;;  %12147 = vst [vmem:[#allocation240_spill] sm:$0xff] %v9550_v6  ;;  %12148 = vst [vmem:[#allocation93_spill] sm:$0xff] %v9552_v7  ;;  %v3345_v47 = vmul.f32 1.442695, %v3036_v40  ;;  %v9556_v51 = vpop.eup %6283  ;;  %v3473_v44 = vmul.f32 1.442695, %v3100_v56 }
 0x4c9   : > { %v9536_v11 = vpop.xlane.xlu1 %2900  ;;  %v9538_v41 = vpop.xlane.xlu0 %2777  ;;  %12150 = vst [vmem:[#allocation144_spill] sm:$0xff] %v9556_v51  ;;  %v3040_v31 = vsub.f32 %v12151_v30, %v9402_v3  ;;  %v12152_v40 = vld [vmem:[#allocation99_spill] sm:$0xff]  ;;  %v12156_v48 = vld [vmem:[#allocation97_spill] sm:$0xff]  ;;  %v3351_v39 = vmul.f32 1.442695, %v3039_v21 }
 0x4ca   : > { %12145 = vst [vmem:[#allocation143_spill] sm:$0xff] %v9547_v63  ;;  %v3796_v58 = vadd.f32 %v12152_v40, %v9174_v17  ;;  %v9566_v57 = vpop.eup %6285  ;;  %v2965_v20 = vmax.f32 %v9547_v63, %v9550_v6  ;;  %v9574_v56 = vadd.f32 %v12156_v48, %v1177_v0  ;;  %v12158_v3 = vld [vmem:[#allocation175_spill] sm:$0xff]  ;;  %6303 = vpow2.f32 %v3345_v47  ;;  %v1095_v17 = vld [vmem:[#allocation5 + $0x528] sm:$0xff]  ;;  %v12161_v6 = vld [vmem:[#allocation177_spill] sm:$0xff] }
 0x4cb   : > { %12153 = vst [vmem:[#allocation145_spill] sm:$0xff] %v9566_v57  ;;  %v3175_v30 = vsub.f32 %v12158_v3, %v9430_v8  ;;  %v9578_v5 = vpop.eup %6287  ;;  %v12160_v40 = vld [vmem:[#allocation176_spill] sm:$0xff]  ;;  %6305 = vpow2.f32 %v3471_v24  ;;  %v3043_v63 = vsub.f32 %v12161_v6, %v9474_v16  ;;  %v3889_v0 = vadd.f32 %v9302_v36, %v9296_v52  ;;  %v12163_v48 = vld [vmem:[#allocation147_spill] sm:$0xff]  ;;  %v1096_v21 = vld [vmem:[#allocation5 + $0x530] sm:$0xff] }
 0x4cc   : > { %3794 = vadd.xlane.f32.xlu1 %v3793_v32  ;;  %2843 = vmax.xlane.f32.xlu0 %v2842_v46  ;;  %v12154_v32 = vld [vmem:[#allocation19_spill] sm:$0xff]  ;;  %12157 = vst [vmem:[#allocation97_spill] sm:$0xff] %v9574_v56  ;;  %12159 = vst [vmem:[#allocation175_spill] sm:$0xff] %v9578_v5  ;;  %v3176_v57 = vsub.f32 %v12160_v40, %v9430_v8  ;;  %6307 = vpow2.f32 %v3473_v44  ;;  %v9589_v47 = vadd.f32 %v12163_v48, %v1094_v35  ;;  %v1097_v3 = vld [vmem:[#allocation5 + $0x538] sm:$0xff] }
 0x4cd   : > { %v9560_v61 = vpop.xlane.xlu1 %2780  ;;  %v9562_v42 = vpop.xlane.xlu0 %2903  ;;  %v9571_v46 = vadd.f32 %v12154_v32, %v1176_v34  ;;  %v3353_v32 = vmul.f32 1.442695, %v3040_v31  ;;  %v12165_v8 = vld [vmem:[#allocation178_spill] sm:$0xff]  ;;  %v3623_v31 = vmul.f32 1.442695, %v3175_v30  ;;  %v12169_v35 = vld [vmem:[#allocation179_spill] sm:$0xff]  ;;  %6309 = vpow2.f32 %v3351_v39 }
 0x4ce   : > { %v9586_v34 = vpop.eup %6289  ;;  %12164 = vst [vmem:[#allocation177_spill] sm:$0xff] %v9589_v47  ;;  %v3044_v24 = vsub.f32 %v12165_v8, %v9474_v16  ;;  %v3177_v48 = vsub.f32 %v12169_v35, %v9456_v9  ;;  %v3625_v16 = vmul.f32 1.442695, %v3176_v57  ;;  %v12171_v8 = vld [vmem:[#allocation180_spill] sm:$0xff]  ;;  %v12177_v30 = vld [vmem:[#allocation183_spill] sm:$0xff] }
 0x4cf   : > { %12155 = vst [vmem:[#allocation19_spill] sm:$0xff] %v9571_v46  ;;  %12162 = vst [vmem:[#allocation176_spill] sm:$0xff] %v9586_v34  ;;  %v2968_v44 = vmax.f32 %v9571_v46, %v9574_v56  ;;  %v3178_v5 = vsub.f32 %v12171_v8, %v9456_v9  ;;  %v3359_v56 = vmul.f32 1.442695, %v3043_v63  ;;  %v3179_v46 = vsub.f32 %v12177_v30, %v9508_v38  ;;  %v12179_v9 = vld [vmem:[#allocation184_spill] sm:$0xff] }
 0x4d0   : > { %2966 = vmax.xlane.f32.xlu1 %v2965_v20  ;;  %3797 = vadd.xlane.f32.xlu0 %v3796_v58  ;;  %v9597_v58 = vpop.eup %6291  ;;  %v12167_v20 = vld [vmem:[#allocation148_spill] sm:$0xff]  ;;  %6311 = vpow2.f32 %v3353_v32  ;;  %v3361_v57 = vmul.f32 1.442695, %v3044_v24  ;;  %v3180_v39 = vsub.f32 %v12179_v9, %v9508_v38  ;;  %v12181_v32 = vld [vmem:[#allocation181_spill] sm:$0xff]  ;;  %v12183_v9 = vld [vmem:[#allocation182_spill] sm:$0xff] }
 0x4d1   : > { %v9593_v40 = vpop.xlane.xlu1 %2906  ;;  %v9595_v6 = vpop.xlane.xlu0 %2783  ;;  %12166 = vst [vmem:[#allocation147_spill] sm:$0xff] %v9597_v58  ;;  %v9600_v52 = vadd.f32 %v12167_v20, %v1095_v17  ;;  %v12173_v58 = vld [vmem:[#allocation149_spill] sm:$0xff]  ;;  %v12175_v17 = vld [vmem:[#allocation150_spill] sm:$0xff]  ;;  %6313 = vpow2.f32 %v3623_v31  ;;  %v3045_v24 = vsub.f32 %v12181_v32, %v9482_v28  ;;  %v1179_v38 = vld [vmem:[#allocation5 + $0x7c8] sm:$0xff]  ;;  %v3629_v30 = vmul.f32 1.442695, %v3178_v5 }
 0x4d2   : > { %v9606_v36 = vpop.eup %6293  ;;  %v9613_v51 = vadd.f32 %v12173_v58, %v1096_v21  ;;  %v9616_v20 = vadd.f32 %v12175_v17, %v1097_v3  ;;  %v3892_v3 = vadd.f32 %v9212_v43, %v9206_v23  ;;  %v1178_v58 = vld [vmem:[#allocation5 + $0x7c0] sm:$0xff]  ;;  %6315 = vpow2.f32 %v3625_v16  ;;  %v12187_v16 = vld [vmem:[#allocation186_spill] sm:$0xff] }
 0x4d3   : > { %12168 = vst [vmem:[#allocation178_spill] sm:$0xff] %v9600_v52  ;;  %12170 = vst [vmem:[#allocation148_spill] sm:$0xff] %v9606_v36  ;;  %v9610_v34 = vpop.eup %6295  ;;  %v3799_v23 = vadd.f32 %v9340_v55, %v9328_v14  ;;  %6317 = vpow2.f32 %v3359_v56  ;;  %v3631_v31 = vmul.f32 1.442695, %v3179_v46  ;;  %v9649_v5 = vadd.f32 %v9192_v54, %v1178_v58  ;;  %v12189_v56 = vld [vmem:[#allocation100_spill] sm:$0xff] }
 0x4d4   : > { %12172 = vst [vmem:[#allocation179_spill] sm:$0xff] %v9610_v34  ;;  %12174 = vst [vmem:[#allocation180_spill] sm:$0xff] %v9613_v51  ;;  %3890 = vadd.xlane.f32.xlu1 %v3889_v0  ;;  %2969 = vmax.xlane.f32.xlu0 %v2968_v44  ;;  %v9620_v35 = vpop.eup %6297  ;;  %v2845_v0 = vmax.f32 %v9589_v47, %v9600_v52  ;;  %v3627_v44 = vmul.f32 1.442695, %v3177_v48  ;;  %v3046_v34 = vsub.f32 %v12183_v9, %v9482_v28  ;;  %v12184_v48 = vld [vmem:[#allocation185_spill] sm:$0xff]  ;;  %v12205_v36 = vld [vmem:[#allocation152_spill] sm:$0xff] }
 0x4d5   : > { %12176 = vst [vmem:[#allocation149_spill] sm:$0xff] %v9616_v20  ;;  %12178 = vst [vmem:[#allocation150_spill] sm:$0xff] %v9620_v35  ;;  %v9624_v8 = vpop.xlane.xlu1 %2786  ;;  %v9626_v21 = vpop.xlane.xlu0 %2909  ;;  %v2848_v43 = vmax.f32 %v9613_v51, %v9616_v20  ;;  %v3181_v52 = vsub.f32 %v12184_v48, %v9510_v22  ;;  %6319 = vpow2.f32 %v3361_v57  ;;  %v3633_v28 = vmul.f32 1.442695, %v3180_v39  ;;  %v1098_v51 = vld [vmem:[#allocation5 + $0x540] sm:$0xff] }
 0x4d6   : > { %v9630_v63 = vpop.eup %6299  ;;  %12186 = vst [vmem:[#allocation182_spill] sm:$0xff] %v9649_v5  ;;  %v3182_v9 = vsub.f32 %v12187_v16, %v9510_v22  ;;  %v9660_v48 = vadd.f32 %v12189_v56, %v1179_v38  ;;  %6321 = vpow2.f32 %v3627_v44  ;;  %v3365_v57 = vmul.f32 1.442695, %v3046_v34  ;;  %v12193_v22 = vld [vmem:[#allocation190_spill] sm:$0xff]  ;;  %v12194_v16 = vld [vmem:[#allocation251_spill] sm:$0xff]  ;;  %v1099_v34 = vld [vmem:[#allocation5 + $0x548] sm:$0xff] }
 0x4d7   : > { %12180 = vst [vmem:[#allocation183_spill] sm:$0xff] %v9630_v63  ;;  %v9636_v17 = vpop.eup %6301  ;;  %6323 = vpow2.f32 %v3629_v30  ;;  %v3184_v39 = vsub.f32 %v12193_v22, %v9536_v11  ;;  %v3802_v20 = vadd.f32 %v12194_v16, %v9242_v45  ;;  %v3635_v47 = vmul.f32 1.442695, %v3181_v52  ;;  %v12195_v38 = vld [vmem:[#allocation187_spill] sm:$0xff]  ;;  %v12198_v52 = vld [vmem:[#allocation253_spill] sm:$0xff] }
 0x4d8   : > { %12182 = vst [vmem:[#allocation184_spill] sm:$0xff] %v9636_v17  ;;  %2846 = vmax.xlane.f32.xlu1 %v2845_v0  ;;  %3893 = vadd.xlane.f32.xlu0 %v3892_v3  ;;  %v9646_v32 = vpop.eup %6303  ;;  %12190 = vst [vmem:[#allocation186_spill] sm:$0xff] %v9660_v48  ;;  %v3363_v3 = vmul.f32 1.442695, %v3045_v24  ;;  %v12191_v0 = vld [vmem:[#allocation189_spill] sm:$0xff]  ;;  %6325 = vpow2.f32 %v3631_v31  ;;  %v3101_v44 = vsub.f32 %v12195_v38, %v9538_v41  ;;  %v12201_v45 = vld [vmem:[#allocation151_spill] sm:$0xff] }
 0x4d9   : > { %12185 = vst [vmem:[#allocation181_spill] sm:$0xff] %v9646_v32  ;;  %v9653_v14 = vpop.xlane.xlu1 %2912  ;;  %v9655_v55 = vpop.xlane.xlu0 %2789  ;;  %v3183_v54 = vsub.f32 %v12191_v0, %v9536_v11  ;;  %v3895_v24 = vadd.f32 %v9370_v12, %v9364_v1  ;;  %6327 = vpow2.f32 %v3633_v28  ;;  %v3637_v30 = vmul.f32 1.442695, %v3182_v9  ;;  %v12197_v11 = vld [vmem:[#allocation188_spill] sm:$0xff]  ;;  %v12199_v12 = vld [vmem:[#allocation191_spill] sm:$0xff] }
 0x4da   : > { %v9657_v46 = vpop.eup %6305  ;;  %v3102_v0 = vsub.f32 %v12197_v11, %v9538_v41  ;;  %v3898_v38 = vadd.f32 %v12198_v52, %v9284_v2  ;;  %6329 = vpow2.f32 %v3363_v3  ;;  %v3103_v28 = vsub.f32 %v12199_v12, %v9560_v61  ;;  %v1101_v11 = vld [vmem:[#allocation5 + $0x558] sm:$0xff]  ;;  %v12207_v12 = vld [vmem:[#allocation193_spill] sm:$0xff] }
 0x4db   : > { %12188 = vst [vmem:[#allocation185_spill] sm:$0xff] %v9657_v46  ;;  %v9664_v58 = vpop.eup %6307  ;;  %v3639_v1 = vmul.f32 1.442695, %v3183_v54  ;;  %v9691_v41 = vadd.f32 %v12201_v45, %v1098_v51  ;;  %6331 = vpow2.f32 %v3365_v57  ;;  %v3641_v16 = vmul.f32 1.442695, %v3184_v39  ;;  %v12209_v51 = vld [vmem:[#allocation153_spill] sm:$0xff] }
 0x4dc   : > { %12192 = vst [vmem:[#allocation100_spill] sm:$0xff] %v9664_v58  ;;  %3800 = vadd.xlane.f32.xlu1 %v3799_v23  ;;  %2849 = vmax.xlane.f32.xlu0 %v2848_v43  ;;  %v9674_v56 = vpop.eup %6309  ;;  %v1100_v23 = vld [vmem:[#allocation5 + $0x550] sm:$0xff]  ;;  %v2971_v43 = vmax.f32 %v9649_v5, %v9660_v48  ;;  %v9698_v48 = vadd.f32 %v12205_v36, %v1099_v34  ;;  %6333 = vpow2.f32 %v3635_v47  ;;  %v3475_v3 = vmul.f32 1.442695, %v3101_v44  ;;  %v12213_v44 = vld [vmem:[#allocation154_spill] sm:$0xff] }
 0x4dd   : > { %12196 = vst [vmem:[#allocation189_spill] sm:$0xff] %v9674_v56  ;;  %v9678_v22 = vpop.xlane.xlu1 %2792  ;;  %v9680_v31 = vpop.xlane.xlu0 %2915  ;;  %12202 = vst [vmem:[#allocation187_spill] sm:$0xff] %v9691_v41  ;;  %v12203_v56 = vld [vmem:[#allocation192_spill] sm:$0xff]  ;;  %v3185_v54 = vsub.f32 %v12207_v12, %v9562_v42  ;;  %v9705_v57 = vadd.f32 %v12209_v51, %v1100_v23  ;;  %6335 = vpow2.f32 %v3637_v30  ;;  %v3477_v39 = vmul.f32 1.442695, %v3102_v0 }
 0x4de   : > { %v9688_v9 = vpop.eup %6311  ;;  %v3104_v2 = vsub.f32 %v12203_v56, %v9560_v61  ;;  %12206 = vst [vmem:[#allocation191_spill] sm:$0xff] %v9698_v48  ;;  %v12211_v61 = vld [vmem:[#allocation194_spill] sm:$0xff]  ;;  %v9716_v34 = vadd.f32 %v12213_v44, %v1101_v11  ;;  %6337 = vpow2.f32 %v3639_v1 }
 0x4df   : > { %12200 = vst [vmem:[#allocation190_spill] sm:$0xff] %v9688_v9  ;;  %v9695_v52 = vpop.eup %6313  ;;  %12210 = vst [vmem:[#allocation192_spill] sm:$0xff] %v9705_v57  ;;  %v3186_v56 = vsub.f32 %v12211_v61, %v9562_v42  ;;  %6339 = vpow2.f32 %v3641_v16  ;;  %v12217_v42 = vld [vmem:[#allocation198_spill] sm:$0xff]  ;;  %v3643_v61 = vmul.f32 1.442695, %v3185_v54  ;;  %v12223_v54 = vld [vmem:[#allocation199_spill] sm:$0xff] }
 0x4e0   : > { %12204 = vst [vmem:[#allocation188_spill] sm:$0xff] %v9695_v52  ;;  %2972 = vmax.xlane.f32.xlu1 %v2971_v43  ;;  %3803 = vadd.xlane.f32.xlu0 %v3802_v20  ;;  %v9702_v45 = vpop.eup %6315  ;;  %12214 = vst [vmem:[#allocation193_spill] sm:$0xff] %v9716_v34  ;;  %v3479_v20 = vmul.f32 1.442695, %v3103_v28  ;;  %v12215_v43 = vld [vmem:[#allocation197_spill] sm:$0xff]  ;;  %v3188_v0 = vsub.f32 %v12217_v42, %v9593_v40  ;;  %6341 = vpow2.f32 %v3475_v3 }
 0x4e1   : > { %12208 = vst [vmem:[#allocation151_spill] sm:$0xff] %v9702_v45  ;;  %v9709_v5 = vpop.xlane.xlu1 %2918  ;;  %v9711_v36 = vpop.xlane.xlu0 %2795  ;;  %v3187_v23 = vsub.f32 %v12215_v43, %v9593_v40  ;;  %v3481_v30 = vmul.f32 1.442695, %v3104_v2  ;;  %v2851_v28 = vmax.f32 %v9691_v41, %v9698_v48  ;;  %6343 = vpow2.f32 %v3477_v39  ;;  %v12221_v2 = vld [vmem:[#allocation196_spill] sm:$0xff] }
 0x4e2   : > { %v9713_v47 = vpop.eup %6317  ;;  %v3645_v16 = vmul.f32 1.442695, %v3186_v56  ;;  %v3106_v44 = vsub.f32 %v12221_v2, %v9595_v6  ;;  %6345 = vpow2.f32 %v3479_v20  ;;  %v3649_v39 = vmul.f32 1.442695, %v3188_v0  ;;  %v12226_v2 = vld [vmem:[#allocation200_spill] sm:$0xff] }
 0x4e3   : > { %12212 = vst [vmem:[#allocation152_spill] sm:$0xff] %v9713_v47  ;;  %v9720_v12 = vpop.eup %6319  ;;  %v12219_v47 = vld [vmem:[#allocation195_spill] sm:$0xff]  ;;  %6347 = vpow2.f32 %v3481_v30  ;;  %v3108_v48 = vsub.f32 %v12226_v2, %v9624_v8  ;;  %v3805_v30 = vadd.f32 %v9398_v50, %v9390_v27  ;;  %v1105_v2 = vld [vmem:[#allocation5 + $0x578] sm:$0xff]  ;;  %v3901_v50 = vadd.f32 %v9434_v60, %v9424_v37 }
 0x4e4   : > { %12216 = vst [vmem:[#allocation153_spill] sm:$0xff] %v9720_v12  ;;  %v9724_v51 = vpop.eup %6321  ;;  %v3105_v11 = vsub.f32 %v12219_v47, %v9595_v6  ;;  %3896 = vadd.xlane.f32.xlu1 %v3895_v24  ;;  %3899 = vadd.xlane.f32.xlu0 %v3898_v38  ;;  %v2854_v24 = vmax.f32 %v9705_v57, %v9716_v34  ;;  %v3647_v38 = vmul.f32 1.442695, %v3187_v23  ;;  %6349 = vpow2.f32 %v3643_v61  ;;  %v1103_v61 = vld [vmem:[#allocation5 + $0x568] sm:$0xff] }
 0x4e5   : > { %12218 = vst [vmem:[#allocation194_spill] sm:$0xff] %v9724_v51  ;;  %v9728_v1 = vpop.eup %6323  ;;  %v9734_v40 = vpop.xlane.xlu1 %2798  ;;  %v3107_v47 = vsub.f32 %v12223_v54, %v9624_v8  ;;  %6351 = vpow2.f32 %v3645_v16  ;;  %v3485_v20 = vmul.f32 1.442695, %v3106_v44  ;;  %v1102_v54 = vld [vmem:[#allocation5 + $0x560] sm:$0xff]  ;;  %v1104_v44 = vld [vmem:[#allocation5 + $0x570] sm:$0xff]  ;;  %v12231_v57 = vld [vmem:[#allocation24_spill] sm:$0xff] }
 0x4e6   : > { %12220 = vst [vmem:[#allocation154_spill] sm:$0xff] %v9728_v1  ;;  %v9736_v43 = vpop.xlane.xlu0 %2921  ;;  %v9738_v3 = vpop.eup %6325  ;;  %v3483_v6 = vmul.f32 1.442695, %v3105_v11  ;;  %6353 = vpow2.f32 %v3647_v38  ;;  %v12229_v8 = vld [vmem:[#allocation23_spill] sm:$0xff]  ;;  %v3190_v27 = vsub.f32 %v12231_v57, %v9626_v21  ;;  %v3489_v38 = vmul.f32 1.442695, %v3108_v48 }
 0x4e7   : > { %12222 = vst [vmem:[#allocation197_spill] sm:$0xff] %v9738_v3  ;;  %v9744_v42 = vpop.eup %6327  ;;  %v3487_v11 = vmul.f32 1.442695, %v3107_v47  ;;  %6355 = vpow2.f32 %v3649_v39  ;;  %v12233_v47 = vld [vmem:[#allocation26_spill] sm:$0xff]  ;;  %v12235_v39 = vld [vmem:[#allocation155_spill] sm:$0xff] }
 0x4e8   : > { %12224 = vst [vmem:[#allocation198_spill] sm:$0xff] %v9744_v42  ;;  %v9746_v56 = vpop.eup %6329  ;;  %2852 = vmax.xlane.f32.xlu1 %v2851_v28  ;;  %2855 = vmax.xlane.f32.xlu0 %v2854_v24  ;;  %v3189_v28 = vsub.f32 %v12229_v8, %v9626_v21  ;;  %v3808_v24 = vadd.f32 %v9320_v33, %v9312_v15  ;;  %6357 = vpow2.f32 %v3483_v6  ;;  %v12237_v21 = vld [vmem:[#allocation156_spill] sm:$0xff]  ;;  %v12239_v6 = vld [vmem:[#allocation51_spill] sm:$0xff] }
 0x4e9   : > { %12225 = vst [vmem:[#allocation195_spill] sm:$0xff] %v9746_v56  ;;  %v9750_v41 = vpop.eup %6331  ;;  %v3753_v23 = vpop.xlane.xlu1 %3752  ;;  %v3191_v8 = vsub.f32 %v12233_v47, %v9653_v14  ;;  %v3904_v15 = vadd.f32 %v9354_v53, %v9346_v49  ;;  %v9777_v3 = vadd.f32 %v12235_v39, %v1102_v54  ;;  %v9780_v57 = vadd.f32 %v12237_v21, %v1103_v61  ;;  %v12243_v49 = vld [vmem:[#allocation158_spill] sm:$0xff] }
 0x4ea   : > { %12227 = vst [vmem:[#allocation196_spill] sm:$0xff] %v9750_v41  ;;  %v9752_v34 = vpop.xlane.xlu0 %2801  ;;  %v9756_v0 = vpop.eup %6333  ;;  %6359 = vpow2.f32 %v3485_v20  ;;  %v3192_v48 = vsub.f32 %v12239_v6, %v9653_v14  ;;  %v9792_v53 = vadd.f32 %v12243_v49, %v1105_v2  ;;  %v3651_v54 = vmul.f32 1.442695, %v3189_v28  ;;  %v12246_v20 = vld [vmem:[#allocation25_spill] sm:$0xff] }
 0x4eb   : > { %12228 = vst [vmem:[#allocation199_spill] sm:$0xff] %v9756_v0  ;;  %v9762_v16 = vpop.eup %6335  ;;  %12236 = vst [vmem:[#allocation26_spill] sm:$0xff] %v9777_v3  ;;  %6361 = vpow2.f32 %v3487_v11  ;;  %v3653_v61 = vmul.f32 1.442695, %v3190_v27  ;;  %v3109_v21 = vsub.f32 %v12246_v20, %v9655_v55  ;;  %v3655_v6 = vmul.f32 1.442695, %v3191_v8 }
 0x4ec   : > { %12230 = vst [vmem:[#allocation200_spill] sm:$0xff] %v9762_v16  ;;  %v9768_v42 = vpop.eup %6337  ;;  %3806 = vadd.xlane.f32.xlu1 %v3805_v30  ;;  %3809 = vadd.xlane.f32.xlu0 %v3808_v24  ;;  %12238 = vst [vmem:[#allocation155_spill] sm:$0xff] %v9780_v57  ;;  %v12241_v24 = vld [vmem:[#allocation157_spill] sm:$0xff]  ;;  %6363 = vrcp.f32 %v3753_v23  ;;  %v2857_v23 = vmax.f32 %v9777_v3, %v9780_v57  ;;  %v12253_v20 = vld [vmem:[#allocation202_spill] sm:$0xff] }
 0x4ed   : > { %12232 = vst [vmem:[#allocation23_spill] sm:$0xff] %v9768_v42  ;;  %v9774_v33 = vpop.eup %6339  ;;  %v9784_v37 = vpop.xlane.xlu1 %2924  ;;  %v9789_v60 = vadd.f32 %v12241_v24, %v1104_v44  ;;  %12244 = vst [vmem:[#allocation157_spill] sm:$0xff] %v9792_v53  ;;  %6365 = vpow2.f32 %v3489_v38  ;;  %v3657_v24 = vmul.f32 1.442695, %v3192_v48  ;;  %v12249_v49 = vld [vmem:[#allocation201_spill] sm:$0xff]  ;;  %v1106_v48 = vld [vmem:[#allocation5 + $0x580] sm:$0xff] }
 0x4ee   : > { %12234 = vst [vmem:[#allocation24_spill] sm:$0xff] %v9774_v33  ;;  %v3756_v47 = vpop.xlane.xlu0 %3755  ;;  %v9786_v30 = vpop.eup %6341  ;;  %v3110_v11 = vsub.f32 %v12249_v49, %v9655_v55  ;;  %v1107_v55 = vld [vmem:[#allocation5 + $0x588] sm:$0xff]  ;;  %v3112_v49 = vsub.f32 %v12253_v20, %v9678_v22 }
 0x4ef   : > { %12240 = vst [vmem:[#allocation156_spill] sm:$0xff] %v9786_v30  ;;  %12242 = vst [vmem:[#allocation51_spill] sm:$0xff] %v9789_v60  ;;  %v9794_v39 = vpop.eup %6343  ;;  %6367 = vrcp.f32 %v3756_v47  ;;  %v2860_v38 = vmax.f32 %v9789_v60, %v9792_v53  ;;  %v3491_v47 = vmul.f32 1.442695, %v3109_v21  ;;  %v12255_v57 = vld [vmem:[#allocation28_spill] sm:$0xff] }
 0x4f0   : > { %12245 = vst [vmem:[#allocation158_spill] sm:$0xff] %v9794_v39  ;;  %v9798_v14 = vpop.eup %6345  ;;  %3902 = vadd.xlane.f32.xlu1 %v3901_v50  ;;  %3905 = vadd.xlane.f32.xlu0 %v3904_v15  ;;  %6369 = vpow2.f32 %v3651_v54  ;;  %v12251_v15 = vld [vmem:[#allocation52_spill] sm:$0xff]  ;;  %v3193_v3 = vsub.f32 %v12255_v57, %v9680_v31  ;;  %v3811_v54 = vadd.f32 %v9460_v4, %v9452_v59  ;;  %v3493_v53 = vmul.f32 1.442695, %v3110_v11  ;;  %v12260_v57 = vld [vmem:[#allocation159_spill] sm:$0xff]  ;;  %v1108_v11 = vld [vmem:[#allocation5 + $0x590] sm:$0xff] }
 0x4f1   : > { %12247 = vst [vmem:[#allocation25_spill] sm:$0xff] %v9798_v14  ;;  %v9800_v44 = vpop.eup %6347  ;;  %v3849_v28 = vpop.xlane.xlu1 %3848  ;;  %v3111_v50 = vsub.f32 %v12251_v15, %v9678_v22  ;;  %6371 = vpow2.f32 %v3653_v61  ;;  %v12257_v61 = vld [vmem:[#allocation29_spill] sm:$0xff] }
 0x4f2   : > { %12248 = vst [vmem:[#allocation261_spill] sm:$0xff] %v9800_v44  ;;  %v9804_v2 = vpop.xlane.xlu0 %2927  ;;  %v9806_v27 = vpop.eup %6349  ;;  %6373 = vpow2.f32 %v3655_v6  ;;  %v3194_v21 = vsub.f32 %v12257_v61, %v9680_v31  ;;  %v12258_v6 = vld [vmem:[#allocation122_spill] sm:$0xff]  ;;  %v3497_v31 = vmul.f32 1.442695, %v3112_v49  ;;  %v12265_v61 = vld [vmem:[#allocation32_spill] sm:$0xff] }
 0x4f3   : > { %12250 = vst [vmem:[#allocation201_spill] sm:$0xff] %v9806_v27  ;;  %v9814_v8 = vpop.eup %6351  ;;  %6375 = vpow2.f32 %v3657_v24  ;;  %v3814_v20 = vadd.f32 %v12258_v6, %v9374_v29  ;;  %v3495_v4 = vmul.f32 1.442695, %v3111_v50  ;;  %v1109_v29 = vld [vmem:[#allocation5 + $0x598] sm:$0xff]  ;;  %v3659_v6 = vmul.f32 1.442695, %v3193_v3 }
 0x4f4   : > { %12252 = vst [vmem:[#allocation52_spill] sm:$0xff] %v9814_v8  ;;  %v9818_v44 = vpop.eup %6353  ;;  %2858 = vmax.xlane.f32.xlu1 %v2857_v23  ;;  %2861 = vmax.xlane.f32.xlu0 %v2860_v38  ;;  %v9835_v23 = vadd.f32 %v12260_v57, %v1106_v48  ;;  %v12262_v38 = vld [vmem:[#allocation160_spill] sm:$0xff]  ;;  %6377 = vrcp.f32 %v3849_v28  ;;  %v12267_v48 = vld [vmem:[#allocation34_spill] sm:$0xff]  ;;  %v3661_v28 = vmul.f32 1.442695, %v3194_v21  ;;  %v12270_v3 = vld [vmem:[#allocation161_spill] sm:$0xff] }
 0x4f5   : > { %12254 = vst [vmem:[#allocation202_spill] sm:$0xff] %v9818_v44  ;;  %v9824_v15 = vpop.eup %6355  ;;  %v9828_v60 = vpop.xlane.xlu1 %2804  ;;  %v9838_v59 = vadd.f32 %v12262_v38, %v1107_v55  ;;  %6379 = vpow2.f32 %v3491_v47  ;;  %v3196_v57 = vsub.f32 %v12267_v48, %v9709_v5  ;;  %v3907_v47 = vadd.f32 %v9498_v18, %v9486_v62  ;;  %v12268_v49 = vld [vmem:[#allocation124_spill] sm:$0xff] }
 0x4f6   : > { %12256 = vst [vmem:[#allocation28_spill] sm:$0xff] %v9824_v15  ;;  %v3852_v22 = vpop.xlane.xlu0 %3851  ;;  %v9832_v44 = vpop.eup %6357  ;;  %12261 = vst [vmem:[#allocation159_spill] sm:$0xff] %v9835_v23  ;;  %v3195_v15 = vsub.f32 %v12265_v61, %v9709_v5  ;;  %v3910_v61 = vadd.f32 %v9418_v13, %v12268_v49  ;;  %v12275_v49 = vld [vmem:[#allocation203_spill] sm:$0xff] }
 0x4f7   : > { %12259 = vst [vmem:[#allocation29_spill] sm:$0xff] %v9832_v44  ;;  %12263 = vst [vmem:[#allocation160_spill] sm:$0xff] %v9838_v59  ;;  %v9840_v24 = vpop.eup %6359  ;;  %6381 = vrcp.f32 %v3852_v22  ;;  %v2863_v5 = vmax.f32 %v9835_v23, %v9838_v59  ;;  %v3114_v13 = vsub.f32 %v12275_v49, %v9711_v36  ;;  %v3665_v59 = vmul.f32 1.442695, %v3196_v57 }
 0x4f8   : > { %12264 = vst [vmem:[#allocation262_spill] sm:$0xff] %v9840_v24  ;;  %v9844_v14 = vpop.eup %6361  ;;  %3812 = vadd.xlane.f32.xlu1 %v3811_v54  ;;  %3815 = vadd.xlane.f32.xlu0 %v3814_v20  ;;  %6383 = vpow2.f32 %v3493_v53  ;;  %v9859_v54 = vadd.f32 %v12270_v3, %v1108_v11  ;;  %v12272_v53 = vld [vmem:[#allocation31_spill] sm:$0xff]  ;;  %v12273_v20 = vld [vmem:[#allocation162_spill] sm:$0xff]  ;;  %v3663_v62 = vmul.f32 1.442695, %v3195_v15  ;;  %v12277_v11 = vld [vmem:[#allocation40_spill] sm:$0xff] }
 0x4f9   : > { %12266 = vst [vmem:[#allocation32_spill] sm:$0xff] %v9844_v14  ;;  %v6364_v50 = vpop.eup %6363  ;;  %v3759_v55 = vpop.xlane.xlu1 %3758  ;;  %6385 = vpow2.f32 %v3495_v4  ;;  %v3113_v21 = vsub.f32 %v12272_v53, %v9711_v36  ;;  %v9864_v48 = vadd.f32 %v12273_v20, %v1109_v29  ;;  %v12278_v3 = vld [vmem:[#allocation209_spill] sm:$0xff]  ;;  %v12280_v29 = vld [vmem:[#allocation35_spill] sm:$0xff]  ;;  %v12281_v36 = vld [vmem:[#allocation204_spill] sm:$0xff] }
 0x4fa   : > { %v9848_v38 = vpop.xlane.xlu0 %2807  ;;  %v9854_v14 = vpop.eup %6365  ;;  %12271 = vst [vmem:[#allocation161_spill] sm:$0xff] %v9859_v54  ;;  %6387 = vpow2.f32 %v3497_v31  ;;  %v4264_v4 = vmul.f32 %v6364_v50, %v12277_v11  ;;  %v3115_v31 = vsub.f32 %v12280_v29, %v9734_v40  ;;  %v4263_v49 = vmul.f32 %v6364_v50, %v12281_v36  ;;  %v12284_v11 = vld [vmem:[#allocation36_spill] sm:$0xff] }
 0x4fb   : > { %12269 = vst [vmem:[#allocation34_spill] sm:$0xff] %v9854_v14  ;;  %v6368_v22 = vpop.eup %6367  ;;  %12274 = vst [vmem:[#allocation31_spill] sm:$0xff] %v9864_v48  ;;  %6389 = vpow2.f32 %v3659_v6  ;;  %v2866_v29 = vmax.f32 %v9859_v54, %v9864_v48  ;;  %v1111_v14 = vld [vmem:[#allocation5 + $0x5a8] sm:$0xff]  ;;  %v12298_v54 = vld [vmem:[#allocation47_spill] sm:$0xff] }
 0x4fc   : > { %v9868_v18 = vpop.eup %6369  ;;  %3908 = vadd.xlane.f32.xlu1 %v3907_v47  ;;  %3911 = vadd.xlane.f32.xlu0 %v3910_v61  ;;  %v4266_v23 = vmul.f32 %v6368_v22, %v12278_v3  ;;  %6391 = vpow2.f32 %v3661_v28  ;;  %v1110_v47 = vld [vmem:[#allocation5 + $0x5a0] sm:$0xff]  ;;  %v3499_v61 = vmul.f32 1.442695, %v3113_v21  ;;  %v3116_v3 = vsub.f32 %v12284_v11, %v9734_v40  ;;  %v12286_v21 = vld [vmem:[#allocation37_spill] sm:$0xff]  ;;  %v12291_v11 = vld [vmem:[#allocation164_spill] sm:$0xff] }
 0x4fd   : > { %12276 = vst [vmem:[#allocation162_spill] sm:$0xff] %v9868_v18  ;;  %v9872_v53 = vpop.eup %6371  ;;  %v9876_v15 = vpop.xlane.xlu1 %2930  ;;  %v12282_v18 = vld [vmem:[#allocation44_spill] sm:$0xff]  ;;  %6393 = vrcp.f32 %v3759_v55  ;;  %v3197_v36 = vsub.f32 %v12286_v21, %v9736_v43  ;;  %v3820_v40 = vadd.f32 %v9448_v26, %v9444_v10  ;;  %v12288_v55 = vld [vmem:[#allocation163_spill] sm:$0xff]  ;;  %v9904_v21 = vadd.f32 %v12291_v11, %v1111_v14  ;;  %v12300_v14 = vld [vmem:[#allocation165_spill] sm:$0xff] }
 0x4fe   : > { %12279 = vst [vmem:[#allocation203_spill] sm:$0xff] %v9872_v53  ;;  %v3762_v20 = vpop.xlane.xlu0 %3761  ;;  %v4265_v6 = vmul.f32 %v6368_v22, %v12282_v18  ;;  %v9880_v57 = vpop.eup %6373  ;;  %v5752_v53 = vpack.c.bf16 %v4266_v23, %v4264_v4  ;;  %6395 = vpow2.f32 %v3663_v62  ;;  %v3817_v18 = vadd.f32 %v9528_v25, %v9524_v19  ;;  %v1112_v62 = vld [vmem:[#allocation5 + $0x5b0] sm:$0xff]  ;;  %v12297_v25 = vld [vmem:[#allocation207_spill] sm:$0xff] }
 0x4ff   : > { %12283 = vst [vmem:[#allocation40_spill] sm:$0xff] %v9880_v57  ;;  %v9884_v28 = vpop.eup %6375  ;;  %v3501_v22 = vmul.f32 1.442695, %v3114_v13  ;;  %6397 = vrcp.f32 %v3762_v20  ;;  %v9897_v4 = vadd.f32 %v12288_v55, %v1110_v47  ;;  %12292 = vst [vmem:[#allocation44_spill] sm:$0xff] %v9904_v21  ;;  %v3505_v10 = vmul.f32 1.442695, %v3116_v3 }
 0x500   : > { %12285 = vst [vmem:[#allocation209_spill] sm:$0xff] %v9884_v28  ;;  %v5754_v24 = vpack.c.bf16 %v4265_v6, %v4263_v49  ;;  %v6378_v50 = vpop.eup %6377  ;;  %5753 = vmatprep.subr.bf16.mxu1 %v5752_v53  ;;  %2864 = vmax.xlane.f32.xlu1 %v2863_v5  ;;  %6399 = vpow2.f32 %v3665_v59  ;;  %v3503_v49 = vmul.f32 1.442695, %v3115_v31  ;;  %v12290_v53 = vld [vmem:[#allocation144_spill] sm:$0xff]  ;;  %v12293_v47 = vld [vmem:[#allocation39_spill] sm:$0xff]  ;;  %v1113_v59 = vld [vmem:[#allocation5 + $0x5b8] sm:$0xff]  ;;  %v9917_v11 = vadd.f32 %v12300_v14, %v1112_v62 }
 0x501   : > { %v9894_v23 = vpop.eup %6379  ;;  %12289 = vst [vmem:[#allocation204_spill] sm:$0xff] %v9897_v4  ;;  %2867 = vmax.xlane.f32.xlu0 %v2866_v29  ;;  %v3855_v13 = vpop.xlane.xlu1 %3854  ;;  %v3913_v20 = vadd.f32 %v12290_v53, %v9552_v7  ;;  %6401 = vpow2.f32 %v3499_v61  ;;  %v3198_v55 = vsub.f32 %v12293_v47, %v9736_v43  ;;  %v12296_v29 = vld [vmem:[#allocation48_spill] sm:$0xff]  ;;  %v4327_v48 = vmul.f32 %v6378_v50, %v12297_v25  ;;  %v12302_v43 = vld [vmem:[#allocation205_spill] sm:$0xff] }
 0x502   : > { %12287 = vst [vmem:[#allocation35_spill] sm:$0xff] %v9894_v23  ;;  %5755 = vmatpush1.bf16.xpose.msra.mxu1 %v5754_v24  ;;  %v9899_v6 = vpop.xlane.xlu0 %2933  ;;  %v6382_v5 = vpop.eup %6381  ;;  %v12295_v24 = vld [vmem:[#allocation43_spill] sm:$0xff]  ;;  %12301 = vst [vmem:[#allocation163_spill] sm:$0xff] %v9917_v11  ;;  %6403 = vpow2.f32 %v3501_v22  ;;  %v3667_v61 = vmul.f32 1.442695, %v3197_v36  ;;  %v3117_v3 = vsub.f32 %v12302_v43, %v9752_v34  ;;  %v12306_v22 = vld [vmem:[#allocation166_spill] sm:$0xff] }
 0x503   : > { %v9908_v26 = vpop.eup %6383  ;;  %v4328_v31 = vmul.f32 %v6378_v50, %v12295_v24  ;;  %v4330_v19 = vmul.f32 %v6382_v5, %v12296_v29  ;;  %v4329_v7 = vmul.f32 %v6382_v5, %v12298_v54  ;;  %6405 = vpow2.f32 %v3503_v49  ;;  %v12304_v24 = vld [vmem:[#allocation206_spill] sm:$0xff] }
 0x504   : > { %12294 = vst [vmem:[#allocation36_spill] sm:$0xff] %v9908_v26  ;;  %v9914_v53 = vpop.eup %6385  ;;  %3818 = vadd.xlane.f32.xlu1 %v3817_v18  ;;  %v3118_v29 = vsub.f32 %v12304_v24, %v9752_v34  ;;  %v9930_v36 = vadd.f32 %v12306_v22, %v1113_v59  ;;  %v3669_v14 = vmul.f32 1.442695, %v3198_v55  ;;  %v12308_v18 = vld [vmem:[#allocation46_spill] sm:$0xff]  ;;  %6407 = vrcp.f32 %v3855_v13  ;;  %v12310_v34 = vld [vmem:[#allocation260_spill] sm:$0xff] }
 0x505   : > { %12299 = vst [vmem:[#allocation37_spill] sm:$0xff] %v9914_v53  ;;  %v9921_v47 = vpop.eup %6387  ;;  %3821 = vadd.xlane.f32.xlu0 %v3820_v40  ;;  %v9925_v25 = vpop.xlane.xlu1 %2810  ;;  %v5816_v54 = vpack.c.bf16 %v4330_v19, %v4328_v31  ;;  %v5818_v5 = vpack.c.bf16 %v4329_v7, %v4327_v48  ;;  %v3199_v43 = vsub.f32 %v12308_v18, %v9784_v37  ;;  %6409 = vpow2.f32 %v3505_v10  ;;  %v12311_v40 = vld [vmem:[#allocation133_spill] sm:$0xff]  ;;  %v12313_v13 = vld [vmem:[#allocation208_spill] sm:$0xff] }
 0x506   : > { %12303 = vst [vmem:[#allocation164_spill] sm:$0xff] %v9921_v47  ;;  %v3858_v50 = vpop.xlane.xlu0 %3857  ;;  %v9927_v62 = vpop.eup %6389  ;;  %12307 = vst [vmem:[#allocation43_spill] sm:$0xff] %v9930_v36  ;;  %v3916_v24 = vadd.f32 %v12311_v40, %v12310_v34  ;;  %v3507_v31 = vmul.f32 1.442695, %v3117_v3  ;;  %v2869_v48 = vmax.f32 %v9897_v4, %v9904_v21  ;;  %v3509_v55 = vmul.f32 1.442695, %v3118_v29 }
 0x507   : > { %12305 = vst [vmem:[#allocation39_spill] sm:$0xff] %v9927_v62  ;;  %v9934_v49 = vpop.eup %6391  ;;  %5817 = vmatprep.subr.bf16.mxu0 %v5816_v54  ;;  %6411 = vrcp.f32 %v3858_v50  ;;  %v3200_v59 = vsub.f32 %v12313_v13, %v9784_v37  ;;  %v2872_v3 = vmax.f32 %v9917_v11, %v9930_v36  ;;  %v12314_v50 = vld [vmem:[#allocation49_spill] sm:$0xff]  ;;  %v12317_v34 = vld [vmem:[#allocation212_spill] sm:$0xff]  ;;  %v12318_v37 = vld [vmem:[#allocation211_spill] sm:$0xff] }
 0x508   : > { %12309 = vst [vmem:[#allocation48_spill] sm:$0xff] %v9934_v49  ;;  %v6394_v19 = vpop.eup %6393  ;;  %5819 = vmatpush1.bf16.xpose.msra.mxu0 %v5818_v5  ;;  %3914 = vadd.xlane.f32.xlu1 %v3913_v20  ;;  %6413 = vpow2.f32 %v3667_v61  ;;  %v3671_v20 = vmul.f32 1.442695, %v3199_v43  ;;  %v3201_v5 = vsub.f32 %v12314_v50, %v9804_v2  ;;  %v12316_v61 = vld [vmem:[#allocation53_spill] sm:$0xff]  ;;  %v12319_v13 = vld [vmem:[#allocation54_spill] sm:$0xff]  ;;  %v1114_v43 = vld [vmem:[#allocation5 + $0x5c0] sm:$0xff] }
 0x509   : > { %v9938_v7 = vpop.eup %6395  ;;  %3917 = vadd.xlane.f32.xlu0 %v3916_v24  ;;  %v3765_v10 = vpop.xlane.xlu1 %3764  ;;  %6415 = vpow2.f32 %v3669_v14  ;;  %v4268_v29 = vmul.f32 %v6394_v19, %v12316_v61  ;;  %v4267_v24 = vmul.f32 %v6394_v19, %v12318_v37  ;;  %v12321_v36 = vld [vmem:[#allocation210_spill] sm:$0xff]  ;;  %v3673_v50 = vmul.f32 1.442695, %v3200_v59  ;;  %v1115_v19 = vld [vmem:[#allocation5 + $0x5c8] sm:$0xff] }
 0x50a   : > { %12312 = vst [vmem:[#allocation207_spill] sm:$0xff] %v9938_v7  ;;  %v9944_v54 = vpop.xlane.xlu0 %2813  ;;  %v6398_v22 = vpop.eup %6397  ;;  %6417 = vpow2.f32 %v3507_v31  ;;  %v3202_v14 = vsub.f32 %v12321_v36, %v9804_v2  ;;  %v3675_v37 = vmul.f32 1.442695, %v3201_v5  ;;  %v12323_v31 = vld [vmem:[#allocation56_spill] sm:$0xff]  ;;  %v12325_v36 = vld [vmem:[#allocation147_spill] sm:$0xff]  ;;  %v1117_v59 = vld [vmem:[#allocation5 + $0x5d8] sm:$0xff] }
 0x50b   : > { %v9950_v18 = vpop.eup %6399  ;;  %v4270_v40 = vmul.f32 %v6398_v22, %v12317_v34  ;;  %v4269_v21 = vmul.f32 %v6398_v22, %v12319_v13  ;;  %6419 = vpow2.f32 %v3509_v55  ;;  %v1116_v22 = vld [vmem:[#allocation5 + $0x5d0] sm:$0xff]  ;;  %v3119_v13 = vsub.f32 %v12323_v31, %v9828_v60  ;;  %v12324_v2 = vld [vmem:[#allocation176_spill] sm:$0xff]  ;;  %v12331_v5 = vld [vmem:[#allocation167_spill] sm:$0xff] }
 0x50c   : > { %12315 = vst [vmem:[#allocation47_spill] sm:$0xff] %v9950_v18  ;;  %v9956_v4 = vpop.eup %6401  ;;  %2870 = vmax.xlane.f32.xlu1 %v2869_v48  ;;  %6421 = vrcp.f32 %v3765_v10  ;;  %v3823_v48 = vadd.f32 %v12325_v36, %v12324_v2  ;;  %v9975_v28 = vadd.f32 %v12331_v5, %v1114_v43  ;;  %v3677_v31 = vmul.f32 1.442695, %v3202_v14 }
 0x50d   : > { %12320 = vst [vmem:[#allocation165_spill] sm:$0xff] %v9956_v4  ;;  %2873 = vmax.xlane.f32.xlu0 %v2872_v3  ;;  %v9960_v11 = vpop.xlane.xlu1 %2936  ;;  %v5756_v61 = vpack.c.bf16 %v4270_v40, %v4268_v29  ;;  %v5758_v34 = vpack.c.bf16 %v4269_v21, %v4267_v24  ;;  %v9962_v62 = vpop.eup %6403  ;;  %6423 = vpow2.f32 %v3671_v20  ;;  %v12327_v40 = vld [vmem:[#allocation58_spill] sm:$0xff]  ;;  %v12328_v3 = vld [vmem:[#allocation135_spill] sm:$0xff]  ;;  %v12329_v29 = vld [vmem:[#allocation141_spill] sm:$0xff]  ;;  %v3919_v10 = vadd.f32 %v9630_v63, %v9620_v35 }
 0x50e   : > { %v3768_v49 = vpop.xlane.xlu0 %3767  ;;  %12322 = vst [vmem:[#allocation205_spill] sm:$0xff] %v9962_v62  ;;  %v9968_v55 = vpop.eup %6405  ;;  %v3826_v21 = vadd.f32 %v12328_v3, %v12327_v40  ;;  %v12330_v24 = vld [vmem:[#allocation142_spill] sm:$0xff]  ;;  %12332 = vst [vmem:[#allocation166_spill] sm:$0xff] %v9975_v28  ;;  %v12334_v20 = vld [vmem:[#allocation168_spill] sm:$0xff] }
 0x50f   : > { %12326 = vst [vmem:[#allocation206_spill] sm:$0xff] %v9968_v55  ;;  %5757 = vmatprep.subr.bf16.mxu1 %v5756_v61  ;;  %v3922_v18 = vadd.f32 %v12330_v24, %v12329_v29  ;;  %v6408_v7 = vpop.eup %6407  ;;  %6425 = vrcp.f32 %v3768_v49  ;;  %v9982_v61 = vadd.f32 %v12334_v20, %v1115_v19  ;;  %v12336_v40 = vld [vmem:[#allocation169_spill] sm:$0xff]  ;;  %v3511_v24 = vmul.f32 1.442695, %v3119_v13 }
 0x510   : > { %5759 = vmatpush1.bf16.xpose.msra.mxu1 %v5758_v34  ;;  %3824 = vadd.xlane.f32.xlu1 %v3823_v48  ;;  %v9979_v2 = vpop.eup %6409  ;;  %v9985_v3 = vadd.f32 %v12336_v40, %v1116_v22  ;;  %6427 = vpow2.f32 %v3673_v50  ;;  %v12338_v29 = vld [vmem:[#allocation57_spill] sm:$0xff]  ;;  %v12339_v48 = vld [vmem:[#allocation170_spill] sm:$0xff]  ;;  %v12343_v22 = vld [vmem:[#allocation60_spill] sm:$0xff] }
 0x511   : > { %12333 = vst [vmem:[#allocation46_spill] sm:$0xff] %v9979_v2  ;;  %12335 = vst [vmem:[#allocation208_spill] sm:$0xff] %v9982_v61  ;;  %v3120_v43 = vsub.f32 %v12338_v29, %v9828_v60  ;;  %3827 = vadd.xlane.f32.xlu0 %v3826_v21  ;;  %v3861_v14 = vpop.xlane.xlu1 %3860  ;;  %v6412_v34 = vpop.eup %6411  ;;  %v9992_v5 = vadd.f32 %v12339_v48, %v1117_v59  ;;  %6429 = vpow2.f32 %v3675_v37  ;;  %v12341_v19 = vld [vmem:[#allocation213_spill] sm:$0xff]  ;;  %v12344_v40 = vld [vmem:[#allocation215_spill] sm:$0xff] }
 0x512   : > { %12337 = vst [vmem:[#allocation49_spill] sm:$0xff] %v9985_v3  ;;  %v9989_v49 = vpop.xlane.xlu0 %2939  ;;  %v3121_v20 = vsub.f32 %v12341_v19, %v9848_v38  ;;  %v9996_v35 = vpop.eup %6413  ;;  %v4332_v50 = vmul.f32 %v6408_v7, %v12343_v22  ;;  %v4334_v63 = vmul.f32 %v6412_v34, %v12344_v40  ;;  %v12345_v60 = vld [vmem:[#allocation59_spill] sm:$0xff]  ;;  %v12346_v29 = vld [vmem:[#allocation61_spill] sm:$0xff]  ;;  %6431 = vpow2.f32 %v3677_v31  ;;  %v12347_v59 = vld [vmem:[#allocation214_spill] sm:$0xff] }
 0x513   : > { %12340 = vst [vmem:[#allocation53_spill] sm:$0xff] %v9992_v5  ;;  %12342 = vst [vmem:[#allocation212_spill] sm:$0xff] %v9996_v35  ;;  %v4331_v21 = vmul.f32 %v6408_v7, %v12345_v60  ;;  %v4333_v36 = vmul.f32 %v6412_v34, %v12346_v29  ;;  %v10002_v57 = vpop.eup %6415  ;;  %v3122_v37 = vsub.f32 %v12347_v59, %v9848_v38  ;;  %v3513_v13 = vmul.f32 1.442695, %v3120_v43  ;;  %v12348_v48 = vld [vmem:[#allocation64_spill] sm:$0xff]  ;;  %v12354_v29 = vld [vmem:[#allocation145_spill] sm:$0xff] }
 0x514   : > { %3920 = vadd.xlane.f32.xlu1 %v3919_v10  ;;  %v3203_v19 = vsub.f32 %v12348_v48, %v9876_v15  ;;  %v5820_v22 = vpack.c.bf16 %v4334_v63, %v4332_v50  ;;  %v10010_v7 = vpop.eup %6417  ;;  %v2875_v34 = vmax.f32 %v9975_v28, %v9982_v61  ;;  %v3515_v31 = vmul.f32 1.442695, %v3121_v20  ;;  %v12350_v60 = vld [vmem:[#allocation216_spill] sm:$0xff]  ;;  %v12353_v50 = vld [vmem:[#allocation67_spill] sm:$0xff]  ;;  %v12361_v28 = vld [vmem:[#allocation217_spill] sm:$0xff] }
 0x515   : > { %3923 = vadd.xlane.f32.xlu0 %v3922_v18  ;;  %v10008_v35 = vpop.xlane.xlu1 %2816  ;;  %v5822_v2 = vpack.c.bf16 %v4333_v36, %v4331_v21  ;;  %12349 = vst [vmem:[#allocation211_spill] sm:$0xff] %v10010_v7  ;;  %v3204_v38 = vsub.f32 %v12350_v60, %v9876_v15  ;;  %6433 = vrcp.f32 %v3861_v14  ;;  %v10016_v10 = vpop.eup %6419  ;;  %v2878_v18 = vmax.f32 %v9985_v3, %v9992_v5  ;;  %v12355_v59 = vld [vmem:[#allocation175_spill] sm:$0xff]  ;;  %v12359_v60 = vld [vmem:[#allocation65_spill] sm:$0xff] }
 0x516   : > { %v3864_v40 = vpop.xlane.xlu0 %3863  ;;  %12351 = vst [vmem:[#allocation54_spill] sm:$0xff] %v10016_v10  ;;  %6435 = vpow2.f32 %v3511_v24  ;;  %5821 = vmatprep.subr.bf16.mxu0 %v5820_v22  ;;  %v6422_v63 = vpop.eup %6421  ;;  %v3517_v43 = vmul.f32 1.442695, %v3122_v37  ;;  %v3679_v20 = vmul.f32 1.442695, %v3203_v19  ;;  %v3205_v15 = vsub.f32 %v12353_v50, %v9899_v6  ;;  %v12360_v50 = vld [vmem:[#allocation62_spill] sm:$0xff] }
 0x517   : > { %6437 = vrcp.f32 %v3864_v40  ;;  %5823 = vmatpush1.bf16.xpose.msra.mxu0 %v5822_v2  ;;  %v10020_v36 = vpop.eup %6423  ;;  %v3832_v24 = vadd.f32 %v12355_v59, %v12354_v29  ;;  %v3681_v37 = vmul.f32 1.442695, %v3204_v38  ;;  %v12356_v2 = vld [vmem:[#allocation68_spill] sm:$0xff]  ;;  %v12358_v40 = vld [vmem:[#allocation63_spill] sm:$0xff]  ;;  %v4271_v61 = vmul.f32 %v6422_v63, %v12360_v50 }
 0x518   : > { %2876 = vmax.xlane.f32.xlu1 %v2875_v34  ;;  %12352 = vst [vmem:[#allocation210_spill] sm:$0xff] %v10020_v36  ;;  %6439 = vpow2.f32 %v3513_v13  ;;  %v3206_v22 = vsub.f32 %v12356_v2, %v9899_v6  ;;  %v3829_v13 = vadd.f32 %v9646_v32, %v9636_v17  ;;  %v4272_v34 = vmul.f32 %v6422_v63, %v12358_v40  ;;  %v12448_v17 = vld [vmem:[#allocation173_spill] sm:$0xff] }
 0x519   : > { %2879 = vmax.xlane.f32.xlu0 %v2878_v18  ;;  %v3771_v14 = vpop.xlane.xlu1 %3770  ;;  %v6426_v48 = vpop.eup %6425  ;;  %6441 = vpow2.f32 %v3515_v31  ;;  %v12363_v31 = vld [vmem:[#allocation71_spill] sm:$0xff]  ;;  %v3683_v6 = vmul.f32 1.442695, %v3205_v15 }
 0x51a   : > { %v10024_v21 = vpop.xlane.xlu0 %2819  ;;  %v10032_v19 = vpop.eup %6427  ;;  %v4274_v18 = vmul.f32 %v6426_v48, %v12359_v60  ;;  %v4273_v5 = vmul.f32 %v6426_v48, %v12361_v28  ;;  %6443 = vpow2.f32 %v3517_v43  ;;  %v3123_v38 = vsub.f32 %v12363_v31, %v9925_v25  ;;  %v12364_v28 = vld [vmem:[#allocation219_spill] sm:$0xff]  ;;  %v12370_v31 = vld [vmem:[#allocation222_spill] sm:$0xff] }
 0x51b   : > { %12357 = vst [vmem:[#allocation56_spill] sm:$0xff] %v10032_v19  ;;  %v10038_v3 = vpop.eup %6429  ;;  %6445 = vpow2.f32 %v3679_v20  ;;  %v3685_v63 = vmul.f32 1.442695, %v3206_v22  ;;  %v3124_v48 = vsub.f32 %v12364_v28, %v9925_v25  ;;  %v3925_v43 = vadd.f32 %v9664_v58, %v9657_v46  ;;  %v12365_v20 = vld [vmem:[#allocation148_spill] sm:$0xff]  ;;  %v12366_v15 = vld [vmem:[#allocation179_spill] sm:$0xff]  ;;  %v12375_v58 = vld [vmem:[#allocation69_spill] sm:$0xff] }
 0x51c   : > { %12362 = vst [vmem:[#allocation167_spill] sm:$0xff] %v10038_v3  ;;  %3830 = vadd.xlane.f32.xlu1 %v3829_v13  ;;  %v5760_v29 = vpack.c.bf16 %v4274_v18, %v4272_v34  ;;  %v5762_v59 = vpack.c.bf16 %v4273_v5, %v4271_v61  ;;  %v10044_v60 = vpop.eup %6431  ;;  %6447 = vrcp.f32 %v3771_v14  ;;  %v3519_v50 = vmul.f32 1.442695, %v3123_v38  ;;  %v12368_v5 = vld [vmem:[#allocation221_spill] sm:$0xff] }
 0x51d   : > { %3833 = vadd.xlane.f32.xlu0 %v3832_v24  ;;  %v10042_v2 = vpop.xlane.xlu1 %2942  ;;  %6449 = vpow2.f32 %v3681_v37  ;;  %v3838_v24 = vadd.f32 %v12366_v15, %v12365_v20  ;;  %v3125_v25 = vsub.f32 %v12368_v5, %v9944_v54  ;;  %v12369_v37 = vld [vmem:[#allocation189_spill] sm:$0xff]  ;;  %v3521_v18 = vmul.f32 1.442695, %v3124_v48  ;;  %v12374_v5 = vld [vmem:[#allocation66_spill] sm:$0xff] }
 0x51e   : > { %v3774_v40 = vpop.xlane.xlu0 %3773  ;;  %5761 = vmatprep.subr.bf16.mxu1 %v5760_v29  ;;  %v3835_v29 = vadd.f32 %v9688_v9, %v12369_v37  ;;  %v4042_v38 = vadd.f32 %v9728_v1, %v9724_v51 }
 0x51f   : > { %v6434_v13 = vpop.eup %6433  ;;  %6451 = vrcp.f32 %v3774_v40  ;;  %5763 = vmatpush1.bf16.xpose.msra.mxu1 %v5762_v59  ;;  %v3126_v59 = vsub.f32 %v12370_v31, %v9944_v54  ;;  %v12372_v40 = vld [vmem:[#allocation218_spill] sm:$0xff]  ;;  %v3523_v54 = vmul.f32 1.442695, %v3125_v25  ;;  %v12378_v31 = vld [vmem:[#allocation224_spill] sm:$0xff] }
 0x520   : > { %3926 = vadd.xlane.f32.xlu1 %v3925_v43  ;;  %v10052_v61 = vpop.eup %6435  ;;  %6453 = vpow2.f32 %v3683_v6  ;;  %v4336_v28 = vmul.f32 %v6434_v13, %v12372_v40  ;;  %v12373_v43 = vld [vmem:[#allocation70_spill] sm:$0xff]  ;;  %v4335_v46 = vmul.f32 %v6434_v13, %v12374_v5  ;;  %v3208_v51 = vsub.f32 %v12378_v31, %v9960_v11 }
 0x521   : > { %12367 = vst [vmem:[#allocation168_spill] sm:$0xff] %v10052_v61  ;;  %3839 = vadd.xlane.f32.xlu0 %v3838_v24  ;;  %v3867_v14 = vpop.xlane.xlu1 %3866  ;;  %v6438_v34 = vpop.eup %6437  ;;  %6455 = vpow2.f32 %v3685_v63  ;;  %v12377_v63 = vld [vmem:[#allocation78_spill] sm:$0xff] }
 0x522   : > { %v10056_v22 = vpop.xlane.xlu0 %2945  ;;  %v10064_v6 = vpop.eup %6439  ;;  %v4338_v24 = vmul.f32 %v6438_v34, %v12373_v43  ;;  %v4337_v20 = vmul.f32 %v6438_v34, %v12375_v58  ;;  %6457 = vpow2.f32 %v3519_v50  ;;  %v3207_v48 = vsub.f32 %v12377_v63, %v9960_v11  ;;  %v12380_v34 = vld [vmem:[#allocation81_spill] sm:$0xff] }
 0x523   : > { %12371 = vst [vmem:[#allocation169_spill] sm:$0xff] %v10064_v6  ;;  %v10070_v37 = vpop.eup %6441  ;;  %v3525_v58 = vmul.f32 1.442695, %v3126_v59  ;;  %v3209_v50 = vsub.f32 %v12380_v34, %v9989_v49  ;;  %6459 = vrcp.f32 %v3867_v14  ;;  %v3844_v11 = vadd.f32 %v9750_v41, %v9746_v56  ;;  %v12383_v14 = vld [vmem:[#allocation226_spill] sm:$0xff]  ;;  %v12388_v34 = vld [vmem:[#allocation225_spill] sm:$0xff] }
 0x524   : > { %12376 = vst [vmem:[#allocation57_spill] sm:$0xff] %v10070_v37  ;;  %3836 = vadd.xlane.f32.xlu1 %v3835_v29  ;;  %v5824_v40 = vpack.c.bf16 %v4338_v24, %v4336_v28  ;;  %v5826_v15 = vpack.c.bf16 %v4337_v20, %v4335_v46  ;;  %v10078_v13 = vpop.eup %6443  ;;  %v4039_v29 = vadd.f32 %v9702_v45, %v9695_v52  ;;  %6461 = vpow2.f32 %v3521_v18  ;;  %v12384_v18 = vld [vmem:[#allocation152_spill] sm:$0xff]  ;;  %v12390_v52 = vld [vmem:[#allocation77_spill] sm:$0xff] }
 0x525   : > { %4043 = vadd.xlane.f32.xlu0 %v4042_v38  ;;  %v10076_v1 = vpop.xlane.xlu1 %2822  ;;  %12379 = vst [vmem:[#allocation170_spill] sm:$0xff] %v10078_v13  ;;  %v10084_v25 = vpop.eup %6445  ;;  %v3687_v28 = vmul.f32 1.442695, %v3207_v48  ;;  %v3689_v20 = vmul.f32 1.442695, %v3208_v51  ;;  %v3210_v59 = vsub.f32 %v12383_v14, %v9989_v49  ;;  %v3841_v63 = vadd.f32 %v9720_v12, %v12384_v18 }
 0x526   : > { %v3870_v43 = vpop.xlane.xlu0 %3869  ;;  %12381 = vst [vmem:[#allocation213_spill] sm:$0xff] %v10084_v25  ;;  %5825 = vmatprep.subr.bf16.mxu0 %v5824_v40  ;;  %v6448_v38 = vpop.eup %6447  ;;  %v3691_v48 = vmul.f32 1.442695, %v3209_v50 }
 0x527   : > { %6463 = vrcp.f32 %v3870_v43  ;;  %5827 = vmatpush1.bf16.xpose.msra.mxu0 %v5826_v15  ;;  %v10088_v46 = vpop.eup %6449  ;;  %v12385_v15 = vld [vmem:[#allocation229_spill] sm:$0xff]  ;;  %v12387_v43 = vld [vmem:[#allocation74_spill] sm:$0xff] }
 0x528   : > { %4040 = vadd.xlane.f32.xlu1 %v4039_v29  ;;  %12382 = vst [vmem:[#allocation60_spill] sm:$0xff] %v10088_v46  ;;  %6465 = vpow2.f32 %v3523_v54  ;;  %v3127_v40 = vsub.f32 %v12385_v15, %v10008_v35  ;;  %v4048_v54 = vadd.f32 %v9762_v16, %v9756_v0  ;;  %v4276_v49 = vmul.f32 %v6448_v38, %v12387_v43 }
 0x529   : > { %3845 = vadd.xlane.f32.xlu0 %v3844_v11  ;;  %v3777_v24 = vpop.xlane.xlu1 %3776  ;;  %v6452_v31 = vpop.eup %6451  ;;  %6467 = vpow2.f32 %v3525_v58  ;;  %v12389_v11 = vld [vmem:[#allocation73_spill] sm:$0xff]  ;;  %v12391_v58 = vld [vmem:[#allocation230_spill] sm:$0xff]  ;;  %v3693_v15 = vmul.f32 1.442695, %v3210_v59 }
 0x52a   : > { %v10092_v5 = vpop.xlane.xlu0 %2825  ;;  %v10100_v51 = vpop.eup %6453  ;;  %v4278_v29 = vmul.f32 %v6452_v31, %v12388_v34  ;;  %v4275_v14 = vmul.f32 %v6448_v38, %v12389_v11  ;;  %v4277_v45 = vmul.f32 %v6452_v31, %v12390_v52  ;;  %6469 = vpow2.f32 %v3687_v28  ;;  %v12393_v52 = vld [vmem:[#allocation87_spill] sm:$0xff]  ;;  %v12394_v28 = vld [vmem:[#allocation197_spill] sm:$0xff]  ;;  %v12395_v11 = vld [vmem:[#allocation198_spill] sm:$0xff] }
 0x52b   : > { %12386 = vst [vmem:[#allocation215_spill] sm:$0xff] %v10100_v51  ;;  %v10106_v56 = vpop.eup %6455  ;;  %v3128_v50 = vsub.f32 %v12391_v58, %v10008_v35  ;;  %6471 = vpow2.f32 %v3689_v20  ;;  %v3527_v38 = vmul.f32 1.442695, %v3127_v40  ;;  %v3129_v31 = vsub.f32 %v12393_v52, %v10024_v21  ;;  %v1181_v40 = vld [vmem:[#allocation5 + $0x7d8] sm:$0xff] }
 0x52c   : > { %3842 = vadd.xlane.f32.xlu1 %v3841_v63  ;;  %v5764_v16 = vpack.c.bf16 %v4278_v29, %v4276_v49  ;;  %v5766_v18 = vpack.c.bf16 %v4277_v45, %v4275_v14  ;;  %v10112_v34 = vpop.eup %6457  ;;  %6473 = vrcp.f32 %v3777_v24  ;;  %v4045_v41 = vadd.f32 %v12395_v11, %v12394_v28  ;;  %v1180_v63 = vld [vmem:[#allocation5 + $0x7d0] sm:$0xff]  ;;  %v12397_v24 = vld [vmem:[#allocation232_spill] sm:$0xff] }
 0x52d   : > { %4049 = vadd.xlane.f32.xlu0 %v4048_v54  ;;  %v10110_v0 = vpop.xlane.xlu1 %2948  ;;  %12392 = vst [vmem:[#allocation59_spill] sm:$0xff] %v10112_v34  ;;  %6475 = vpow2.f32 %v3691_v48  ;;  %v3928_v35 = vadd.f32 %v9794_v39, %v9786_v30  ;;  %v6460_v20 = vpop.eup %6459  ;;  %v3529_v59 = vmul.f32 1.442695, %v3128_v50  ;;  %v3130_v54 = vsub.f32 %v12397_v24, %v10024_v21  ;;  %v12403_v28 = vld [vmem:[#allocation220_spill] sm:$0xff] }
 0x52e   : > { %v3780_v43 = vpop.xlane.xlu0 %3779  ;;  %5765 = vmatprep.subr.bf16.mxu1 %v5764_v16  ;;  %v10120_v45 = vpop.eup %6461  ;;  %v4051_v16 = vadd.f32 %v9774_v33, %v9768_v42  ;;  %v3531_v14 = vmul.f32 1.442695, %v3129_v31  ;;  %v4054_v58 = vadd.f32 %v9814_v8, %v9806_v27  ;;  %v12407_v33 = vld [vmem:[#allocation103_spill] sm:$0xff] }
 0x52f   : > { %6477 = vrcp.f32 %v3780_v43  ;;  %5767 = vmatpush1.bf16.xpose.msra.mxu1 %v5766_v18  ;;  %12396 = vst [vmem:[#allocation61_spill] sm:$0xff] %v10120_v45  ;;  %v12401_v43 = vld [vmem:[#allocation72_spill] sm:$0xff]  ;;  %v12409_v27 = vld [vmem:[#allocation235_spill] sm:$0xff] }
 0x530   : > { %4046 = vadd.xlane.f32.xlu1 %v4045_v41  ;;  %6479 = vpow2.f32 %v3693_v15  ;;  %v12398_v41 = vld [vmem:[#allocation234_spill] sm:$0xff]  ;;  %v3212_v8 = vsub.f32 %v12409_v27, %v10042_v2  ;;  %v12414_v27 = vld [vmem:[#allocation261_spill] sm:$0xff] }
 0x531   : > { %3929 = vadd.xlane.f32.xlu0 %v3928_v35  ;;  %v3873_v49 = vpop.xlane.xlu1 %3872  ;;  %v6464_v29 = vpop.eup %6463  ;;  %6481 = vpow2.f32 %v3527_v38  ;;  %v3211_v18 = vsub.f32 %v12398_v41, %v10042_v2  ;;  %v12400_v15 = vld [vmem:[#allocation82_spill] sm:$0xff]  ;;  %v12402_v35 = vld [vmem:[#allocation227_spill] sm:$0xff]  ;;  %v10144_v41 = vadd.f32 %v12407_v33, %v1181_v40  ;;  %v12413_v40 = vld [vmem:[#allocation25_spill] sm:$0xff] }
 0x532   : > { %v10124_v48 = vpop.xlane.xlu0 %2951  ;;  %v10132_v50 = vpop.eup %6465  ;;  %v4340_v21 = vmul.f32 %v6460_v20, %v12400_v15  ;;  %v4342_v52 = vmul.f32 %v6464_v29, %v12401_v43  ;;  %v4339_v24 = vmul.f32 %v6460_v20, %v12402_v35  ;;  %v4341_v11 = vmul.f32 %v6464_v29, %v12403_v28  ;;  %v12405_v38 = vld [vmem:[#allocation247_spill] sm:$0xff]  ;;  %v12410_v43 = vld [vmem:[#allocation238_spill] sm:$0xff] }
 0x533   : > { %12399 = vst [vmem:[#allocation214_spill] sm:$0xff] %v10132_v50  ;;  %v10138_v42 = vpop.eup %6467  ;;  %v10141_v31 = vadd.f32 %v12405_v38, %v1180_v63  ;;  %12408 = vst [vmem:[#allocation67_spill] sm:$0xff] %v10144_v41  ;;  %6483 = vpow2.f32 %v3529_v59  ;;  %v3533_v15 = vmul.f32 1.442695, %v3130_v54  ;;  %v3213_v30 = vsub.f32 %v12410_v43, %v10056_v22  ;;  %v12412_v33 = vld [vmem:[#allocation239_spill] sm:$0xff] }
 0x534   : > { %12404 = vst [vmem:[#allocation64_spill] sm:$0xff] %v10138_v42  ;;  %4052 = vadd.xlane.f32.xlu1 %v4051_v16  ;;  %v5828_v28 = vpack.c.bf16 %v4342_v52, %v4340_v21  ;;  %v5830_v35 = vpack.c.bf16 %v4341_v11, %v4339_v24  ;;  %v10152_v63 = vpop.eup %6469  ;;  %v3695_v38 = vmul.f32 1.442695, %v3211_v18  ;;  %v3214_v59 = vsub.f32 %v12412_v33, %v10056_v22  ;;  %v12416_v16 = vld [vmem:[#allocation262_spill] sm:$0xff]  ;;  %v12417_v18 = vld [vmem:[#allocation96_spill] sm:$0xff] }
 0x535   : > { %12406 = vst [vmem:[#allocation216_spill] sm:$0xff] %v10141_v31  ;;  %4055 = vadd.xlane.f32.xlu0 %v4054_v58  ;;  %v10150_v20 = vpop.xlane.xlu1 %2828  ;;  %12411 = vst [vmem:[#allocation68_spill] sm:$0xff] %v10152_v63  ;;  %6485 = vrcp.f32 %v3873_v49  ;;  %v3931_v2 = vadd.f32 %v12414_v27, %v12413_v40  ;;  %v10158_v54 = vpop.eup %6471  ;;  %v3934_v58 = vadd.f32 %v12416_v16, %v9832_v44  ;;  %v3697_v52 = vmul.f32 1.442695, %v3212_v8  ;;  %v12419_v33 = vld [vmem:[#allocation202_spill] sm:$0xff]  ;;  %v12422_v40 = vld [vmem:[#allocation75_spill] sm:$0xff] }
 0x536   : > { %v3876_v29 = vpop.xlane.xlu0 %3875  ;;  %12415 = vst [vmem:[#allocation63_spill] sm:$0xff] %v10158_v54  ;;  %6487 = vpow2.f32 %v3531_v14  ;;  %5829 = vmatprep.subr.bf16.mxu0 %v5828_v28  ;;  %v6474_v21 = vpop.eup %6473  ;;  %v2974_v22 = vmax.f32 %v10141_v31, %v10144_v41  ;;  %v3699_v49 = vmul.f32 1.442695, %v3213_v30  ;;  %v3131_v24 = vsub.f32 %v12417_v18, %v10076_v1  ;;  %v12423_v18 = vld [vmem:[#allocation231_spill] sm:$0xff] }
 0x537   : > { %6489 = vrcp.f32 %v3876_v29  ;;  %5831 = vmatpush1.bf16.xpose.msra.mxu0 %v5830_v35  ;;  %v10162_v11 = vpop.eup %6475  ;;  %v3701_v8 = vmul.f32 1.442695, %v3214_v59  ;;  %v12418_v29 = vld [vmem:[#allocation18_spill] sm:$0xff]  ;;  %v12424_v41 = vld [vmem:[#allocation223_spill] sm:$0xff] }
 0x538   : > { %3932 = vadd.xlane.f32.xlu1 %v3931_v2  ;;  %6491 = vpow2.f32 %v3533_v15  ;;  %v3132_v35 = vsub.f32 %v12418_v29, %v10076_v1  ;;  %v12420_v2 = vld [vmem:[#allocation28_spill] sm:$0xff]  ;;  %v12421_v15 = vld [vmem:[#allocation85_spill] sm:$0xff]  ;;  %v1118_v1 = vld [vmem:[#allocation5 + $0x5e0] sm:$0xff]  ;;  %v3535_v29 = vmul.f32 1.442695, %v3131_v24 }
 0x539   : > { %3935 = vadd.xlane.f32.xlu0 %v3934_v58  ;;  %v3783_v14 = vpop.xlane.xlu1 %3782  ;;  %v6478_v28 = vpop.eup %6477  ;;  %6493 = vpow2.f32 %v3695_v38  ;;  %v4057_v44 = vadd.f32 %v12420_v2, %v12419_v33  ;;  %v4280_v30 = vmul.f32 %v6474_v21, %v12421_v15  ;;  %v4279_v58 = vmul.f32 %v6474_v21, %v12423_v18  ;;  %v12426_v38 = vld [vmem:[#allocation21_spill] sm:$0xff]  ;;  %v1119_v21 = vld [vmem:[#allocation5 + $0x5e8] sm:$0xff] }
 0x53a   : > { %v10168_v43 = vpop.xlane.xlu0 %2831  ;;  %v10174_v16 = vpop.eup %6479  ;;  %v4282_v27 = vmul.f32 %v6478_v28, %v12422_v40  ;;  %v4281_v31 = vmul.f32 %v6478_v28, %v12424_v41  ;;  %6495 = vpow2.f32 %v3697_v52  ;;  %v3133_v59 = vsub.f32 %v12426_v38, %v10092_v5  ;;  %v12428_v28 = vld [vmem:[#allocation22_spill] sm:$0xff]  ;;  %v12429_v18 = vld [vmem:[#allocation32_spill] sm:$0xff] }
 0x53b   : > { %v10180_v39 = vpop.eup %6481  ;;  %6497 = vpow2.f32 %v3699_v49  ;;  %v3537_v41 = vmul.f32 1.442695, %v3132_v35  ;;  %v3134_v52 = vsub.f32 %v12428_v28, %v10092_v5  ;;  %v12430_v38 = vld [vmem:[#allocation34_spill] sm:$0xff]  ;;  %v12434_v5 = vld [vmem:[#allocation172_spill] sm:$0xff] }
 0x53c   : > { %12425 = vst [vmem:[#allocation65_spill] sm:$0xff] %v10180_v39  ;;  %4058 = vadd.xlane.f32.xlu1 %v4057_v44  ;;  %v5768_v15 = vpack.c.bf16 %v4282_v27, %v4280_v30  ;;  %v5770_v40 = vpack.c.bf16 %v4281_v31, %v4279_v58  ;;  %6499 = vrcp.f32 %v3783_v14  ;;  %v3937_v44 = vadd.f32 %v12430_v38, %v12429_v18  ;;  %v12431_v27 = vld [vmem:[#allocation171_spill] sm:$0xff] }
 0x53d   : > { %2975 = vmax.xlane.f32.xlu0 %v2974_v22  ;;  %v10184_v33 = vpop.xlane.xlu1 %2954  ;;  %v10186_v12 = vpop.eup %6483  ;;  %6501 = vpow2.f32 %v3701_v8  ;;  %v3940_v22 = vadd.f32 %v9908_v26, %v9894_v23  ;;  %v10195_v24 = vadd.f32 %v12431_v27, %v1118_v1  ;;  %v3539_v31 = vmul.f32 1.442695, %v3133_v59  ;;  %v12436_v8 = vld [vmem:[#allocation245_spill] sm:$0xff]  ;;  %v12442_v26 = vld [vmem:[#allocation79_spill] sm:$0xff] }
 0x53e   : > { %v3786_v2 = vpop.xlane.xlu0 %3785  ;;  %12427 = vst [vmem:[#allocation62_spill] sm:$0xff] %v10186_v12  ;;  %5769 = vmatprep.subr.bf16.mxu1 %v5768_v15  ;;  %v10200_v14 = vadd.f32 %v12434_v5, %v1119_v21  ;;  %v3215_v30 = vsub.f32 %v12436_v8, %v10110_v0  ;;  %v3943_v1 = vadd.f32 %v9921_v47, %v9914_v53  ;;  %v12441_v8 = vld [vmem:[#allocation88_spill] sm:$0xff] }
 0x53f   : > { %v6486_v49 = vpop.eup %6485  ;;  %12432 = vst [vmem:[#allocation217_spill] sm:$0xff] %v10195_v24  ;;  %6503 = vrcp.f32 %v3786_v2  ;;  %5771 = vmatpush1.bf16.xpose.msra.mxu1 %v5770_v40  ;;  %v3541_v2 = vmul.f32 1.442695, %v3134_v52  ;;  %v12437_v40 = vld [vmem:[#allocation246_spill] sm:$0xff]  ;;  %v3946_v21 = vadd.f32 %v9962_v62, %v9956_v4  ;;  %v1182_v4 = vld [vmem:[#allocation5 + $0x7e0] sm:$0xff]  ;;  %v1183_v62 = vld [vmem:[#allocation5 + $0x7e8] sm:$0xff] }
 0x540   : > { %3938 = vadd.xlane.f32.xlu1 %v3937_v44  ;;  %v10197_v35 = vpop.eup %6487  ;;  %12435 = vst [vmem:[#allocation219_spill] sm:$0xff] %v10200_v14  ;;  %6505 = vpow2.f32 %v3535_v29  ;;  %v3216_v28 = vsub.f32 %v12437_v40, %v10110_v0  ;;  %v12439_v44 = vld [vmem:[#allocation89_spill] sm:$0xff]  ;;  %v4343_v23 = vmul.f32 %v6486_v49, %v12441_v8  ;;  %v1121_v52 = vld [vmem:[#allocation5 + $0x5f8] sm:$0xff]  ;;  %v3703_v47 = vmul.f32 1.442695, %v3215_v30 }
 0x541   : > { %12433 = vst [vmem:[#allocation71_spill] sm:$0xff] %v10197_v35  ;;  %3941 = vadd.xlane.f32.xlu0 %v3940_v22  ;;  %v3879_v58 = vpop.xlane.xlu1 %3878  ;;  %v6490_v59 = vpop.eup %6489  ;;  %6507 = vpow2.f32 %v3537_v41  ;;  %v4344_v27 = vmul.f32 %v6486_v49, %v12439_v44  ;;  %v12440_v22 = vld [vmem:[#allocation80_spill] sm:$0xff]  ;;  %v1120_v41 = vld [vmem:[#allocation5 + $0x5f0] sm:$0xff]  ;;  %v12444_v0 = vld [vmem:[#allocation106_spill] sm:$0xff] }
 0x542   : > { %v10204_v15 = vpop.xlane.xlu0 %2957  ;;  %v10212_v29 = vpop.eup %6491  ;;  %v4346_v5 = vmul.f32 %v6490_v59, %v12440_v22  ;;  %v4345_v18 = vmul.f32 %v6490_v59, %v12442_v26  ;;  %6509 = vpow2.f32 %v3539_v31  ;;  %v3217_v40 = vsub.f32 %v12444_v0, %v10124_v48  ;;  %v12445_v44 = vld [vmem:[#allocation249_spill] sm:$0xff] }
 0x543   : > { %12438 = vst [vmem:[#allocation221_spill] sm:$0xff] %v10212_v29  ;;  %v10218_v53 = vpop.eup %6493  ;;  %v3218_v38 = vsub.f32 %v12445_v44, %v10124_v48  ;;  %v2881_v31 = vmax.f32 %v10195_v24, %v10200_v14  ;;  %v3705_v9 = vmul.f32 1.442695, %v3216_v28  ;;  %6511 = vrcp.f32 %v3879_v58  ;;  %v12453_v14 = vld [vmem:[#allocation250_spill] sm:$0xff]  ;;  %v12454_v24 = vld [vmem:[#allocation107_spill] sm:$0xff] }
 0x544   : > { %12443 = vst [vmem:[#allocation222_spill] sm:$0xff] %v10218_v53  ;;  %3944 = vadd.xlane.f32.xlu1 %v3943_v1  ;;  %v5832_v49 = vpack.c.bf16 %v4346_v5, %v4344_v27  ;;  %v5834_v59 = vpack.c.bf16 %v4345_v18, %v4343_v23  ;;  %v10226_v8 = vpop.eup %6495  ;;  %v12446_v1 = vld [vmem:[#allocation109_spill] sm:$0xff]  ;;  %v10235_v48 = vadd.f32 %v12448_v17, %v1120_v41  ;;  %6513 = vpow2.f32 %v3541_v2  ;;  %v12451_v23 = vld [vmem:[#allocation162_spill] sm:$0xff]  ;;  %v12452_v18 = vld [vmem:[#allocation203_spill] sm:$0xff] }
 0x545   : > { %3947 = vadd.xlane.f32.xlu0 %v3946_v21  ;;  %v10224_v22 = vpop.xlane.xlu1 %2834  ;;  %v3135_v0 = vsub.f32 %v12446_v1, %v10150_v20  ;;  %v10232_v30 = vpop.eup %6497  ;;  %v12449_v21 = vld [vmem:[#allocation174_spill] sm:$0xff]  ;;  %v4060_v27 = vadd.f32 %v12452_v18, %v12451_v23  ;;  %v10243_v28 = vadd.f32 %v12453_v14, %v1182_v4  ;;  %v10246_v1 = vadd.f32 %v12454_v24, %v1183_v62  ;;  %v12456_v2 = vld [vmem:[#allocation27_spill] sm:$0xff]  ;;  %v12463_v18 = vld [vmem:[#allocation228_spill] sm:$0xff] }
 0x546   : > { %v3882_v26 = vpop.xlane.xlu0 %3881  ;;  %12447 = vst [vmem:[#allocation218_spill] sm:$0xff] %v10232_v30  ;;  %v10238_v44 = vadd.f32 %v12449_v21, %v1121_v52  ;;  %5833 = vmatprep.subr.bf16.mxu0 %v5832_v49  ;;  %v6500_v5 = vpop.eup %6499  ;;  %v3707_v58 = vmul.f32 1.442695, %v3217_v40  ;;  %v3709_v41 = vmul.f32 1.442695, %v3218_v38  ;;  %v3136_v52 = vsub.f32 %v12456_v2, %v10150_v20  ;;  %v12457_v4 = vld [vmem:[#allocation46_spill] sm:$0xff] }
 0x547   : > { %6515 = vrcp.f32 %v3882_v26  ;;  %5835 = vmatpush1.bf16.xpose.msra.mxu0 %v5834_v59  ;;  %v10248_v17 = vpop.eup %6501  ;;  %v3949_v14 = vadd.f32 %v12457_v4, %v9968_v55  ;;  %v3543_v24 = vmul.f32 1.442695, %v3135_v0  ;;  %v12458_v40 = vld [vmem:[#allocation33_spill] sm:$0xff]  ;;  %v12460_v59 = vld [vmem:[#allocation92_spill] sm:$0xff]  ;;  %v12462_v2 = vld [vmem:[#allocation91_spill] sm:$0xff] }
 0x548   : > { %12450 = vst [vmem:[#allocation70_spill] sm:$0xff] %v10238_v44  ;;  %2882 = vmax.xlane.f32.xlu1 %v2881_v31  ;;  %12455 = vst [vmem:[#allocation66_spill] sm:$0xff] %v10248_v17  ;;  %6517 = vpow2.f32 %v3703_v47  ;;  %v3137_v26 = vsub.f32 %v12458_v40, %v10168_v43  ;;  %v3952_v47 = vadd.f32 %v10016_v10, %v10010_v7  ;;  %v12461_v31 = vld [vmem:[#allocation83_spill] sm:$0xff]  ;;  %v1184_v40 = vld [vmem:[#allocation5 + $0x7f0] sm:$0xff]  ;;  %v3545_v7 = vmul.f32 1.442695, %v3136_v52 }
 0x549   : > { %4061 = vadd.xlane.f32.xlu0 %v4060_v27  ;;  %v3789_v49 = vpop.xlane.xlu1 %3788  ;;  %v6504_v62 = vpop.eup %6503  ;;  %6519 = vpow2.f32 %v3705_v9  ;;  %v4284_v20 = vmul.f32 %v6500_v5, %v12460_v59  ;;  %v4283_v23 = vmul.f32 %v6500_v5, %v12462_v2  ;;  %v12464_v9 = vld [vmem:[#allocation38_spill] sm:$0xff] }
 0x54a   : > { %v10252_v21 = vpop.xlane.xlu0 %2837  ;;  %v10260_v38 = vpop.eup %6505  ;;  %v4286_v27 = vmul.f32 %v6504_v62, %v12461_v31  ;;  %v4285_v32 = vmul.f32 %v6504_v62, %v12463_v18  ;;  %6521 = vpow2.f32 %v3707_v58  ;;  %v3138_v0 = vsub.f32 %v12464_v9, %v10168_v43  ;;  %v1185_v5 = vld [vmem:[#allocation5 + $0x7f8] sm:$0xff]  ;;  %v12466_v62 = vld [vmem:[#allocation115_spill] sm:$0xff] }
 0x54b   : > { %12459 = vst [vmem:[#allocation69_spill] sm:$0xff] %v10260_v38  ;;  %v10266_v55 = vpop.eup %6507  ;;  %6523 = vpow2.f32 %v3709_v41  ;;  %v2977_v18 = vmax.f32 %v10243_v28, %v10246_v1  ;;  %v3547_v58 = vmul.f32 1.442695, %v3137_v26  ;;  %v3219_v43 = vsub.f32 %v12466_v62, %v10184_v33  ;;  %v12468_v26 = vld [vmem:[#allocation110_spill] sm:$0xff] }
 0x54c   : > { %3950 = vadd.xlane.f32.xlu1 %v3949_v14  ;;  %v5772_v59 = vpack.c.bf16 %v4286_v27, %v4284_v20  ;;  %v5774_v31 = vpack.c.bf16 %v4285_v32, %v4283_v23  ;;  %v10272_v17 = vpop.eup %6509  ;;  %6525 = vrcp.f32 %v3789_v49  ;;  %v2884_v41 = vmax.f32 %v10235_v48, %v10238_v44  ;;  %v12467_v14 = vld [vmem:[#allocation30_spill] sm:$0xff]  ;;  %v12470_v49 = vld [vmem:[#allocation116_spill] sm:$0xff] }
 0x54d   : > { %3953 = vadd.xlane.f32.xlu0 %v3952_v47  ;;  %v10270_v10 = vpop.xlane.xlu1 %2960  ;;  %12465 = vst [vmem:[#allocation78_spill] sm:$0xff] %v10272_v17  ;;  %6527 = vpow2.f32 %v3543_v24  ;;  %v6512_v52 = vpop.eup %6511  ;;  %v10281_v47 = vadd.f32 %v12467_v14, %v1184_v40  ;;  %v3549_v32 = vmul.f32 1.442695, %v3138_v0  ;;  %v10286_v20 = vadd.f32 %v12468_v26, %v1185_v5  ;;  %v12471_v40 = vld [vmem:[#allocation119_spill] sm:$0xff]  ;;  %v12474_v5 = vld [vmem:[#allocation233_spill] sm:$0xff]  ;;  %v12476_v26 = vld [vmem:[#allocation86_spill] sm:$0xff] }
 0x54e   : > { %v3792_v4 = vpop.xlane.xlu0 %3791  ;;  %5773 = vmatprep.subr.bf16.mxu1 %v5772_v59  ;;  %v10283_v23 = vpop.eup %6513  ;;  %v3220_v27 = vsub.f32 %v12470_v49, %v10184_v33  ;;  %v3955_v9 = vadd.f32 %v10064_v6, %v10052_v61  ;;  %v3221_v59 = vsub.f32 %v12471_v40, %v10204_v15 }
 0x54f   : > { %6529 = vrcp.f32 %v3792_v4  ;;  %5775 = vmatpush1.bf16.xpose.msra.mxu1 %v5774_v31  ;;  %12469 = vst [vmem:[#allocation224_spill] sm:$0xff] %v10286_v20  ;;  %v3711_v4 = vmul.f32 1.442695, %v3219_v43  ;;  %v3958_v31 = vadd.f32 %v10078_v13, %v10070_v37  ;;  %v12479_v37 = vld [vmem:[#allocation41_spill] sm:$0xff] }
 0x550   : > { %2978 = vmax.xlane.f32.xlu1 %v2977_v18  ;;  %6531 = vpow2.f32 %v3545_v7  ;;  %v12473_v18 = vld [vmem:[#allocation242_spill] sm:$0xff]  ;;  %v3713_v40 = vmul.f32 1.442695, %v3220_v27  ;;  %v3139_v13 = vsub.f32 %v12479_v37, %v10224_v22  ;;  %v2980_v37 = vmax.f32 %v10281_v47, %v10286_v20 }
 0x551   : > { %2885 = vmax.xlane.f32.xlu0 %v2884_v41  ;;  %v3885_v24 = vpop.xlane.xlu1 %3884  ;;  %v6516_v0 = vpop.eup %6515  ;;  %6533 = vpow2.f32 %v3547_v58  ;;  %v4348_v33 = vmul.f32 %v6512_v52, %v12473_v18  ;;  %v12475_v41 = vld [vmem:[#allocation95_spill] sm:$0xff]  ;;  %v12478_v58 = vld [vmem:[#allocation84_spill] sm:$0xff] }
 0x552   : > { %v10290_v2 = vpop.xlane.xlu0 %2963  ;;  %v10298_v7 = vpop.eup %6517  ;;  %v4350_v62 = vmul.f32 %v6516_v0, %v12474_v5  ;;  %v4347_v14 = vmul.f32 %v6512_v52, %v12475_v41  ;;  %v4349_v49 = vmul.f32 %v6516_v0, %v12476_v26  ;;  %6535 = vpow2.f32 %v3549_v32  ;;  %v12481_v41 = vld [vmem:[#allocation42_spill] sm:$0xff]  ;;  %v12482_v26 = vld [vmem:[#allocation40_spill] sm:$0xff] }
 0x553   : > { %12472 = vst [vmem:[#allocation81_spill] sm:$0xff] %v10298_v7  ;;  %v10304_v61 = vpop.eup %6519  ;;  %v3222_v43 = vsub.f32 %v12478_v58, %v10204_v15  ;;  %v3715_v0 = vmul.f32 1.442695, %v3221_v59  ;;  %v3140_v32 = vsub.f32 %v12481_v41, %v10224_v22  ;;  %6537 = vrcp.f32 %v3885_v24  ;;  %v12483_v15 = vld [vmem:[#allocation209_spill] sm:$0xff] }
 0x554   : > { %12477 = vst [vmem:[#allocation226_spill] sm:$0xff] %v10304_v61  ;;  %3956 = vadd.xlane.f32.xlu1 %v3955_v9  ;;  %v5836_v18 = vpack.c.bf16 %v4350_v62, %v4348_v33  ;;  %v5838_v44 = vpack.c.bf16 %v4349_v49, %v4347_v14  ;;  %v10312_v52 = vpop.eup %6521  ;;  %v4063_v9 = vadd.f32 %v12483_v15, %v12482_v26  ;;  %6539 = vpow2.f32 %v3711_v4  ;;  %v12486_v24 = vld [vmem:[#allocation125_spill] sm:$0xff]  ;;  %v12491_v15 = vld [vmem:[#allocation236_spill] sm:$0xff] }
 0x555   : > { %3959 = vadd.xlane.f32.xlu0 %v3958_v31  ;;  %v10310_v6 = vpop.xlane.xlu1 %2840  ;;  %12480 = vst [vmem:[#allocation229_spill] sm:$0xff] %v10312_v52  ;;  %v10318_v27 = vpop.eup %6523  ;;  %v3717_v33 = vmul.f32 1.442695, %v3222_v43  ;;  %v3551_v22 = vmul.f32 1.442695, %v3139_v13  ;;  %v3141_v62 = vsub.f32 %v12486_v24, %v10252_v21  ;;  %v3961_v4 = vadd.f32 %v10120_v45, %v10112_v34  ;;  %v12490_v24 = vld [vmem:[#allocation243_spill] sm:$0xff] }
 0x556   : > { %v3888_v5 = vpop.xlane.xlu0 %3887  ;;  %12484 = vst [vmem:[#allocation74_spill] sm:$0xff] %v10318_v27  ;;  %5837 = vmatprep.subr.bf16.mxu0 %v5836_v18  ;;  %v6526_v31 = vpop.eup %6525  ;;  %v3553_v43 = vmul.f32 1.442695, %v3140_v32 }
 0x557   : > { %6541 = vrcp.f32 %v3888_v5  ;;  %5839 = vmatpush1.bf16.xpose.msra.mxu0 %v5838_v44  ;;  %v10322_v59 = vpop.eup %6527  ;;  %v12487_v44 = vld [vmem:[#allocation126_spill] sm:$0xff]  ;;  %v12488_v5 = vld [vmem:[#allocation244_spill] sm:$0xff]  ;;  %v4287_v26 = vmul.f32 %v6526_v31, %v12490_v24  ;;  %v12497_v24 = vld [vmem:[#allocation47_spill] sm:$0xff] }
 0x558   : > { %4064 = vadd.xlane.f32.xlu1 %v4063_v9  ;;  %12485 = vst [vmem:[#allocation225_spill] sm:$0xff] %v10322_v59  ;;  %6543 = vpow2.f32 %v3713_v40  ;;  %v3142_v18 = vsub.f32 %v12487_v44, %v10252_v21  ;;  %v3964_v40 = vadd.f32 %v10138_v42, %v10132_v50  ;;  %v4288_v41 = vmul.f32 %v6526_v31, %v12488_v5  ;;  %v12489_v9 = vld [vmem:[#allocation237_spill] sm:$0xff] }
 0x559   : > { %2981 = vmax.xlane.f32.xlu0 %v2980_v37  ;;  %v3795_v14 = vpop.xlane.xlu1 %3794  ;;  %v6530_v58 = vpop.eup %6529  ;;  %6545 = vpow2.f32 %v3715_v0  ;;  %v12493_v0 = vld [vmem:[#allocation128_spill] sm:$0xff]  ;;  %v3555_v21 = vmul.f32 1.442695, %v3141_v62 }
 0x55a   : > { %v10326_v49 = vpop.xlane.xlu0 %2843  ;;  %v10334_v13 = vpop.eup %6531  ;;  %v4290_v37 = vmul.f32 %v6530_v58, %v12489_v9  ;;  %v4289_v20 = vmul.f32 %v6530_v58, %v12491_v15  ;;  %6547 = vpow2.f32 %v3717_v33  ;;  %v3223_v32 = vsub.f32 %v12493_v0, %v10270_v10  ;;  %v12495_v15 = vld [vmem:[#allocation129_spill] sm:$0xff]  ;;  %v12496_v33 = vld [vmem:[#allocation207_spill] sm:$0xff]  ;;  %v12499_v62 = vld [vmem:[#allocation48_spill] sm:$0xff] }
 0x55b   : > { %v10340_v34 = vpop.eup %6533  ;;  %6549 = vpow2.f32 %v3551_v22  ;;  %v3557_v31 = vmul.f32 1.442695, %v3142_v18  ;;  %v3224_v58 = vsub.f32 %v12495_v15, %v10270_v10  ;;  %v4069_v45 = vadd.f32 %v12497_v24, %v12496_v33  ;;  %v12498_v22 = vld [vmem:[#allocation39_spill] sm:$0xff]  ;;  %v12504_v15 = vld [vmem:[#allocation94_spill] sm:$0xff]  ;;  %v12506_v24 = vld [vmem:[#allocation241_spill] sm:$0xff] }
 0x55c   : > { %12492 = vst [vmem:[#allocation73_spill] sm:$0xff] %v10340_v34  ;;  %3962 = vadd.xlane.f32.xlu1 %v3961_v4  ;;  %v5776_v50 = vpack.c.bf16 %v4290_v37, %v4288_v41  ;;  %v5778_v42 = vpack.c.bf16 %v4289_v20, %v4287_v26  ;;  %v10346_v9 = vpop.eup %6535  ;;  %6551 = vrcp.f32 %v3795_v14  ;;  %v4066_v4 = vadd.f32 %v12499_v62, %v12498_v22  ;;  %v12501_v26 = vld [vmem:[#allocation259_spill] sm:$0xff]  ;;  %v12502_v37 = vld [vmem:[#allocation90_spill] sm:$0xff] }
 0x55d   : > { %3965 = vadd.xlane.f32.xlu0 %v3964_v40  ;;  %v10344_v44 = vpop.xlane.xlu1 %2966  ;;  %12494 = vst [vmem:[#allocation77_spill] sm:$0xff] %v10346_v9  ;;  %6553 = vpow2.f32 %v3553_v43  ;;  %v6538_v40 = vpop.eup %6537  ;;  %v3719_v0 = vmul.f32 1.442695, %v3223_v32  ;;  %v3225_v10 = vsub.f32 %v12501_v26, %v10290_v2  ;;  %v3721_v41 = vmul.f32 1.442695, %v3224_v58  ;;  %v12505_v26 = vld [vmem:[#allocation248_spill] sm:$0xff] }
 0x55e   : > { %v3798_v5 = vpop.xlane.xlu0 %3797  ;;  %5777 = vmatprep.subr.bf16.mxu1 %v5776_v50  ;;  %v10354_v20 = vpop.eup %6539  ;;  %v3967_v50 = vadd.f32 %v10186_v12, %v10180_v39  ;;  %v4351_v33 = vmul.f32 %v6538_v40, %v12505_v26 }
 0x55f   : > { %6555 = vrcp.f32 %v3798_v5  ;;  %5779 = vmatpush1.bf16.xpose.msra.mxu1 %v5778_v42  ;;  %12500 = vst [vmem:[#allocation230_spill] sm:$0xff] %v10354_v20  ;;  %v3226_v42 = vsub.f32 %v12502_v37, %v10290_v2  ;;  %v3723_v2 = vmul.f32 1.442695, %v3225_v10  ;;  %v12509_v37 = vld [vmem:[#allocation138_spill] sm:$0xff] }
 0x560   : > { %4070 = vadd.xlane.f32.xlu1 %v4069_v45  ;;  %6557 = vpow2.f32 %v3555_v21  ;;  %v3970_v45 = vadd.f32 %v10212_v29, %v10197_v35  ;;  %v12503_v21 = vld [vmem:[#allocation104_spill] sm:$0xff]  ;;  %v3144_v35 = vsub.f32 %v12509_v37, %v10310_v6 }
 0x561   : > { %4067 = vadd.xlane.f32.xlu0 %v4066_v4  ;;  %v3891_v14 = vpop.xlane.xlu1 %3890  ;;  %v6542_v43 = vpop.eup %6541  ;;  %6559 = vpow2.f32 %v3557_v31  ;;  %v4352_v5 = vmul.f32 %v6538_v40, %v12503_v21  ;;  %v12508_v31 = vld [vmem:[#allocation137_spill] sm:$0xff] }
 0x562   : > { %v10358_v18 = vpop.xlane.xlu0 %2969  ;;  %v10366_v32 = vpop.eup %6543  ;;  %v4354_v4 = vmul.f32 %v6542_v43, %v12504_v15  ;;  %v4353_v22 = vmul.f32 %v6542_v43, %v12506_v24  ;;  %6561 = vpow2.f32 %v3719_v0  ;;  %v3143_v58 = vsub.f32 %v12508_v31, %v10310_v6  ;;  %v12510_v43 = vld [vmem:[#allocation136_spill] sm:$0xff] }
 0x563   : > { %v10372_v39 = vpop.eup %6545  ;;  %v3725_v24 = vmul.f32 1.442695, %v3226_v42  ;;  %v3145_v0 = vsub.f32 %v12510_v43, %v10326_v49  ;;  %6563 = vrcp.f32 %v3891_v14  ;;  %v12512_v6 = vld [vmem:[#allocation212_spill] sm:$0xff]  ;;  %v12517_v43 = vld [vmem:[#allocation99_spill] sm:$0xff] }
 0x564   : > { %12507 = vst [vmem:[#allocation87_spill] sm:$0xff] %v10372_v39  ;;  %3968 = vadd.xlane.f32.xlu1 %v3967_v50  ;;  %v5840_v21 = vpack.c.bf16 %v4354_v4, %v4352_v5  ;;  %v5842_v12 = vpack.c.bf16 %v4353_v22, %v4351_v33  ;;  %v10380_v40 = vpop.eup %6547  ;;  %v4075_v50 = vadd.f32 %v10032_v19, %v10020_v36  ;;  %6565 = vpow2.f32 %v3721_v41  ;;  %v12513_v14 = vld [vmem:[#allocation140_spill] sm:$0xff]  ;;  %v12519_v36 = vld [vmem:[#allocation98_spill] sm:$0xff] }
 0x565   : > { %3971 = vadd.xlane.f32.xlu0 %v3970_v45  ;;  %v10378_v29 = vpop.xlane.xlu1 %2846  ;;  %v10386_v10 = vpop.eup %6549  ;;  %v4072_v45 = vadd.f32 %v10002_v57, %v12512_v6  ;;  %v3559_v4 = vmul.f32 1.442695, %v3143_v58  ;;  %v3561_v22 = vmul.f32 1.442695, %v3144_v35  ;;  %v3146_v42 = vsub.f32 %v12513_v14, %v10326_v49 }
 0x566   : > { %v3894_v15 = vpop.xlane.xlu0 %3893  ;;  %12511 = vst [vmem:[#allocation232_spill] sm:$0xff] %v10386_v10  ;;  %5841 = vmatprep.subr.bf16.mxu0 %v5840_v21  ;;  %v6552_v5 = vpop.eup %6551  ;;  %v3973_v41 = vadd.f32 %v10266_v55, %v10260_v38  ;;  %v3563_v58 = vmul.f32 1.442695, %v3145_v0 }
 0x567   : > { %6567 = vrcp.f32 %v3894_v15  ;;  %5843 = vmatpush1.bf16.xpose.msra.mxu0 %v5842_v12  ;;  %v10390_v33 = vpop.eup %6553  ;;  %v12514_v12 = vld [vmem:[#allocation143_spill] sm:$0xff]  ;;  %v12516_v15 = vld [vmem:[#allocation76_spill] sm:$0xff]  ;;  %v3565_v0 = vmul.f32 1.442695, %v3146_v42 }
 0x568   : > { %4076 = vadd.xlane.f32.xlu1 %v4075_v50  ;;  %6569 = vpow2.f32 %v3723_v2  ;;  %v3227_v21 = vsub.f32 %v12514_v12, %v10344_v44  ;;  %v3976_v2 = vadd.f32 %v10283_v23, %v10272_v17  ;;  %v4292_v49 = vmul.f32 %v6552_v5, %v12516_v15 }
 0x569   : > { %4073 = vadd.xlane.f32.xlu0 %v4072_v45  ;;  %v3801_v26 = vpop.xlane.xlu1 %3800  ;;  %v6556_v37 = vpop.eup %6555  ;;  %6571 = vpow2.f32 %v3725_v24  ;;  %v12518_v45 = vld [vmem:[#allocation108_spill] sm:$0xff]  ;;  %v4081_v24 = vadd.f32 %v10088_v46, %v10084_v25  ;;  %v12531_v25 = vld [vmem:[#allocation101_spill] sm:$0xff] }
 0x56a   : > { %v10394_v31 = vpop.xlane.xlu0 %2849  ;;  %v10402_v35 = vpop.eup %6557  ;;  %v4294_v50 = vmul.f32 %v6556_v37, %v12517_v43  ;;  %v4291_v14 = vmul.f32 %v6552_v5, %v12518_v45  ;;  %v4293_v19 = vmul.f32 %v6556_v37, %v12519_v36  ;;  %6573 = vpow2.f32 %v3559_v4  ;;  %v12521_v5 = vld [vmem:[#allocation240_spill] sm:$0xff]  ;;  %v12522_v4 = vld [vmem:[#allocation19_spill] sm:$0xff] }
 0x56b   : > { %12515 = vst [vmem:[#allocation234_spill] sm:$0xff] %v10402_v35  ;;  %v10408_v6 = vpop.eup %6559  ;;  %6575 = vpow2.f32 %v3561_v22  ;;  %v3228_v36 = vsub.f32 %v12521_v5, %v10344_v44  ;;  %v3727_v37 = vmul.f32 1.442695, %v3227_v21  ;;  %v4078_v22 = vadd.f32 %v10044_v60, %v10038_v3  ;;  %v12525_v44 = vld [vmem:[#allocation178_spill] sm:$0xff]  ;;  %v12528_v5 = vld [vmem:[#allocation112_spill] sm:$0xff] }
 0x56c   : > { %3974 = vadd.xlane.f32.xlu1 %v3973_v41  ;;  %v5780_v17 = vpack.c.bf16 %v4294_v50, %v4292_v49  ;;  %v5782_v38 = vpack.c.bf16 %v4293_v19, %v4291_v14  ;;  %v10414_v43 = vpop.eup %6561  ;;  %v3229_v41 = vsub.f32 %v12522_v4, %v10358_v18  ;;  %6577 = vrcp.f32 %v3801_v26  ;;  %v12529_v4 = vld [vmem:[#allocation102_spill] sm:$0xff] }
 0x56d   : > { %3977 = vadd.xlane.f32.xlu0 %v3976_v2  ;;  %v10412_v12 = vpop.xlane.xlu1 %2972  ;;  %12520 = vst [vmem:[#allocation82_spill] sm:$0xff] %v10414_v43  ;;  %6579 = vpow2.f32 %v3563_v58  ;;  %v6564_v42 = vpop.eup %6563  ;;  %v12523_v2 = vld [vmem:[#allocation177_spill] sm:$0xff]  ;;  %v3148_v21 = vsub.f32 %v12525_v44, %v10378_v29  ;;  %v3982_v50 = vadd.f32 %v10346_v9, %v10340_v34  ;;  %v3729_v14 = vmul.f32 1.442695, %v3228_v36 }
 0x56e   : > { %v3804_v15 = vpop.xlane.xlu0 %3803  ;;  %5781 = vmatprep.subr.bf16.mxu1 %v5780_v17  ;;  %v3147_v49 = vsub.f32 %v12523_v2, %v10378_v29  ;;  %v10424_v19 = vpop.eup %6565  ;;  %v3979_v17 = vadd.f32 %v10334_v13, %v10322_v59  ;;  %v4356_v29 = vmul.f32 %v6564_v42, %v12528_v5  ;;  %v12530_v2 = vld [vmem:[#allocation111_spill] sm:$0xff] }
 0x56f   : > { %6581 = vrcp.f32 %v3804_v15  ;;  %5783 = vmatpush1.bf16.xpose.msra.mxu1 %v5782_v38  ;;  %12524 = vst [vmem:[#allocation72_spill] sm:$0xff] %v10424_v19  ;;  %v3731_v38 = vmul.f32 1.442695, %v3229_v41  ;;  %v4355_v44 = vmul.f32 %v6564_v42, %v12530_v2  ;;  %v3569_v41 = vmul.f32 1.442695, %v3148_v21  ;;  %v12537_v2 = vld [vmem:[#allocation114_spill] sm:$0xff] }
 0x570   : > { %4082 = vadd.xlane.f32.xlu1 %v4081_v24  ;;  %6583 = vpow2.f32 %v3565_v0  ;;  %v12526_v24 = vld [vmem:[#allocation180_spill] sm:$0xff]  ;;  %v3567_v34 = vmul.f32 1.442695, %v3147_v49 }
 0x571   : > { %4079 = vadd.xlane.f32.xlu0 %v4078_v22  ;;  %v3897_v26 = vpop.xlane.xlu1 %3896  ;;  %v6568_v45 = vpop.eup %6567  ;;  %6585 = vpow2.f32 %v3727_v37  ;;  %v3149_v15 = vsub.f32 %v12526_v24, %v10394_v31  ;;  %v12533_v37 = vld [vmem:[#allocation149_spill] sm:$0xff] }
 0x572   : > { %v3900_v58 = vpop.xlane.xlu0 %3899  ;;  %v10434_v0 = vpop.eup %6569  ;;  %v4358_v22 = vmul.f32 %v6568_v45, %v12529_v4  ;;  %v4357_v46 = vmul.f32 %v6568_v45, %v12531_v25  ;;  %v3150_v36 = vsub.f32 %v12533_v37, %v10394_v31  ;;  %6587 = vrcp.f32 %v3897_v26  ;;  %v12534_v45 = vld [vmem:[#allocation187_spill] sm:$0xff]  ;;  %v12538_v37 = vld [vmem:[#allocation105_spill] sm:$0xff] }
 0x573   : > { %12527 = vst [vmem:[#allocation227_spill] sm:$0xff] %v10434_v0  ;;  %v10440_v3 = vpop.eup %6571  ;;  %6589 = vrcp.f32 %v3900_v58  ;;  %v3571_v42 = vmul.f32 1.442695, %v3149_v15  ;;  %v4087_v25 = vadd.f32 %v10158_v54, %v10152_v63  ;;  %v4084_v31 = vadd.f32 %v10106_v56, %v10100_v51  ;;  %v12542_v63 = vld [vmem:[#allocation193_spill] sm:$0xff] }
 0x574   : > { %12532 = vst [vmem:[#allocation220_spill] sm:$0xff] %v10440_v3  ;;  %3980 = vadd.xlane.f32.xlu1 %v3979_v17  ;;  %v5844_v59 = vpack.c.bf16 %v4358_v22, %v4356_v29  ;;  %v5846_v9 = vpack.c.bf16 %v4357_v46, %v4355_v44  ;;  %v10444_v4 = vpop.eup %6573  ;;  %6591 = vpow2.f32 %v3729_v14  ;;  %v3573_v26 = vmul.f32 1.442695, %v3150_v36  ;;  %v12536_v29 = vld [vmem:[#allocation251_spill] sm:$0xff] }
 0x575   : > { %3983 = vadd.xlane.f32.xlu0 %v3982_v50  ;;  %v2853_v24 = vpop.xlane.xlu1 %2852  ;;  %v10448_v49 = vpop.eup %6575  ;;  %6593 = vpow2.f32 %v3731_v38  ;;  %v3988_v38 = vadd.f32 %v10408_v6, %v10402_v35 }
 0x576   : > { %v2856_v5 = vpop.xlane.xlu0 %2855  ;;  %5845 = vmatprep.subr.bf16.mxu0 %v5844_v59  ;;  %v6578_v21 = vpop.eup %6577  ;;  %6595 = vpow2.f32 %v3567_v34  ;;  %v3151_v14 = vsub.f32 %v12534_v45, %v2853_v24  ;;  %v3985_v59 = vadd.f32 %v10390_v33, %v10386_v10 }
 0x577   : > { %5847 = vmatpush1.bf16.xpose.msra.mxu0 %v5846_v9  ;;  %v10452_v46 = vpop.eup %6579  ;;  %6597 = vpow2.f32 %v3569_v41  ;;  %v12535_v9 = vld [vmem:[#allocation255_spill] sm:$0xff]  ;;  %v4295_v44 = vmul.f32 %v6578_v21, %v12537_v2  ;;  %v3154_v54 = vsub.f32 %v12542_v63, %v2856_v5  ;;  %v12544_v63 = vld [vmem:[#allocation256_spill] sm:$0xff] }
 0x578   : > { %4088 = vadd.xlane.f32.xlu1 %v4087_v25  ;;  %6599 = vpow2.f32 %v3571_v42  ;;  %v4296_v15 = vmul.f32 %v6578_v21, %v12535_v9  ;;  %v12540_v42 = vld [vmem:[#allocation191_spill] sm:$0xff]  ;;  %v4093_v21 = vadd.f32 %v10226_v8, %v10218_v53  ;;  %v12554_v53 = vld [vmem:[#allocation182_spill] sm:$0xff] }
 0x579   : > { %4085 = vadd.xlane.f32.xlu0 %v4084_v31  ;;  %v3807_v58 = vpop.xlane.xlu1 %3806  ;;  %v6582_v50 = vpop.eup %6581  ;;  %6601 = vpow2.f32 %v3573_v26  ;;  %v3152_v25 = vsub.f32 %v12540_v42, %v2853_v24  ;;  %v12541_v31 = vld [vmem:[#allocation192_spill] sm:$0xff]  ;;  %v4090_v26 = vadd.f32 %v10174_v16, %v10162_v11  ;;  %v3575_v24 = vmul.f32 1.442695, %v3151_v14 }
 0x57a   : > { %v3810_v17 = vpop.xlane.xlu0 %3809  ;;  %v10459_v34 = vpop.eup %6583  ;;  %v4298_v22 = vmul.f32 %v6582_v50, %v12536_v29  ;;  %v4297_v36 = vmul.f32 %v6582_v50, %v12538_v37  ;;  %v3153_v45 = vsub.f32 %v12541_v31, %v2856_v5  ;;  %6603 = vrcp.f32 %v3807_v58  ;;  %v12546_v58 = vld [vmem:[#allocation253_spill] sm:$0xff] }
 0x57b   : > { %v10465_v41 = vpop.eup %6585  ;;  %6605 = vrcp.f32 %v3810_v17  ;;  %v3581_v14 = vmul.f32 1.442695, %v3154_v54  ;;  %v3991_v31 = vadd.f32 %v10448_v49, %v10444_v4  ;;  %v12552_v54 = vld [vmem:[#allocation97_spill] sm:$0xff] }
 0x57c   : > { %12539 = vst [vmem:[#allocation247_spill] sm:$0xff] %v10465_v41  ;;  %3986 = vadd.xlane.f32.xlu1 %v3985_v59  ;;  %v5784_v35 = vpack.c.bf16 %v4298_v22, %v4296_v15  ;;  %v5786_v10 = vpack.c.bf16 %v4297_v36, %v4295_v44  ;;  %v6588_v29 = vpop.eup %6587  ;;  %v12543_v59 = vld [vmem:[#allocation120_spill] sm:$0xff]  ;;  %v3577_v15 = vmul.f32 1.442695, %v3152_v25  ;;  %v3579_v42 = vmul.f32 1.442695, %v3153_v45 }
 0x57d   : > { %3989 = vadd.xlane.f32.xlu0 %v3988_v38  ;;  %v3903_v51 = vpop.xlane.xlu1 %3902  ;;  %v6590_v50 = vpop.eup %6589  ;;  %v4360_v2 = vmul.f32 %v6588_v29, %v12543_v59  ;;  %v4359_v5 = vmul.f32 %v6588_v29, %v12544_v63  ;;  %v12547_v44 = vld [vmem:[#allocation252_spill] sm:$0xff]  ;;  %v12550_v25 = vld [vmem:[#allocation155_spill] sm:$0xff]  ;;  %v3230_v45 = vsub.f32 %v12552_v54, %v10358_v18 }
 0x57e   : > { %v3906_v9 = vpop.xlane.xlu0 %3905  ;;  %5785 = vmatprep.subr.bf16.mxu1 %v5784_v35  ;;  %v10476_v38 = vpop.eup %6591  ;;  %6607 = vrcp.f32 %v3903_v51  ;;  %v4362_v22 = vmul.f32 %v6590_v50, %v12546_v58  ;;  %v4361_v37 = vmul.f32 %v6590_v50, %v12547_v44  ;;  %v12549_v51 = vld [vmem:[#allocation26_spill] sm:$0xff]  ;;  %v12551_v63 = vld [vmem:[#allocation51_spill] sm:$0xff] }
 0x57f   : > { %12545 = vst [vmem:[#allocation103_spill] sm:$0xff] %v10476_v38  ;;  %5787 = vmatpush1.bf16.xpose.msra.mxu1 %v5786_v10  ;;  %v10480_v36 = vpop.eup %6593  ;;  %6609 = vrcp.f32 %v3906_v9  ;;  %v12558_v54 = vld [vmem:[#allocation123_spill] sm:$0xff] }
 0x580   : > { %4094 = vadd.xlane.f32.xlu1 %v4093_v21  ;;  %12548 = vst [vmem:[#allocation235_spill] sm:$0xff] %v10480_v36  ;;  %v10484_v29 = vpop.eup %6595  ;;  %v5848_v59 = vpack.c.bf16 %v4362_v22, %v4360_v2  ;;  %6611 = vpow2.f32 %v3575_v24  ;;  %v5850_v9 = vpack.c.bf16 %v4361_v37, %v4359_v5  ;;  %v12555_v37 = vld [vmem:[#allocation157_spill] sm:$0xff] }
 0x581   : > { %4091 = vadd.xlane.f32.xlu0 %v4090_v26  ;;  %v2859_v35 = vpop.xlane.xlu1 %2858  ;;  %v10489_v58 = vpop.eup %6597  ;;  %v3994_v26 = vadd.f32 %v10459_v34, %v10452_v46  ;;  %6613 = vpow2.f32 %v3577_v15 }
 0x582   : > { %v2862_v17 = vpop.xlane.xlu0 %2861  ;;  %v3155_v10 = vsub.f32 %v12549_v51, %v2859_v35  ;;  %v3156_v21 = vsub.f32 %v12550_v25, %v2859_v35  ;;  %v10495_v44 = vpop.eup %6599  ;;  %v3231_v51 = vsub.f32 %v12554_v53, %v10412_v12  ;;  %5849 = vmatprep.subr.bf16.mxu0 %v5848_v59  ;;  %6615 = vpow2.f32 %v3579_v42  ;;  %v12556_v53 = vld [vmem:[#allocation66_spill] sm:$0xff] }
 0x583   : > { %v3157_v50 = vsub.f32 %v12551_v63, %v2862_v17  ;;  %12553 = vst [vmem:[#allocation238_spill] sm:$0xff] %v10495_v44  ;;  %5851 = vmatpush1.bf16.xpose.msra.mxu0 %v5850_v9  ;;  %v10499_v5 = vpop.eup %6601  ;;  %6617 = vpow2.f32 %v3581_v14  ;;  %v3158_v25 = vsub.f32 %v12555_v37, %v2862_v17  ;;  %v4099_v63 = vadd.f32 %v10304_v61, %v10298_v7  ;;  %v12560_v61 = vld [vmem:[#allocation113_spill] sm:$0xff] }
 0x584   : > { %v3583_v35 = vmul.f32 1.442695, %v3155_v10  ;;  %v3585_v2 = vmul.f32 1.442695, %v3156_v21  ;;  %3992 = vadd.xlane.f32.xlu1 %v3991_v31  ;;  %v4096_v15 = vadd.f32 %v12556_v53, %v10232_v30  ;;  %v4102_v42 = vadd.f32 %v10318_v27, %v10312_v52  ;;  %v6604_v31 = vpop.eup %6603  ;;  %v12557_v21 = vld [vmem:[#allocation186_spill] sm:$0xff] }
 0x585   : > { %v3587_v22 = vmul.f32 1.442695, %v3157_v50  ;;  %3995 = vadd.xlane.f32.xlu0 %v3994_v26  ;;  %v3813_v18 = vpop.xlane.xlu1 %3812  ;;  %v3733_v10 = vmul.f32 1.442695, %v3230_v45  ;;  %v3232_v59 = vsub.f32 %v12557_v21, %v10412_v12  ;;  %v3735_v50 = vmul.f32 1.442695, %v3231_v51  ;;  %v6606_v14 = vpop.eup %6605 }
 0x586   : > { %v3816_v24 = vpop.xlane.xlu0 %3815  ;;  %6619 = vpow2.f32 %v3583_v35  ;;  %v4300_v9 = vmul.f32 %v6604_v31, %v12558_v54  ;;  %v12559_v35 = vld [vmem:[#allocation257_spill] sm:$0xff]  ;;  %v3997_v7 = vadd.f32 %v10489_v58, %v10484_v29  ;;  %v3589_v45 = vmul.f32 1.442695, %v3158_v25  ;;  %v12561_v51 = vld [vmem:[#allocation254_spill] sm:$0xff] }
 0x587   : > { %6621 = vpow2.f32 %v3585_v2  ;;  %v4299_v37 = vmul.f32 %v6604_v31, %v12559_v35  ;;  %v4302_v12 = vmul.f32 %v6606_v14, %v12560_v61  ;;  %v4301_v2 = vmul.f32 %v6606_v14, %v12561_v51  ;;  %v12563_v54 = vld [vmem:[#allocation50_spill] sm:$0xff] }
 0x588   : > { %4100 = vadd.xlane.f32.xlu1 %v4099_v63  ;;  %6623 = vpow2.f32 %v3587_v22  ;;  %v6608_v52 = vpop.eup %6607  ;;  %v4000_v22 = vadd.f32 %v10499_v5, %v10495_v44  ;;  %v12564_v30 = vld [vmem:[#allocation118_spill] sm:$0xff]  ;;  %v3737_v61 = vmul.f32 1.442695, %v3232_v59  ;;  %v4105_v44 = vadd.f32 %v10366_v32, %v10354_v20  ;;  %v12568_v59 = vld [vmem:[#allocation161_spill] sm:$0xff] }
 0x589   : > { %4097 = vadd.xlane.f32.xlu0 %v4096_v15  ;;  %v3909_v17 = vpop.xlane.xlu1 %3908  ;;  %6625 = vrcp.f32 %v3813_v18  ;;  %v6610_v63 = vpop.eup %6609  ;;  %v12562_v15 = vld [vmem:[#allocation127_spill] sm:$0xff]  ;;  %v4363_v27 = vmul.f32 %v6608_v52, %v12563_v54  ;;  %v5788_v31 = vpack.c.bf16 %v4302_v12, %v4300_v9  ;;  %v5790_v35 = vpack.c.bf16 %v4301_v2, %v4299_v37 }
 0x58a   : > { %v3912_v26 = vpop.xlane.xlu0 %3911  ;;  %6627 = vrcp.f32 %v3816_v24  ;;  %v4364_v21 = vmul.f32 %v6608_v52, %v12562_v15  ;;  %v4366_v25 = vmul.f32 %v6610_v63, %v12564_v30  ;;  %v10521_v18 = vpop.eup %6611  ;;  %v12565_v24 = vld [vmem:[#allocation117_spill] sm:$0xff]  ;;  %v12566_v52 = vld [vmem:[#allocation159_spill] sm:$0xff] }
 0x58b   : > { %6629 = vrcp.f32 %v3909_v17  ;;  %v4365_v51 = vmul.f32 %v6610_v63, %v12565_v24  ;;  %v10526_v15 = vpop.eup %6613  ;;  %5789 = vmatprep.subr.bf16.mxu1 %v5788_v31  ;;  %v12569_v2 = vld [vmem:[#allocation31_spill] sm:$0xff] }
 0x58c   : > { %3998 = vadd.xlane.f32.xlu1 %v3997_v7  ;;  %6631 = vrcp.f32 %v3912_v26  ;;  %v12567_v7 = vld [vmem:[#allocation160_spill] sm:$0xff]  ;;  %v5852_v30 = vpack.c.bf16 %v4366_v25, %v4364_v21  ;;  %v10530_v12 = vpop.eup %6615  ;;  %5791 = vmatpush1.bf16.xpose.msra.mxu1 %v5790_v35 }
 0x58d   : > { %4001 = vadd.xlane.f32.xlu0 %v4000_v22  ;;  %v2865_v14 = vpop.xlane.xlu1 %2864  ;;  %6633 = vpow2.f32 %v3589_v45  ;;  %v5854_v22 = vpack.c.bf16 %v4365_v51, %v4363_v27  ;;  %v10534_v54 = vpop.eup %6617  ;;  %v4003_v27 = vadd.f32 %v10526_v15, %v10521_v18 }
 0x58e   : > { %v3159_v17 = vsub.f32 %v12566_v52, %v2865_v14  ;;  %v3160_v9 = vsub.f32 %v12567_v7, %v2865_v14  ;;  %v2868_v37 = vpop.xlane.xlu0 %2867  ;;  %6635 = vpow2.f32 %v3733_v10  ;;  %5853 = vmatprep.subr.bf16.mxu0 %v5852_v30  ;;  %v12572_v52 = vld [vmem:[#allocation132_spill] sm:$0xff]  ;;  %v12573_v7 = vld [vmem:[#allocation131_spill] sm:$0xff] }
 0x58f   : > { %v3161_v26 = vsub.f32 %v12568_v59, %v2868_v37  ;;  %v3162_v63 = vsub.f32 %v12569_v2, %v2868_v37  ;;  %6637 = vpow2.f32 %v3735_v50  ;;  %5855 = vmatpush1.bf16.xpose.msra.mxu0 %v5854_v22  ;;  %v12574_v37 = vld [vmem:[#allocation122_spill] sm:$0xff]  ;;  %v12575_v2 = vld [vmem:[#allocation121_spill] sm:$0xff]  ;;  %v4111_v22 = vadd.f32 %v10424_v19, %v10414_v43 }
 0x590   : > { %v3591_v45 = vmul.f32 1.442695, %v3159_v17  ;;  %v3593_v31 = vmul.f32 1.442695, %v3160_v9  ;;  %4106 = vadd.xlane.f32.xlu1 %v4105_v44  ;;  %v10536_v24 = vpop.eup %6619  ;;  %6639 = vpow2.f32 %v3737_v61  ;;  %v4006_v44 = vadd.f32 %v10534_v54, %v10530_v12 }
 0x591   : > { %12570 = vst [vmem:[#allocation239_spill] sm:$0xff] %v10536_v24  ;;  %v3595_v21 = vmul.f32 1.442695, %v3161_v26  ;;  %v3597_v25 = vmul.f32 1.442695, %v3162_v63  ;;  %4103 = vadd.xlane.f32.xlu0 %v4102_v42  ;;  %v3819_v10 = vpop.xlane.xlu1 %3818  ;;  %v10538_v35 = vpop.eup %6621 }
 0x592   : > { %6641 = vpow2.f32 %v3591_v45  ;;  %v3822_v14 = vpop.xlane.xlu0 %3821  ;;  %v10542_v50 = vpop.eup %6623 }
 0x593   : > { %12571 = vst [vmem:[#allocation96_spill] sm:$0xff] %v10542_v50  ;;  %6643 = vpow2.f32 %v3593_v31  ;;  %v6626_v51 = vpop.eup %6625  ;;  %v4108_v31 = vadd.f32 %v10380_v40, %v10372_v39  ;;  %v12627_v39 = vld [vmem:[#allocation185_spill] sm:$0xff] }
 0x594   : > { %6645 = vpow2.f32 %v3595_v21  ;;  %4004 = vadd.xlane.f32.xlu1 %v4003_v27  ;;  %v6628_v61 = vpop.eup %6627  ;;  %v4304_v17 = vmul.f32 %v6626_v51, %v12572_v52  ;;  %v4303_v9 = vmul.f32 %v6626_v51, %v12573_v7  ;;  %v12576_v21 = vld [vmem:[#allocation55_spill] sm:$0xff]  ;;  %v12577_v27 = vld [vmem:[#allocation134_spill] sm:$0xff]  ;;  %v12578_v7 = vld [vmem:[#allocation45_spill] sm:$0xff] }
 0x595   : > { %6647 = vpow2.f32 %v3597_v25  ;;  %4007 = vadd.xlane.f32.xlu0 %v4006_v44  ;;  %v3915_v42 = vpop.xlane.xlu1 %3914  ;;  %v6630_v30 = vpop.eup %6629  ;;  %v4306_v59 = vmul.f32 %v6628_v61, %v12574_v37  ;;  %v4305_v63 = vmul.f32 %v6628_v61, %v12575_v2  ;;  %v12580_v2 = vld [vmem:[#allocation124_spill] sm:$0xff] }
 0x596   : > { %6649 = vrcp.f32 %v3819_v10  ;;  %v3918_v26 = vpop.xlane.xlu0 %3917  ;;  %v6632_v45 = vpop.eup %6631  ;;  %v4368_v25 = vmul.f32 %v6630_v30, %v12576_v21  ;;  %v4367_v44 = vmul.f32 %v6630_v30, %v12577_v27  ;;  %v12582_v21 = vld [vmem:[#allocation204_spill] sm:$0xff] }
 0x597   : > { %6651 = vrcp.f32 %v3822_v14  ;;  %v10556_v51 = vpop.eup %6633  ;;  %v5792_v10 = vpack.c.bf16 %v4306_v59, %v4304_v17  ;;  %v5794_v52 = vpack.c.bf16 %v4305_v63, %v4303_v9  ;;  %v4370_v61 = vmul.f32 %v6632_v45, %v12578_v7  ;;  %v12583_v27 = vld [vmem:[#allocation44_spill] sm:$0xff] }
 0x598   : > { %6653 = vrcp.f32 %v3915_v42  ;;  %4112 = vadd.xlane.f32.xlu1 %v4111_v22  ;;  %v10559_v37 = vpop.eup %6635  ;;  %v4369_v43 = vmul.f32 %v6632_v45, %v12580_v2  ;;  %v4009_v9 = vadd.f32 %v10538_v35, %v10536_v24  ;;  %v12586_v22 = vld [vmem:[#allocation43_spill] sm:$0xff] }
 0x599   : > { %12579 = vst [vmem:[#allocation18_spill] sm:$0xff] %v10559_v37  ;;  %6655 = vrcp.f32 %v3918_v26  ;;  %4109 = vadd.xlane.f32.xlu0 %v4108_v31  ;;  %v2871_v14 = vpop.xlane.xlu1 %2870  ;;  %v10562_v19 = vpop.eup %6637  ;;  %5793 = vmatprep.subr.bf16.mxu1 %v5792_v10  ;;  %v5856_v42 = vpack.c.bf16 %v4370_v61, %v4368_v25  ;;  %v12585_v26 = vld [vmem:[#allocation163_spill] sm:$0xff]  ;;  %v4012_v10 = vadd.f32 %v10556_v51, %v10542_v50 }
 0x59a   : > { %12581 = vst [vmem:[#allocation85_spill] sm:$0xff] %v10562_v19  ;;  %v3163_v30 = vsub.f32 %v12582_v21, %v2871_v14  ;;  %v3164_v20 = vsub.f32 %v12583_v27, %v2871_v14  ;;  %v2874_v17 = vpop.xlane.xlu0 %2873  ;;  %v10568_v59 = vpop.eup %6639  ;;  %5795 = vmatpush1.bf16.xpose.msra.mxu1 %v5794_v52  ;;  %v5858_v45 = vpack.c.bf16 %v4369_v43, %v4367_v44 }
 0x59b   : > { %12584 = vst [vmem:[#allocation75_spill] sm:$0xff] %v10568_v59  ;;  %v3165_v63 = vsub.f32 %v12585_v26, %v2874_v17  ;;  %v3166_v31 = vsub.f32 %v12586_v22, %v2874_v17  ;;  %5857 = vmatprep.subr.bf16.mxu0 %v5856_v42  ;;  %v4117_v44 = vadd.f32 %v10476_v38, %v10465_v41  ;;  %v12591_v26 = vld [vmem:[#allocation146_spill] sm:$0xff]  ;;  %v12592_v22 = vld [vmem:[#allocation13_spill] sm:$0xff] }
 0x59c   : > { %v10574_v7 = vpop.eup %6641  ;;  %v3599_v2 = vmul.f32 1.442695, %v3163_v30  ;;  %v3601_v14 = vmul.f32 1.442695, %v3164_v20  ;;  %4010 = vadd.xlane.f32.xlu1 %v4009_v9  ;;  %5859 = vmatpush1.bf16.xpose.msra.mxu0 %v5858_v45  ;;  %v4114_v20 = vadd.f32 %v10440_v3, %v10434_v0 }
 0x59d   : > { %12587 = vst [vmem:[#allocation231_spill] sm:$0xff] %v10574_v7  ;;  %v10576_v25 = vpop.eup %6643  ;;  %v3603_v61 = vmul.f32 1.442695, %v3165_v63  ;;  %v3605_v21 = vmul.f32 1.442695, %v3166_v31  ;;  %4013 = vadd.xlane.f32.xlu0 %v4012_v10  ;;  %v3825_v52 = vpop.xlane.xlu1 %3824  ;;  %v12593_v10 = vld [vmem:[#allocation130_spill] sm:$0xff] }
 0x59e   : > { %12588 = vst [vmem:[#allocation223_spill] sm:$0xff] %v10576_v25  ;;  %v10578_v27 = vpop.eup %6645  ;;  %6657 = vpow2.f32 %v3599_v2  ;;  %v3828_v43 = vpop.xlane.xlu0 %3827  ;;  %v4015_v0 = vadd.f32 %v10576_v25, %v10574_v7 }
 0x59f   : > { %12589 = vst [vmem:[#allocation21_spill] sm:$0xff] %v10578_v27  ;;  %v10582_v17 = vpop.eup %6647  ;;  %6659 = vpow2.f32 %v3601_v14  ;;  %v12594_v14 = vld [vmem:[#allocation258_spill] sm:$0xff] }
 0x5a0   : > { %12590 = vst [vmem:[#allocation22_spill] sm:$0xff] %v10582_v17  ;;  %v6650_v30 = vpop.eup %6649  ;;  %6661 = vpow2.f32 %v3603_v61  ;;  %4118 = vadd.xlane.f32.xlu1 %v4117_v44  ;;  %v12595_v44 = vld [vmem:[#allocation144_spill] sm:$0xff] }
 0x5a1   : > { %v6652_v42 = vpop.eup %6651  ;;  %6663 = vpow2.f32 %v3605_v21  ;;  %4115 = vadd.xlane.f32.xlu0 %v4114_v20  ;;  %v3921_v9 = vpop.xlane.xlu1 %3920  ;;  %v4308_v63 = vmul.f32 %v6650_v30, %v12591_v26  ;;  %v4307_v31 = vmul.f32 %v6650_v30, %v12592_v22  ;;  %v4018_v21 = vadd.f32 %v10582_v17, %v10578_v27  ;;  %v12596_v26 = vld [vmem:[#allocation93_spill] sm:$0xff] }
 0x5a2   : > { %v6654_v45 = vpop.eup %6653  ;;  %6665 = vrcp.f32 %v3825_v52  ;;  %v4310_v2 = vmul.f32 %v6652_v42, %v12593_v10  ;;  %v3924_v41 = vpop.xlane.xlu0 %3923  ;;  %v4309_v38 = vmul.f32 %v6652_v42, %v12594_v14  ;;  %v12597_v22 = vld [vmem:[#allocation133_spill] sm:$0xff]  ;;  %v12598_v14 = vld [vmem:[#allocation260_spill] sm:$0xff] }
 0x5a3   : > { %v6656_v61 = vpop.eup %6655  ;;  %6667 = vrcp.f32 %v3828_v43  ;;  %v4372_v20 = vmul.f32 %v6654_v45, %v12595_v44  ;;  %v4371_v3 = vmul.f32 %v6654_v45, %v12596_v26  ;;  %v4123_v44 = vadd.f32 %v10568_v59, %v10562_v19  ;;  %v12603_v26 = vld [vmem:[#allocation147_spill] sm:$0xff] }
 0x5a4   : > { %6669 = vrcp.f32 %v3921_v9  ;;  %v5796_v30 = vpack.c.bf16 %v4310_v2, %v4308_v63  ;;  %v5798_v52 = vpack.c.bf16 %v4309_v38, %v4307_v31  ;;  %4016 = vadd.xlane.f32.xlu1 %v4015_v0  ;;  %v4374_v10 = vmul.f32 %v6656_v61, %v12597_v22 }
 0x5a5   : > { %6671 = vrcp.f32 %v3924_v41  ;;  %4019 = vadd.xlane.f32.xlu0 %v4018_v21  ;;  %v10597_v42 = vpop.xlane.xlu1 %2876  ;;  %v4373_v7 = vmul.f32 %v6656_v61, %v12598_v14  ;;  %v4120_v0 = vadd.f32 %v10559_v37, %v10480_v36  ;;  %v12605_v14 = vld [vmem:[#allocation135_spill] sm:$0xff]  ;;  %v12608_v36 = vld [vmem:[#allocation150_spill] sm:$0xff] }
 0x5a6   : > { %5797 = vmatprep.subr.bf16.mxu1 %v5796_v30  ;;  %v5860_v43 = vpack.c.bf16 %v4374_v10, %v4372_v20  ;;  %v10600_v25 = vpop.xlane.xlu0 %2879 }
 0x5a7   : > { %5799 = vmatpush1.bf16.xpose.msra.mxu1 %v5798_v52  ;;  %v5862_v9 = vpack.c.bf16 %v4373_v7, %v4371_v3  ;;  %v12604_v52 = vld [vmem:[#allocation176_spill] sm:$0xff] }
 0x5a8   : > { %v10606_v38 = vpop.eup %6657  ;;  %5861 = vmatprep.subr.bf16.mxu0 %v5860_v43  ;;  %4124 = vadd.xlane.f32.xlu1 %v4123_v44 }
 0x5a9   : > { %12599 = vst [vmem:[#allocation171_spill] sm:$0xff] %v10606_v38  ;;  %v10608_v41 = vpop.eup %6659  ;;  %5863 = vmatpush1.bf16.xpose.msra.mxu0 %v5862_v9  ;;  %4121 = vadd.xlane.f32.xlu0 %v4120_v0  ;;  %v3831_v63 = vpop.xlane.xlu1 %3830  ;;  %v12606_v9 = vld [vmem:[#allocation58_spill] sm:$0xff] }
 0x5aa   : > { %12600 = vst [vmem:[#allocation172_spill] sm:$0xff] %v10608_v41  ;;  %v10610_v31 = vpop.eup %6661  ;;  %v3834_v45 = vpop.xlane.xlu0 %3833  ;;  %v4021_v2 = vadd.f32 %v10608_v41, %v10606_v38  ;;  %6673 = vrcp.f32 %v3831_v63  ;;  %v12609_v41 = vld [vmem:[#allocation142_spill] sm:$0xff] }
 0x5ab   : > { %12601 = vst [vmem:[#allocation245_spill] sm:$0xff] %v10610_v31  ;;  %v10614_v61 = vpop.eup %6663  ;;  %6675 = vrcp.f32 %v3834_v45 }
 0x5ac   : > { %12602 = vst [vmem:[#allocation246_spill] sm:$0xff] %v10614_v61  ;;  %v6666_v3 = vpop.eup %6665  ;;  %4022 = vadd.xlane.f32.xlu1 %v4021_v2  ;;  %v4024_v7 = vadd.f32 %v10614_v61, %v10610_v31  ;;  %v12607_v2 = vld [vmem:[#allocation183_spill] sm:$0xff] }
 0x5ad   : > { %v6668_v21 = vpop.eup %6667  ;;  %v3927_v20 = vpop.xlane.xlu1 %3926  ;;  %v4312_v30 = vmul.f32 %v6666_v3, %v12603_v26  ;;  %v4311_v22 = vmul.f32 %v6666_v3, %v12604_v52  ;;  %v12610_v52 = vld [vmem:[#allocation141_spill] sm:$0xff] }
 0x5ae   : > { %v6670_v10 = vpop.eup %6669  ;;  %4025 = vadd.xlane.f32.xlu0 %v4024_v7  ;;  %v4314_v43 = vmul.f32 %v6668_v21, %v12605_v14  ;;  %v3840_v44 = vpop.xlane.xlu0 %3839  ;;  %v4313_v0 = vmul.f32 %v6668_v21, %v12606_v9 }
 0x5af   : > { %v6672_v19 = vpop.eup %6671  ;;  %v4376_v59 = vmul.f32 %v6670_v10, %v12607_v2  ;;  %v4375_v31 = vmul.f32 %v6670_v10, %v12608_v36  ;;  %6677 = vrcp.f32 %v3840_v44  ;;  %v12611_v10 = vld [vmem:[#allocation181_spill] sm:$0xff]  ;;  %v12612_v44 = vld [vmem:[#allocation184_spill] sm:$0xff] }
 0x5b0   : > { %v5800_v38 = vpack.c.bf16 %v4314_v43, %v4312_v30  ;;  %v5802_v61 = vpack.c.bf16 %v4313_v0, %v4311_v22  ;;  %v4378_v26 = vmul.f32 %v6672_v19, %v12609_v41  ;;  %v4377_v63 = vmul.f32 %v6672_v19, %v12610_v52 }
 0x5b1   : > { %v3837_v3 = vpop.xlane.xlu1 %3836 }
 0x5b2   : > { %5801 = vmatprep.subr.bf16.mxu1 %v5800_v38  ;;  %6679 = vrcp.f32 %v3837_v3  ;;  %v5864_v7 = vpack.c.bf16 %v4378_v26, %v4376_v59  ;;  %v10626_v14 = vpop.xlane.xlu0 %4043  ;;  %v5866_v21 = vpack.c.bf16 %v4377_v63, %v4375_v31  ;;  %v12613_v38 = vld [vmem:[#allocation175_spill] sm:$0xff]  ;;  %v12615_v63 = vld [vmem:[#allocation190_spill] sm:$0xff] }
 0x5b3   : > { %5803 = vmatpush1.bf16.xpose.msra.mxu1 %v5802_v61  ;;  %v12614_v61 = vld [vmem:[#allocation145_spill] sm:$0xff] }
 0x5b4   : > { %5865 = vmatprep.subr.bf16.mxu0 %v5864_v7  ;;  %v6674_v30 = vpop.eup %6673 }
 0x5b5   : > { %5867 = vmatpush1.bf16.xpose.msra.mxu0 %v5866_v21  ;;  %v10628_v45 = vpop.xlane.xlu1 %4040  ;;  %v6676_v22 = vpop.eup %6675  ;;  %v4316_v43 = vmul.f32 %v6674_v30, %v12611_v10  ;;  %v4315_v19 = vmul.f32 %v6674_v30, %v12612_v44  ;;  %v12616_v21 = vld [vmem:[#allocation179_spill] sm:$0xff]  ;;  %v12617_v10 = vld [vmem:[#allocation189_spill] sm:$0xff] }
 0x5b6   : > { %v3846_v36 = vpop.xlane.xlu0 %3845  ;;  %v4318_v59 = vmul.f32 %v6676_v22, %v12613_v38  ;;  %v4317_v31 = vmul.f32 %v6676_v22, %v12614_v61  ;;  %v12618_v22 = vld [vmem:[#allocation49_spill] sm:$0xff] }
 0x5b7   : > { %6681 = vrcp.f32 %v3846_v36  ;;  %v3169_v38 = vsub.f32 %v12618_v22, %v10600_v25 }
 0x5b8   : > { %v5804_v26 = vpack.c.bf16 %v4318_v59, %v4316_v43  ;;  %v5806_v3 = vpack.c.bf16 %v4317_v31, %v4315_v19  ;;  %v12620_v31 = vld [vmem:[#allocation53_spill] sm:$0xff] }
 0x5b9   : > { %v3843_v41 = vpop.xlane.xlu1 %3842  ;;  %v6678_v0 = vpop.eup %6677 }
 0x5ba   : > { %6683 = vrcp.f32 %v3843_v41  ;;  %v10633_v9 = vpop.xlane.xlu0 %4049  ;;  %v4322_v36 = vmul.f32 %v6678_v0, %v12616_v21  ;;  %5805 = vmatprep.subr.bf16.mxu1 %v5804_v26  ;;  %v3170_v26 = vsub.f32 %v12620_v31, %v10600_v25  ;;  %v3611_v21 = vmul.f32 1.442695, %v3169_v38  ;;  %v12625_v31 = vld [vmem:[#allocation100_spill] sm:$0xff] }
 0x5bb   : > { %6685 = vrcp.f32 %v3927_v20  ;;  %5807 = vmatpush1.bf16.xpose.msra.mxu1 %v5806_v3  ;;  %v12619_v20 = vld [vmem:[#allocation148_spill] sm:$0xff] }
 0x5bc   : > { %v6680_v2 = vpop.eup %6679  ;;  %v4321_v43 = vmul.f32 %v6678_v0, %v12619_v20  ;;  %v12623_v20 = vld [vmem:[#allocation152_spill] sm:$0xff] }
 0x5bd   : > { %v10636_v52 = vpop.xlane.xlu1 %4046  ;;  %v4320_v7 = vmul.f32 %v6680_v2, %v12615_v63  ;;  %v4319_v44 = vmul.f32 %v6680_v2, %v12617_v10 }
 0x5be   : > { %v3930_v30 = vpop.xlane.xlu0 %3929 }
 0x5bf   : > { %6687 = vrcp.f32 %v3930_v30  ;;  %v5808_v41 = vpack.c.bf16 %v4322_v36, %v4320_v7  ;;  %v5810_v63 = vpack.c.bf16 %v4321_v43, %v4319_v44  ;;  %v12621_v36 = vld [vmem:[#allocation153_spill] sm:$0xff]  ;;  %v12622_v30 = vld [vmem:[#allocation196_spill] sm:$0xff]  ;;  %v12624_v44 = vld [vmem:[#allocation195_spill] sm:$0xff] }
 0x5c1   : > { %v10643_v61 = vpop.xlane.xlu1 %4052  ;;  %5809 = vmatprep.subr.bf16.mxu1 %v5808_v41  ;;  %v6682_v19 = vpop.eup %6681  ;;  %v3613_v41 = vmul.f32 1.442695, %v3170_v26  ;;  %v12628_v26 = vld [vmem:[#allocation156_spill] sm:$0xff] }
 0x5c2   : > { %v10646_v59 = vpop.xlane.xlu0 %4055  ;;  %v4326_v10 = vmul.f32 %v6682_v19, %v12622_v30  ;;  %v4325_v38 = vmul.f32 %v6682_v19, %v12624_v44  ;;  %v12626_v30 = vld [vmem:[#allocation158_spill] sm:$0xff] }
 0x5c3   : > { %5811 = vmatpush1.bf16.xpose.msra.mxu1 %v5810_v63 }
 0x5c4   : > { %v6684_v3 = vpop.eup %6683 }
 0x5c5   : > { %v3933_v7 = vpop.xlane.xlu1 %3932  ;;  %v4324_v2 = vmul.f32 %v6684_v3, %v12621_v36  ;;  %v6686_v37 = vpop.eup %6685  ;;  %v4323_v27 = vmul.f32 %v6684_v3, %v12623_v20  ;;  %v12630_v3 = vld [vmem:[#allocation67_spill] sm:$0xff] }
 0x5c6   : > { %6689 = vrcp.f32 %v3933_v7  ;;  %v3936_v22 = vpop.xlane.xlu0 %3935  ;;  %v4380_v36 = vmul.f32 %v6686_v37, %v12625_v31  ;;  %v4379_v50 = vmul.f32 %v6686_v37, %v12627_v39 }
 0x5c7   : > { %6691 = vrcp.f32 %v3936_v22  ;;  %v5812_v0 = vpack.c.bf16 %v4326_v10, %v4324_v2  ;;  %v12629_v2 = vld [vmem:[#allocation216_spill] sm:$0xff] }
 0x5c8   : > { %6693 = vpow2.f32 %v3611_v21  ;;  %v5814_v21 = vpack.c.bf16 %v4325_v38, %v4323_v27  ;;  %v12631_v27 = vld [vmem:[#allocation166_spill] sm:$0xff] }
 0x5c9   : > { %v6688_v17 = vpop.eup %6687  ;;  %v10653_v25 = vpop.xlane.xlu1 %4058  ;;  %5813 = vmatprep.subr.bf16.mxu1 %v5812_v0  ;;  %6695 = vpow2.f32 %v3613_v41  ;;  %v3167_v41 = vsub.f32 %v12631_v27, %v10597_v42 }
 0x5ca   : > { %v2976_v43 = vpop.xlane.xlu0 %2975  ;;  %v4382_v7 = vmul.f32 %v6688_v17, %v12626_v30  ;;  %v4381_v63 = vmul.f32 %v6688_v17, %v12628_v26  ;;  %6697 = vrcp.f32 %v10626_v14  ;;  %v12635_v26 = vld [vmem:[#allocation262_spill] sm:$0xff] }
 0x5cb   : > { %v3233_v10 = vsub.f32 %v12629_v2, %v2976_v43  ;;  %v3234_v22 = vsub.f32 %v12630_v3, %v2976_v43  ;;  %6699 = vrcp.f32 %v10628_v45  ;;  %5815 = vmatpush1.bf16.xpose.msra.mxu1 %v5814_v21  ;;  %v12633_v45 = vld [vmem:[#allocation25_spill] sm:$0xff]  ;;  %v12639_v21 = vld [vmem:[#allocation11_spill] sm:$0xff] }
 0x5cc   : > { %v5868_v0 = vpack.c.bf16 %v4382_v7, %v4380_v36  ;;  %v5870_v20 = vpack.c.bf16 %v4381_v63, %v4379_v50  ;;  %v12632_v50 = vld [vmem:[#allocation261_spill] sm:$0xff]  ;;  %v12634_v36 = vld [vmem:[#allocation208_spill] sm:$0xff] }
 0x5cd   : > { %v3739_v19 = vmul.f32 1.442695, %v3233_v10  ;;  %v3741_v44 = vmul.f32 1.442695, %v3234_v22  ;;  %v3939_v31 = vpop.xlane.xlu1 %3938  ;;  %v3168_v30 = vsub.f32 %v12634_v36, %v10597_v42  ;;  %v12636_v2 = vld [vmem:[#allocation29_spill] sm:$0xff]  ;;  %v12638_v22 = vld [vmem:[#allocation139_spill] sm:$0xff] }
 0x5ce   : > { %6701 = vrcp.f32 %v3939_v31  ;;  %5869 = vmatprep.subr.bf16.mxu0 %v5868_v0  ;;  %v3942_v39 = vpop.xlane.xlu0 %3941  ;;  %v652_v0 = vadd.f32 %v12639_v21, %v12638_v22  ;;  %v3607_v31 = vmul.f32 1.442695, %v3167_v41  ;;  %v12644_v36 = vld [vmem:[#allocation32_spill] sm:$0xff] }
 0x5cf   : > { %6703 = vpow2.f32 %v3739_v19  ;;  %5871 = vmatpush1.bf16.xpose.msra.mxu0 %v5870_v20  ;;  %v12646_v22 = vld [vmem:[#allocation36_spill] sm:$0xff] }
 0x5d0   : > { %v6690_v37 = vpop.eup %6689  ;;  %6705 = vpow2.f32 %v3741_v44 }
 0x5d1   : > { %v6692_v17 = vpop.eup %6691  ;;  %6707 = vrcp.f32 %v3942_v39  ;;  %v3945_v14 = vpop.xlane.xlu1 %3944  ;;  %v4384_v38 = vmul.f32 %v6690_v37, %v12632_v50  ;;  %v4383_v43 = vmul.f32 %v6690_v37, %v12633_v45  ;;  %v3609_v37 = vmul.f32 1.442695, %v3168_v30  ;;  %v12643_v45 = vld [vmem:[#allocation34_spill] sm:$0xff] }
 0x5d2   : > { %6709 = vrcp.f32 %v3945_v14  ;;  %v3948_v7 = vpop.xlane.xlu0 %3947  ;;  %v4386_v63 = vmul.f32 %v6692_v17, %v12635_v26  ;;  %v4385_v10 = vmul.f32 %v6692_v17, %v12636_v2  ;;  %v10672_v3 = vpop.eup %6693  ;;  %4584 = vmatmul.mubr.f32.vlgmr.msra.gmra.mrb[138].mxu1 %v652_v0  ;;  %v12647_v0 = vld [vmem:[#allocation35_spill] sm:$0xff] }
 0x5d3   : > { %12637 = vst [vmem:[#allocation89_spill] sm:$0xff] %v10672_v3  ;;  %6711 = vrcp.f32 %v3948_v7  ;;  %v10676_v44 = vpop.eup %6695 }
 0x5d4   : > { %v5872_v20 = vpack.c.bf16 %v4386_v63, %v4384_v38  ;;  %v5874_v19 = vpack.c.bf16 %v4385_v10, %v4383_v43  ;;  %12640 = vst [vmem:[#allocation80_spill] sm:$0xff] %v10676_v44  ;;  %6713 = vrcp.f32 %v10636_v52  ;;  %v10681_v39 = vpop.eup %6697  ;;  %v4030_v26 = vadd.f32 %v10676_v44, %v10672_v3  ;;  %v12645_v63 = vld [vmem:[#allocation151_spill] sm:$0xff]  ;;  %v12651_v44 = vld [vmem:[#allocation37_spill] sm:$0xff] }
 0x5d5   : > { %v10679_v42 = vpop.xlane.xlu1 %2882  ;;  %v6700_v27 = vpop.eup %6699  ;;  %6715 = vrcp.f32 %v10633_v9 }
 0x5d6   : > { %5873 = vmatprep.subr.bf16.mxu0 %v5872_v20  ;;  %v4062_v17 = vpop.xlane.xlu0 %4061  ;;  %6717 = vpow2.f32 %v3607_v31  ;;  %v4456_v2 = vmul.f32 %v6700_v27, %v12645_v63 }
 0x5d7   : > { %5875 = vmatpush1.bf16.xpose.msra.mxu0 %v5874_v19  ;;  %6719 = vpow2.f32 %v3609_v37  ;;  %v12648_v19 = vld [vmem:[#allocation154_spill] sm:$0xff] }
 0x5d8   : > { %v6702_v14 = vpop.eup %6701  ;;  %6721 = vrcp.f32 %v10643_v61  ;;  %v4458_v31 = vmul.f32 %v10681_v39, %v12648_v19  ;;  %v12649_v61 = vld [vmem:[#allocation217_spill] sm:$0xff] }
 0x5d9   : > { %v10684_v50 = vpop.eup %6703  ;;  %v3951_v38 = vpop.xlane.xlu1 %3950  ;;  %v4388_v43 = vmul.f32 %v6702_v14, %v12643_v45  ;;  %v4387_v30 = vmul.f32 %v6702_v14, %v12644_v36  ;;  %v3171_v14 = vsub.f32 %v12649_v61, %v10679_v42  ;;  %v12650_v36 = vld [vmem:[#allocation164_spill] sm:$0xff]  ;;  %v12652_v61 = vld [vmem:[#allocation205_spill] sm:$0xff] }
 0x5da   : > { %12641 = vst [vmem:[#allocation88_spill] sm:$0xff] %v10684_v50  ;;  %v10686_v41 = vpop.eup %6705  ;;  %v3954_v52 = vpop.xlane.xlu0 %3953  ;;  %6723 = vrcp.f32 %v3951_v38  ;;  %v5944_v19 = vpack.c.bf16 %v4458_v31, %v4456_v2 }
 0x5db   : > { %12642 = vst [vmem:[#allocation79_spill] sm:$0xff] %v10686_v41  ;;  %v6708_v7 = vpop.eup %6707  ;;  %v4126_v9 = vadd.f32 %v10686_v41, %v10684_v50  ;;  %6725 = vrcp.f32 %v3954_v52 }
 0x5dc   : > { %v6710_v10 = vpop.eup %6709  ;;  %v4390_v21 = vmul.f32 %v6708_v7, %v12646_v22  ;;  %v4389_v20 = vmul.f32 %v6708_v7, %v12647_v0  ;;  %6727 = vrcp.f32 %v10646_v59 }
 0x5dd   : > { %v6712_v37 = vpop.eup %6711  ;;  %4127 = vadd.xlane.f32.xlu0 %v4126_v9  ;;  %v2979_v45 = vpop.xlane.xlu1 %2978  ;;  %v4392_v3 = vmul.f32 %v6710_v10, %v12650_v36  ;;  %v4391_v63 = vmul.f32 %v6710_v10, %v12651_v44  ;;  %v12653_v9 = vld [vmem:[#allocation165_spill] sm:$0xff]  ;;  %6729 = vrcp.f32 %v10653_v25  ;;  %v12654_v44 = vld [vmem:[#allocation219_spill] sm:$0xff]  ;;  %v12655_v25 = vld [vmem:[#allocation188_spill] sm:$0xff] }
 0x5de   : > { %v3235_v38 = vsub.f32 %v10243_v28, %v2979_v45  ;;  %v3236_v22 = vsub.f32 %v10246_v1, %v2979_v45  ;;  %v5876_v50 = vpack.c.bf16 %v4390_v21, %v4388_v43  ;;  %v2886_v7 = vpop.xlane.xlu0 %2885  ;;  %v5878_v0 = vpack.c.bf16 %v4389_v20, %v4387_v30  ;;  %v10706_v41 = vpop.eup %6713 }
 0x5df   : > { %v4394_v52 = vmul.f32 %v6712_v37, %v12652_v61  ;;  %v4393_v24 = vmul.f32 %v6712_v37, %v12653_v9  ;;  %v3172_v10 = vsub.f32 %v12654_v44, %v10679_v42  ;;  %v10714_v1 = vpop.eup %6715  ;;  %v3615_v43 = vmul.f32 1.442695, %v3171_v14  ;;  %v12656_v37 = vld [vmem:[#allocation198_spill] sm:$0xff] }
 0x5e0   : > { %v3743_v28 = vmul.f32 1.442695, %v3235_v38  ;;  %v3745_v36 = vmul.f32 1.442695, %v3236_v22  ;;  %5877 = vmatprep.subr.bf16.mxu0 %v5876_v50  ;;  %v3173_v30 = vsub.f32 %v10235_v48, %v2886_v7  ;;  %v4455_v31 = vmul.f32 %v6700_v27, %v12655_v25  ;;  %v10720_v45 = vpop.eup %6717  ;;  %v12659_v27 = vld [vmem:[#allocation20_spill] sm:$0xff] }
 0x5e1   : > { %5879 = vmatpush1.bf16.xpose.msra.mxu0 %v5878_v0  ;;  %4031 = vadd.xlane.f32.xlu0 %v4030_v26  ;;  %v3957_v59 = vpop.xlane.xlu1 %3956  ;;  %v5880_v2 = vpack.c.bf16 %v4394_v52, %v4392_v3  ;;  %v5882_v21 = vpack.c.bf16 %v4393_v24, %v4391_v63  ;;  %v4460_v42 = vmul.f32 %v10706_v41, %v12656_v37  ;;  %v10722_v50 = vpop.eup %6719  ;;  %v3617_v48 = vmul.f32 1.442695, %v3172_v10  ;;  %v12657_v26 = vld [vmem:[#allocation194_spill] sm:$0xff]  ;;  %v12658_v3 = vld [vmem:[#allocation200_spill] sm:$0xff] }
 0x5e2   : > { %6731 = vpow2.f32 %v3743_v28  ;;  %5945 = vmatprep.subr.bf16.mxu0 %v5944_v19  ;;  %v3960_v20 = vpop.xlane.xlu0 %3959  ;;  %v4457_v24 = vmul.f32 %v10681_v39, %v12657_v26  ;;  %v4462_v14 = vmul.f32 %v10714_v1, %v12658_v3  ;;  %v10728_v63 = vpop.eup %6721  ;;  %v12660_v38 = vld [vmem:[#allocation12_spill] sm:$0xff]  ;;  %v3619_v0 = vmul.f32 1.442695, %v3173_v30  ;;  %v12661_v52 = vld [vmem:[#allocation70_spill] sm:$0xff]  ;;  %v12666_v3 = vld [vmem:[#allocation211_spill] sm:$0xff] }
 0x5e3   : > { %6733 = vpow2.f32 %v3745_v36  ;;  %5881 = vmatprep.subr.bf16.mxu1 %v5880_v2  ;;  %v658_v22 = vadd.f32 %v12660_v38, %v12659_v27  ;;  %v3174_v9 = vsub.f32 %v12661_v52, %v2886_v7  ;;  %v12662_v36 = vld [vmem:[#allocation224_spill] sm:$0xff]  ;;  %v12665_v37 = vld [vmem:[#allocation206_spill] sm:$0xff]  ;;  %v12667_v38 = vld [vmem:[#allocation197_spill] sm:$0xff] }
 0x5e4   : > { %6735 = vrcp.f32 %v4062_v17  ;;  %5883 = vmatpush1.bf16.xpose.msra.mxu1 %v5882_v21  ;;  %v6724_v61 = vpop.eup %6723  ;;  %v5946_v44 = vpack.c.bf16 %v4457_v24, %v4455_v31  ;;  %v5948_v10 = vpack.c.bf16 %v4462_v14, %v4460_v42  ;;  %v12663_v21 = vld [vmem:[#allocation46_spill] sm:$0xff] }
 0x5e5   : > { %6737 = vpow2.f32 %v3615_v43  ;;  %v4065_v19 = vpop.xlane.xlu1 %4064  ;;  %v6726_v28 = vpop.eup %6725  ;;  %v4396_v25 = vmul.f32 %v6724_v61, %v12663_v21  ;;  %v12664_v43 = vld [vmem:[#allocation54_spill] sm:$0xff]  ;;  %v4395_v26 = vmul.f32 %v6724_v61, %v12665_v37 }
 0x5e6   : > { %6739 = vrcp.f32 %v3957_v59  ;;  %v2982_v17 = vpop.xlane.xlu0 %2981  ;;  %v4398_v30 = vmul.f32 %v6726_v28, %v12664_v43  ;;  %v4397_v7 = vmul.f32 %v6726_v28, %v12666_v3  ;;  %v6728_v59 = vpop.eup %6727  ;;  %v12671_v3 = vld [vmem:[#allocation169_spill] sm:$0xff] }
 0x5e7   : > { %6741 = vrcp.f32 %v3960_v20  ;;  %v3237_v39 = vsub.f32 %v10281_v47, %v2982_v17  ;;  %v3238_v2 = vsub.f32 %v12662_v36, %v2982_v17  ;;  %v10739_v24 = vpop.eup %6729  ;;  %v3621_v47 = vmul.f32 1.442695, %v3174_v9  ;;  %v12669_v17 = vld [vmem:[#allocation52_spill] sm:$0xff] }
 0x5e8   : > { %6743 = vpow2.f32 %v3617_v48  ;;  %4655 = vmatmul.mubr.f32.vlgmr.msra.gmra.mrb[142].mxu0 %v658_v22  ;;  %v5884_v14 = vpack.c.bf16 %v4398_v30, %v4396_v25  ;;  %v5886_v27 = vpack.c.bf16 %v4397_v7, %v4395_v26  ;;  %v4459_v22 = vmul.f32 %v10706_v41, %v12667_v38  ;;  %v12672_v7 = vld [vmem:[#allocation168_spill] sm:$0xff] }
 0x5e9   : > { %6745 = vpow2.f32 %v3619_v0  ;;  %v3747_v31 = vmul.f32 1.442695, %v3237_v39  ;;  %v3749_v42 = vmul.f32 1.442695, %v3238_v2  ;;  %5947 = vmatpush1.bf16.xpose.msra.mxu0 %v5946_v44  ;;  %v3963_v20 = vpop.xlane.xlu1 %3962  ;;  %v12668_v0 = vld [vmem:[#allocation24_spill] sm:$0xff]  ;;  %v4466_v44 = vmul.f32 %v6728_v59, %v12669_v17 }
 0x5ea   : > { %5949 = vmatprep.subr.bf16.mxu0 %v5948_v10  ;;  %6747 = vrcp.f32 %v3963_v20  ;;  %v3966_v48 = vpop.xlane.xlu0 %3965  ;;  %5885 = vmatprep.subr.bf16.mxu1 %v5884_v14  ;;  %v4464_v52 = vmul.f32 %v10728_v63, %v12668_v0  ;;  %v12670_v10 = vld [vmem:[#allocation199_spill] sm:$0xff]  ;;  %v12673_v20 = vld [vmem:[#allocation170_spill] sm:$0xff]  ;;  %v4027_v38 = vadd.f32 %v10722_v50, %v10720_v45 }
 0x5eb   : > { %6749 = vpow2.f32 %v3747_v31  ;;  %v4461_v39 = vmul.f32 %v10714_v1, %v12670_v10 }
 0x5ec   : > { %v10743_v61 = vpop.eup %6731  ;;  %6751 = vpow2.f32 %v3749_v42  ;;  %5887 = vmatpush1.bf16.xpose.msra.mxu1 %v5886_v27  ;;  %v5952_v30 = vpack.c.bf16 %v4466_v44, %v4464_v52  ;;  %v12676_v52 = vld [vmem:[#allocation201_spill] sm:$0xff] }
 0x5ed   : > { %v10748_v28 = vpop.eup %6733  ;;  %6753 = vrcp.f32 %v3966_v48  ;;  %v4071_v9 = vpop.xlane.xlu1 %4070  ;;  %v5950_v25 = vpack.c.bf16 %v4461_v39, %v4459_v22  ;;  %v12674_v48 = vld [vmem:[#allocation57_spill] sm:$0xff]  ;;  %v4465_v17 = vmul.f32 %v6728_v59, %v12676_v52  ;;  %v12682_v52 = vld [vmem:[#allocation214_spill] sm:$0xff] }
 0x5ee   : > { %v10752_v36 = vpop.eup %6735  ;;  %6755 = vpow2.f32 %v3621_v47  ;;  %v4068_v41 = vpop.xlane.xlu0 %4067  ;;  %v4129_v2 = vadd.f32 %v10748_v28, %v10743_v61 }
 0x5ef   : > { %v10756_v21 = vpop.eup %6737  ;;  %6757 = vrcp.f32 %v4068_v41  ;;  %v12677_v41 = vld [vmem:[#allocation203_spill] sm:$0xff] }
 0x5f0   : > { %v6740_v43 = vpop.eup %6739  ;;  %4130 = vadd.xlane.f32.xlu1 %v4129_v2  ;;  %6759 = vrcp.f32 %v4065_v19  ;;  %v12675_v19 = vld [vmem:[#allocation23_spill] sm:$0xff]  ;;  %v4470_v2 = vmul.f32 %v10752_v36, %v12677_v41 }
 0x5f1   : > { %v6742_v37 = vpop.eup %6741  ;;  %5951 = vmatpush1.bf16.xpose.msra.mxu0 %v5950_v25  ;;  %v3969_v26 = vpop.xlane.xlu1 %3968  ;;  %v4400_v1 = vmul.f32 %v6740_v43, %v12671_v3  ;;  %v4399_v31 = vmul.f32 %v6740_v43, %v12672_v7  ;;  %v4463_v0 = vmul.f32 %v10728_v63, %v12675_v19  ;;  %v12678_v63 = vld [vmem:[#allocation28_spill] sm:$0xff]  ;;  %v12679_v3 = vld [vmem:[#allocation61_spill] sm:$0xff] }
 0x5f2   : > { %v10760_v42 = vpop.eup %6743  ;;  %5953 = vmatprep.subr.bf16.mxu0 %v5952_v30  ;;  %6761 = vrcp.f32 %v3969_v26  ;;  %v4402_v47 = vmul.f32 %v6742_v37, %v12673_v20  ;;  %v3972_v14 = vpop.xlane.xlu0 %3971  ;;  %v4401_v27 = vmul.f32 %v6742_v37, %v12674_v48  ;;  %v4468_v59 = vmul.f32 %v10739_v24, %v12678_v63 }
 0x5f3   : > { %v10766_v22 = vpop.eup %6745  ;;  %6763 = vrcp.f32 %v3972_v14  ;;  %v4033_v26 = vadd.f32 %v10760_v42, %v10756_v21 }
 0x5f4   : > { %v6748_v44 = vpop.eup %6747  ;;  %v5888_v10 = vpack.c.bf16 %v4402_v47, %v4400_v1  ;;  %v5890_v39 = vpack.c.bf16 %v4401_v27, %v4399_v31  ;;  %4028 = vadd.xlane.f32.xlu1 %v4027_v38  ;;  %v5954_v31 = vpack.c.bf16 %v4465_v17, %v4463_v0  ;;  %v12680_v47 = vld [vmem:[#allocation59_spill] sm:$0xff]  ;;  %v5956_v27 = vpack.c.bf16 %v4470_v2, %v4468_v59  ;;  %v12681_v38 = vld [vmem:[#allocation64_spill] sm:$0xff]  ;;  %v12683_v2 = vld [vmem:[#allocation162_spill] sm:$0xff] }
 0x5f5   : > { %v10773_v25 = vpop.eup %6749  ;;  %v4077_v43 = vpop.xlane.xlu1 %4076  ;;  %v4404_v1 = vmul.f32 %v6748_v44, %v12679_v3  ;;  %v4403_v14 = vmul.f32 %v6748_v44, %v12680_v47  ;;  %v4469_v63 = vmul.f32 %v10752_v36, %v12683_v2 }
 0x5f6   : > { %v10775_v30 = vpop.eup %6751  ;;  %5889 = vmatprep.subr.bf16.mxu1 %v5888_v10  ;;  %v4074_v37 = vpop.xlane.xlu0 %4073 }
 0x5f7   : > { %v6754_v7 = vpop.eup %6753  ;;  %5891 = vmatpush1.bf16.xpose.msra.mxu1 %v5890_v39  ;;  %6765 = vrcp.f32 %v4074_v37  ;;  %v4132_v20 = vadd.f32 %v10775_v30, %v10773_v25 }
 0x5f8   : > { %v10785_v48 = vpop.eup %6755  ;;  %4034 = vadd.xlane.f32.xlu1 %v4033_v26  ;;  %v4406_v19 = vmul.f32 %v6754_v7, %v12681_v38  ;;  %v4405_v10 = vmul.f32 %v6754_v7, %v12682_v52  ;;  %6767 = vrcp.f32 %v4071_v9 }
 0x5f9   : > { %v6758_v41 = vpop.eup %6757  ;;  %5955 = vmatpush1.bf16.xpose.msra.mxu0 %v5954_v31  ;;  %4133 = vadd.xlane.f32.xlu0 %v4132_v20  ;;  %v3975_v39 = vpop.xlane.xlu1 %3974  ;;  %v4036_v26 = vadd.f32 %v10785_v48, %v10766_v22  ;;  %v12684_v31 = vld [vmem:[#allocation202_spill] sm:$0xff] }
 0x5fa   : > { %5957 = vmatprep.subr.bf16.mxu0 %v5956_v27  ;;  %6769 = vrcp.f32 %v3975_v39  ;;  %v5892_v0 = vpack.c.bf16 %v4406_v19, %v4404_v1  ;;  %v3978_v17 = vpop.xlane.xlu0 %3977  ;;  %v6760_v37 = vpop.eup %6759  ;;  %v5894_v44 = vpack.c.bf16 %v4405_v10, %v4403_v14  ;;  %v4474_v9 = vmul.f32 %v6758_v41, %v12499_v62  ;;  %v12685_v20 = vld [vmem:[#allocation62_spill] sm:$0xff]  ;;  %v12686_v14 = vld [vmem:[#allocation209_spill] sm:$0xff] }
 0x5fb   : > { %6771 = vrcp.f32 %v3978_v17  ;;  %v4467_v1 = vmul.f32 %v10739_v24, %v12684_v31  ;;  %v4472_v38 = vmul.f32 %v6760_v37, %v12686_v14  ;;  %v12687_v19 = vld [vmem:[#allocation221_spill] sm:$0xff] }
 0x5fc   : > { %v6762_v59 = vpop.eup %6761  ;;  %5893 = vmatprep.subr.bf16.mxu1 %v5892_v0  ;;  %v12688_v10 = vld [vmem:[#allocation65_spill] sm:$0xff]  ;;  %v12689_v0 = vld [vmem:[#allocation71_spill] sm:$0xff] }
 0x5fd   : > { %v6764_v3 = vpop.eup %6763  ;;  %4037 = vadd.xlane.f32.xlu0 %v4036_v26  ;;  %v4083_v7 = vpop.xlane.xlu1 %4082  ;;  %v4408_v47 = vmul.f32 %v6762_v59, %v12685_v20  ;;  %v5958_v36 = vpack.c.bf16 %v4469_v63, %v4467_v1  ;;  %v4407_v39 = vmul.f32 %v6762_v59, %v12688_v10  ;;  %v5960_v17 = vpack.c.bf16 %v4474_v9, %v4472_v38  ;;  %v12691_v9 = vld [vmem:[#allocation40_spill] sm:$0xff] }
 0x5fe   : > { %v4080_v27 = vpop.xlane.xlu0 %4079  ;;  %v4410_v52 = vmul.f32 %v6764_v3, %v12687_v19  ;;  %v4409_v62 = vmul.f32 %v6764_v3, %v12689_v0  ;;  %v12692_v19 = vld [vmem:[#allocation47_spill] sm:$0xff]  ;;  %v12694_v0 = vld [vmem:[#allocation78_spill] sm:$0xff] }
 0x5ff   : > { %5895 = vmatpush1.bf16.xpose.msra.mxu1 %v5894_v44  ;;  %6773 = vrcp.f32 %v4080_v27  ;;  %v12690_v44 = vld [vmem:[#allocation39_spill] sm:$0xff] }
 0x600   : > { %v5896_v26 = vpack.c.bf16 %v4410_v52, %v4408_v47  ;;  %6775 = vrcp.f32 %v4077_v43  ;;  %v5898_v14 = vpack.c.bf16 %v4409_v62, %v4407_v39  ;;  %v4473_v27 = vmul.f32 %v6758_v41, %v12690_v44  ;;  %v12693_v39 = vld [vmem:[#allocation69_spill] sm:$0xff] }
 0x601   : > { %v6766_v2 = vpop.eup %6765  ;;  %5959 = vmatpush1.bf16.xpose.msra.mxu0 %v5958_v36  ;;  %v3981_v24 = vpop.xlane.xlu1 %3980  ;;  %v4471_v47 = vmul.f32 %v6760_v37, %v12691_v9  ;;  %v342_v36 = vld [vmem:[%s11106_s2 + $0x50] sm:$0xff]  ;;  %v12696_v9 = vld [vmem:[#allocation207_spill] sm:$0xff] }
 0x602   : > { %5961 = vmatprep.subr.bf16.mxu0 %v5960_v17  ;;  %6777 = vrcp.f32 %v3981_v24  ;;  %5897 = vmatprep.subr.bf16.mxu1 %v5896_v26  ;;  %v3984_v31 = vpop.xlane.xlu0 %3983  ;;  %v6768_v20 = vpop.eup %6767  ;;  %v4478_v59 = vmul.f32 %v6766_v2, %v10002_v57 }
 0x603   : > { %6779 = vrcp.f32 %v3984_v31  ;;  %v4476_v52 = vmul.f32 %v6768_v20, %v12692_v19  ;;  %v5962_v41 = vpack.c.bf16 %v4473_v27, %v4471_v47  ;;  %v4475_v47 = vmul.f32 %v6768_v20, %v12696_v9 }
 0x604   : > { %v6770_v63 = vpop.eup %6769 }
 0x605   : > { %v6772_v1 = vpop.eup %6771  ;;  %v4089_v3 = vpop.xlane.xlu1 %4088  ;;  %v4412_v43 = vmul.f32 %v6770_v63, %v10266_v55  ;;  %v4411_v57 = vmul.f32 %v6770_v63, %v12693_v39  ;;  %v5964_v17 = vpack.c.bf16 %v4478_v59, %v4476_v52  ;;  %v12698_v52 = vld [vmem:[#allocation77_spill] sm:$0xff] }
 0x606   : > { %v4086_v38 = vpop.xlane.xlu0 %4085  ;;  %v4414_v10 = vmul.f32 %v6772_v1, %v10283_v23  ;;  %v4413_v62 = vmul.f32 %v6772_v1, %v12694_v0 }
 0x607   : > { %5899 = vmatpush1.bf16.xpose.msra.mxu1 %v5898_v14  ;;  %6781 = vrcp.f32 %v4086_v38  ;;  %v12695_v14 = vld [vmem:[#allocation212_spill] sm:$0xff] }
 0x608   : > { %v5900_v37 = vpack.c.bf16 %v4414_v10, %v4412_v43  ;;  %6783 = vrcp.f32 %v4083_v7  ;;  %v5902_v23 = vpack.c.bf16 %v4413_v62, %v4411_v57  ;;  %v4477_v44 = vmul.f32 %v6766_v2, %v12695_v14  ;;  %v12697_v38 = vld [vmem:[#allocation56_spill] sm:$0xff]  ;;  %v12700_v2 = vld [vmem:[#allocation73_spill] sm:$0xff] }
 0x609   : > { %v6774_v26 = vpop.eup %6773  ;;  %5963 = vmatpush1.bf16.xpose.msra.mxu0 %v5962_v41  ;;  %396 = vperm.xlu1 %6084, %v342_v36   ;;  %v3987_v55 = vpop.xlane.xlu1 %3986  ;;  %v12699_v41 = vld [vmem:[#allocation225_spill] sm:$0xff] }
 0x60a   : > { %5965 = vmatprep.subr.bf16.mxu0 %v5964_v17  ;;  %6785 = vrcp.f32 %v3987_v55  ;;  %5901 = vmatprep.subr.bf16.mxu1 %v5900_v37  ;;  %v3990_v24 = vpop.xlane.xlu0 %3989  ;;  %v6776_v31 = vpop.eup %6775  ;;  %v4482_v63 = vmul.f32 %v6774_v26, %v10044_v60  ;;  %v5966_v10 = vpack.c.bf16 %v4477_v44, %v4475_v47  ;;  %v343_v60 = vld [vmem:[%s11106_s2 + $0x58] sm:$0xff] }
 0x60b   : > { %6787 = vrcp.f32 %v3990_v24  ;;  %v4480_v19 = vmul.f32 %v6776_v31, %v12697_v38  ;;  %v12701_v24 = vld [vmem:[#allocation167_spill] sm:$0xff] }
 0x60c   : > { %v6778_v27 = vpop.eup %6777 }
 0x60d   : > { %v6780_v1 = vpop.eup %6779  ;;  %v4095_v59 = vpop.xlane.xlu1 %4094  ;;  %v4416_v7 = vmul.f32 %v6778_v27, %v10334_v13  ;;  %v4415_v39 = vmul.f32 %v6778_v27, %v12699_v41  ;;  %v5968_v0 = vpack.c.bf16 %v4482_v63, %v4480_v19 }
 0x60e   : > { %v4092_v43 = vpop.xlane.xlu0 %4091  ;;  %v4418_v36 = vmul.f32 %v6780_v1, %v12698_v52  ;;  %v4417_v57 = vmul.f32 %v6780_v1, %v12700_v2  ;;  %v12702_v1 = vld [vmem:[#allocation210_spill] sm:$0xff]  ;;  %v12704_v52 = vld [vmem:[#allocation232_spill] sm:$0xff] }
 0x60f   : > { %5903 = vmatpush1.bf16.xpose.msra.mxu1 %v5902_v23  ;;  %6789 = vrcp.f32 %v4092_v43  ;;  %v4481_v23 = vmul.f32 %v6774_v26, %v12701_v24  ;;  %v4479_v9 = vmul.f32 %v6776_v31, %v12702_v1  ;;  %v12705_v26 = vld [vmem:[#allocation234_spill] sm:$0xff] }
 0x610   : > { %v5904_v20 = vpack.c.bf16 %v4418_v36, %v4416_v7  ;;  %6791 = vrcp.f32 %v4089_v3  ;;  %v5906_v55 = vpack.c.bf16 %v4417_v57, %v4415_v39  ;;  %v12703_v7 = vld [vmem:[#allocation60_spill] sm:$0xff]  ;;  %v12706_v57 = vld [vmem:[#allocation215_spill] sm:$0xff] }
 0x611   : > { %v6782_v62 = vpop.eup %6781  ;;  %5967 = vmatpush1.bf16.xpose.msra.mxu0 %v5966_v10  ;;  %v3993_v13 = vpop.xlane.xlu1 %3992  ;;  %v5970_v19 = vpack.c.bf16 %v4481_v23, %v4479_v9 }
 0x612   : > { %5969 = vmatprep.subr.bf16.mxu0 %v5968_v0  ;;  %6793 = vrcp.f32 %v3993_v13  ;;  %5905 = vmatprep.subr.bf16.mxu1 %v5904_v20  ;;  %v3996_v17 = vpop.xlane.xlu0 %3995  ;;  %v6784_v37 = vpop.eup %6783  ;;  %v4486_v44 = vmul.f32 %v6782_v62, %v10106_v56  ;;  %v4485_v0 = vmul.f32 %v6782_v62, %v12706_v57  ;;  %v12711_v57 = vld [vmem:[#allocation218_spill] sm:$0xff] }
 0x613   : > { %401 = vperm.xlu0 %6083, %v343_v60   ;;  %6795 = vrcp.f32 %v3996_v17  ;;  %v4484_v43 = vmul.f32 %v6784_v37, %v12703_v7 }
 0x614   : > { %v6786_v14 = vpop.eup %6785 }
 0x615   : > { %v6788_v27 = vpop.eup %6787  ;;  %v4101_v63 = vpop.xlane.xlu1 %4100  ;;  %v4420_v3 = vmul.f32 %v6786_v14, %v10390_v33  ;;  %v4419_v36 = vmul.f32 %v6786_v14, %v12704_v52  ;;  %v5972_v41 = vpack.c.bf16 %v4486_v44, %v4484_v43  ;;  %v12708_v14 = vld [vmem:[#allocation63_spill] sm:$0xff]  ;;  %v12709_v52 = vld [vmem:[#allocation68_spill] sm:$0xff] }
 0x616   : > { %v4098_v47 = vpop.xlane.xlu0 %4097  ;;  %v4422_v38 = vmul.f32 %v6788_v27, %v10408_v6  ;;  %v4421_v10 = vmul.f32 %v6788_v27, %v12705_v26 }
 0x617   : > { %5907 = vmatpush1.bf16.xpose.msra.mxu1 %v5906_v55  ;;  %6797 = vrcp.f32 %v4098_v47  ;;  %v12707_v55 = vld [vmem:[#allocation213_spill] sm:$0xff] }
 0x618   : > { %v5908_v56 = vpack.c.bf16 %v4422_v38, %v4420_v3  ;;  %6799 = vrcp.f32 %v4095_v59  ;;  %v5910_v6 = vpack.c.bf16 %v4421_v10, %v4419_v36  ;;  %v4483_v24 = vmul.f32 %v6784_v37, %v12707_v55 }
 0x619   : > { %v6790_v39 = vpop.eup %6789  ;;  %5971 = vmatpush1.bf16.xpose.msra.mxu0 %v5970_v19  ;;  %v3999_v31 = vpop.xlane.xlu1 %3998 }
 0x61a   : > { %5973 = vmatprep.subr.bf16.mxu0 %v5972_v41  ;;  %6801 = vrcp.f32 %v3999_v31  ;;  %5909 = vmatprep.subr.bf16.mxu1 %v5908_v56  ;;  %v4002_v33 = vpop.xlane.xlu0 %4001  ;;  %v6792_v2 = vpop.eup %6791  ;;  %v4490_v20 = vmul.f32 %v6790_v39, %v10174_v16  ;;  %v5974_v1 = vpack.c.bf16 %v4485_v0, %v4483_v24  ;;  %v4489_v43 = vmul.f32 %v6790_v39, %v10162_v11  ;;  %v12710_v11 = vld [vmem:[#allocation238_spill] sm:$0xff] }
 0x61b   : > { %6803 = vrcp.f32 %v4002_v33  ;;  %v4488_v44 = vmul.f32 %v6792_v2, %v12708_v14  ;;  %v4487_v36 = vmul.f32 %v6792_v2, %v12709_v52  ;;  %v12713_v24 = vld [vmem:[#allocation222_spill] sm:$0xff] }
 0x61c   : > { %v6794_v60 = vpop.eup %6793  ;;  %v12714_v14 = vld [vmem:[#allocation226_spill] sm:$0xff] }
 0x61d   : > { %v6796_v13 = vpop.eup %6795  ;;  %v4107_v17 = vpop.xlane.xlu1 %4106  ;;  %v4424_v59 = vmul.f32 %v6794_v60, %v10448_v49  ;;  %v4423_v9 = vmul.f32 %v6794_v60, %v10444_v4  ;;  %v5976_v3 = vpack.c.bf16 %v4490_v20, %v4488_v44  ;;  %v5978_v56 = vpack.c.bf16 %v4489_v43, %v4487_v36  ;;  %v12712_v20 = vld [vmem:[#allocation74_spill] sm:$0xff] }
 0x61e   : > { %v4104_v23 = vpop.xlane.xlu0 %4103  ;;  %v4426_v27 = vmul.f32 %v6796_v13, %v10459_v34  ;;  %v4425_v62 = vmul.f32 %v6796_v13, %v10452_v46 }
 0x61f   : > { %5911 = vmatpush1.bf16.xpose.msra.mxu1 %v5910_v6  ;;  %6805 = vrcp.f32 %v4104_v23 }
 0x620   : > { %v5912_v16 = vpack.c.bf16 %v4426_v27, %v4424_v59  ;;  %6807 = vrcp.f32 %v4101_v63  ;;  %v5914_v34 = vpack.c.bf16 %v4425_v62, %v4423_v9 }
 0x621   : > { %v6798_v47 = vpop.eup %6797  ;;  %5975 = vmatpush1.bf16.xpose.msra.mxu0 %v5974_v1  ;;  %v4005_v37 = vpop.xlane.xlu1 %4004 }
 0x622   : > { %5977 = vmatprep.subr.bf16.mxu0 %v5976_v3  ;;  %6809 = vrcp.f32 %v4005_v37  ;;  %5913 = vmatprep.subr.bf16.mxu1 %v5912_v16  ;;  %v4008_v49 = vpop.xlane.xlu0 %4007  ;;  %v6800_v7 = vpop.eup %6799  ;;  %v4494_v4 = vmul.f32 %v6798_v47, %v12556_v53  ;;  %v4493_v0 = vmul.f32 %v6798_v47, %v12711_v57  ;;  %v12721_v57 = vld [vmem:[#allocation230_spill] sm:$0xff] }
 0x623   : > { %6811 = vrcp.f32 %v4008_v49  ;;  %v4492_v10 = vmul.f32 %v6800_v7, %v10226_v8  ;;  %v4491_v59 = vmul.f32 %v6800_v7, %v12713_v24  ;;  %v12715_v7 = vld [vmem:[#allocation229_spill] sm:$0xff] }
 0x624   : > { %v6802_v38 = vpop.eup %6801 }
 0x625   : > { %v6804_v19 = vpop.eup %6803  ;;  %v4113_v46 = vpop.xlane.xlu1 %4112  ;;  %v4428_v63 = vmul.f32 %v6802_v38, %v10489_v58  ;;  %v4427_v31 = vmul.f32 %v6802_v38, %v10484_v29  ;;  %v5980_v33 = vpack.c.bf16 %v4494_v4, %v4492_v10  ;;  %v5982_v1 = vpack.c.bf16 %v4493_v0, %v4491_v59  ;;  %v12716_v4 = vld [vmem:[#allocation81_spill] sm:$0xff]  ;;  %v12717_v10 = vld [vmem:[#allocation239_spill] sm:$0xff] }
 0x626   : > { %v4110_v26 = vpop.xlane.xlu0 %4109  ;;  %v4430_v41 = vmul.f32 %v6804_v19, %v10499_v5  ;;  %v4429_v39 = vmul.f32 %v6804_v19, %v12710_v11 }
 0x627   : > { %5915 = vmatpush1.bf16.xpose.msra.mxu1 %v5914_v34  ;;  %6813 = vrcp.f32 %v4110_v26 }
 0x628   : > { %v5916_v53 = vpack.c.bf16 %v4430_v41, %v4428_v63  ;;  %6815 = vrcp.f32 %v4107_v17  ;;  %v5918_v5 = vpack.c.bf16 %v4429_v39, %v4427_v31 }
 0x629   : > { %v6806_v6 = vpop.eup %6805  ;;  %5979 = vmatpush1.bf16.xpose.msra.mxu0 %v5978_v56  ;;  %v4011_v2 = vpop.xlane.xlu1 %4010  ;;  %v12718_v56 = vld [vmem:[#allocation96_spill] sm:$0xff] }
 0x62a   : > { %5981 = vmatprep.subr.bf16.mxu0 %v5980_v33  ;;  %6817 = vrcp.f32 %v4011_v2  ;;  %5917 = vmatprep.subr.bf16.mxu1 %v5916_v53  ;;  %v4014_v58 = vpop.xlane.xlu0 %4013  ;;  %v6808_v8 = vpop.eup %6807  ;;  %v4498_v29 = vmul.f32 %v6806_v6, %v12712_v20  ;;  %v4497_v34 = vmul.f32 %v6806_v6, %v12715_v7 }
 0x62b   : > { %6819 = vrcp.f32 %v4014_v58  ;;  %v4496_v44 = vmul.f32 %v6808_v8, %v12714_v14  ;;  %v4495_v19 = vmul.f32 %v6808_v8, %v12716_v4  ;;  %v12720_v58 = vld [vmem:[#allocation220_spill] sm:$0xff]  ;;  %v12726_v14 = vld [vmem:[#allocation21_spill] sm:$0xff] }
 0x62c   : > { %v6810_v60 = vpop.eup %6809 }
 0x62d   : > { %v6812_v13 = vpop.eup %6811  ;;  %v4119_v55 = vpop.xlane.xlu1 %4118  ;;  %v4432_v17 = vmul.f32 %v6810_v60, %v10526_v15  ;;  %v4431_v9 = vmul.f32 %v6810_v60, %v10521_v18  ;;  %v5984_v3 = vpack.c.bf16 %v4498_v29, %v4496_v44  ;;  %v5986_v26 = vpack.c.bf16 %v4497_v34, %v4495_v19  ;;  %v12722_v60 = vld [vmem:[#allocation223_spill] sm:$0xff]  ;;  %v12723_v29 = vld [vmem:[#allocation72_spill] sm:$0xff] }
 0x62e   : > { %v4116_v23 = vpop.xlane.xlu0 %4115  ;;  %v4434_v27 = vmul.f32 %v6812_v13, %v10534_v54  ;;  %v4433_v62 = vmul.f32 %v6812_v13, %v10530_v12  ;;  %v12730_v34 = vld [vmem:[#allocation172_spill] sm:$0xff] }
 0x62f   : > { %5919 = vmatpush1.bf16.xpose.msra.mxu1 %v5918_v5  ;;  %6821 = vrcp.f32 %v4116_v23 }
 0x630   : > { %v5920_v16 = vpack.c.bf16 %v4434_v27, %v4432_v17  ;;  %6823 = vrcp.f32 %v4113_v46  ;;  %v5922_v54 = vpack.c.bf16 %v4433_v62, %v4431_v9  ;;  %v12725_v17 = vld [vmem:[#allocation231_spill] sm:$0xff] }
 0x631   : > { %v6814_v47 = vpop.eup %6813  ;;  %5983 = vmatpush1.bf16.xpose.msra.mxu0 %v5982_v1  ;;  %v4017_v37 = vpop.xlane.xlu1 %4016 }
 0x632   : > { %5985 = vmatprep.subr.bf16.mxu0 %v5984_v3  ;;  %6825 = vrcp.f32 %v4017_v37  ;;  %5921 = vmatprep.subr.bf16.mxu1 %v5920_v16  ;;  %v4020_v15 = vpop.xlane.xlu0 %4019  ;;  %v6816_v49 = vpop.eup %6815  ;;  %v4502_v18 = vmul.f32 %v6814_v47, %v10380_v40  ;;  %v12727_v16 = vld [vmem:[#allocation227_spill] sm:$0xff] }
 0x633   : > { %6827 = vrcp.f32 %v4020_v15  ;;  %v4500_v36 = vmul.f32 %v6816_v49, %v10366_v32  ;;  %v4499_v0 = vmul.f32 %v6816_v49, %v12721_v57  ;;  %v12728_v15 = vld [vmem:[#allocation18_spill] sm:$0xff] }
 0x634   : > { %v6818_v43 = vpop.eup %6817 }
 0x635   : > { %v6820_v38 = vpop.eup %6819  ;;  %v10857_v12 = vpop.xlane.xlu1 %4124  ;;  %v4436_v46 = vmul.f32 %v6818_v43, %v10538_v35  ;;  %v4435_v41 = vmul.f32 %v6818_v43, %v12717_v10  ;;  %v5988_v40 = vpack.c.bf16 %v4502_v18, %v4500_v36  ;;  %v12733_v36 = vld [vmem:[#allocation171_spill] sm:$0xff] }
 0x636   : > { %v4122_v52 = vpop.xlane.xlu0 %4121  ;;  %v4438_v63 = vmul.f32 %v6820_v38, %v10556_v51  ;;  %v4437_v31 = vmul.f32 %v6820_v38, %v12718_v56  ;;  %v12719_v51 = vld [vmem:[#allocation87_spill] sm:$0xff] }
 0x637   : > { %5923 = vmatpush1.bf16.xpose.msra.mxu1 %v5922_v54  ;;  %6829 = vrcp.f32 %v4122_v52  ;;  %v4501_v6 = vmul.f32 %v6814_v47, %v12719_v51  ;;  %v12729_v54 = vld [vmem:[#allocation82_spill] sm:$0xff]  ;;  %v12731_v38 = vld [vmem:[#allocation103_spill] sm:$0xff] }
 0x638   : > { %v5924_v11 = vpack.c.bf16 %v4438_v63, %v4436_v46  ;;  %6831 = vrcp.f32 %v4119_v55  ;;  %v5926_v53 = vpack.c.bf16 %v4437_v31, %v4435_v41  ;;  %v12724_v55 = vld [vmem:[#allocation22_spill] sm:$0xff] }
 0x639   : > { %v6822_v39 = vpop.eup %6821  ;;  %5987 = vmatpush1.bf16.xpose.msra.mxu0 %v5986_v26  ;;  %v4023_v33 = vpop.xlane.xlu1 %4022  ;;  %v5990_v59 = vpack.c.bf16 %v4501_v6, %v4499_v0  ;;  %v12732_v46 = vld [vmem:[#allocation246_spill] sm:$0xff]  ;;  %v12734_v26 = vld [vmem:[#allocation245_spill] sm:$0xff]  ;;  %v12737_v6 = vld [vmem:[#allocation75_spill] sm:$0xff] }
 0x63a   : > { %5989 = vmatprep.subr.bf16.mxu0 %v5988_v40  ;;  %6833 = vrcp.f32 %v4023_v33  ;;  %5925 = vmatprep.subr.bf16.mxu1 %v5924_v11  ;;  %v6824_v35 = vpop.eup %6823  ;;  %v4506_v8 = vmul.f32 %v6822_v39, %v12720_v58  ;;  %v4505_v47 = vmul.f32 %v6822_v39, %v12727_v16  ;;  %v12735_v40 = vld [vmem:[#allocation235_spill] sm:$0xff]  ;;  %v12740_v0 = vld [vmem:[#allocation88_spill] sm:$0xff] }
 0x63b   : > { %v4026_v32 = vpop.xlane.xlu0 %4025  ;;  %v4504_v13 = vmul.f32 %v6824_v35, %v12723_v29  ;;  %v4503_v7 = vmul.f32 %v6824_v35, %v12729_v54  ;;  %v12736_v39 = vld [vmem:[#allocation247_spill] sm:$0xff] }
 0x63c   : > { %v6826_v2 = vpop.eup %6825  ;;  %6835 = vrcp.f32 %v4026_v32  ;;  %v12738_v58 = vld [vmem:[#allocation79_spill] sm:$0xff] }
 0x63d   : > { %v6828_v5 = vpop.eup %6827  ;;  %v4440_v20 = vmul.f32 %v6826_v2, %v12722_v60  ;;  %v4439_v23 = vmul.f32 %v6826_v2, %v12725_v17  ;;  %v5992_v27 = vpack.c.bf16 %v4506_v8, %v4504_v13  ;;  %v5994_v19 = vpack.c.bf16 %v4505_v47, %v4503_v7  ;;  %v12743_v47 = vld [vmem:[#allocation89_spill] sm:$0xff] }
 0x63e   : > { %v4442_v24 = vmul.f32 %v6828_v5, %v12724_v55  ;;  %v4441_v44 = vmul.f32 %v6828_v5, %v12726_v14  ;;  %6837 = vrcp.f32 %v10857_v12  ;;  %v12739_v5 = vld [vmem:[#allocation85_spill] sm:$0xff]  ;;  %v12741_v14 = vld [vmem:[#allocation15_spill] sm:$0xff] }
 0x63f   : > { %5927 = vmatpush1.bf16.xpose.msra.mxu1 %v5926_v53 }
 0x640   : > { %v5928_v1 = vpack.c.bf16 %v4442_v24, %v4440_v20  ;;  %v5930_v3 = vpack.c.bf16 %v4441_v44, %v4439_v23 }
 0x641   : > { %v6830_v9 = vpop.eup %6829  ;;  %5991 = vmatpush1.bf16.xpose.msra.mxu0 %v5990_v59 }
 0x642   : > { %5993 = vmatprep.subr.bf16.mxu0 %v5992_v27  ;;  %5929 = vmatprep.subr.bf16.mxu1 %v5928_v1  ;;  %v6832_v62 = vpop.eup %6831  ;;  %v4510_v49 = vmul.f32 %v6830_v9, %v12728_v15  ;;  %v4509_v11 = vmul.f32 %v6830_v9, %v12735_v40 }
 0x643   : > { %v4508_v4 = vmul.f32 %v6832_v62, %v12731_v38  ;;  %v4507_v33 = vmul.f32 %v6832_v62, %v12736_v39  ;;  %v12742_v62 = vld [vmem:[#allocation80_spill] sm:$0xff] }
 0x644   : > { %v6834_v37 = vpop.eup %6833 }
 0x645   : > { %v4444_v43 = vmul.f32 %v6834_v37, %v12730_v34  ;;  %v4443_v63 = vmul.f32 %v6834_v37, %v12733_v36  ;;  %v5996_v41 = vpack.c.bf16 %v4510_v49, %v4508_v4  ;;  %v5998_v35 = vpack.c.bf16 %v4509_v11, %v4507_v33 }
 0x646   : > { %v6836_v18 = vpop.eup %6835 }
 0x647   : > { %5931 = vmatpush1.bf16.xpose.msra.mxu1 %v5930_v3  ;;  %v4446_v52 = vmul.f32 %v6836_v18, %v12732_v46  ;;  %v4445_v10 = vmul.f32 %v6836_v18, %v12734_v26 }
 0x648   : > { %v6838_v53 = vpop.eup %6837 }
 0x649   : > { %5995 = vmatpush1.bf16.xpose.msra.mxu0 %v5994_v19  ;;  %v5932_v56 = vpack.c.bf16 %v4446_v52, %v4444_v43  ;;  %v5934_v31 = vpack.c.bf16 %v4445_v10, %v4443_v63  ;;  %v4512_v2 = vmul.f32 %v6838_v53, %v12737_v6  ;;  %v4511_v57 = vmul.f32 %v6838_v53, %v12739_v5  ;;  %v12744_v19 = vld [vmem:[#allocation17_spill] sm:$0xff]  ;;  %v4806_v6 = vld [vmem:[%s11108_s4 + $0x18] sm:$0xff] }
 0x64a   : > { %5997 = vmatprep.subr.bf16.mxu0 %v5996_v41 }
 0x64b   : > { %5933 = vmatprep.subr.bf16.mxu1 %v5932_v56  ;;  %v12746_v56 = vld [vmem:[#allocation14_spill] sm:$0xff] }
 0x64f   : > { %5935 = vmatpush1.bf16.xpose.msra.mxu1 %v5934_v31 }
 0x651   : > { %5999 = vmatpush1.bf16.xpose.msra.mxu0 %v5998_v35  ;;  %v4803_v35 = vld [vmem:[%s11108_s4] sm:$0xff] }
 0x66a   : > { %v4128_v32 = vpop.xlane.xlu0 %4127 }
 0x66b   : > { %6839 = vrcp.f32 %v4128_v32  ;;  %v4804_v32 = vld [vmem:[%s11108_s4 + $0x8] sm:$0xff] }
 0x66c   : > { %v6008_v53 = vpack.c.bf16 %v4804_v32, %v4803_v35 }
 0x66e   : > { %v4032_v13 = vpop.xlane.xlu0 %4031 }
 0x66f   : > { %6841 = vrcp.f32 %v4032_v13 }
 0x675   : > { %v6840_v51 = vpop.eup %6839 }
 0x676   : > { %v4514_v8 = vmul.f32 %v6840_v51, %v12738_v58  ;;  %v4513_v60 = vmul.f32 %v6840_v51, %v12740_v0  ;;  %v4805_v51 = vld [vmem:[%s11108_s4 + $0x10] sm:$0xff] }
 0x678   : > { %v6000_v20 = vpack.c.bf16 %v4514_v8, %v4512_v2  ;;  %v6002_v29 = vpack.c.bf16 %v4513_v60, %v4511_v57  ;;  %v6012_v2 = vpack.c.bf16 %v4806_v6, %v4805_v51 }
 0x679   : > { %v6842_v23 = vpop.eup %6841 }
 0x67a   : > { %6001 = vmatprep.subr.bf16.mxu0 %v6000_v20  ;;  %v4450_v3 = vmul.f32 %v6842_v23, %v12742_v62  ;;  %v4449_v37 = vmul.f32 %v6842_v23, %v12743_v47 }
 0x67b   : > { %6003 = vmatpush1.bf16.xpose.msra.mxu0 %v6002_v29 }
 0x67d   : > { %v4131_v55 = vpop.xlane.xlu1 %4130 }
 0x681   : > { %v4029_v12 = vpop.xlane.xlu1 %4028 }
 0x682   : > { %6843 = vrcp.f32 %v4029_v12 }
 0x683   : > { %6845 = vrcp.f32 %v4131_v55 }
 0x685   : > { %v4035_v24 = vpop.xlane.xlu1 %4034 }
 0x686   : > { %v4134_v59 = vpop.xlane.xlu0 %4133 }
 0x687   : > { %6847 = vrcp.f32 %v4134_v59 }
 0x688   : > { %6849 = vrcp.f32 %v4035_v24 }
 0x689   : > { %v397_v17 = vpop.permute.xlu1 %396 }
 0x68a   : > { %v666_v44 = vadd.f32 %v12741_v14, %v397_v17  ;;  %v4038_v27 = vpop.xlane.xlu0 %4037  ;;  %v664_v31 = vadd.f32 %v12746_v56, %v397_v17 }
 0x68b   : > { %6851 = vrcp.f32 %v4038_v27 }
 0x68c   : > { %v6844_v1 = vpop.eup %6843  ;;  %4725 = vmatprep.mubr.f32.mxu1 %v666_v44 }
 0x68d   : > { %v4448_v9 = vmul.f32 %v6844_v1, %v10722_v50  ;;  %v4447_v16 = vmul.f32 %v6844_v1, %v10720_v45  ;;  %v6846_v15 = vpop.eup %6845 }
 0x68e   : > { %v4516_v43 = vmul.f32 %v6846_v15, %v10748_v28  ;;  %v4515_v38 = vmul.f32 %v6846_v15, %v10743_v61 }
 0x68f   : > { %v5936_v49 = vpack.c.bf16 %v4450_v3, %v4448_v9  ;;  %v5938_v54 = vpack.c.bf16 %v4449_v37, %v4447_v16 }
 0x691   : > { %v6848_v7 = vpop.eup %6847  ;;  %5937 = vmatprep.subr.bf16.mxu1 %v5936_v49 }
 0x692   : > { %v402_v34 = vpop.permute.xlu0 %401  ;;  %5939 = vmatpush1.bf16.xpose.msra.mxu1 %v5938_v54  ;;  %v4518_v18 = vmul.f32 %v6848_v7, %v10775_v30  ;;  %v4517_v50 = vmul.f32 %v6848_v7, %v10773_v25  ;;  %v6850_v4 = vpop.eup %6849  ;;  %v12745_v25 = vld [vmem:[#allocation16_spill] sm:$0xff] }
 0x693   : > { %v672_v45 = vadd.f32 %v12744_v19, %v402_v34  ;;  %v4452_v63 = vmul.f32 %v6850_v4, %v10760_v42  ;;  %v4451_v28 = vmul.f32 %v6850_v4, %v10756_v21  ;;  %v670_v41 = vadd.f32 %v12745_v25, %v402_v34 }
 0x694   : > { %v6004_v46 = vpack.c.bf16 %v4518_v18, %v4516_v43  ;;  %v6006_v52 = vpack.c.bf16 %v4517_v50, %v4515_v38  ;;  %v10951_v38 = vld [vmem:[%s11109_s5] ss:$0 sm:$0xff] }
 0x695   : > { %v6852_v36 = vpop.eup %6851  ;;  %4796 = vmatprep.mubr.f32.mxu0 %v672_v45 }
 0x696   : > { %6005 = vmatprep.subr.bf16.mxu0 %v6004_v46  ;;  %v4454_v26 = vmul.f32 %v6852_v36, %v10785_v48  ;;  %v4453_v30 = vmul.f32 %v6852_v36, %v10766_v22 }
 0x697   : > { %6007 = vmatpush1.bf16.xpose.msra.mxu0 %v6006_v52 }
 0x698   : > { %v5940_v61 = vpack.c.bf16 %v4454_v26, %v4452_v63  ;;  %v5942_v10 = vpack.c.bf16 %v4453_v30, %v4451_v28 }
 0x69a   : > { %5941 = vmatprep.subr.bf16.mxu1 %v5940_v61 }
 0x69b   : > { %5943 = vmatpush1.bf16.xpose.msra.mxu1 %v5942_v10 }
 0x69c   : > { %6009 = vmatprep.subr.bf16.mxu1 %v6008_v53 }
 0x69e   : > { %4797 = vmatmul.mubr.f32.vlgmr.msra.gmra.mrb[144].mxu0 %v670_v41 }
 0x6a2   : > { %4726 = vmatmul.mubr.f32.vlgmr.msra.gmra.mrb[140].mxu1 %v664_v31 }
 0x6a3   : > { %6011 = vmatpush3.bf16.msra.mxu1 %v6008_v53 }
 0x6a4   : > { %6013 = vmatprep.subr.bf16.mxu1 %v6012_v2 }
 0x6a5   : > { %v4585_v40 = vpop.f32.mrb[138].mxu1 }
 0x6a6   : > { %4814 = vxpose.xlu1.b32.start [1/4] (short) %v4585_v40, 128  ;;  %v4587_v42 = vpop.f32.mrb[139].mxu1 }
 0x6a7   : > { %4846 = vxpose.xlu0.b32.start [1/4] (short) %v4587_v42, 128  ;;  %6015 = vmatpush3.bf16.msra.mxu1 %v6012_v2 }
 0x6bb   : > { %v4656_v48 = vpop.f32.mrb[142].mxu0 }
 0x6bc   : > { %4815 = vxpose.xlu1.b32.cont [2/4] (short) %v4656_v48, 128  ;;  %v4658_v21 = vpop.f32.mrb[143].mxu0 }
 0x6bd   : > { %4847 = vxpose.xlu0.b32.cont [2/4] (short) %v4658_v21, 128 }
 0x771   : > { %v4798_v22 = vpop.f32.mrb[144].mxu0 }
 0x772   : > { %v4800_v11 = vpop.f32.mrb[145].mxu0 }
 0x775   : > { %v4727_v39 = vpop.f32.mrb[140].mxu1 }
 0x776   : > { %4816 = vxpose.xlu1.b32.cont [3/4] (short) %v4727_v39, 128  ;;  %v4729_v33 = vpop.f32.mrb[141].mxu1 }
 0x777   : > { %4848 = vxpose.xlu0.b32.cont [3/4] (short) %v4729_v33, 128 }
 0x77a   : > { %4817 = vxpose.xlu1.b32.end [4/4] (short) %v4798_v22, 128 }
 0x77b   : > { %4849 = vxpose.xlu0.b32.end [4/4] (short) %v4800_v11, 128 }
 0x7ee   : > { %v4830_v58 = vpop.trf.xlu1 }
 0x7ef   : > { %5656 = vmatprep.mubr.msk.f32.mxu1 %vm404_vm0, %v4830_v58  ;;  %v4862_v8 = vpop.trf.xlu0 }
 0x7f2   : > { %v4831_v5 = vpop.trf.xlu1 }
 0x7f3   : > { %5657 = vmatmul.mubr.msk.f32.vlgmr.msra.gmra.mrb[142].mxu1 %vm404_vm0, %v4831_v5  ;;  %v4863_v57 = vpop.trf.xlu0 }
 0x7f6   : > { %v4832_v0 = vpop.trf.xlu1 }
 0x7f7   : > { %5659 = vmatprep.mubr.msk.f32.mxu1 %vm404_vm0, %v4832_v0  ;;  %v4864_v20 = vpop.trf.xlu0 }
 0x7fa   : > { %v4833_v60 = vpop.trf.xlu1 }
 0x7fb   : > { %5660 = vmatmul.mubr.msk.f32.gmra.mrb[144].mxu1 %vm404_vm0, %v4833_v60  ;;  %v4865_v13 = vpop.trf.xlu0 }
 0x7fe   : > { %v4834_v29 = vpop.trf.xlu1 }
 0x7ff   : > { %5662 = vmatprep.mubr.msk.f32.mxu1 %vm404_vm0, %v4834_v29  ;;  %v4866_v24 = vpop.trf.xlu0 }
 0x802   : > { %v4835_v55 = vpop.trf.xlu1 }
 0x803   : > { %5663 = vmatmul.mubr.msk.f32.gmra.mrb[146].mxu1 %vm404_vm0, %v4835_v55  ;;  %v4867_v17 = vpop.trf.xlu0 }
 0x806   : > { %v4836_v12 = vpop.trf.xlu1 }
 0x807   : > { %5665 = vmatprep.mubr.msk.f32.mxu1 %vm404_vm0, %v4836_v12  ;;  %v4868_v44 = vpop.trf.xlu0 }
 0x80a   : > { %v4837_v59 = vpop.trf.xlu1 }
 0x80b   : > { %5666 = vmatmul.mubr.msk.f32.gmra.mrb[148].mxu1 %vm404_vm0, %v4837_v59  ;;  %v4869_v1 = vpop.trf.xlu0 }
 0x80e   : > { %v4838_v23 = vpop.trf.xlu1 }
 0x80f   : > { %5668 = vmatprep.mubr.msk.f32.mxu1 %vm404_vm0, %v4838_v23  ;;  %v4870_v3 = vpop.trf.xlu0 }
 0x812   : > { %v4839_v14 = vpop.trf.xlu1 }
 0x813   : > { %5669 = vmatmul.mubr.msk.f32.gmra.mrb[150].mxu1 %vm404_vm0, %v4839_v14  ;;  %v4871_v47 = vpop.trf.xlu0 }
 0x816   : > { %v4840_v27 = vpop.trf.xlu1 }
 0x817   : > { %5671 = vmatprep.mubr.msk.f32.mxu1 %vm404_vm0, %v4840_v27  ;;  %v4872_v49 = vpop.trf.xlu0 }
 0x81a   : > { %v4841_v9 = vpop.trf.xlu1 }
 0x81b   : > { %5672 = vmatmul.mubr.msk.f32.gmra.mrb[152].mxu1 %vm404_vm0, %v4841_v9  ;;  %v4873_v54 = vpop.trf.xlu0 }
 0x81e   : > { %v4842_v62 = vpop.trf.xlu1 }
 0x81f   : > { %5674 = vmatprep.mubr.msk.f32.mxu1 %vm404_vm0, %v4842_v62  ;;  %v4874_v7 = vpop.trf.xlu0 }
 0x822   : > { %v4843_v16 = vpop.trf.xlu1 }
 0x823   : > { %5675 = vmatmul.mubr.msk.f32.gmra.mrb[154].mxu1 %vm404_vm0, %v4843_v16  ;;  %v4875_v34 = vpop.trf.xlu0 }
 0x826   : > { %v4844_v37 = vpop.trf.xlu1 }
 0x827   : > { %5677 = vmatprep.mubr.msk.f32.mxu1 %vm404_vm0, %v4844_v37  ;;  %v4876_v43 = vpop.trf.xlu0 }
 0x82a   : > { %v4845_v15 = vpop.trf.xlu1 }
 0x82b   : > { %5678 = vmatmul.mubr.msk.f32.gmra.mrb[156].mxu1 %vm404_vm0, %v4845_v15  ;;  %v4877_v18 = vpop.trf.xlu0 }
 0x82c   : > { %5680 = vmatprep.mubr.msk.f32.mxu1 %vm404_vm0, %v4862_v8 }
 0x82f   : > { %5681 = vmatmul.mubr.msk.f32.gmra.mrb[158].mxu1 %vm404_vm0, %v4863_v57 }
 0x830   : > { %5683 = vmatprep.mubr.msk.f32.mxu1 %vm404_vm0, %v4864_v20 }
 0x833   : > { %5684 = vmatmul.mubr.msk.f32.gmra.mrb[160].mxu1 %vm404_vm0, %v4865_v13 }
 0x834   : > { %5686 = vmatprep.mubr.msk.f32.mxu1 %vm404_vm0, %v4866_v24 }
 0x837   : > { %5687 = vmatmul.mubr.msk.f32.gmra.mrb[162].mxu1 %vm404_vm0, %v4867_v17 }
 0x838   : > { %5689 = vmatprep.mubr.msk.f32.mxu1 %vm404_vm0, %v4868_v44 }
 0x83b   : > { %5690 = vmatmul.mubr.msk.f32.gmra.mrb[164].mxu1 %vm404_vm0, %v4869_v1 }
 0x83c   : > { %5692 = vmatprep.mubr.msk.f32.mxu1 %vm404_vm0, %v4870_v3 }
 0x83f   : > { %5693 = vmatmul.mubr.msk.f32.gmra.mrb[166].mxu1 %vm404_vm0, %v4871_v47 }
 0x840   : > { %5695 = vmatprep.mubr.msk.f32.mxu1 %vm404_vm0, %v4872_v49 }
 0x843   : > { %5696 = vmatmul.mubr.msk.f32.gmra.mrb[168].mxu1 %vm404_vm0, %v4873_v54 }
 0x844   : > { %5698 = vmatprep.mubr.msk.f32.mxu1 %vm404_vm0, %v4874_v7 }
 0x847   : > { %5699 = vmatmul.mubr.msk.f32.gmra.mrb[170].mxu1 %vm404_vm0, %v4875_v34 }
 0x848   : > { %5701 = vmatprep.mubr.msk.f32.mxu1 %vm404_vm0, %v4876_v43 }
 0x84b   : > { %5702 = vmatmul.mubr.msk.f32.gmra.mrb[172].mxu1 %vm404_vm0, %v4877_v18 }
 0x8c6   : > { %v5658_v50 = vpop.f32.mrb[142].mxu1 }
 0x8c7   : > { %v5046_v4 = vadd.f32 %v5658_v50, %v10951_v38  ;;  %v5040_v19 = vpop.f32.mrb[143].mxu1 }
 0x8c8   : > { %v5041_v45 = vadd.f32 %v10951_v38, %v5040_v19 }
 0x8c9   : > { %5200 = vst.msk [vmem:[%s10957_s18 + $0x8] sm:$0xff] %vm404_vm0, %v5046_v4 }
 0x8ca   : > { %5199 = vst.msk [vmem:[%s10957_s18] sm:$0xff] %vm404_vm0, %v5041_v45 }
 0x8ce   : > { %v5661_v46 = vpop.f32.mrb[144].mxu1 }
 0x8cf   : > { %v5056_v52 = vadd.f32 %v5661_v46, %v10951_v38  ;;  %v5050_v36 = vpop.f32.mrb[145].mxu1 }
 0x8d0   : > { %v5051_v63 = vadd.f32 %v10951_v38, %v5050_v36 }
 0x8d1   : > { %5202 = vst.msk [vmem:[%s10957_s18 + $0x18] sm:$0xff] %vm404_vm0, %v5056_v52 }
 0x8d2   : > { %5201 = vst.msk [vmem:[%s10957_s18 + $0x10] sm:$0xff] %vm404_vm0, %v5051_v63 }
 0x8d6   : > { %v5664_v26 = vpop.f32.mrb[146].mxu1 }
 0x8d7   : > { %v5066_v28 = vadd.f32 %v5664_v26, %v10951_v38  ;;  %v5060_v30 = vpop.f32.mrb[147].mxu1 }
 0x8d8   : > { %v5061_v61 = vadd.f32 %v10951_v38, %v5060_v30 }
 0x8d9   : > { %5204 = vst.msk [vmem:[%s10957_s18 + $0x28] sm:$0xff] %vm404_vm0, %v5066_v28 }
 0x8da   : > { %5203 = vst.msk [vmem:[%s10957_s18 + $0x20] sm:$0xff] %vm404_vm0, %v5061_v61 }
 0x8de   : > { %v5667_v10 = vpop.f32.mrb[148].mxu1 }
 0x8df   : > { %v5076_v25 = vadd.f32 %v5667_v10, %v10951_v38  ;;  %v5070_v41 = vpop.f32.mrb[149].mxu1 }
 0x8e0   : > { %v5071_v56 = vadd.f32 %v10951_v38, %v5070_v41 }
 0x8e1   : > { %5206 = vst.msk [vmem:[%s10957_s18 + $0x38] sm:$0xff] %vm404_vm0, %v5076_v25 }
 0x8e2   : > { %5205 = vst.msk [vmem:[%s10957_s18 + $0x30] sm:$0xff] %vm404_vm0, %v5071_v56 }
 0x8e6   : > { %v5670_v31 = vpop.f32.mrb[150].mxu1 }
 0x8e7   : > { %v5086_v40 = vadd.f32 %v5670_v31, %v10951_v38  ;;  %v5080_v42 = vpop.f32.mrb[151].mxu1 }
 0x8e8   : > { %v5081_v48 = vadd.f32 %v10951_v38, %v5080_v42 }
 0x8e9   : > { %5208 = vst.msk [vmem:[%s10957_s18 + $0x48] sm:$0xff] %vm404_vm0, %v5086_v40 }
 0x8ea   : > { %5207 = vst.msk [vmem:[%s10957_s18 + $0x40] sm:$0xff] %vm404_vm0, %v5081_v48 }
 0x8ee   : > { %v5673_v21 = vpop.f32.mrb[152].mxu1 }
 0x8ef   : > { %v5096_v22 = vadd.f32 %v5673_v21, %v10951_v38  ;;  %v5090_v11 = vpop.f32.mrb[153].mxu1 }
 0x8f0   : > { %v5091_v39 = vadd.f32 %v10951_v38, %v5090_v11 }
 0x8f1   : > { %5210 = vst.msk [vmem:[%s10957_s18 + $0x58] sm:$0xff] %vm404_vm0, %v5096_v22 }
 0x8f2   : > { %5209 = vst.msk [vmem:[%s10957_s18 + $0x50] sm:$0xff] %vm404_vm0, %v5091_v39 }
 0x8f6   : > { %v5676_v33 = vpop.f32.mrb[154].mxu1 }
 0x8f7   : > { %v5106_v35 = vadd.f32 %v5676_v33, %v10951_v38  ;;  %v5100_v32 = vpop.f32.mrb[155].mxu1 }
 0x8f8   : > { %v5101_v53 = vadd.f32 %v10951_v38, %v5100_v32 }
 0x8f9   : > { %5212 = vst.msk [vmem:[%s10957_s18 + $0x68] sm:$0xff] %vm404_vm0, %v5106_v35 }
 0x8fa   : > { %5211 = vst.msk [vmem:[%s10957_s18 + $0x60] sm:$0xff] %vm404_vm0, %v5101_v53 }
 0x8fe   : > { %v5679_v51 = vpop.f32.mrb[156].mxu1 }
 0x8ff   : > { %v5116_v6 = vadd.f32 %v5679_v51, %v10951_v38  ;;  %v5110_v2 = vpop.f32.mrb[157].mxu1 }
 0x900   : > { %v5111_v58 = vadd.f32 %v10951_v38, %v5110_v2 }
 0x901   : > { %5214 = vst.msk [vmem:[%s10957_s18 + $0x78] sm:$0xff] %vm404_vm0, %v5116_v6 }
 0x902   : > { %5213 = vst.msk [vmem:[%s10957_s18 + $0x70] sm:$0xff] %vm404_vm0, %v5111_v58  ;;  %v5682_v8 = vpop.f32.mrb[158].mxu1 }
 0x903   : > { %v5126_v5 = vadd.f32 %v5682_v8, %v10951_v38  ;;  %v5120_v57 = vpop.f32.mrb[159].mxu1 }
 0x904   : > { %v5121_v0 = vadd.f32 %v10951_v38, %v5120_v57 }
 0x905   : > { %5216 = vst.msk [vmem:[%s10957_s18 + $0x88] sm:$0xff] %vm404_vm0, %v5126_v5 }
 0x906   : > { %5215 = vst.msk [vmem:[%s10957_s18 + $0x80] sm:$0xff] %vm404_vm0, %v5121_v0  ;;  %v5685_v60 = vpop.f32.mrb[160].mxu1 }
 0x907   : > { %v5136_v20 = vadd.f32 %v5685_v60, %v10951_v38  ;;  %v5130_v29 = vpop.f32.mrb[161].mxu1 }
 0x908   : > { %v5131_v13 = vadd.f32 %v10951_v38, %v5130_v29 }
 0x909   : > { %5218 = vst.msk [vmem:[%s10957_s18 + $0x98] sm:$0xff] %vm404_vm0, %v5136_v20 }
 0x90a   : > { %5217 = vst.msk [vmem:[%s10957_s18 + $0x90] sm:$0xff] %vm404_vm0, %v5131_v13  ;;  %v5688_v55 = vpop.f32.mrb[162].mxu1 }
 0x90b   : > { %v5146_v12 = vadd.f32 %v5688_v55, %v10951_v38  ;;  %v5140_v24 = vpop.f32.mrb[163].mxu1 }
 0x90c   : > { %v5141_v59 = vadd.f32 %v10951_v38, %v5140_v24 }
 0x90d   : > { %5220 = vst.msk [vmem:[%s10957_s18 + $0xa8] sm:$0xff] %vm404_vm0, %v5146_v12 }
 0x90e   : > { %5219 = vst.msk [vmem:[%s10957_s18 + $0xa0] sm:$0xff] %vm404_vm0, %v5141_v59  ;;  %v5691_v17 = vpop.f32.mrb[164].mxu1 }
 0x90f   : > { %v5156_v23 = vadd.f32 %v5691_v17, %v10951_v38  ;;  %v5150_v14 = vpop.f32.mrb[165].mxu1 }
 0x910   : > { %v5151_v44 = vadd.f32 %v10951_v38, %v5150_v14 }
 0x911   : > { %5222 = vst.msk [vmem:[%s10957_s18 + $0xb8] sm:$0xff] %vm404_vm0, %v5156_v23 }
 0x912   : > { %5221 = vst.msk [vmem:[%s10957_s18 + $0xb0] sm:$0xff] %vm404_vm0, %v5151_v44  ;;  %v5694_v27 = vpop.f32.mrb[166].mxu1 }
 0x913   : > { %v5166_v1 = vadd.f32 %v5694_v27, %v10951_v38  ;;  %v5160_v9 = vpop.f32.mrb[167].mxu1 }
 0x914   : > { %v5161_v62 = vadd.f32 %v10951_v38, %v5160_v9 }
 0x915   : > { %5224 = vst.msk [vmem:[%s10957_s18 + $0xc8] sm:$0xff] %vm404_vm0, %v5166_v1 }
 0x916   : > { %5223 = vst.msk [vmem:[%s10957_s18 + $0xc0] sm:$0xff] %vm404_vm0, %v5161_v62  ;;  %v5697_v3 = vpop.f32.mrb[168].mxu1 }
 0x917   : > { %v5176_v16 = vadd.f32 %v5697_v3, %v10951_v38  ;;  %v5170_v47 = vpop.f32.mrb[169].mxu1 }
 0x918   : > { %v5171_v37 = vadd.f32 %v10951_v38, %v5170_v47 }
 0x919   : > { %5226 = vst.msk [vmem:[%s10957_s18 + $0xd8] sm:$0xff] %vm404_vm0, %v5176_v16 }
 0x91a   : > { %5225 = vst.msk [vmem:[%s10957_s18 + $0xd0] sm:$0xff] %vm404_vm0, %v5171_v37  ;;  %v5700_v15 = vpop.f32.mrb[170].mxu1 }
 0x91b   : > { %v5186_v49 = vadd.f32 %v5700_v15, %v10951_v38  ;;  %v5180_v54 = vpop.f32.mrb[171].mxu1 }
 0x91c   : > { %v5181_v7 = vadd.f32 %v10951_v38, %v5180_v54 }
 0x91d   : > { %5228 = vst.msk [vmem:[%s10957_s18 + $0xe8] sm:$0xff] %vm404_vm0, %v5186_v49 }
 0x91e   : > { %5227 = vst.msk [vmem:[%s10957_s18 + $0xe0] sm:$0xff] %vm404_vm0, %v5181_v7  ;;  %v5703_v34 = vpop.f32.mrb[172].mxu1 }
 0x91f   : > { %v5196_v43 = vadd.f32 %v5703_v34, %v10951_v38  ;;  %v5190_v18 = vpop.f32.mrb[173].mxu1 }
 0x920   : > { %v5191_v50 = vadd.f32 %v10951_v38, %v5190_v18 }
 0x921   : > { %5230 = vst.msk [vmem:[%s10957_s18 + $0xf8] sm:$0xff] %vm404_vm0, %v5196_v43 }
 0x922   : > { %5229 = vst.msk [vmem:[%s10957_s18 + $0xf0] sm:$0xff] %vm404_vm0, %v5191_v50 }
 0x923   : > { %6924 = shalt.err (!%p6921_p7)
}
 0x924   : > { %s6925_s10 = scalar_lea.hbm %s11053_s12, 4096  ;;  %s6929_s15 = scalar_lea.hbm %s11110_s6, 8192 }
 0x925   : > { %p6926_p9 = scmp.ne.s32.totalorder %s11053_s12, %s6925_s10  ;;  %p6930_p5 = scmp.lt.u32.totalorder %s11053_s12, %s11110_s6 }
 0x926   : > { %p6931_p11 = scmp.lt.u32.totalorder %s6929_s15, %s6925_s10  ;;  %p6933_p4 = scmp.lt.u32.totalorder %s6925_s10, %s11053_s12 }
 0x927   : > { %p6927_p2 = pnand %p6926_p9, %p7120_p12 }
 0x928   : > { %p6932_p1 = por %p6931_p11, %p6930_p5 }
 0x929   : > { %p6928_p0 = pneg %p6927_p2 }
 0x92a   : > { %p6934_p6 = por %p6933_p4, %p6932_p1 }
 0x92c   : > { %p6935_p8 = pnand %p6934_p6, %p6928_p0 }
 0x92e   : > { %6938 = shalt.err (!%p6935_p8)
}
 0x92f   : > { %s6992_s30 = smov 128   ;;  %s6993_s26 = smov 8  }
 0x930   : > { %6024 = dma.vmem_to_hbm [thread:$0]  (%p7120_p12), %s11055_s7, 4096, %s11053_s12, %s5232_s25, %s6992_s30, %s6992_s30, %s6993_s26  }
 0x931 PF: > { %s5261_s8 = sand.u32 1, %s6969_s21   ;;  %p12747_p10 = scmp.ne.s32.totalorder %s11590_s28, 0 }
 0x932   : > { %p12748_p13 = scmp.ge.s32.totalorder %s6981_s24, 2  ;;  %s5262_s27 = scalar_lea.sflag [#allocation4], %s5261_s8 }
 0x934   : > { %p6035_p3 = pnand %p12748_p13, %p12747_p10 }
 0x936   : > { %6964 = dma.done.wait (!%p6035_p3), %s5262_s27, 4096  }
 0x937   : > { %6966 = vsyncadd (!%p6035_p3), %s5262_s27, 4294963200  ;;  %p20_p7 = scmp.ge.s32.totalorder %s7085_s9, 4   ;;  %s12749_s21 = smov %s6973_s22 }
 0x938   : > { %s12750_s22 = smov %s6977_s23  ;;  %s12751_s23 = smov %s7116_s13 }
 0x939   : > { %s12752_s24 = smov %s7085_s9  ;;  %22 = sbr.rel (!%p20_p7) target bundleno = 6 (0x6), region = 93 }
 0x940   :  { %5267 = vsyncpa [#allocation3], 1 }
 0x941   :  { %5269 = vsyncpa [#allocation3 + $0x1], 1 }
 0x942   :  { %5270 = vsyncpa [#allocation6], 1 }
 0x943   :  { %5271 = vsyncpa [#allocation4], 1 }
 0x944   :  { %5273 = vsyncpa [#allocation4 + $0x1], 1 }

</bundles_post_ra>
